<compile_context>
chip_gen: v5e
topology: v5e:2x2
jax: 0.10.0
libtpu: 0.0.40
codegen_flags: <defaults>
</compile_context>

<pallas_src>
import functools

import jax
import jax.numpy as jnp
from jax.experimental import pallas as pl
from jax.experimental.pallas import tpu as pltpu

EPS = 1e-5                          # nn.BatchNorm1d default eps
_DEFAULT_TILE_N = 1024              # rows per tile (multiple of 16 for bf16 blocks)
_VMEM_LIMIT_BYTES = 32 * 1024 * 1024  # ~16 MiB actually used at TILE_N=1024; v7x-safe


# ---------------------------------------------------------------------------
# Kernels
# ---------------------------------------------------------------------------

def _conv1_vpu(x, w, b):
    """(T, Cin) x (Cin, C1) + (1, C1) via unrolled VPU broadcast FMAs (Cin tiny)."""
    cin = w.shape[0]
    y = x[:, 0:1] * w[0:1, :]
    for d in range(1, cin):
        y = y + x[:, d:d + 1] * w[d:d + 1, :]
    return y + b


def _row_mask(nt, tile_n, n_valid, shape):
    row = nt * tile_n + jax.lax.broadcasted_iota(jnp.int32, shape, 0)
    return row < n_valid


def _conv1_stats_kernel(x_ref, w_ref, b_ref, s1_ref, s2_ref,
                        *, n_valid, tile_n, needs_mask):
    """Pass 1 of conv1: emit ONLY per-batch-block per-channel sum / sumsq of the pre-BN
    activation; the activation itself is recomputed (cheaply) in the next kernel."""
    nt = pl.program_id(1)
    y = _conv1_vpu(x_ref[...], w_ref[...], b_ref[...])     # (T, C1) f32

    @pl.when(nt == 0)
    def _():
        s1_ref[...] = jnp.zeros_like(s1_ref)
        s2_ref[...] = jnp.zeros_like(s2_ref)

    def acc(ys):
        s1_ref[...] += jnp.sum(ys, axis=0, keepdims=True)
        s2_ref[...] += jnp.sum(ys * ys, axis=0, keepdims=True)

    if needs_mask:
        last = pl.num_programs(1) - 1

        @pl.when(nt < last)
        def _():
            acc(y)

        @pl.when(nt == last)
        def _():
            acc(jnp.where(_row_mask(nt, tile_n, n_valid, y.shape), y, 0.0))
    else:
        acc(y)


def _conv12_kernel(x_ref, w1_ref, b1_ref, sc1_ref, sh1_ref, w2_ref, b2_ref,
                   y_ref, s1_ref, s2_ref, *, n_valid, tile_n, needs_mask):
    """Fused: recompute conv1 from the raw points (VPU FMAs), BN1+ReLU prologue, conv2 on
    the MXU (bf16 operands, f32 acc), store conv2 pre-BN activation in bf16, accumulate
    BN2 sum/sumsq from the f32 values."""
    nt = pl.program_id(1)
    h = _conv1_vpu(x_ref[...], w1_ref[...], b1_ref[...])
    h = jnp.maximum(h * sc1_ref[...] + sh1_ref[...], 0.0)
    y = jnp.dot(h.astype(jnp.bfloat16), w2_ref[...],
                preferred_element_type=jnp.float32) + b2_ref[...]
    y_ref[...] = y.astype(y_ref.dtype)

    @pl.when(nt == 0)
    def _():
        s1_ref[...] = jnp.zeros_like(s1_ref)
        s2_ref[...] = jnp.zeros_like(s2_ref)

    def acc(ys):
        s1_ref[...] += jnp.sum(ys, axis=0, keepdims=True)
        s2_ref[...] += jnp.sum(ys * ys, axis=0, keepdims=True)

    if needs_mask:
        last = pl.num_programs(1) - 1

        @pl.when(nt < last)
        def _():
            acc(y)

        @pl.when(nt == last)
        def _():
            acc(jnp.where(_row_mask(nt, tile_n, n_valid, y.shape), y, 0.0))
    else:
        acc(y)


def _conv3_pool_kernel(x_ref, sc_ref, sh_ref, w_ref, b_ref,
                       mx_ref, mn_ref, s1_ref, s2_ref,
                       *, n_valid, tile_n, needs_mask):
    """Fused: BN2+ReLU prologue on the bf16 conv2 activation, conv3 on the MXU, then keep
    per-batch running max/min + sum/sumsq of the pre-BN conv3 activation (the (B*N,1024)
    activation never touches HBM)."""
    nt = pl.program_id(1)
    h = jnp.maximum(x_ref[...].astype(jnp.float32) * sc_ref[...] + sh_ref[...], 0.0)
    y = jnp.dot(h.astype(jnp.bfloat16), w_ref[...],
                preferred_element_type=jnp.float32) + b_ref[...]

    @pl.when(nt == 0)
    def _():
        mx_ref[...] = jnp.full_like(mx_ref, -jnp.inf)
        mn_ref[...] = jnp.full_like(mn_ref, jnp.inf)
        s1_ref[...] = jnp.zeros_like(s1_ref)
        s2_ref[...] = jnp.zeros_like(s2_ref)

    def acc(ys, yx, yn):
        s1_ref[...] += jnp.sum(ys, axis=0, keepdims=True)
        s2_ref[...] += jnp.sum(ys * ys, axis=0, keepdims=True)
        mx_ref[...] = jnp.maximum(mx_ref[...], jnp.max(yx, axis=0, keepdims=True))
        mn_ref[...] = jnp.minimum(mn_ref[...], jnp.min(yn, axis=0, keepdims=True))

    if needs_mask:
        last = pl.num_programs(1) - 1

        @pl.when(nt < last)
        def _():
            acc(y, y, y)

        @pl.when(nt == last)
        def _():
            valid = _row_mask(nt, tile_n, n_valid, y.shape)
            acc(jnp.where(valid, y, 0.0),
                jnp.where(valid, y, -jnp.inf),
                jnp.where(valid, y, jnp.inf))
    else:
        acc(y, y, y)


def _stn_fc_head_kernel(g_ref, w1_ref, b1_ref, g1_ref, be1_ref,
                        w2_ref, b2_ref, g2_ref, be2_ref,
                        w3_ref, b3_ref, o_ref):
    """Fused STN head: fc1->bn4->relu->fc2->bn5->relu->fc3 on the (B, 1024) pooled feature.
    BN uses batch statistics over the B rows (training mode); the whole batch is in-block."""
    def fc(h, w_r, b_r):
        return jnp.dot(h.astype(jnp.bfloat16), w_r[...],
                       preferred_element_type=jnp.float32) + b_r[...]

    def bn_relu(y, gamma_r, beta_r):
        mean = jnp.mean(y, axis=0, keepdims=True)
        var = jnp.mean(jnp.square(y - mean), axis=0, keepdims=True)
        y = (y - mean) * jax.lax.rsqrt(var + EPS) * gamma_r[...] + beta_r[...]
        return jnp.maximum(y, 0.0)

    h = g_ref[...]
    h = bn_relu(fc(h, w1_ref, b1_ref), g1_ref, be1_ref)
    h = bn_relu(fc(h, w2_ref, b2_ref), g2_ref, be2_ref)
    o_ref[...] = fc(h, w3_ref, b3_ref)


# ---------------------------------------------------------------------------
# Pallas wrappers
# ---------------------------------------------------------------------------

def _compiler_params():
    return pltpu.CompilerParams(
        dimension_semantics=("parallel", "arbitrary"),
        vmem_limit_bytes=_VMEM_LIMIT_BYTES)


def _tiling(ns, tile_n):
    """Pick the point-axis tile: full extent when it fits, otherwise a multiple of 16."""
    if ns <= tile_n:
        return ns, 1, False
    tile = max(16, (min(tile_n, ns) // 16) * 16)
    if tile >= ns:
        return ns, 1, False
    return tile, pl.cdiv(ns, tile), (ns % tile != 0)


def _conv1_stats(x, w1, b1, *, tile, n_tiles, n_valid, needs_mask):
    BS, _, Cin = x.shape
    C1 = w1.shape[-1]
    acc_shape = jax.ShapeDtypeStruct((BS, 1, C1), jnp.float32)
    acc_spec = pl.BlockSpec((None, 1, C1), lambda b, n: (b, 0, 0))
    kernel = functools.partial(_conv1_stats_kernel, n_valid=n_valid,
                               tile_n=tile, needs_mask=needs_mask)
    return pl.pallas_call(
        kernel,
        out_shape=(acc_shape, acc_shape),
        grid=(BS, n_tiles),
        in_specs=[pl.BlockSpec((None, tile, Cin), lambda b, n: (b, n, 0)),
                  pl.BlockSpec((None, Cin, C1), lambda b, n: (b, 0, 0)),
                  pl.BlockSpec((1, C1), lambda b, n: (0, 0))],
        out_specs=(acc_spec, acc_spec),
        compiler_params=_compiler_params(),
    )(x, w1, b1)


def _conv12(x, w1, b1, sc1, sh1, w2, b2, *, tile, n_tiles, n_valid, needs_mask):
    BS, NS, Cin = x.shape
    C1 = w1.shape[-1]
    C2 = w2.shape[-1]
    acc_shape = jax.ShapeDtypeStruct((BS, 1, C2), jnp.float32)
    acc_spec = pl.BlockSpec((None, 1, C2), lambda b, n: (b, 0, 0))
    kernel = functools.partial(_conv12_kernel, n_valid=n_valid,
                               tile_n=tile, needs_mask=needs_mask)
    return pl.pallas_call(
        kernel,
        out_shape=(jax.ShapeDtypeStruct((BS, NS, C2), jnp.bfloat16),
                   acc_shape, acc_shape),
        grid=(BS, n_tiles),
        in_specs=[pl.BlockSpec((None, tile, Cin), lambda b, n: (b, n, 0)),
                  pl.BlockSpec((None, Cin, C1), lambda b, n: (b, 0, 0)),
                  pl.BlockSpec((1, C1), lambda b, n: (0, 0)),
                  pl.BlockSpec((1, C1), lambda b, n: (0, 0)),
                  pl.BlockSpec((1, C1), lambda b, n: (0, 0)),
                  pl.BlockSpec((C1, C2), lambda b, n: (0, 0)),
                  pl.BlockSpec((1, C2), lambda b, n: (0, 0))],
        out_specs=(pl.BlockSpec((None, tile, C2), lambda b, n: (b, n, 0)),
                   acc_spec, acc_spec),
        compiler_params=_compiler_params(),
    )(x, w1, b1, sc1, sh1, w2, b2)


def _conv3_pool(x, sc2, sh2, w3, b3, *, tile, n_tiles, n_valid, needs_mask):
    BS, _, C2 = x.shape
    C3 = w3.shape[-1]
    acc_shape = jax.ShapeDtypeStruct((BS, 1, C3), jnp.float32)
    acc_spec = pl.BlockSpec((None, 1, C3), lambda b, n: (b, 0, 0))
    kernel = functools.partial(_conv3_pool_kernel, n_valid=n_valid,
                               tile_n=tile, needs_mask=needs_mask)
    return pl.pallas_call(
        kernel,
        out_shape=(acc_shape,) * 4,
        grid=(BS, n_tiles),
        in_specs=[pl.BlockSpec((None, tile, C2), lambda b, n: (b, n, 0)),
                  pl.BlockSpec((1, C2), lambda b, n: (0, 0)),
                  pl.BlockSpec((1, C2), lambda b, n: (0, 0)),
                  pl.BlockSpec((C2, C3), lambda b, n: (0, 0)),
                  pl.BlockSpec((1, C3), lambda b, n: (0, 0))],
        out_specs=(acc_spec,) * 4,
        compiler_params=_compiler_params(),
    )(x, sc2, sh2, w3, b3)


def _bn_scale_shift(s1, s2, gamma, beta, m_total):
    """Fold training-mode BN (stats over all B*N points, biased var) into scale/shift."""
    total_sum = jnp.sum(s1, axis=(0, 1))                       # (C,)
    total_sq = jnp.sum(s2, axis=(0, 1))
    mean = total_sum / m_total
    var = jnp.maximum(total_sq / m_total - mean * mean, 0.0)
    scale = gamma * jax.lax.rsqrt(var + EPS)
    shift = beta - mean * scale
    return scale, shift


def point_mlp_chain(xp, w1_bdc, chain, *, relu_after_pool, tile_n, n_split):
    """conv1->bn1->relu->conv2->bn2->relu->conv3->bn3->[relu]->max over points.

    xp: (B, N, Cin) f32.  w1_bdc: (B, Cin, C1) f32 per-batch conv1 weight (W^T layout;
    the STN 3x3 transform can be folded in here).  Returns (B, C3) pooled features.
    """
    B, N, Cin = xp.shape
    C1 = w1_bdc.shape[-1]
    m_total = B * N

    if N % n_split != 0:
        n_split = 1
    BS, NS = B * n_split, N // n_split
    x = xp.reshape(BS, NS, Cin)                                # point-axis split (megacore)
    w1 = jnp.repeat(w1_bdc, n_split, axis=0) if n_split > 1 else w1_bdc

    tile, n_tiles, needs_mask = _tiling(NS, tile_n)

    c1, c2, c3 = chain['conv1'], chain['conv2'], chain['conv3']
    b1 = c1['b'].reshape(1, C1)
    w2 = jnp.transpose(c2['w']).astype(jnp.bfloat16)           # (C1, C2)
    b2 = c2['b'].reshape(1, -1)
    w3 = jnp.transpose(c3['w']).astype(jnp.bfloat16)           # (C2, C3)
    b3 = c3['b'].reshape(1, -1)
    C2, C3 = w2.shape[1], w3.shape[1]

    kw = dict(tile=tile, n_tiles=n_tiles, n_valid=NS, needs_mask=needs_mask)

    # Pass 1: BN1 batch statistics only (conv1 activation is recomputed in pass 2).
    s1, s2 = _conv1_stats(x, w1, b1, **kw)
    sc1, sh1 = _bn_scale_shift(s1, s2, c1['g'], c1['beta'], m_total)

    # Pass 2: conv1(recompute)+BN1+ReLU -> conv2; bf16 activation out + BN2 stats.
    y2, s1, s2 = _conv12(x, w1, b1, sc1.reshape(1, C1), sh1.reshape(1, C1), w2, b2, **kw)
    sc2, sh2 = _bn_scale_shift(s1, s2, c2['g'], c2['beta'], m_total)

    # Pass 3: BN2+ReLU -> conv3 fused with the per-batch max-pool.
    mx, mn, s1, s2 = _conv3_pool(y2, sc2.reshape(1, C2), sh2.reshape(1, C2), w3, b3, **kw)
    sc3, sh3 = _bn_scale_shift(s1, s2, c3['g'], c3['beta'], m_total)

    mx = jnp.max(mx.reshape(B, n_split, C3), axis=1)
    mn = jnp.min(mn.reshape(B, n_split, C3), axis=1)
    pooled = jnp.where(sc3 >= 0.0, sc3 * mx, sc3 * mn) + sh3   # max over points of BN3(y)
    if relu_after_pool:
        pooled = jnp.maximum(pooled, 0.0)  # relu is monotone: max(relu(.)) == relu(max(.))
    return pooled


def stn_fc_head(g, stn_params):
    """Fused fc1/bn4/relu -> fc2/bn5/relu -> fc3 head.  g: (B, 1024) -> (B, 9)."""
    B = g.shape[0]

    def prep(L):
        return (jnp.transpose(L['w']).astype(jnp.bfloat16),
                L['b'].reshape(1, -1).astype(jnp.float32))

    w1, b1 = prep(stn_params['fc1'])
    w2, b2 = prep(stn_params['fc2'])
    w3, b3 = prep(stn_params['fc3'])
    g1 = stn_params['fc1']['g'].reshape(1, -1)
    be1 = stn_params['fc1']['beta'].reshape(1, -1)
    g2 = stn_params['fc2']['g'].reshape(1, -1)
    be2 = stn_params['fc2']['beta'].reshape(1, -1)

    args = (g, w1, b1, g1, be1, w2, b2, g2, be2, w3, b3)
    in_specs = [pl.BlockSpec(a.shape, lambda i: (0, 0)) for a in args]   # all 2D, full-block
    return pl.pallas_call(
        _stn_fc_head_kernel,
        out_shape=jax.ShapeDtypeStruct((B, 9), jnp.float32),
        grid=(1,),
        in_specs=in_specs,
        out_specs=pl.BlockSpec((B, 9), lambda i: (0, 0)),
        compiler_params=pltpu.CompilerParams(vmem_limit_bytes=_VMEM_LIMIT_BYTES),
    )(*args)


# ---------------------------------------------------------------------------
# Model: parameters + forward
# ---------------------------------------------------------------------------

def init_params(key, channel=3):
    def layer(k, cout, cin, bn=True):
        kw, kb, kg, kbe = jax.random.split(k, 4)
        p = {'w': 0.1 * jax.random.normal(kw, (cout, cin), jnp.float32),
             'b': 0.1 * jax.random.normal(kb, (cout,), jnp.float32)}
        if bn:
            p['g'] = 1.0 + 0.1 * jax.random.normal(kg, (cout,), jnp.float32)
            p['beta'] = 0.1 * jax.random.normal(kbe, (cout,), jnp.float32)
        return p

    keys = jax.random.split(key, 9)
    stn = {
        'conv1': layer(keys[0], 64, channel),
        'conv2': layer(keys[1], 128, 64),
        'conv3': layer(keys[2], 1024, 128),
        'fc1': layer(keys[3], 512, 1024),
        'fc2': layer(keys[4], 256, 512),
        'fc3': layer(keys[5], 9, 256, bn=False),
    }
    enc = {
        'conv1': layer(keys[6], 64, channel),
        'conv2': layer(keys[7], 128, 64),
        'conv3': layer(keys[8], 1024, 128),
    }
    return {'stn': stn, 'enc': enc}


def pointnet_encoder_forward(x, params, *, tile_n=_DEFAULT_TILE_N, n_split=None):
    """x: (B, D, N) float32 (PyTorch NCW).  Returns (global_feat, trans, trans_feat)."""
    B, D, N = x.shape
    if D != 3:
        # TODO(synk): D > 3 (extra point features) requires the un-folded transform path.
        raise NotImplementedError("only channel == 3 is supported")

    if n_split is None:
        n_split = 2 if (B < 4 or B % 2 == 1) and N % 2 == 0 and N >= 16 else 1

    xp = jnp.transpose(x, (0, 2, 1))                           # (B, N, 3), channel-last
    s = params['stn']
    C1 = s['conv1']['w'].shape[0]

    # ---- STN3d: per-point MLP + fused max-pool, then fused FC head ----
    w1_stn = jnp.broadcast_to(jnp.transpose(s['conv1']['w'])[None], (B, D, C1))
    pooled = point_mlp_chain(xp, w1_stn, s, relu_after_pool=True,
                             tile_n=tile_n, n_split=n_split)   # (B, 1024)
    nine = stn_fc_head(pooled, s)                              # (B, 9)
    iden = jnp.eye(3, dtype=jnp.float32).reshape(1, 9)
    trans = (nine + iden).reshape(B, 3, 3)

    # ---- encoder chain: fold the 3x3 input transform into per-batch conv1 weights,
    #      so the transformed point cloud is never materialized in HBM ----
    e = params['enc']
    w1_eff = jnp.einsum('bdk,kc->bdc', trans, jnp.transpose(e['conv1']['w']))
    gfeat = point_mlp_chain(xp, w1_eff, e, relu_after_pool=False,
                            tile_n=tile_n, n_split=n_split)    # (B, 1024)

    # global_feat=True, feature_transform=False
    return gfeat, trans, None


# ---------------------------------------------------------------------------
# Pure-JAX reference (module-faithful structure; mirrors the bf16 matmul operands,
# f32 epilogue, and bf16 storage of the conv2 activation)
# ---------------------------------------------------------------------------

def _ref_forward(x, params):
    B, D, N = x.shape
    xp = jnp.transpose(x, (0, 2, 1))
    m = B * N

    def bf16mm(a, w_oi):   # w in PyTorch (Cout, Cin) layout
        return jnp.dot(a.astype(jnp.bfloat16), jnp.transpose(w_oi).astype(jnp.bfloat16),
                       preferred_element_type=jnp.float32)

    def bn_scale_shift(y, g, beta):
        mean = jnp.sum(y, axis=0) / m
        var = jnp.maximum(jnp.sum(y * y, axis=0) / m - mean * mean, 0.0)
        scale = g * jax.lax.rsqrt(var + EPS)
        return scale, beta - mean * scale

    def chain(pts, L, relu_last):
        h = pts.reshape(m, -1)
        y1 = jnp.dot(h, jnp.transpose(L['conv1']['w'])) + L['conv1']['b']    # f32 conv1
        sc, sh = bn_scale_shift(y1, L['conv1']['g'], L['conv1']['beta'])
        h1 = jnp.maximum(y1 * sc + sh, 0.0)

        y2 = bf16mm(h1, L['conv2']['w']) + L['conv2']['b']
        sc, sh = bn_scale_shift(y2, L['conv2']['g'], L['conv2']['beta'])
        y2b = y2.astype(jnp.bfloat16).astype(jnp.float32)      # mirrors bf16 activation storage
        h2 = jnp.maximum(y2b * sc + sh, 0.0)

        y3 = bf16mm(h2, L['conv3']['w']) + L['conv3']['b']
        sc, sh = bn_scale_shift(y3, L['conv3']['g'], L['conv3']['beta'])
        z = y3 * sc + sh
        if relu_last:
            z = jnp.maximum(z, 0.0)
        return jnp.max(z.reshape(B, N, -1), axis=1)

    s = params['stn']
    g = chain(xp, s, True)

    def fc(h, L):
        return bf16mm(h, L['w']) + L['b']

    def bn_relu(y, L):
        mean = jnp.mean(y, axis=0, keepdims=True)
        var = jnp.mean(jnp.square(y - mean), axis=0, keepdims=True)
        return jnp.maximum((y - mean) * jax.lax.rsqrt(var + EPS) * L['g'] + L['beta'], 0.0)

    g = bn_relu(fc(g, s['fc1']), s['fc1'])
    g = bn_relu(fc(g, s['fc2']), s['fc2'])
    nine = fc(g, s['fc3'])
    trans = (nine + jnp.eye(3, dtype=jnp.float32).reshape(1, 9)).reshape(B, 3, 3)

    xt = jnp.einsum('bnd,bdk->bnk', xp, trans)                 # module-faithful bmm path
    gfeat = chain(xt, params['enc'], False)
    return gfeat, trans, None


# ---------------------------------------------------------------------------
# Main
# ---------------------------------------------------------------------------

if __name__ == "__main__":
    key = jax.random.PRNGKey(0)
    kx, kx2, kp = jax.random.split(key, 3)

    # Config 1: even tiling, point-axis split (no masked tiles).
    B, D, N = 2, 3, 128
    x = jax.random.normal(kx, (B, D, N), dtype=jnp.float32)
    params = init_params(kp, channel=D)

    fwd = jax.jit(pointnet_encoder_forward)
    gfeat, trans, trans_feat = fwd(x, params)
    jax.block_until_ready((gfeat, trans))

    ref_gfeat, ref_trans, _ = jax.jit(_ref_forward)(x, params)
    jax.block_until_ready((ref_gfeat, ref_trans))

    assert gfeat.shape == (B, 1024) and gfeat.dtype == jnp.float32
    assert trans.shape == (B, 3, 3) and trans.dtype == jnp.float32
    assert trans_feat is None
    assert bool(jnp.allclose(trans, ref_trans, atol=1e-2, rtol=1e-2)), "trans mismatch"
    assert bool(jnp.allclose(gfeat, ref_gfeat, atol=1e-2, rtol=1e-2)), "gfeat mismatch"

    # Config 2: ragged last tile (gated masked path) + forced small tile / split.
    B2, N2 = 2, 56
    x2 = jax.random.normal(kx2, (B2, D, N2), dtype=jnp.float32)
    fwd2 = jax.jit(functools.partial(pointnet_encoder_forward, tile_n=16, n_split=2))
    g2, t2, _ = fwd2(x2, params)
    rg2, rt2, _ = jax.jit(_ref_forward)(x2, params)
    jax.block_until_ready((g2, t2, rg2, rt2))
    assert bool(jnp.allclose(t2, rt2, atol=1e-2, rtol=1e-2)), "trans mismatch (masked)"
    assert bool(jnp.allclose(g2, rg2, atol=1e-2, rtol=1e-2)), "gfeat mismatch (masked)"

    print("KERNEL_OK")
</pallas_src>

<mosaic_0001>
module attributes {stable_mosaic.version = 11 : i64} {
  func.func @_conv1_stats_kernel(%arg0: i32, %arg1: i32, %arg2: memref<1x64x3xf32, #tpu.memory_space<vmem>>, %arg3: memref<1x3x64xf32, #tpu.memory_space<vmem>>, %arg4: memref<1x64xf32, #tpu.memory_space<vmem>>, %arg5: memref<1x1x64xf32, #tpu.memory_space<vmem>>, %arg6: memref<1x1x64xf32, #tpu.memory_space<vmem>>) attributes {dimension_semantics = [#tpu.dimension_semantics<parallel>, #tpu.dimension_semantics<arbitrary>], iteration_bounds = array<i64: 4, 1>, scalar_prefetch = 0 : i64, scratch_operands = 0 : i64, tpu.core_type = #tpu.core_type<tc>, window_params = [{transform_indices = @transform_0, window_bounds = array<i64: 1, 64, 3>}, {transform_indices = @transform_1, window_bounds = array<i64: 1, 3, 64>}, {pipeline_mode = #tpu.pipeline_mode<synchronous>, transform_indices = @transform_2, window_bounds = array<i64: 1, 64>}, {transform_indices = @transform_3, window_bounds = array<i64: 1, 1, 64>}, {transform_indices = @transform_4, window_bounds = array<i64: 1, 1, 64>}]} {
    %c0 = arith.constant 0 : index
    %c0_0 = arith.constant 0 : index
    %c0_1 = arith.constant 0 : index
    %0 = vector.load %arg2[%c0, %c0_0, %c0_1] : memref<1x64x3xf32, #tpu.memory_space<vmem>>, vector<1x64x3xf32>
    %1 = vector.shape_cast %0 : vector<1x64x3xf32> to vector<64x3xf32>
    %c0_2 = arith.constant 0 : index
    %c0_3 = arith.constant 0 : index
    %c0_4 = arith.constant 0 : index
    %2 = vector.load %arg3[%c0_2, %c0_3, %c0_4] : memref<1x3x64xf32, #tpu.memory_space<vmem>>, vector<1x3x64xf32>
    %3 = vector.shape_cast %2 : vector<1x3x64xf32> to vector<3x64xf32>
    %c0_5 = arith.constant 0 : index
    %c0_6 = arith.constant 0 : index
    %4 = vector.load %arg4[%c0_5, %c0_6] : memref<1x64xf32, #tpu.memory_space<vmem>>, vector<1x64xf32>
    %5 = vector.extract_strided_slice %1 {offsets = [0, 0], sizes = [64, 1], strides = [1, 1]} : vector<64x3xf32> to vector<64x1xf32>
    %6 = vector.extract_strided_slice %3 {offsets = [0, 0], sizes = [1, 64], strides = [1, 1]} : vector<3x64xf32> to vector<1x64xf32>
    %7 = vector.broadcast %5 : vector<64x1xf32> to vector<64x64xf32>
    %8 = vector.broadcast %6 : vector<1x64xf32> to vector<64x64xf32>
    %9 = arith.mulf %7, %8 : vector<64x64xf32>
    %10 = vector.extract_strided_slice %1 {offsets = [0, 1], sizes = [64, 1], strides = [1, 1]} : vector<64x3xf32> to vector<64x1xf32>
    %11 = vector.extract_strided_slice %3 {offsets = [1, 0], sizes = [1, 64], strides = [1, 1]} : vector<3x64xf32> to vector<1x64xf32>
    %12 = vector.broadcast %10 : vector<64x1xf32> to vector<64x64xf32>
    %13 = vector.broadcast %11 : vector<1x64xf32> to vector<64x64xf32>
    %14 = arith.mulf %12, %13 : vector<64x64xf32>
    %15 = arith.addf %9, %14 : vector<64x64xf32>
    %16 = vector.extract_strided_slice %1 {offsets = [0, 2], sizes = [64, 1], strides = [1, 1]} : vector<64x3xf32> to vector<64x1xf32>
    %17 = vector.extract_strided_slice %3 {offsets = [2, 0], sizes = [1, 64], strides = [1, 1]} : vector<3x64xf32> to vector<1x64xf32>
    %18 = vector.broadcast %16 : vector<64x1xf32> to vector<64x64xf32>
    %19 = vector.broadcast %17 : vector<1x64xf32> to vector<64x64xf32>
    %20 = arith.mulf %18, %19 : vector<64x64xf32>
    %21 = arith.addf %15, %20 : vector<64x64xf32>
    %22 = vector.broadcast %4 : vector<1x64xf32> to vector<64x64xf32>
    %23 = arith.addf %21, %22 : vector<64x64xf32>
    %c0_i32 = arith.constant 0 : i32
    %24 = arith.cmpi eq, %arg1, %c0_i32 : i32
    %25 = arith.extui %24 : i1 to i32
    %c0_i32_7 = arith.constant 0 : i32
    %26 = arith.cmpi ne, %25, %c0_i32_7 : i32
    scf.if %26 {
      %cst_21 = arith.constant 0.000000e+00 : f32
      %44 = vector.broadcast %cst_21 : f32 to vector<1x64xf32>
      %c0_22 = arith.constant 0 : index
      %c0_23 = arith.constant 0 : index
      %c0_24 = arith.constant 0 : index
      %45 = vector.load %arg5[%c0_22, %c0_23, %c0_24] : memref<1x1x64xf32, #tpu.memory_space<vmem>>, vector<1x1x64xf32>
      %46 = vector.shape_cast %45 : vector<1x1x64xf32> to vector<1x64xf32>
      %47 = vector.shape_cast %44 : vector<1x64xf32> to vector<1x1x64xf32>
      tpu.vector_store %arg5[%c0_22, %c0_23, %c0_24], %47 {strides = array<i32>} : memref<1x1x64xf32, #tpu.memory_space<vmem>>, vector<1x1x64xf32>,
      %cst_25 = arith.constant 0.000000e+00 : f32
      %48 = vector.broadcast %cst_25 : f32 to vector<1x64xf32>
      %c0_26 = arith.constant 0 : index
      %c0_27 = arith.constant 0 : index
      %c0_28 = arith.constant 0 : index
      %49 = vector.load %arg6[%c0_26, %c0_27, %c0_28] : memref<1x1x64xf32, #tpu.memory_space<vmem>>, vector<1x1x64xf32>
      %50 = vector.shape_cast %49 : vector<1x1x64xf32> to vector<1x64xf32>
      %51 = vector.shape_cast %48 : vector<1x64xf32> to vector<1x1x64xf32>
      tpu.vector_store %arg6[%c0_26, %c0_27, %c0_28], %51 {strides = array<i32>} : memref<1x1x64xf32, #tpu.memory_space<vmem>>, vector<1x1x64xf32>,
    } else {
    }
    %c0_8 = arith.constant 0 : index
    %c0_9 = arith.constant 0 : index
    %c0_10 = arith.constant 0 : index
    %27 = vector.load %arg5[%c0_8, %c0_9, %c0_10] : memref<1x1x64xf32, #tpu.memory_space<vmem>>, vector<1x1x64xf32>
    %28 = vector.shape_cast %27 : vector<1x1x64xf32> to vector<1x64xf32>
    %cst = arith.constant dense<0.000000e+00> : vector<64xf32>
    %29 = vector.multi_reduction <add>, %23, %cst [0] : vector<64x64xf32> to vector<64xf32>
    %30 = vector.shape_cast %29 : vector<64xf32> to vector<1x64xf32>
    %31 = arith.addf %28, %30 : vector<1x64xf32>
    %c0_11 = arith.constant 0 : index
    %c0_12 = arith.constant 0 : index
    %c0_13 = arith.constant 0 : index
    %32 = vector.load %arg5[%c0_11, %c0_12, %c0_13] : memref<1x1x64xf32, #tpu.memory_space<vmem>>, vector<1x1x64xf32>
    %33 = vector.shape_cast %32 : vector<1x1x64xf32> to vector<1x64xf32>
    %34 = vector.shape_cast %31 : vector<1x64xf32> to vector<1x1x64xf32>
    tpu.vector_store %arg5[%c0_11, %c0_12, %c0_13], %34 {strides = array<i32>} : memref<1x1x64xf32, #tpu.memory_space<vmem>>, vector<1x1x64xf32>,
    %c0_14 = arith.constant 0 : index
    %c0_15 = arith.constant 0 : index
    %c0_16 = arith.constant 0 : index
    %35 = vector.load %arg6[%c0_14, %c0_15, %c0_16] : memref<1x1x64xf32, #tpu.memory_space<vmem>>, vector<1x1x64xf32>
    %36 = vector.shape_cast %35 : vector<1x1x64xf32> to vector<1x64xf32>
    %37 = arith.mulf %23, %23 : vector<64x64xf32>
    %cst_17 = arith.constant dense<0.000000e+00> : vector<64xf32>
    %38 = vector.multi_reduction <add>, %37, %cst_17 [0] : vector<64x64xf32> to vector<64xf32>
    %39 = vector.shape_cast %38 : vector<64xf32> to vector<1x64xf32>
    %40 = arith.addf %36, %39 : vector<1x64xf32>
    %c0_18 = arith.constant 0 : index
    %c0_19 = arith.constant 0 : index
    %c0_20 = arith.constant 0 : index
    %41 = vector.load %arg6[%c0_18, %c0_19, %c0_20] : memref<1x1x64xf32, #tpu.memory_space<vmem>>, vector<1x1x64xf32>
    %42 = vector.shape_cast %41 : vector<1x1x64xf32> to vector<1x64xf32>
    %43 = vector.shape_cast %40 : vector<1x64xf32> to vector<1x1x64xf32>
    tpu.vector_store %arg6[%c0_18, %c0_19, %c0_20], %43 {strides = array<i32>} : memref<1x1x64xf32, #tpu.memory_space<vmem>>, vector<1x1x64xf32>,
    return
  }
  func.func @transform_0(%arg0: i32, %arg1: i32) -> (i32, i32, i32) {
    %c0_i32 = arith.constant 0 : i32
    %c0_i32_0 = arith.constant 0 : i32
    return %arg0, %arg1, %c0_i32 : i32, i32, i32
  }
  func.func @transform_1(%arg0: i32, %arg1: i32) -> (i32, i32, i32) {
    %c0_i32 = arith.constant 0 : i32
    %c0_i32_0 = arith.constant 0 : i32
    %c0_i32_1 = arith.constant 0 : i32
    return %arg0, %c0_i32, %c0_i32_0 : i32, i32, i32
  }
  func.func @transform_2(%arg0: i32, %arg1: i32) -> (i32, i32) {
    %c0_i32 = arith.constant 0 : i32
    %c0_i32_0 = arith.constant 0 : i32
    %c0_i32_1 = arith.constant 0 : i32
    return %c0_i32, %c0_i32_0 : i32, i32
  }
  func.func @transform_3(%arg0: i32, %arg1: i32) -> (i32, i32, i32) {
    %c0_i32 = arith.constant 0 : i32
    %c0_i32_0 = arith.constant 0 : i32
    %c0_i32_1 = arith.constant 0 : i32
    return %arg0, %c0_i32, %c0_i32_0 : i32, i32, i32
  }
  func.func @transform_4(%arg0: i32, %arg1: i32) -> (i32, i32, i32) {
    %c0_i32 = arith.constant 0 : i32
    %c0_i32_0 = arith.constant 0 : i32
    %c0_i32_1 = arith.constant 0 : i32
    return %arg0, %c0_i32, %c0_i32_0 : i32, i32, i32
  }
}

module attributes {stable_mosaic.version = 11 : i64} {
  func.func @_conv3_pool_kernel(%arg0: i32, %arg1: i32, %arg2: memref<1x64x128xbf16, #tpu.memory_space<vmem>>, %arg3: memref<1x128xf32, #tpu.memory_space<vmem>>, %arg4: memref<1x128xf32, #tpu.memory_space<vmem>>, %arg5: memref<128x1024xbf16, #tpu.memory_space<vmem>>, %arg6: memref<1x1024xf32, #tpu.memory_space<vmem>>, %arg7: memref<1x1x1024xf32, #tpu.memory_space<vmem>>, %arg8: memref<1x1x1024xf32, #tpu.memory_space<vmem>>, %arg9: memref<1x1x1024xf32, #tpu.memory_space<vmem>>, %arg10: memref<1x1x1024xf32, #tpu.memory_space<vmem>>) attributes {dimension_semantics = [#tpu.dimension_semantics<parallel>, #tpu.dimension_semantics<arbitrary>], iteration_bounds = array<i64: 4, 1>, scalar_prefetch = 0 : i64, scratch_operands = 0 : i64, tpu.core_type = #tpu.core_type<tc>, window_params = [{transform_indices = @transform_0, window_bounds = array<i64: 1, 64, 128>}, {pipeline_mode = #tpu.pipeline_mode<synchronous>, transform_indices = @transform_1, window_bounds = array<i64: 1, 128>}, {pipeline_mode = #tpu.pipeline_mode<synchronous>, transform_indices = @transform_2, window_bounds = array<i64: 1, 128>}, {pipeline_mode = #tpu.pipeline_mode<synchronous>, transform_indices = @transform_3, window_bounds = array<i64: 128, 1024>}, {pipeline_mode = #tpu.pipeline_mode<synchronous>, transform_indices = @transform_4, window_bounds = array<i64: 1, 1024>}, {transform_indices = @transform_5, window_bounds = array<i64: 1, 1, 1024>}, {transform_indices = @transform_6, window_bounds = array<i64: 1, 1, 1024>}, {transform_indices = @transform_7, window_bounds = array<i64: 1, 1, 1024>}, {transform_indices = @transform_8, window_bounds = array<i64: 1, 1, 1024>}]} {
    %c0 = arith.constant 0 : index
    %c0_0 = arith.constant 0 : index
    %c0_1 = arith.constant 0 : index
    %0 = vector.load %arg2[%c0, %c0_0, %c0_1] : memref<1x64x128xbf16, #tpu.memory_space<vmem>>, vector<1x64x128xbf16>
    %1 = vector.shape_cast %0 : vector<1x64x128xbf16> to vector<64x128xbf16>
    %2 = arith.extf %1 : vector<64x128xbf16> to vector<64x128xf32>
    %c0_2 = arith.constant 0 : index
    %c0_3 = arith.constant 0 : index
    %3 = vector.load %arg3[%c0_2, %c0_3] : memref<1x128xf32, #tpu.memory_space<vmem>>, vector<1x128xf32>
    %4 = vector.broadcast %3 : vector<1x128xf32> to vector<64x128xf32>
    %5 = arith.mulf %2, %4 : vector<64x128xf32>
    %c0_4 = arith.constant 0 : index
    %c0_5 = arith.constant 0 : index
    %6 = vector.load %arg4[%c0_4, %c0_5] : memref<1x128xf32, #tpu.memory_space<vmem>>, vector<1x128xf32>
    %7 = vector.broadcast %6 : vector<1x128xf32> to vector<64x128xf32>
    %8 = arith.addf %5, %7 : vector<64x128xf32>
    %cst = arith.constant 0.000000e+00 : f32
    %9 = vector.broadcast %cst : f32 to vector<64x128xf32>
    %10 = arith.maximumf %8, %9 : vector<64x128xf32>
    %11 = arith.truncf %10 : vector<64x128xf32> to vector<64x128xbf16>
    %c0_6 = arith.constant 0 : index
    %c0_7 = arith.constant 0 : index
    %12 = vector.load %arg5[%c0_6, %c0_7] : memref<128x1024xbf16, #tpu.memory_space<vmem>>, vector<128x1024xbf16>
    %cst_8 = arith.constant dense<0.000000e+00> : vector<64x1024xf32>
    %13 = tpu.matmul %11, %12, %cst_8 {dimension_numbers = #tpu.dot_dimension_numbers<[1], [0], [0], [1], [0, 0, 1, 1], [], []>} : vector<64x128xbf16>, vector<128x1024xbf16>, vector<64x1024xf32> -> vector<64x1024xf32>
    %c0_9 = arith.constant 0 : index
    %c0_10 = arith.constant 0 : index
    %14 = vector.load %arg6[%c0_9, %c0_10] : memref<1x1024xf32, #tpu.memory_space<vmem>>, vector<1x1024xf32>
    %15 = vector.broadcast %14 : vector<1x1024xf32> to vector<64x1024xf32>
    %16 = arith.addf %13, %15 : vector<64x1024xf32>
    %c0_i32 = arith.constant 0 : i32
    %17 = arith.cmpi eq, %arg1, %c0_i32 : i32
    %18 = arith.extui %17 : i1 to i32
    %c0_i32_11 = arith.constant 0 : i32
    %19 = arith.cmpi ne, %18, %c0_i32_11 : i32
    scf.if %19 {
      %cst_40 = arith.constant 0xFF800000 : f32
      %53 = vector.broadcast %cst_40 : f32 to vector<1x1024xf32>
      %c0_41 = arith.constant 0 : index
      %c0_42 = arith.constant 0 : index
      %c0_43 = arith.constant 0 : index
      %54 = vector.load %arg7[%c0_41, %c0_42, %c0_43] : memref<1x1x1024xf32, #tpu.memory_space<vmem>>, vector<1x1x1024xf32>
      %55 = vector.shape_cast %54 : vector<1x1x1024xf32> to vector<1x1024xf32>
      %56 = vector.shape_cast %53 : vector<1x1024xf32> to vector<1x1x1024xf32>
      tpu.vector_store %arg7[%c0_41, %c0_42, %c0_43], %56 {strides = array<i32>} : memref<1x1x1024xf32, #tpu.memory_space<vmem>>, vector<1x1x1024xf32>,
      %cst_44 = arith.constant 0x7F800000 : f32
      %57 = vector.broadcast %cst_44 : f32 to vector<1x1024xf32>
      %c0_45 = arith.constant 0 : index
      %c0_46 = arith.constant 0 : index
      %c0_47 = arith.constant 0 : index
      %58 = vector.load %arg8[%c0_45, %c0_46, %c0_47] : memref<1x1x1024xf32, #tpu.memory_space<vmem>>, vector<1x1x1024xf32>
      %59 = vector.shape_cast %58 : vector<1x1x1024xf32> to vector<1x1024xf32>
      %60 = vector.shape_cast %57 : vector<1x1024xf32> to vector<1x1x1024xf32>
      tpu.vector_store %arg8[%c0_45, %c0_46, %c0_47], %60 {strides = array<i32>} : memref<1x1x1024xf32, #tpu.memory_space<vmem>>, vector<1x1x1024xf32>,
      %cst_48 = arith.constant 0.000000e+00 : f32
      %61 = vector.broadcast %cst_48 : f32 to vector<1x1024xf32>
      %c0_49 = arith.constant 0 : index
      %c0_50 = arith.constant 0 : index
      %c0_51 = arith.constant 0 : index
      %62 = vector.load %arg9[%c0_49, %c0_50, %c0_51] : memref<1x1x1024xf32, #tpu.memory_space<vmem>>, vector<1x1x1024xf32>
      %63 = vector.shape_cast %62 : vector<1x1x1024xf32> to vector<1x1024xf32>
      %64 = vector.shape_cast %61 : vector<1x1024xf32> to vector<1x1x1024xf32>
      tpu.vector_store %arg9[%c0_49, %c0_50, %c0_51], %64 {strides = array<i32>} : memref<1x1x1024xf32, #tpu.memory_space<vmem>>, vector<1x1x1024xf32>,
      %cst_52 = arith.constant 0.000000e+00 : f32
      %65 = vector.broadcast %cst_52 : f32 to vector<1x1024xf32>
      %c0_53 = arith.constant 0 : index
      %c0_54 = arith.constant 0 : index
      %c0_55 = arith.constant 0 : index
      %66 = vector.load %arg10[%c0_53, %c0_54, %c0_55] : memref<1x1x1024xf32, #tpu.memory_space<vmem>>, vector<1x1x1024xf32>
      %67 = vector.shape_cast %66 : vector<1x1x1024xf32> to vector<1x1024xf32>
      %68 = vector.shape_cast %65 : vector<1x1024xf32> to vector<1x1x1024xf32>
      tpu.vector_store %arg10[%c0_53, %c0_54, %c0_55], %68 {strides = array<i32>} : memref<1x1x1024xf32, #tpu.memory_space<vmem>>, vector<1x1x1024xf32>,
    } else {
    }
    %c0_12 = arith.constant 0 : index
    %c0_13 = arith.constant 0 : index
    %c0_14 = arith.constant 0 : index
    %20 = vector.load %arg9[%c0_12, %c0_13, %c0_14] : memref<1x1x1024xf32, #tpu.memory_space<vmem>>, vector<1x1x1024xf32>
    %21 = vector.shape_cast %20 : vector<1x1x1024xf32> to vector<1x1024xf32>
    %cst_15 = arith.constant dense<0.000000e+00> : vector<1024xf32>
    %22 = vector.multi_reduction <add>, %16, %cst_15 [0] : vector<64x1024xf32> to vector<1024xf32>
    %23 = vector.shape_cast %22 : vector<1024xf32> to vector<1x1024xf32>
    %24 = arith.addf %21, %23 : vector<1x1024xf32>
    %c0_16 = arith.constant 0 : index
    %c0_17 = arith.constant 0 : index
    %c0_18 = arith.constant 0 : index
    %25 = vector.load %arg9[%c0_16, %c0_17, %c0_18] : memref<1x1x1024xf32, #tpu.memory_space<vmem>>, vector<1x1x1024xf32>
    %26 = vector.shape_cast %25 : vector<1x1x1024xf32> to vector<1x1024xf32>
    %27 = vector.shape_cast %24 : vector<1x1024xf32> to vector<1x1x1024xf32>
    tpu.vector_store %arg9[%c0_16, %c0_17, %c0_18], %27 {strides = array<i32>} : memref<1x1x1024xf32, #tpu.memory_space<vmem>>, vector<1x1x1024xf32>,
    %c0_19 = arith.constant 0 : index
    %c0_20 = arith.constant 0 : index
    %c0_21 = arith.constant 0 : index
    %28 = vector.load %arg10[%c0_19, %c0_20, %c0_21] : memref<1x1x1024xf32, #tpu.memory_space<vmem>>, vector<1x1x1024xf32>
    %29 = vector.shape_cast %28 : vector<1x1x1024xf32> to vector<1x1024xf32>
    %30 = arith.mulf %16, %16 : vector<64x1024xf32>
    %cst_22 = arith.constant dense<0.000000e+00> : vector<1024xf32>
    %31 = vector.multi_reduction <add>, %30, %cst_22 [0] : vector<64x1024xf32> to vector<1024xf32>
    %32 = vector.shape_cast %31 : vector<1024xf32> to vector<1x1024xf32>
    %33 = arith.addf %29, %32 : vector<1x1024xf32>
    %c0_23 = arith.constant 0 : index
    %c0_24 = arith.constant 0 : index
    %c0_25 = arith.constant 0 : index
    %34 = vector.load %arg10[%c0_23, %c0_24, %c0_25] : memref<1x1x1024xf32, #tpu.memory_space<vmem>>, vector<1x1x1024xf32>
    %35 = vector.shape_cast %34 : vector<1x1x1024xf32> to vector<1x1024xf32>
    %36 = vector.shape_cast %33 : vector<1x1024xf32> to vector<1x1x1024xf32>
    tpu.vector_store %arg10[%c0_23, %c0_24, %c0_25], %36 {strides = array<i32>} : memref<1x1x1024xf32, #tpu.memory_space<vmem>>, vector<1x1x1024xf32>,
    %c0_26 = arith.constant 0 : index
    %c0_27 = arith.constant 0 : index
    %c0_28 = arith.constant 0 : index
    %37 = vector.load %arg7[%c0_26, %c0_27, %c0_28] : memref<1x1x1024xf32, #tpu.memory_space<vmem>>, vector<1x1x1024xf32>
    %38 = vector.shape_cast %37 : vector<1x1x1024xf32> to vector<1x1024xf32>
    %cst_29 = arith.constant dense<0xFF800000> : vector<1024xf32>
    %39 = vector.multi_reduction <maximumf>, %16, %cst_29 [0] : vector<64x1024xf32> to vector<1024xf32>
    %40 = vector.shape_cast %39 : vector<1024xf32> to vector<1x1024xf32>
    %41 = arith.maximumf %38, %40 : vector<1x1024xf32>
    %c0_30 = arith.constant 0 : index
    %c0_31 = arith.constant 0 : index
    %c0_32 = arith.constant 0 : index
    %42 = vector.load %arg7[%c0_30, %c0_31, %c0_32] : memref<1x1x1024xf32, #tpu.memory_space<vmem>>, vector<1x1x1024xf32>
    %43 = vector.shape_cast %42 : vector<1x1x1024xf32> to vector<1x1024xf32>
    %44 = vector.shape_cast %41 : vector<1x1024xf32> to vector<1x1x1024xf32>
    tpu.vector_store %arg7[%c0_30, %c0_31, %c0_32], %44 {strides = array<i32>} : memref<1x1x1024xf32, #tpu.memory_space<vmem>>, vector<1x1x1024xf32>,
    %c0_33 = arith.constant 0 : index
    %c0_34 = arith.constant 0 : index
    %c0_35 = arith.constant 0 : index
    %45 = vector.load %arg8[%c0_33, %c0_34, %c0_35] : memref<1x1x1024xf32, #tpu.memory_space<vmem>>, vector<1x1x1024xf32>
    %46 = vector.shape_cast %45 : vector<1x1x1024xf32> to vector<1x1024xf32>
    %cst_36 = arith.constant dense<0x7F800000> : vector<1024xf32>
    %47 = vector.multi_reduction <minimumf>, %16, %cst_36 [0] : vector<64x1024xf32> to vector<1024xf32>
    %48 = vector.shape_cast %47 : vector<1024xf32> to vector<1x1024xf32>
    %49 = arith.minimumf %46, %48 : vector<1x1024xf32>
    %c0_37 = arith.constant 0 : index
    %c0_38 = arith.constant 0 : index
    %c0_39 = arith.constant 0 : index
    %50 = vector.load %arg8[%c0_37, %c0_38, %c0_39] : memref<1x1x1024xf32, #tpu.memory_space<vmem>>, vector<1x1x1024xf32>
    %51 = vector.shape_cast %50 : vector<1x1x1024xf32> to vector<1x1024xf32>
    %52 = vector.shape_cast %49 : vector<1x1024xf32> to vector<1x1x1024xf32>
    tpu.vector_store %arg8[%c0_37, %c0_38, %c0_39], %52 {strides = array<i32>} : memref<1x1x1024xf32, #tpu.memory_space<vmem>>, vector<1x1x1024xf32>,
    return
  }
  func.func @transform_0(%arg0: i32, %arg1: i32) -> (i32, i32, i32) {
    %c0_i32 = arith.constant 0 : i32
    %c0_i32_0 = arith.constant 0 : i32
    return %arg0, %arg1, %c0_i32 : i32, i32, i32
  }
  func.func @transform_1(%arg0: i32, %arg1: i32) -> (i32, i32) {
    %c0_i32 = arith.constant 0 : i32
    %c0_i32_0 = arith.constant 0 : i32
    %c0_i32_1 = arith.constant 0 : i32
    return %c0_i32, %c0_i32_0 : i32, i32
  }
  func.func @transform_2(%arg0: i32, %arg1: i32) -> (i32, i32) {
    %c0_i32 = arith.constant 0 : i32
    %c0_i32_0 = arith.constant 0 : i32
    %c0_i32_1 = arith.constant 0 : i32
    return %c0_i32, %c0_i32_0 : i32, i32
  }
  func.func @transform_3(%arg0: i32, %arg1: i32) -> (i32, i32) {
    %c0_i32 = arith.constant 0 : i32
    %c0_i32_0 = arith.constant 0 : i32
    %c0_i32_1 = arith.constant 0 : i32
    return %c0_i32, %c0_i32_0 : i32, i32
  }
  func.func @transform_4(%arg0: i32, %arg1: i32) -> (i32, i32) {
    %c0_i32 = arith.constant 0 : i32
    %c0_i32_0 = arith.constant 0 : i32
    %c0_i32_1 = arith.constant 0 : i32
    return %c0_i32, %c0_i32_0 : i32, i32
  }
  func.func @transform_5(%arg0: i32, %arg1: i32) -> (i32, i32, i32) {
    %c0_i32 = arith.constant 0 : i32
    %c0_i32_0 = arith.constant 0 : i32
    %c0_i32_1 = arith.constant 0 : i32
    return %arg0, %c0_i32, %c0_i32_0 : i32, i32, i32
  }
  func.func @transform_6(%arg0: i32, %arg1: i32) -> (i32, i32, i32) {
    %c0_i32 = arith.constant 0 : i32
    %c0_i32_0 = arith.constant 0 : i32
    %c0_i32_1 = arith.constant 0 : i32
    return %arg0, %c0_i32, %c0_i32_0 : i32, i32, i32
  }
  func.func @transform_7(%arg0: i32, %arg1: i32) -> (i32, i32, i32) {
    %c0_i32 = arith.constant 0 : i32
    %c0_i32_0 = arith.constant 0 : i32
    %c0_i32_1 = arith.constant 0 : i32
    return %arg0, %c0_i32, %c0_i32_0 : i32, i32, i32
  }
  func.func @transform_8(%arg0: i32, %arg1: i32) -> (i32, i32, i32) {
    %c0_i32 = arith.constant 0 : i32
    %c0_i32_0 = arith.constant 0 : i32
    %c0_i32_1 = arith.constant 0 : i32
    return %arg0, %c0_i32, %c0_i32_0 : i32, i32, i32
  }
}

module attributes {stable_mosaic.version = 11 : i64} {
  func.func @_conv12_kernel(%arg0: i32, %arg1: i32, %arg2: memref<1x64x3xf32, #tpu.memory_space<vmem>>, %arg3: memref<1x3x64xf32, #tpu.memory_space<vmem>>, %arg4: memref<1x64xf32, #tpu.memory_space<vmem>>, %arg5: memref<1x64xf32, #tpu.memory_space<vmem>>, %arg6: memref<1x64xf32, #tpu.memory_space<vmem>>, %arg7: memref<64x128xbf16, #tpu.memory_space<vmem>>, %arg8: memref<1x128xf32, #tpu.memory_space<vmem>>, %arg9: memref<1x64x128xbf16, #tpu.memory_space<vmem>>, %arg10: memref<1x1x128xf32, #tpu.memory_space<vmem>>, %arg11: memref<1x1x128xf32, #tpu.memory_space<vmem>>) attributes {dimension_semantics = [#tpu.dimension_semantics<parallel>, #tpu.dimension_semantics<arbitrary>], iteration_bounds = array<i64: 4, 1>, scalar_prefetch = 0 : i64, scratch_operands = 0 : i64, tpu.core_type = #tpu.core_type<tc>, window_params = [{transform_indices = @transform_0, window_bounds = array<i64: 1, 64, 3>}, {transform_indices = @transform_1, window_bounds = array<i64: 1, 3, 64>}, {pipeline_mode = #tpu.pipeline_mode<synchronous>, transform_indices = @transform_2, window_bounds = array<i64: 1, 64>}, {pipeline_mode = #tpu.pipeline_mode<synchronous>, transform_indices = @transform_3, window_bounds = array<i64: 1, 64>}, {pipeline_mode = #tpu.pipeline_mode<synchronous>, transform_indices = @transform_4, window_bounds = array<i64: 1, 64>}, {pipeline_mode = #tpu.pipeline_mode<synchronous>, transform_indices = @transform_5, window_bounds = array<i64: 64, 128>}, {pipeline_mode = #tpu.pipeline_mode<synchronous>, transform_indices = @transform_6, window_bounds = array<i64: 1, 128>}, {transform_indices = @transform_7, window_bounds = array<i64: 1, 64, 128>}, {transform_indices = @transform_8, window_bounds = array<i64: 1, 1, 128>}, {transform_indices = @transform_9, window_bounds = array<i64: 1, 1, 128>}]} {
    %c0 = arith.constant 0 : index
    %c0_0 = arith.constant 0 : index
    %c0_1 = arith.constant 0 : index
    %0 = vector.load %arg2[%c0, %c0_0, %c0_1] : memref<1x64x3xf32, #tpu.memory_space<vmem>>, vector<1x64x3xf32>
    %1 = vector.shape_cast %0 : vector<1x64x3xf32> to vector<64x3xf32>
    %c0_2 = arith.constant 0 : index
    %c0_3 = arith.constant 0 : index
    %c0_4 = arith.constant 0 : index
    %2 = vector.load %arg3[%c0_2, %c0_3, %c0_4] : memref<1x3x64xf32, #tpu.memory_space<vmem>>, vector<1x3x64xf32>
    %3 = vector.shape_cast %2 : vector<1x3x64xf32> to vector<3x64xf32>
    %c0_5 = arith.constant 0 : index
    %c0_6 = arith.constant 0 : index
    %4 = vector.load %arg4[%c0_5, %c0_6] : memref<1x64xf32, #tpu.memory_space<vmem>>, vector<1x64xf32>
    %5 = vector.extract_strided_slice %1 {offsets = [0, 0], sizes = [64, 1], strides = [1, 1]} : vector<64x3xf32> to vector<64x1xf32>
    %6 = vector.extract_strided_slice %3 {offsets = [0, 0], sizes = [1, 64], strides = [1, 1]} : vector<3x64xf32> to vector<1x64xf32>
    %7 = vector.broadcast %5 : vector<64x1xf32> to vector<64x64xf32>
    %8 = vector.broadcast %6 : vector<1x64xf32> to vector<64x64xf32>
    %9 = arith.mulf %7, %8 : vector<64x64xf32>
    %10 = vector.extract_strided_slice %1 {offsets = [0, 1], sizes = [64, 1], strides = [1, 1]} : vector<64x3xf32> to vector<64x1xf32>
    %11 = vector.extract_strided_slice %3 {offsets = [1, 0], sizes = [1, 64], strides = [1, 1]} : vector<3x64xf32> to vector<1x64xf32>
    %12 = vector.broadcast %10 : vector<64x1xf32> to vector<64x64xf32>
    %13 = vector.broadcast %11 : vector<1x64xf32> to vector<64x64xf32>
    %14 = arith.mulf %12, %13 : vector<64x64xf32>
    %15 = arith.addf %9, %14 : vector<64x64xf32>
    %16 = vector.extract_strided_slice %1 {offsets = [0, 2], sizes = [64, 1], strides = [1, 1]} : vector<64x3xf32> to vector<64x1xf32>
    %17 = vector.extract_strided_slice %3 {offsets = [2, 0], sizes = [1, 64], strides = [1, 1]} : vector<3x64xf32> to vector<1x64xf32>
    %18 = vector.broadcast %16 : vector<64x1xf32> to vector<64x64xf32>
    %19 = vector.broadcast %17 : vector<1x64xf32> to vector<64x64xf32>
    %20 = arith.mulf %18, %19 : vector<64x64xf32>
    %21 = arith.addf %15, %20 : vector<64x64xf32>
    %22 = vector.broadcast %4 : vector<1x64xf32> to vector<64x64xf32>
    %23 = arith.addf %21, %22 : vector<64x64xf32>
    %c0_7 = arith.constant 0 : index
    %c0_8 = arith.constant 0 : index
    %24 = vector.load %arg5[%c0_7, %c0_8] : memref<1x64xf32, #tpu.memory_space<vmem>>, vector<1x64xf32>
    %25 = vector.broadcast %24 : vector<1x64xf32> to vector<64x64xf32>
    %26 = arith.mulf %23, %25 : vector<64x64xf32>
    %c0_9 = arith.constant 0 : index
    %c0_10 = arith.constant 0 : index
    %27 = vector.load %arg6[%c0_9, %c0_10] : memref<1x64xf32, #tpu.memory_space<vmem>>, vector<1x64xf32>
    %28 = vector.broadcast %27 : vector<1x64xf32> to vector<64x64xf32>
    %29 = arith.addf %26, %28 : vector<64x64xf32>
    %cst = arith.constant 0.000000e+00 : f32
    %30 = vector.broadcast %cst : f32 to vector<64x64xf32>
    %31 = arith.maximumf %29, %30 : vector<64x64xf32>
    %32 = arith.truncf %31 : vector<64x64xf32> to vector<64x64xbf16>
    %c0_11 = arith.constant 0 : index
    %c0_12 = arith.constant 0 : index
    %33 = vector.load %arg7[%c0_11, %c0_12] : memref<64x128xbf16, #tpu.memory_space<vmem>>, vector<64x128xbf16>
    %cst_13 = arith.constant dense<0.000000e+00> : vector<64x128xf32>
    %34 = tpu.matmul %32, %33, %cst_13 {dimension_numbers = #tpu.dot_dimension_numbers<[1], [0], [0], [1], [0, 0, 1, 1], [], []>} : vector<64x64xbf16>, vector<64x128xbf16>, vector<64x128xf32> -> vector<64x128xf32>
    %c0_14 = arith.constant 0 : index
    %c0_15 = arith.constant 0 : index
    %35 = vector.load %arg8[%c0_14, %c0_15] : memref<1x128xf32, #tpu.memory_space<vmem>>, vector<1x128xf32>
    %36 = vector.broadcast %35 : vector<1x128xf32> to vector<64x128xf32>
    %37 = arith.addf %34, %36 : vector<64x128xf32>
    %38 = arith.truncf %37 : vector<64x128xf32> to vector<64x128xbf16>
    %c0_16 = arith.constant 0 : index
    %c0_17 = arith.constant 0 : index
    %c0_18 = arith.constant 0 : index
    %39 = vector.load %arg9[%c0_16, %c0_17, %c0_18] : memref<1x64x128xbf16, #tpu.memory_space<vmem>>, vector<1x64x128xbf16>
    %40 = vector.shape_cast %39 : vector<1x64x128xbf16> to vector<64x128xbf16>
    %41 = vector.shape_cast %38 : vector<64x128xbf16> to vector<1x64x128xbf16>
    tpu.vector_store %arg9[%c0_16, %c0_17, %c0_18], %41 {strides = array<i32>} : memref<1x64x128xbf16, #tpu.memory_space<vmem>>, vector<1x64x128xbf16>,
    %c0_i32 = arith.constant 0 : i32
    %42 = arith.cmpi eq, %arg1, %c0_i32 : i32
    %43 = arith.extui %42 : i1 to i32
    %c0_i32_19 = arith.constant 0 : i32
    %44 = arith.cmpi ne, %43, %c0_i32_19 : i32
    scf.if %44 {
      %cst_34 = arith.constant 0.000000e+00 : f32
      %62 = vector.broadcast %cst_34 : f32 to vector<1x128xf32>
      %c0_35 = arith.constant 0 : index
      %c0_36 = arith.constant 0 : index
      %c0_37 = arith.constant 0 : index
      %63 = vector.load %arg10[%c0_35, %c0_36, %c0_37] : memref<1x1x128xf32, #tpu.memory_space<vmem>>, vector<1x1x128xf32>
      %64 = vector.shape_cast %63 : vector<1x1x128xf32> to vector<1x128xf32>
      %65 = vector.shape_cast %62 : vector<1x128xf32> to vector<1x1x128xf32>
      tpu.vector_store %arg10[%c0_35, %c0_36, %c0_37], %65 {strides = array<i32>} : memref<1x1x128xf32, #tpu.memory_space<vmem>>, vector<1x1x128xf32>,
      %cst_38 = arith.constant 0.000000e+00 : f32
      %66 = vector.broadcast %cst_38 : f32 to vector<1x128xf32>
      %c0_39 = arith.constant 0 : index
      %c0_40 = arith.constant 0 : index
      %c0_41 = arith.constant 0 : index
      %67 = vector.load %arg11[%c0_39, %c0_40, %c0_41] : memref<1x1x128xf32, #tpu.memory_space<vmem>>, vector<1x1x128xf32>
      %68 = vector.shape_cast %67 : vector<1x1x128xf32> to vector<1x128xf32>
      %69 = vector.shape_cast %66 : vector<1x128xf32> to vector<1x1x128xf32>
      tpu.vector_store %arg11[%c0_39, %c0_40, %c0_41], %69 {strides = array<i32>} : memref<1x1x128xf32, #tpu.memory_space<vmem>>, vector<1x1x128xf32>,
    } else {
    }
    %c0_20 = arith.constant 0 : index
    %c0_21 = arith.constant 0 : index
    %c0_22 = arith.constant 0 : index
    %45 = vector.load %arg10[%c0_20, %c0_21, %c0_22] : memref<1x1x128xf32, #tpu.memory_space<vmem>>, vector<1x1x128xf32>
    %46 = vector.shape_cast %45 : vector<1x1x128xf32> to vector<1x128xf32>
    %cst_23 = arith.constant dense<0.000000e+00> : vector<128xf32>
    %47 = vector.multi_reduction <add>, %37, %cst_23 [0] : vector<64x128xf32> to vector<128xf32>
    %48 = vector.shape_cast %47 : vector<128xf32> to vector<1x128xf32>
    %49 = arith.addf %46, %48 : vector<1x128xf32>
    %c0_24 = arith.constant 0 : index
    %c0_25 = arith.constant 0 : index
    %c0_26 = arith.constant 0 : index
    %50 = vector.load %arg10[%c0_24, %c0_25, %c0_26] : memref<1x1x128xf32, #tpu.memory_space<vmem>>, vector<1x1x128xf32>
    %51 = vector.shape_cast %50 : vector<1x1x128xf32> to vector<1x128xf32>
    %52 = vector.shape_cast %49 : vector<1x128xf32> to vector<1x1x128xf32>
    tpu.vector_store %arg10[%c0_24, %c0_25, %c0_26], %52 {strides = array<i32>} : memref<1x1x128xf32, #tpu.memory_space<vmem>>, vector<1x1x128xf32>,
    %c0_27 = arith.constant 0 : index
    %c0_28 = arith.constant 0 : index
    %c0_29 = arith.constant 0 : index
    %53 = vector.load %arg11[%c0_27, %c0_28, %c0_29] : memref<1x1x128xf32, #tpu.memory_space<vmem>>, vector<1x1x128xf32>
    %54 = vector.shape_cast %53 : vector<1x1x128xf32> to vector<1x128xf32>
    %55 = arith.mulf %37, %37 : vector<64x128xf32>
    %cst_30 = arith.constant dense<0.000000e+00> : vector<128xf32>
    %56 = vector.multi_reduction <add>, %55, %cst_30 [0] : vector<64x128xf32> to vector<128xf32>
    %57 = vector.shape_cast %56 : vector<128xf32> to vector<1x128xf32>
    %58 = arith.addf %54, %57 : vector<1x128xf32>
    %c0_31 = arith.constant 0 : index
    %c0_32 = arith.constant 0 : index
    %c0_33 = arith.constant 0 : index
    %59 = vector.load %arg11[%c0_31, %c0_32, %c0_33] : memref<1x1x128xf32, #tpu.memory_space<vmem>>, vector<1x1x128xf32>
    %60 = vector.shape_cast %59 : vector<1x1x128xf32> to vector<1x128xf32>
    %61 = vector.shape_cast %58 : vector<1x128xf32> to vector<1x1x128xf32>
    tpu.vector_store %arg11[%c0_31, %c0_32, %c0_33], %61 {strides = array<i32>} : memref<1x1x128xf32, #tpu.memory_space<vmem>>, vector<1x1x128xf32>,
    return
  }
  func.func @transform_0(%arg0: i32, %arg1: i32) -> (i32, i32, i32) {
    %c0_i32 = arith.constant 0 : i32
    %c0_i32_0 = arith.constant 0 : i32
    return %arg0, %arg1, %c0_i32 : i32, i32, i32
  }
  func.func @transform_1(%arg0: i32, %arg1: i32) -> (i32, i32, i32) {
    %c0_i32 = arith.constant 0 : i32
    %c0_i32_0 = arith.constant 0 : i32
    %c0_i32_1 = arith.constant 0 : i32
    return %arg0, %c0_i32, %c0_i32_0 : i32, i32, i32
  }
  func.func @transform_2(%arg0: i32, %arg1: i32) -> (i32, i32) {
    %c0_i32 = arith.constant 0 : i32
    %c0_i32_0 = arith.constant 0 : i32
    %c0_i32_1 = arith.constant 0 : i32
    return %c0_i32, %c0_i32_0 : i32, i32
  }
  func.func @transform_3(%arg0: i32, %arg1: i32) -> (i32, i32) {
    %c0_i32 = arith.constant 0 : i32
    %c0_i32_0 = arith.constant 0 : i32
    %c0_i32_1 = arith.constant 0 : i32
    return %c0_i32, %c0_i32_0 : i32, i32
  }
  func.func @transform_4(%arg0: i32, %arg1: i32) -> (i32, i32) {
    %c0_i32 = arith.constant 0 : i32
    %c0_i32_0 = arith.constant 0 : i32
    %c0_i32_1 = arith.constant 0 : i32
    return %c0_i32, %c0_i32_0 : i32, i32
  }
  func.func @transform_5(%arg0: i32, %arg1: i32) -> (i32, i32) {
    %c0_i32 = arith.constant 0 : i32
    %c0_i32_0 = arith.constant 0 : i32
    %c0_i32_1 = arith.constant 0 : i32
    return %c0_i32, %c0_i32_0 : i32, i32
  }
  func.func @transform_6(%arg0: i32, %arg1: i32) -> (i32, i32) {
    %c0_i32 = arith.constant 0 : i32
    %c0_i32_0 = arith.constant 0 : i32
    %c0_i32_1 = arith.constant 0 : i32
    return %c0_i32, %c0_i32_0 : i32, i32
  }
  func.func @transform_7(%arg0: i32, %arg1: i32) -> (i32, i32, i32) {
    %c0_i32 = arith.constant 0 : i32
    %c0_i32_0 = arith.constant 0 : i32
    return %arg0, %arg1, %c0_i32 : i32, i32, i32
  }
  func.func @transform_8(%arg0: i32, %arg1: i32) -> (i32, i32, i32) {
    %c0_i32 = arith.constant 0 : i32
    %c0_i32_0 = arith.constant 0 : i32
    %c0_i32_1 = arith.constant 0 : i32
    return %arg0, %c0_i32, %c0_i32_0 : i32, i32, i32
  }
  func.func @transform_9(%arg0: i32, %arg1: i32) -> (i32, i32, i32) {
    %c0_i32 = arith.constant 0 : i32
    %c0_i32_0 = arith.constant 0 : i32
    %c0_i32_1 = arith.constant 0 : i32
    return %arg0, %c0_i32, %c0_i32_0 : i32, i32, i32
  }
}

module attributes {stable_mosaic.version = 11 : i64} {
  func.func @_stn_fc_head_kernel(%arg0: i32, %arg1: memref<2x1024xf32, #tpu.memory_space<vmem>>, %arg2: memref<1024x512xbf16, #tpu.memory_space<vmem>>, %arg3: memref<1x512xf32, #tpu.memory_space<vmem>>, %arg4: memref<1x512xf32, #tpu.memory_space<vmem>>, %arg5: memref<1x512xf32, #tpu.memory_space<vmem>>, %arg6: memref<512x256xbf16, #tpu.memory_space<vmem>>, %arg7: memref<1x256xf32, #tpu.memory_space<vmem>>, %arg8: memref<1x256xf32, #tpu.memory_space<vmem>>, %arg9: memref<1x256xf32, #tpu.memory_space<vmem>>, %arg10: memref<256x9xbf16, #tpu.memory_space<vmem>>, %arg11: memref<1x9xf32, #tpu.memory_space<vmem>>, %arg12: memref<2x9xf32, #tpu.memory_space<vmem>>) attributes {dimension_semantics = [#tpu.dimension_semantics<arbitrary>], iteration_bounds = array<i64: 1>, scalar_prefetch = 0 : i64, scratch_operands = 0 : i64, tpu.core_type = #tpu.core_type<tc>, window_params = [{pipeline_mode = #tpu.pipeline_mode<synchronous>, transform_indices = @transform_0, window_bounds = array<i64: 2, 1024>}, {pipeline_mode = #tpu.pipeline_mode<synchronous>, transform_indices = @transform_1, window_bounds = array<i64: 1024, 512>}, {pipeline_mode = #tpu.pipeline_mode<synchronous>, transform_indices = @transform_2, window_bounds = array<i64: 1, 512>}, {pipeline_mode = #tpu.pipeline_mode<synchronous>, transform_indices = @transform_3, window_bounds = array<i64: 1, 512>}, {pipeline_mode = #tpu.pipeline_mode<synchronous>, transform_indices = @transform_4, window_bounds = array<i64: 1, 512>}, {pipeline_mode = #tpu.pipeline_mode<synchronous>, transform_indices = @transform_5, window_bounds = array<i64: 512, 256>}, {pipeline_mode = #tpu.pipeline_mode<synchronous>, transform_indices = @transform_6, window_bounds = array<i64: 1, 256>}, {pipeline_mode = #tpu.pipeline_mode<synchronous>, transform_indices = @transform_7, window_bounds = array<i64: 1, 256>}, {pipeline_mode = #tpu.pipeline_mode<synchronous>, transform_indices = @transform_8, window_bounds = array<i64: 1, 256>}, {pipeline_mode = #tpu.pipeline_mode<synchronous>, transform_indices = @transform_9, window_bounds = array<i64: 256, 9>}, {pipeline_mode = #tpu.pipeline_mode<synchronous>, transform_indices = @transform_10, window_bounds = array<i64: 1, 9>}, {pipeline_mode = #tpu.pipeline_mode<synchronous>, transform_indices = @transform_11, window_bounds = array<i64: 2, 9>}]} {
    %c0 = arith.constant 0 : index
    %c0_0 = arith.constant 0 : index
    %0 = vector.load %arg1[%c0, %c0_0] : memref<2x1024xf32, #tpu.memory_space<vmem>>, vector<2x1024xf32>
    %1 = arith.truncf %0 : vector<2x1024xf32> to vector<2x1024xbf16>
    %c0_1 = arith.constant 0 : index
    %c0_2 = arith.constant 0 : index
    %2 = vector.load %arg2[%c0_1, %c0_2] : memref<1024x512xbf16, #tpu.memory_space<vmem>>, vector<1024x512xbf16>
    %cst = arith.constant dense<0.000000e+00> : vector<2x512xf32>
    %3 = tpu.matmul %1, %2, %cst {dimension_numbers = #tpu.dot_dimension_numbers<[1], [0], [0], [1], [0, 0, 1, 1], [], []>} : vector<2x1024xbf16>, vector<1024x512xbf16>, vector<2x512xf32> -> vector<2x512xf32>
    %c0_3 = arith.constant 0 : index
    %c0_4 = arith.constant 0 : index
    %4 = vector.load %arg3[%c0_3, %c0_4] : memref<1x512xf32, #tpu.memory_space<vmem>>, vector<1x512xf32>
    %5 = vector.broadcast %4 : vector<1x512xf32> to vector<2x512xf32>
    %6 = arith.addf %3, %5 : vector<2x512xf32>
    %cst_5 = arith.constant dense<0.000000e+00> : vector<512xf32>
    %7 = vector.multi_reduction <add>, %6, %cst_5 [0] : vector<2x512xf32> to vector<512xf32>
    %8 = vector.shape_cast %7 : vector<512xf32> to vector<1x512xf32>
    %cst_6 = arith.constant 2.000000e+00 : f32
    %9 = vector.broadcast %cst_6 : f32 to vector<1x512xf32>
    %10 = arith.divf %8, %9 : vector<1x512xf32>
    %11 = vector.broadcast %10 : vector<1x512xf32> to vector<2x512xf32>
    %12 = arith.subf %6, %11 : vector<2x512xf32>
    %13 = arith.mulf %12, %12 : vector<2x512xf32>
    %cst_7 = arith.constant dense<0.000000e+00> : vector<512xf32>
    %14 = vector.multi_reduction <add>, %13, %cst_7 [0] : vector<2x512xf32> to vector<512xf32>
    %15 = vector.shape_cast %14 : vector<512xf32> to vector<1x512xf32>
    %cst_8 = arith.constant 2.000000e+00 : f32
    %16 = vector.broadcast %cst_8 : f32 to vector<1x512xf32>
    %17 = arith.divf %15, %16 : vector<1x512xf32>
    %18 = vector.broadcast %10 : vector<1x512xf32> to vector<2x512xf32>
    %19 = arith.subf %6, %18 : vector<2x512xf32>
    %cst_9 = arith.constant 9.99999974E-6 : f32
    %20 = vector.broadcast %cst_9 : f32 to vector<1x512xf32>
    %21 = arith.addf %17, %20 : vector<1x512xf32>
    %22 = math.rsqrt %21 : vector<1x512xf32>
    %23 = vector.broadcast %22 : vector<1x512xf32> to vector<2x512xf32>
    %24 = arith.mulf %19, %23 : vector<2x512xf32>
    %c0_10 = arith.constant 0 : index
    %c0_11 = arith.constant 0 : index
    %25 = vector.load %arg4[%c0_10, %c0_11] : memref<1x512xf32, #tpu.memory_space<vmem>>, vector<1x512xf32>
    %26 = vector.broadcast %25 : vector<1x512xf32> to vector<2x512xf32>
    %27 = arith.mulf %24, %26 : vector<2x512xf32>
    %c0_12 = arith.constant 0 : index
    %c0_13 = arith.constant 0 : index
    %28 = vector.load %arg5[%c0_12, %c0_13] : memref<1x512xf32, #tpu.memory_space<vmem>>, vector<1x512xf32>
    %29 = vector.broadcast %28 : vector<1x512xf32> to vector<2x512xf32>
    %30 = arith.addf %27, %29 : vector<2x512xf32>
    %cst_14 = arith.constant 0.000000e+00 : f32
    %31 = vector.broadcast %cst_14 : f32 to vector<2x512xf32>
    %32 = arith.maximumf %30, %31 : vector<2x512xf32>
    %33 = arith.truncf %32 : vector<2x512xf32> to vector<2x512xbf16>
    %c0_15 = arith.constant 0 : index
    %c0_16 = arith.constant 0 : index
    %34 = vector.load %arg6[%c0_15, %c0_16] : memref<512x256xbf16, #tpu.memory_space<vmem>>, vector<512x256xbf16>
    %cst_17 = arith.constant dense<0.000000e+00> : vector<2x256xf32>
    %35 = tpu.matmul %33, %34, %cst_17 {dimension_numbers = #tpu.dot_dimension_numbers<[1], [0], [0], [1], [0, 0, 1, 1], [], []>} : vector<2x512xbf16>, vector<512x256xbf16>, vector<2x256xf32> -> vector<2x256xf32>
    %c0_18 = arith.constant 0 : index
    %c0_19 = arith.constant 0 : index
    %36 = vector.load %arg7[%c0_18, %c0_19] : memref<1x256xf32, #tpu.memory_space<vmem>>, vector<1x256xf32>
    %37 = vector.broadcast %36 : vector<1x256xf32> to vector<2x256xf32>
    %38 = arith.addf %35, %37 : vector<2x256xf32>
    %cst_20 = arith.constant dense<0.000000e+00> : vector<256xf32>
    %39 = vector.multi_reduction <add>, %38, %cst_20 [0] : vector<2x256xf32> to vector<256xf32>
    %40 = vector.shape_cast %39 : vector<256xf32> to vector<1x256xf32>
    %cst_21 = arith.constant 2.000000e+00 : f32
    %41 = vector.broadcast %cst_21 : f32 to vector<1x256xf32>
    %42 = arith.divf %40, %41 : vector<1x256xf32>
    %43 = vector.broadcast %42 : vector<1x256xf32> to vector<2x256xf32>
    %44 = arith.subf %38, %43 : vector<2x256xf32>
    %45 = arith.mulf %44, %44 : vector<2x256xf32>
    %cst_22 = arith.constant dense<0.000000e+00> : vector<256xf32>
    %46 = vector.multi_reduction <add>, %45, %cst_22 [0] : vector<2x256xf32> to vector<256xf32>
    %47 = vector.shape_cast %46 : vector<256xf32> to vector<1x256xf32>
    %cst_23 = arith.constant 2.000000e+00 : f32
    %48 = vector.broadcast %cst_23 : f32 to vector<1x256xf32>
    %49 = arith.divf %47, %48 : vector<1x256xf32>
    %50 = vector.broadcast %42 : vector<1x256xf32> to vector<2x256xf32>
    %51 = arith.subf %38, %50 : vector<2x256xf32>
    %cst_24 = arith.constant 9.99999974E-6 : f32
    %52 = vector.broadcast %cst_24 : f32 to vector<1x256xf32>
    %53 = arith.addf %49, %52 : vector<1x256xf32>
    %54 = math.rsqrt %53 : vector<1x256xf32>
    %55 = vector.broadcast %54 : vector<1x256xf32> to vector<2x256xf32>
    %56 = arith.mulf %51, %55 : vector<2x256xf32>
    %c0_25 = arith.constant 0 : index
    %c0_26 = arith.constant 0 : index
    %57 = vector.load %arg8[%c0_25, %c0_26] : memref<1x256xf32, #tpu.memory_space<vmem>>, vector<1x256xf32>
    %58 = vector.broadcast %57 : vector<1x256xf32> to vector<2x256xf32>
    %59 = arith.mulf %56, %58 : vector<2x256xf32>
    %c0_27 = arith.constant 0 : index
    %c0_28 = arith.constant 0 : index
    %60 = vector.load %arg9[%c0_27, %c0_28] : memref<1x256xf32, #tpu.memory_space<vmem>>, vector<1x256xf32>
    %61 = vector.broadcast %60 : vector<1x256xf32> to vector<2x256xf32>
    %62 = arith.addf %59, %61 : vector<2x256xf32>
    %cst_29 = arith.constant 0.000000e+00 : f32
    %63 = vector.broadcast %cst_29 : f32 to vector<2x256xf32>
    %64 = arith.maximumf %62, %63 : vector<2x256xf32>
    %65 = arith.truncf %64 : vector<2x256xf32> to vector<2x256xbf16>
    %c0_30 = arith.constant 0 : index
    %c0_31 = arith.constant 0 : index
    %66 = vector.load %arg10[%c0_30, %c0_31] : memref<256x9xbf16, #tpu.memory_space<vmem>>, vector<256x9xbf16>
    %cst_32 = arith.constant dense<0.000000e+00> : vector<2x9xf32>
    %67 = tpu.matmul %65, %66, %cst_32 {dimension_numbers = #tpu.dot_dimension_numbers<[1], [0], [0], [1], [0, 0, 1, 1], [], []>} : vector<2x256xbf16>, vector<256x9xbf16>, vector<2x9xf32> -> vector<2x9xf32>
    %c0_33 = arith.constant 0 : index
    %c0_34 = arith.constant 0 : index
    %68 = vector.load %arg11[%c0_33, %c0_34] : memref<1x9xf32, #tpu.memory_space<vmem>>, vector<1x9xf32>
    %69 = vector.broadcast %68 : vector<1x9xf32> to vector<2x9xf32>
    %70 = arith.addf %67, %69 : vector<2x9xf32>
    %c0_35 = arith.constant 0 : index
    %c0_36 = arith.constant 0 : index
    %71 = vector.load %arg12[%c0_35, %c0_36] : memref<2x9xf32, #tpu.memory_space<vmem>>, vector<2x9xf32>
    tpu.vector_store %arg12[%c0_35, %c0_36], %70 {strides = array<i32>} : memref<2x9xf32, #tpu.memory_space<vmem>>, vector<2x9xf32>,
    return
  }
  func.func @transform_0(%arg0: i32) -> (i32, i32) {
    %c0_i32 = arith.constant 0 : i32
    %c0_i32_0 = arith.constant 0 : i32
    %c0_i32_1 = arith.constant 0 : i32
    return %c0_i32, %c0_i32_0 : i32, i32
  }
  func.func @transform_1(%arg0: i32) -> (i32, i32) {
    %c0_i32 = arith.constant 0 : i32
    %c0_i32_0 = arith.constant 0 : i32
    %c0_i32_1 = arith.constant 0 : i32
    return %c0_i32, %c0_i32_0 : i32, i32
  }
  func.func @transform_2(%arg0: i32) -> (i32, i32) {
    %c0_i32 = arith.constant 0 : i32
    %c0_i32_0 = arith.constant 0 : i32
    %c0_i32_1 = arith.constant 0 : i32
    return %c0_i32, %c0_i32_0 : i32, i32
  }
  func.func @transform_3(%arg0: i32) -> (i32, i32) {
    %c0_i32 = arith.constant 0 : i32
    %c0_i32_0 = arith.constant 0 : i32
    %c0_i32_1 = arith.constant 0 : i32
    return %c0_i32, %c0_i32_0 : i32, i32
  }
  func.func @transform_4(%arg0: i32) -> (i32, i32) {
    %c0_i32 = arith.constant 0 : i32
    %c0_i32_0 = arith.constant 0 : i32
    %c0_i32_1 = arith.constant 0 : i32
    return %c0_i32, %c0_i32_0 : i32, i32
  }
  func.func @transform_5(%arg0: i32) -> (i32, i32) {
    %c0_i32 = arith.constant 0 : i32
    %c0_i32_0 = arith.constant 0 : i32
    %c0_i32_1 = arith.constant 0 : i32
    return %c0_i32, %c0_i32_0 : i32, i32
  }
  func.func @transform_6(%arg0: i32) -> (i32, i32) {
    %c0_i32 = arith.constant 0 : i32
    %c0_i32_0 = arith.constant 0 : i32
    %c0_i32_1 = arith.constant 0 : i32
    return %c0_i32, %c0_i32_0 : i32, i32
  }
  func.func @transform_7(%arg0: i32) -> (i32, i32) {
    %c0_i32 = arith.constant 0 : i32
    %c0_i32_0 = arith.constant 0 : i32
    %c0_i32_1 = arith.constant 0 : i32
    return %c0_i32, %c0_i32_0 : i32, i32
  }
  func.func @transform_8(%arg0: i32) -> (i32, i32) {
    %c0_i32 = arith.constant 0 : i32
    %c0_i32_0 = arith.constant 0 : i32
    %c0_i32_1 = arith.constant 0 : i32
    return %c0_i32, %c0_i32_0 : i32, i32
  }
  func.func @transform_9(%arg0: i32) -> (i32, i32) {
    %c0_i32 = arith.constant 0 : i32
    %c0_i32_0 = arith.constant 0 : i32
    %c0_i32_1 = arith.constant 0 : i32
    return %c0_i32, %c0_i32_0 : i32, i32
  }
  func.func @transform_10(%arg0: i32) -> (i32, i32) {
    %c0_i32 = arith.constant 0 : i32
    %c0_i32_0 = arith.constant 0 : i32
    %c0_i32_1 = arith.constant 0 : i32
    return %c0_i32, %c0_i32_0 : i32, i32
  }
  func.func @transform_11(%arg0: i32) -> (i32, i32) {
    %c0_i32 = arith.constant 0 : i32
    %c0_i32_0 = arith.constant 0 : i32
    %c0_i32_1 = arith.constant 0 : i32
    return %c0_i32, %c0_i32_0 : i32, i32
  }
}

module attributes {stable_mosaic.version = 11 : i64} {
  func.func @_conv1_stats_kernel(%arg0: i32, %arg1: i32, %arg2: memref<1x64x3xf32, #tpu.memory_space<vmem>>, %arg3: memref<1x3x64xf32, #tpu.memory_space<vmem>>, %arg4: memref<1x64xf32, #tpu.memory_space<vmem>>, %arg5: memref<1x1x64xf32, #tpu.memory_space<vmem>>, %arg6: memref<1x1x64xf32, #tpu.memory_space<vmem>>) attributes {dimension_semantics = [#tpu.dimension_semantics<parallel>, #tpu.dimension_semantics<arbitrary>], iteration_bounds = array<i64: 4, 1>, scalar_prefetch = 0 : i64, scratch_operands = 0 : i64, tpu.core_type = #tpu.core_type<tc>, window_params = [{transform_indices = @transform_0, window_bounds = array<i64: 1, 64, 3>}, {transform_indices = @transform_1, window_bounds = array<i64: 1, 3, 64>}, {pipeline_mode = #tpu.pipeline_mode<synchronous>, transform_indices = @transform_2, window_bounds = array<i64: 1, 64>}, {transform_indices = @transform_3, window_bounds = array<i64: 1, 1, 64>}, {transform_indices = @transform_4, window_bounds = array<i64: 1, 1, 64>}]} {
    %c0 = arith.constant 0 : index
    %c0_0 = arith.constant 0 : index
    %c0_1 = arith.constant 0 : index
    %0 = vector.load %arg2[%c0, %c0_0, %c0_1] : memref<1x64x3xf32, #tpu.memory_space<vmem>>, vector<1x64x3xf32>
    %1 = vector.shape_cast %0 : vector<1x64x3xf32> to vector<64x3xf32>
    %c0_2 = arith.constant 0 : index
    %c0_3 = arith.constant 0 : index
    %c0_4 = arith.constant 0 : index
    %2 = vector.load %arg3[%c0_2, %c0_3, %c0_4] : memref<1x3x64xf32, #tpu.memory_space<vmem>>, vector<1x3x64xf32>
    %3 = vector.shape_cast %2 : vector<1x3x64xf32> to vector<3x64xf32>
    %c0_5 = arith.constant 0 : index
    %c0_6 = arith.constant 0 : index
    %4 = vector.load %arg4[%c0_5, %c0_6] : memref<1x64xf32, #tpu.memory_space<vmem>>, vector<1x64xf32>
    %5 = vector.extract_strided_slice %1 {offsets = [0, 0], sizes = [64, 1], strides = [1, 1]} : vector<64x3xf32> to vector<64x1xf32>
    %6 = vector.extract_strided_slice %3 {offsets = [0, 0], sizes = [1, 64], strides = [1, 1]} : vector<3x64xf32> to vector<1x64xf32>
    %7 = vector.broadcast %5 : vector<64x1xf32> to vector<64x64xf32>
    %8 = vector.broadcast %6 : vector<1x64xf32> to vector<64x64xf32>
    %9 = arith.mulf %7, %8 : vector<64x64xf32>
    %10 = vector.extract_strided_slice %1 {offsets = [0, 1], sizes = [64, 1], strides = [1, 1]} : vector<64x3xf32> to vector<64x1xf32>
    %11 = vector.extract_strided_slice %3 {offsets = [1, 0], sizes = [1, 64], strides = [1, 1]} : vector<3x64xf32> to vector<1x64xf32>
    %12 = vector.broadcast %10 : vector<64x1xf32> to vector<64x64xf32>
    %13 = vector.broadcast %11 : vector<1x64xf32> to vector<64x64xf32>
    %14 = arith.mulf %12, %13 : vector<64x64xf32>
    %15 = arith.addf %9, %14 : vector<64x64xf32>
    %16 = vector.extract_strided_slice %1 {offsets = [0, 2], sizes = [64, 1], strides = [1, 1]} : vector<64x3xf32> to vector<64x1xf32>
    %17 = vector.extract_strided_slice %3 {offsets = [2, 0], sizes = [1, 64], strides = [1, 1]} : vector<3x64xf32> to vector<1x64xf32>
    %18 = vector.broadcast %16 : vector<64x1xf32> to vector<64x64xf32>
    %19 = vector.broadcast %17 : vector<1x64xf32> to vector<64x64xf32>
    %20 = arith.mulf %18, %19 : vector<64x64xf32>
    %21 = arith.addf %15, %20 : vector<64x64xf32>
    %22 = vector.broadcast %4 : vector<1x64xf32> to vector<64x64xf32>
    %23 = arith.addf %21, %22 : vector<64x64xf32>
    %c0_i32 = arith.constant 0 : i32
    %24 = arith.cmpi eq, %arg1, %c0_i32 : i32
    %25 = arith.extui %24 : i1 to i32
    %c0_i32_7 = arith.constant 0 : i32
    %26 = arith.cmpi ne, %25, %c0_i32_7 : i32
    scf.if %26 {
      %cst_21 = arith.constant 0.000000e+00 : f32
      %44 = vector.broadcast %cst_21 : f32 to vector<1x64xf32>
      %c0_22 = arith.constant 0 : index
      %c0_23 = arith.constant 0 : index
      %c0_24 = arith.constant 0 : index
      %45 = vector.load %arg5[%c0_22, %c0_23, %c0_24] : memref<1x1x64xf32, #tpu.memory_space<vmem>>, vector<1x1x64xf32>
      %46 = vector.shape_cast %45 : vector<1x1x64xf32> to vector<1x64xf32>
      %47 = vector.shape_cast %44 : vector<1x64xf32> to vector<1x1x64xf32>
      tpu.vector_store %arg5[%c0_22, %c0_23, %c0_24], %47 {strides = array<i32>} : memref<1x1x64xf32, #tpu.memory_space<vmem>>, vector<1x1x64xf32>,
      %cst_25 = arith.constant 0.000000e+00 : f32
      %48 = vector.broadcast %cst_25 : f32 to vector<1x64xf32>
      %c0_26 = arith.constant 0 : index
      %c0_27 = arith.constant 0 : index
      %c0_28 = arith.constant 0 : index
      %49 = vector.load %arg6[%c0_26, %c0_27, %c0_28] : memref<1x1x64xf32, #tpu.memory_space<vmem>>, vector<1x1x64xf32>
      %50 = vector.shape_cast %49 : vector<1x1x64xf32> to vector<1x64xf32>
      %51 = vector.shape_cast %48 : vector<1x64xf32> to vector<1x1x64xf32>
      tpu.vector_store %arg6[%c0_26, %c0_27, %c0_28], %51 {strides = array<i32>} : memref<1x1x64xf32, #tpu.memory_space<vmem>>, vector<1x1x64xf32>,
    } else {
    }
    %c0_8 = arith.constant 0 : index
    %c0_9 = arith.constant 0 : index
    %c0_10 = arith.constant 0 : index
    %27 = vector.load %arg5[%c0_8, %c0_9, %c0_10] : memref<1x1x64xf32, #tpu.memory_space<vmem>>, vector<1x1x64xf32>
    %28 = vector.shape_cast %27 : vector<1x1x64xf32> to vector<1x64xf32>
    %cst = arith.constant dense<0.000000e+00> : vector<64xf32>
    %29 = vector.multi_reduction <add>, %23, %cst [0] : vector<64x64xf32> to vector<64xf32>
    %30 = vector.shape_cast %29 : vector<64xf32> to vector<1x64xf32>
    %31 = arith.addf %28, %30 : vector<1x64xf32>
    %c0_11 = arith.constant 0 : index
    %c0_12 = arith.constant 0 : index
    %c0_13 = arith.constant 0 : index
    %32 = vector.load %arg5[%c0_11, %c0_12, %c0_13] : memref<1x1x64xf32, #tpu.memory_space<vmem>>, vector<1x1x64xf32>
    %33 = vector.shape_cast %32 : vector<1x1x64xf32> to vector<1x64xf32>
    %34 = vector.shape_cast %31 : vector<1x64xf32> to vector<1x1x64xf32>
    tpu.vector_store %arg5[%c0_11, %c0_12, %c0_13], %34 {strides = array<i32>} : memref<1x1x64xf32, #tpu.memory_space<vmem>>, vector<1x1x64xf32>,
    %c0_14 = arith.constant 0 : index
    %c0_15 = arith.constant 0 : index
    %c0_16 = arith.constant 0 : index
    %35 = vector.load %arg6[%c0_14, %c0_15, %c0_16] : memref<1x1x64xf32, #tpu.memory_space<vmem>>, vector<1x1x64xf32>
    %36 = vector.shape_cast %35 : vector<1x1x64xf32> to vector<1x64xf32>
    %37 = arith.mulf %23, %23 : vector<64x64xf32>
    %cst_17 = arith.constant dense<0.000000e+00> : vector<64xf32>
    %38 = vector.multi_reduction <add>, %37, %cst_17 [0] : vector<64x64xf32> to vector<64xf32>
    %39 = vector.shape_cast %38 : vector<64xf32> to vector<1x64xf32>
    %40 = arith.addf %36, %39 : vector<1x64xf32>
    %c0_18 = arith.constant 0 : index
    %c0_19 = arith.constant 0 : index
    %c0_20 = arith.constant 0 : index
    %41 = vector.load %arg6[%c0_18, %c0_19, %c0_20] : memref<1x1x64xf32, #tpu.memory_space<vmem>>, vector<1x1x64xf32>
    %42 = vector.shape_cast %41 : vector<1x1x64xf32> to vector<1x64xf32>
    %43 = vector.shape_cast %40 : vector<1x64xf32> to vector<1x1x64xf32>
    tpu.vector_store %arg6[%c0_18, %c0_19, %c0_20], %43 {strides = array<i32>} : memref<1x1x64xf32, #tpu.memory_space<vmem>>, vector<1x1x64xf32>,
    return
  }
  func.func @transform_0(%arg0: i32, %arg1: i32) -> (i32, i32, i32) {
    %c0_i32 = arith.constant 0 : i32
    %c0_i32_0 = arith.constant 0 : i32
    return %arg0, %arg1, %c0_i32 : i32, i32, i32
  }
  func.func @transform_1(%arg0: i32, %arg1: i32) -> (i32, i32, i32) {
    %c0_i32 = arith.constant 0 : i32
    %c0_i32_0 = arith.constant 0 : i32
    %c0_i32_1 = arith.constant 0 : i32
    return %arg0, %c0_i32, %c0_i32_0 : i32, i32, i32
  }
  func.func @transform_2(%arg0: i32, %arg1: i32) -> (i32, i32) {
    %c0_i32 = arith.constant 0 : i32
    %c0_i32_0 = arith.constant 0 : i32
    %c0_i32_1 = arith.constant 0 : i32
    return %c0_i32, %c0_i32_0 : i32, i32
  }
  func.func @transform_3(%arg0: i32, %arg1: i32) -> (i32, i32, i32) {
    %c0_i32 = arith.constant 0 : i32
    %c0_i32_0 = arith.constant 0 : i32
    %c0_i32_1 = arith.constant 0 : i32
    return %arg0, %c0_i32, %c0_i32_0 : i32, i32, i32
  }
  func.func @transform_4(%arg0: i32, %arg1: i32) -> (i32, i32, i32) {
    %c0_i32 = arith.constant 0 : i32
    %c0_i32_0 = arith.constant 0 : i32
    %c0_i32_1 = arith.constant 0 : i32
    return %arg0, %c0_i32, %c0_i32_0 : i32, i32, i32
  }
}

module attributes {stable_mosaic.version = 11 : i64} {
  func.func @_conv12_kernel(%arg0: i32, %arg1: i32, %arg2: memref<1x64x3xf32, #tpu.memory_space<vmem>>, %arg3: memref<1x3x64xf32, #tpu.memory_space<vmem>>, %arg4: memref<1x64xf32, #tpu.memory_space<vmem>>, %arg5: memref<1x64xf32, #tpu.memory_space<vmem>>, %arg6: memref<1x64xf32, #tpu.memory_space<vmem>>, %arg7: memref<64x128xbf16, #tpu.memory_space<vmem>>, %arg8: memref<1x128xf32, #tpu.memory_space<vmem>>, %arg9: memref<1x64x128xbf16, #tpu.memory_space<vmem>>, %arg10: memref<1x1x128xf32, #tpu.memory_space<vmem>>, %arg11: memref<1x1x128xf32, #tpu.memory_space<vmem>>) attributes {dimension_semantics = [#tpu.dimension_semantics<parallel>, #tpu.dimension_semantics<arbitrary>], iteration_bounds = array<i64: 4, 1>, scalar_prefetch = 0 : i64, scratch_operands = 0 : i64, tpu.core_type = #tpu.core_type<tc>, window_params = [{transform_indices = @transform_0, window_bounds = array<i64: 1, 64, 3>}, {transform_indices = @transform_1, window_bounds = array<i64: 1, 3, 64>}, {pipeline_mode = #tpu.pipeline_mode<synchronous>, transform_indices = @transform_2, window_bounds = array<i64: 1, 64>}, {pipeline_mode = #tpu.pipeline_mode<synchronous>, transform_indices = @transform_3, window_bounds = array<i64: 1, 64>}, {pipeline_mode = #tpu.pipeline_mode<synchronous>, transform_indices = @transform_4, window_bounds = array<i64: 1, 64>}, {pipeline_mode = #tpu.pipeline_mode<synchronous>, transform_indices = @transform_5, window_bounds = array<i64: 64, 128>}, {pipeline_mode = #tpu.pipeline_mode<synchronous>, transform_indices = @transform_6, window_bounds = array<i64: 1, 128>}, {transform_indices = @transform_7, window_bounds = array<i64: 1, 64, 128>}, {transform_indices = @transform_8, window_bounds = array<i64: 1, 1, 128>}, {transform_indices = @transform_9, window_bounds = array<i64: 1, 1, 128>}]} {
    %c0 = arith.constant 0 : index
    %c0_0 = arith.constant 0 : index
    %c0_1 = arith.constant 0 : index
    %0 = vector.load %arg2[%c0, %c0_0, %c0_1] : memref<1x64x3xf32, #tpu.memory_space<vmem>>, vector<1x64x3xf32>
    %1 = vector.shape_cast %0 : vector<1x64x3xf32> to vector<64x3xf32>
    %c0_2 = arith.constant 0 : index
    %c0_3 = arith.constant 0 : index
    %c0_4 = arith.constant 0 : index
    %2 = vector.load %arg3[%c0_2, %c0_3, %c0_4] : memref<1x3x64xf32, #tpu.memory_space<vmem>>, vector<1x3x64xf32>
    %3 = vector.shape_cast %2 : vector<1x3x64xf32> to vector<3x64xf32>
    %c0_5 = arith.constant 0 : index
    %c0_6 = arith.constant 0 : index
    %4 = vector.load %arg4[%c0_5, %c0_6] : memref<1x64xf32, #tpu.memory_space<vmem>>, vector<1x64xf32>
    %5 = vector.extract_strided_slice %1 {offsets = [0, 0], sizes = [64, 1], strides = [1, 1]} : vector<64x3xf32> to vector<64x1xf32>
    %6 = vector.extract_strided_slice %3 {offsets = [0, 0], sizes = [1, 64], strides = [1, 1]} : vector<3x64xf32> to vector<1x64xf32>
    %7 = vector.broadcast %5 : vector<64x1xf32> to vector<64x64xf32>
    %8 = vector.broadcast %6 : vector<1x64xf32> to vector<64x64xf32>
    %9 = arith.mulf %7, %8 : vector<64x64xf32>
    %10 = vector.extract_strided_slice %1 {offsets = [0, 1], sizes = [64, 1], strides = [1, 1]} : vector<64x3xf32> to vector<64x1xf32>
    %11 = vector.extract_strided_slice %3 {offsets = [1, 0], sizes = [1, 64], strides = [1, 1]} : vector<3x64xf32> to vector<1x64xf32>
    %12 = vector.broadcast %10 : vector<64x1xf32> to vector<64x64xf32>
    %13 = vector.broadcast %11 : vector<1x64xf32> to vector<64x64xf32>
    %14 = arith.mulf %12, %13 : vector<64x64xf32>
    %15 = arith.addf %9, %14 : vector<64x64xf32>
    %16 = vector.extract_strided_slice %1 {offsets = [0, 2], sizes = [64, 1], strides = [1, 1]} : vector<64x3xf32> to vector<64x1xf32>
    %17 = vector.extract_strided_slice %3 {offsets = [2, 0], sizes = [1, 64], strides = [1, 1]} : vector<3x64xf32> to vector<1x64xf32>
    %18 = vector.broadcast %16 : vector<64x1xf32> to vector<64x64xf32>
    %19 = vector.broadcast %17 : vector<1x64xf32> to vector<64x64xf32>
    %20 = arith.mulf %18, %19 : vector<64x64xf32>
    %21 = arith.addf %15, %20 : vector<64x64xf32>
    %22 = vector.broadcast %4 : vector<1x64xf32> to vector<64x64xf32>
    %23 = arith.addf %21, %22 : vector<64x64xf32>
    %c0_7 = arith.constant 0 : index
    %c0_8 = arith.constant 0 : index
    %24 = vector.load %arg5[%c0_7, %c0_8] : memref<1x64xf32, #tpu.memory_space<vmem>>, vector<1x64xf32>
    %25 = vector.broadcast %24 : vector<1x64xf32> to vector<64x64xf32>
    %26 = arith.mulf %23, %25 : vector<64x64xf32>
    %c0_9 = arith.constant 0 : index
    %c0_10 = arith.constant 0 : index
    %27 = vector.load %arg6[%c0_9, %c0_10] : memref<1x64xf32, #tpu.memory_space<vmem>>, vector<1x64xf32>
    %28 = vector.broadcast %27 : vector<1x64xf32> to vector<64x64xf32>
    %29 = arith.addf %26, %28 : vector<64x64xf32>
    %cst = arith.constant 0.000000e+00 : f32
    %30 = vector.broadcast %cst : f32 to vector<64x64xf32>
    %31 = arith.maximumf %29, %30 : vector<64x64xf32>
    %32 = arith.truncf %31 : vector<64x64xf32> to vector<64x64xbf16>
    %c0_11 = arith.constant 0 : index
    %c0_12 = arith.constant 0 : index
    %33 = vector.load %arg7[%c0_11, %c0_12] : memref<64x128xbf16, #tpu.memory_space<vmem>>, vector<64x128xbf16>
    %cst_13 = arith.constant dense<0.000000e+00> : vector<64x128xf32>
    %34 = tpu.matmul %32, %33, %cst_13 {dimension_numbers = #tpu.dot_dimension_numbers<[1], [0], [0], [1], [0, 0, 1, 1], [], []>} : vector<64x64xbf16>, vector<64x128xbf16>, vector<64x128xf32> -> vector<64x128xf32>
    %c0_14 = arith.constant 0 : index
    %c0_15 = arith.constant 0 : index
    %35 = vector.load %arg8[%c0_14, %c0_15] : memref<1x128xf32, #tpu.memory_space<vmem>>, vector<1x128xf32>
    %36 = vector.broadcast %35 : vector<1x128xf32> to vector<64x128xf32>
    %37 = arith.addf %34, %36 : vector<64x128xf32>
    %38 = arith.truncf %37 : vector<64x128xf32> to vector<64x128xbf16>
    %c0_16 = arith.constant 0 : index
    %c0_17 = arith.constant 0 : index
    %c0_18 = arith.constant 0 : index
    %39 = vector.load %arg9[%c0_16, %c0_17, %c0_18] : memref<1x64x128xbf16, #tpu.memory_space<vmem>>, vector<1x64x128xbf16>
    %40 = vector.shape_cast %39 : vector<1x64x128xbf16> to vector<64x128xbf16>
    %41 = vector.shape_cast %38 : vector<64x128xbf16> to vector<1x64x128xbf16>
    tpu.vector_store %arg9[%c0_16, %c0_17, %c0_18], %41 {strides = array<i32>} : memref<1x64x128xbf16, #tpu.memory_space<vmem>>, vector<1x64x128xbf16>,
    %c0_i32 = arith.constant 0 : i32
    %42 = arith.cmpi eq, %arg1, %c0_i32 : i32
    %43 = arith.extui %42 : i1 to i32
    %c0_i32_19 = arith.constant 0 : i32
    %44 = arith.cmpi ne, %43, %c0_i32_19 : i32
    scf.if %44 {
      %cst_34 = arith.constant 0.000000e+00 : f32
      %62 = vector.broadcast %cst_34 : f32 to vector<1x128xf32>
      %c0_35 = arith.constant 0 : index
      %c0_36 = arith.constant 0 : index
      %c0_37 = arith.constant 0 : index
      %63 = vector.load %arg10[%c0_35, %c0_36, %c0_37] : memref<1x1x128xf32, #tpu.memory_space<vmem>>, vector<1x1x128xf32>
      %64 = vector.shape_cast %63 : vector<1x1x128xf32> to vector<1x128xf32>
      %65 = vector.shape_cast %62 : vector<1x128xf32> to vector<1x1x128xf32>
      tpu.vector_store %arg10[%c0_35, %c0_36, %c0_37], %65 {strides = array<i32>} : memref<1x1x128xf32, #tpu.memory_space<vmem>>, vector<1x1x128xf32>,
      %cst_38 = arith.constant 0.000000e+00 : f32
      %66 = vector.broadcast %cst_38 : f32 to vector<1x128xf32>
      %c0_39 = arith.constant 0 : index
      %c0_40 = arith.constant 0 : index
      %c0_41 = arith.constant 0 : index
      %67 = vector.load %arg11[%c0_39, %c0_40, %c0_41] : memref<1x1x128xf32, #tpu.memory_space<vmem>>, vector<1x1x128xf32>
      %68 = vector.shape_cast %67 : vector<1x1x128xf32> to vector<1x128xf32>
      %69 = vector.shape_cast %66 : vector<1x128xf32> to vector<1x1x128xf32>
      tpu.vector_store %arg11[%c0_39, %c0_40, %c0_41], %69 {strides = array<i32>} : memref<1x1x128xf32, #tpu.memory_space<vmem>>, vector<1x1x128xf32>,
    } else {
    }
    %c0_20 = arith.constant 0 : index
    %c0_21 = arith.constant 0 : index
    %c0_22 = arith.constant 0 : index
    %45 = vector.load %arg10[%c0_20, %c0_21, %c0_22] : memref<1x1x128xf32, #tpu.memory_space<vmem>>, vector<1x1x128xf32>
    %46 = vector.shape_cast %45 : vector<1x1x128xf32> to vector<1x128xf32>
    %cst_23 = arith.constant dense<0.000000e+00> : vector<128xf32>
    %47 = vector.multi_reduction <add>, %37, %cst_23 [0] : vector<64x128xf32> to vector<128xf32>
    %48 = vector.shape_cast %47 : vector<128xf32> to vector<1x128xf32>
    %49 = arith.addf %46, %48 : vector<1x128xf32>
    %c0_24 = arith.constant 0 : index
    %c0_25 = arith.constant 0 : index
    %c0_26 = arith.constant 0 : index
    %50 = vector.load %arg10[%c0_24, %c0_25, %c0_26] : memref<1x1x128xf32, #tpu.memory_space<vmem>>, vector<1x1x128xf32>
    %51 = vector.shape_cast %50 : vector<1x1x128xf32> to vector<1x128xf32>
    %52 = vector.shape_cast %49 : vector<1x128xf32> to vector<1x1x128xf32>
    tpu.vector_store %arg10[%c0_24, %c0_25, %c0_26], %52 {strides = array<i32>} : memref<1x1x128xf32, #tpu.memory_space<vmem>>, vector<1x1x128xf32>,
    %c0_27 = arith.constant 0 : index
    %c0_28 = arith.constant 0 : index
    %c0_29 = arith.constant 0 : index
    %53 = vector.load %arg11[%c0_27, %c0_28, %c0_29] : memref<1x1x128xf32, #tpu.memory_space<vmem>>, vector<1x1x128xf32>
    %54 = vector.shape_cast %53 : vector<1x1x128xf32> to vector<1x128xf32>
    %55 = arith.mulf %37, %37 : vector<64x128xf32>
    %cst_30 = arith.constant dense<0.000000e+00> : vector<128xf32>
    %56 = vector.multi_reduction <add>, %55, %cst_30 [0] : vector<64x128xf32> to vector<128xf32>
    %57 = vector.shape_cast %56 : vector<128xf32> to vector<1x128xf32>
    %58 = arith.addf %54, %57 : vector<1x128xf32>
    %c0_31 = arith.constant 0 : index
    %c0_32 = arith.constant 0 : index
    %c0_33 = arith.constant 0 : index
    %59 = vector.load %arg11[%c0_31, %c0_32, %c0_33] : memref<1x1x128xf32, #tpu.memory_space<vmem>>, vector<1x1x128xf32>
    %60 = vector.shape_cast %59 : vector<1x1x128xf32> to vector<1x128xf32>
    %61 = vector.shape_cast %58 : vector<1x128xf32> to vector<1x1x128xf32>
    tpu.vector_store %arg11[%c0_31, %c0_32, %c0_33], %61 {strides = array<i32>} : memref<1x1x128xf32, #tpu.memory_space<vmem>>, vector<1x1x128xf32>,
    return
  }
  func.func @transform_0(%arg0: i32, %arg1: i32) -> (i32, i32, i32) {
    %c0_i32 = arith.constant 0 : i32
    %c0_i32_0 = arith.constant 0 : i32
    return %arg0, %arg1, %c0_i32 : i32, i32, i32
  }
  func.func @transform_1(%arg0: i32, %arg1: i32) -> (i32, i32, i32) {
    %c0_i32 = arith.constant 0 : i32
    %c0_i32_0 = arith.constant 0 : i32
    %c0_i32_1 = arith.constant 0 : i32
    return %arg0, %c0_i32, %c0_i32_0 : i32, i32, i32
  }
  func.func @transform_2(%arg0: i32, %arg1: i32) -> (i32, i32) {
    %c0_i32 = arith.constant 0 : i32
    %c0_i32_0 = arith.constant 0 : i32
    %c0_i32_1 = arith.constant 0 : i32
    return %c0_i32, %c0_i32_0 : i32, i32
  }
  func.func @transform_3(%arg0: i32, %arg1: i32) -> (i32, i32) {
    %c0_i32 = arith.constant 0 : i32
    %c0_i32_0 = arith.constant 0 : i32
    %c0_i32_1 = arith.constant 0 : i32
    return %c0_i32, %c0_i32_0 : i32, i32
  }
  func.func @transform_4(%arg0: i32, %arg1: i32) -> (i32, i32) {
    %c0_i32 = arith.constant 0 : i32
    %c0_i32_0 = arith.constant 0 : i32
    %c0_i32_1 = arith.constant 0 : i32
    return %c0_i32, %c0_i32_0 : i32, i32
  }
  func.func @transform_5(%arg0: i32, %arg1: i32) -> (i32, i32) {
    %c0_i32 = arith.constant 0 : i32
    %c0_i32_0 = arith.constant 0 : i32
    %c0_i32_1 = arith.constant 0 : i32
    return %c0_i32, %c0_i32_0 : i32, i32
  }
  func.func @transform_6(%arg0: i32, %arg1: i32) -> (i32, i32) {
    %c0_i32 = arith.constant 0 : i32
    %c0_i32_0 = arith.constant 0 : i32
    %c0_i32_1 = arith.constant 0 : i32
    return %c0_i32, %c0_i32_0 : i32, i32
  }
  func.func @transform_7(%arg0: i32, %arg1: i32) -> (i32, i32, i32) {
    %c0_i32 = arith.constant 0 : i32
    %c0_i32_0 = arith.constant 0 : i32
    return %arg0, %arg1, %c0_i32 : i32, i32, i32
  }
  func.func @transform_8(%arg0: i32, %arg1: i32) -> (i32, i32, i32) {
    %c0_i32 = arith.constant 0 : i32
    %c0_i32_0 = arith.constant 0 : i32
    %c0_i32_1 = arith.constant 0 : i32
    return %arg0, %c0_i32, %c0_i32_0 : i32, i32, i32
  }
  func.func @transform_9(%arg0: i32, %arg1: i32) -> (i32, i32, i32) {
    %c0_i32 = arith.constant 0 : i32
    %c0_i32_0 = arith.constant 0 : i32
    %c0_i32_1 = arith.constant 0 : i32
    return %arg0, %c0_i32, %c0_i32_0 : i32, i32, i32
  }
}

module attributes {stable_mosaic.version = 11 : i64} {
  func.func @_conv3_pool_kernel(%arg0: i32, %arg1: i32, %arg2: memref<1x64x128xbf16, #tpu.memory_space<vmem>>, %arg3: memref<1x128xf32, #tpu.memory_space<vmem>>, %arg4: memref<1x128xf32, #tpu.memory_space<vmem>>, %arg5: memref<128x1024xbf16, #tpu.memory_space<vmem>>, %arg6: memref<1x1024xf32, #tpu.memory_space<vmem>>, %arg7: memref<1x1x1024xf32, #tpu.memory_space<vmem>>, %arg8: memref<1x1x1024xf32, #tpu.memory_space<vmem>>, %arg9: memref<1x1x1024xf32, #tpu.memory_space<vmem>>, %arg10: memref<1x1x1024xf32, #tpu.memory_space<vmem>>) attributes {dimension_semantics = [#tpu.dimension_semantics<parallel>, #tpu.dimension_semantics<arbitrary>], iteration_bounds = array<i64: 4, 1>, scalar_prefetch = 0 : i64, scratch_operands = 0 : i64, tpu.core_type = #tpu.core_type<tc>, window_params = [{transform_indices = @transform_0, window_bounds = array<i64: 1, 64, 128>}, {pipeline_mode = #tpu.pipeline_mode<synchronous>, transform_indices = @transform_1, window_bounds = array<i64: 1, 128>}, {pipeline_mode = #tpu.pipeline_mode<synchronous>, transform_indices = @transform_2, window_bounds = array<i64: 1, 128>}, {pipeline_mode = #tpu.pipeline_mode<synchronous>, transform_indices = @transform_3, window_bounds = array<i64: 128, 1024>}, {pipeline_mode = #tpu.pipeline_mode<synchronous>, transform_indices = @transform_4, window_bounds = array<i64: 1, 1024>}, {transform_indices = @transform_5, window_bounds = array<i64: 1, 1, 1024>}, {transform_indices = @transform_6, window_bounds = array<i64: 1, 1, 1024>}, {transform_indices = @transform_7, window_bounds = array<i64: 1, 1, 1024>}, {transform_indices = @transform_8, window_bounds = array<i64: 1, 1, 1024>}]} {
    %c0 = arith.constant 0 : index
    %c0_0 = arith.constant 0 : index
    %c0_1 = arith.constant 0 : index
    %0 = vector.load %arg2[%c0, %c0_0, %c0_1] : memref<1x64x128xbf16, #tpu.memory_space<vmem>>, vector<1x64x128xbf16>
    %1 = vector.shape_cast %0 : vector<1x64x128xbf16> to vector<64x128xbf16>
    %2 = arith.extf %1 : vector<64x128xbf16> to vector<64x128xf32>
    %c0_2 = arith.constant 0 : index
    %c0_3 = arith.constant 0 : index
    %3 = vector.load %arg3[%c0_2, %c0_3] : memref<1x128xf32, #tpu.memory_space<vmem>>, vector<1x128xf32>
    %4 = vector.broadcast %3 : vector<1x128xf32> to vector<64x128xf32>
    %5 = arith.mulf %2, %4 : vector<64x128xf32>
    %c0_4 = arith.constant 0 : index
    %c0_5 = arith.constant 0 : index
    %6 = vector.load %arg4[%c0_4, %c0_5] : memref<1x128xf32, #tpu.memory_space<vmem>>, vector<1x128xf32>
    %7 = vector.broadcast %6 : vector<1x128xf32> to vector<64x128xf32>
    %8 = arith.addf %5, %7 : vector<64x128xf32>
    %cst = arith.constant 0.000000e+00 : f32
    %9 = vector.broadcast %cst : f32 to vector<64x128xf32>
    %10 = arith.maximumf %8, %9 : vector<64x128xf32>
    %11 = arith.truncf %10 : vector<64x128xf32> to vector<64x128xbf16>
    %c0_6 = arith.constant 0 : index
    %c0_7 = arith.constant 0 : index
    %12 = vector.load %arg5[%c0_6, %c0_7] : memref<128x1024xbf16, #tpu.memory_space<vmem>>, vector<128x1024xbf16>
    %cst_8 = arith.constant dense<0.000000e+00> : vector<64x1024xf32>
    %13 = tpu.matmul %11, %12, %cst_8 {dimension_numbers = #tpu.dot_dimension_numbers<[1], [0], [0], [1], [0, 0, 1, 1], [], []>} : vector<64x128xbf16>, vector<128x1024xbf16>, vector<64x1024xf32> -> vector<64x1024xf32>
    %c0_9 = arith.constant 0 : index
    %c0_10 = arith.constant 0 : index
    %14 = vector.load %arg6[%c0_9, %c0_10] : memref<1x1024xf32, #tpu.memory_space<vmem>>, vector<1x1024xf32>
    %15 = vector.broadcast %14 : vector<1x1024xf32> to vector<64x1024xf32>
    %16 = arith.addf %13, %15 : vector<64x1024xf32>
    %c0_i32 = arith.constant 0 : i32
    %17 = arith.cmpi eq, %arg1, %c0_i32 : i32
    %18 = arith.extui %17 : i1 to i32
    %c0_i32_11 = arith.constant 0 : i32
    %19 = arith.cmpi ne, %18, %c0_i32_11 : i32
    scf.if %19 {
      %cst_40 = arith.constant 0xFF800000 : f32
      %53 = vector.broadcast %cst_40 : f32 to vector<1x1024xf32>
      %c0_41 = arith.constant 0 : index
      %c0_42 = arith.constant 0 : index
      %c0_43 = arith.constant 0 : index
      %54 = vector.load %arg7[%c0_41, %c0_42, %c0_43] : memref<1x1x1024xf32, #tpu.memory_space<vmem>>, vector<1x1x1024xf32>
      %55 = vector.shape_cast %54 : vector<1x1x1024xf32> to vector<1x1024xf32>
      %56 = vector.shape_cast %53 : vector<1x1024xf32> to vector<1x1x1024xf32>
      tpu.vector_store %arg7[%c0_41, %c0_42, %c0_43], %56 {strides = array<i32>} : memref<1x1x1024xf32, #tpu.memory_space<vmem>>, vector<1x1x1024xf32>,
      %cst_44 = arith.constant 0x7F800000 : f32
      %57 = vector.broadcast %cst_44 : f32 to vector<1x1024xf32>
      %c0_45 = arith.constant 0 : index
      %c0_46 = arith.constant 0 : index
      %c0_47 = arith.constant 0 : index
      %58 = vector.load %arg8[%c0_45, %c0_46, %c0_47] : memref<1x1x1024xf32, #tpu.memory_space<vmem>>, vector<1x1x1024xf32>
      %59 = vector.shape_cast %58 : vector<1x1x1024xf32> to vector<1x1024xf32>
      %60 = vector.shape_cast %57 : vector<1x1024xf32> to vector<1x1x1024xf32>
      tpu.vector_store %arg8[%c0_45, %c0_46, %c0_47], %60 {strides = array<i32>} : memref<1x1x1024xf32, #tpu.memory_space<vmem>>, vector<1x1x1024xf32>,
      %cst_48 = arith.constant 0.000000e+00 : f32
      %61 = vector.broadcast %cst_48 : f32 to vector<1x1024xf32>
      %c0_49 = arith.constant 0 : index
      %c0_50 = arith.constant 0 : index
      %c0_51 = arith.constant 0 : index
      %62 = vector.load %arg9[%c0_49, %c0_50, %c0_51] : memref<1x1x1024xf32, #tpu.memory_space<vmem>>, vector<1x1x1024xf32>
      %63 = vector.shape_cast %62 : vector<1x1x1024xf32> to vector<1x1024xf32>
      %64 = vector.shape_cast %61 : vector<1x1024xf32> to vector<1x1x1024xf32>
      tpu.vector_store %arg9[%c0_49, %c0_50, %c0_51], %64 {strides = array<i32>} : memref<1x1x1024xf32, #tpu.memory_space<vmem>>, vector<1x1x1024xf32>,
      %cst_52 = arith.constant 0.000000e+00 : f32
      %65 = vector.broadcast %cst_52 : f32 to vector<1x1024xf32>
      %c0_53 = arith.constant 0 : index
      %c0_54 = arith.constant 0 : index
      %c0_55 = arith.constant 0 : index
      %66 = vector.load %arg10[%c0_53, %c0_54, %c0_55] : memref<1x1x1024xf32, #tpu.memory_space<vmem>>, vector<1x1x1024xf32>
      %67 = vector.shape_cast %66 : vector<1x1x1024xf32> to vector<1x1024xf32>
      %68 = vector.shape_cast %65 : vector<1x1024xf32> to vector<1x1x1024xf32>
      tpu.vector_store %arg10[%c0_53, %c0_54, %c0_55], %68 {strides = array<i32>} : memref<1x1x1024xf32, #tpu.memory_space<vmem>>, vector<1x1x1024xf32>,
    } else {
    }
    %c0_12 = arith.constant 0 : index
    %c0_13 = arith.constant 0 : index
    %c0_14 = arith.constant 0 : index
    %20 = vector.load %arg9[%c0_12, %c0_13, %c0_14] : memref<1x1x1024xf32, #tpu.memory_space<vmem>>, vector<1x1x1024xf32>
    %21 = vector.shape_cast %20 : vector<1x1x1024xf32> to vector<1x1024xf32>
    %cst_15 = arith.constant dense<0.000000e+00> : vector<1024xf32>
    %22 = vector.multi_reduction <add>, %16, %cst_15 [0] : vector<64x1024xf32> to vector<1024xf32>
    %23 = vector.shape_cast %22 : vector<1024xf32> to vector<1x1024xf32>
    %24 = arith.addf %21, %23 : vector<1x1024xf32>
    %c0_16 = arith.constant 0 : index
    %c0_17 = arith.constant 0 : index
    %c0_18 = arith.constant 0 : index
    %25 = vector.load %arg9[%c0_16, %c0_17, %c0_18] : memref<1x1x1024xf32, #tpu.memory_space<vmem>>, vector<1x1x1024xf32>
    %26 = vector.shape_cast %25 : vector<1x1x1024xf32> to vector<1x1024xf32>
    %27 = vector.shape_cast %24 : vector<1x1024xf32> to vector<1x1x1024xf32>
    tpu.vector_store %arg9[%c0_16, %c0_17, %c0_18], %27 {strides = array<i32>} : memref<1x1x1024xf32, #tpu.memory_space<vmem>>, vector<1x1x1024xf32>,
    %c0_19 = arith.constant 0 : index
    %c0_20 = arith.constant 0 : index
    %c0_21 = arith.constant 0 : index
    %28 = vector.load %arg10[%c0_19, %c0_20, %c0_21] : memref<1x1x1024xf32, #tpu.memory_space<vmem>>, vector<1x1x1024xf32>
    %29 = vector.shape_cast %28 : vector<1x1x1024xf32> to vector<1x1024xf32>
    %30 = arith.mulf %16, %16 : vector<64x1024xf32>
    %cst_22 = arith.constant dense<0.000000e+00> : vector<1024xf32>
    %31 = vector.multi_reduction <add>, %30, %cst_22 [0] : vector<64x1024xf32> to vector<1024xf32>
    %32 = vector.shape_cast %31 : vector<1024xf32> to vector<1x1024xf32>
    %33 = arith.addf %29, %32 : vector<1x1024xf32>
    %c0_23 = arith.constant 0 : index
    %c0_24 = arith.constant 0 : index
    %c0_25 = arith.constant 0 : index
    %34 = vector.load %arg10[%c0_23, %c0_24, %c0_25] : memref<1x1x1024xf32, #tpu.memory_space<vmem>>, vector<1x1x1024xf32>
    %35 = vector.shape_cast %34 : vector<1x1x1024xf32> to vector<1x1024xf32>
    %36 = vector.shape_cast %33 : vector<1x1024xf32> to vector<1x1x1024xf32>
    tpu.vector_store %arg10[%c0_23, %c0_24, %c0_25], %36 {strides = array<i32>} : memref<1x1x1024xf32, #tpu.memory_space<vmem>>, vector<1x1x1024xf32>,
    %c0_26 = arith.constant 0 : index
    %c0_27 = arith.constant 0 : index
    %c0_28 = arith.constant 0 : index
    %37 = vector.load %arg7[%c0_26, %c0_27, %c0_28] : memref<1x1x1024xf32, #tpu.memory_space<vmem>>, vector<1x1x1024xf32>
    %38 = vector.shape_cast %37 : vector<1x1x1024xf32> to vector<1x1024xf32>
    %cst_29 = arith.constant dense<0xFF800000> : vector<1024xf32>
    %39 = vector.multi_reduction <maximumf>, %16, %cst_29 [0] : vector<64x1024xf32> to vector<1024xf32>
    %40 = vector.shape_cast %39 : vector<1024xf32> to vector<1x1024xf32>
    %41 = arith.maximumf %38, %40 : vector<1x1024xf32>
    %c0_30 = arith.constant 0 : index
    %c0_31 = arith.constant 0 : index
    %c0_32 = arith.constant 0 : index
    %42 = vector.load %arg7[%c0_30, %c0_31, %c0_32] : memref<1x1x1024xf32, #tpu.memory_space<vmem>>, vector<1x1x1024xf32>
    %43 = vector.shape_cast %42 : vector<1x1x1024xf32> to vector<1x1024xf32>
    %44 = vector.shape_cast %41 : vector<1x1024xf32> to vector<1x1x1024xf32>
    tpu.vector_store %arg7[%c0_30, %c0_31, %c0_32], %44 {strides = array<i32>} : memref<1x1x1024xf32, #tpu.memory_space<vmem>>, vector<1x1x1024xf32>,
    %c0_33 = arith.constant 0 : index
    %c0_34 = arith.constant 0 : index
    %c0_35 = arith.constant 0 : index
    %45 = vector.load %arg8[%c0_33, %c0_34, %c0_35] : memref<1x1x1024xf32, #tpu.memory_space<vmem>>, vector<1x1x1024xf32>
    %46 = vector.shape_cast %45 : vector<1x1x1024xf32> to vector<1x1024xf32>
    %cst_36 = arith.constant dense<0x7F800000> : vector<1024xf32>
    %47 = vector.multi_reduction <minimumf>, %16, %cst_36 [0] : vector<64x1024xf32> to vector<1024xf32>
    %48 = vector.shape_cast %47 : vector<1024xf32> to vector<1x1024xf32>
    %49 = arith.minimumf %46, %48 : vector<1x1024xf32>
    %c0_37 = arith.constant 0 : index
    %c0_38 = arith.constant 0 : index
    %c0_39 = arith.constant 0 : index
    %50 = vector.load %arg8[%c0_37, %c0_38, %c0_39] : memref<1x1x1024xf32, #tpu.memory_space<vmem>>, vector<1x1x1024xf32>
    %51 = vector.shape_cast %50 : vector<1x1x1024xf32> to vector<1x1024xf32>
    %52 = vector.shape_cast %49 : vector<1x1024xf32> to vector<1x1x1024xf32>
    tpu.vector_store %arg8[%c0_37, %c0_38, %c0_39], %52 {strides = array<i32>} : memref<1x1x1024xf32, #tpu.memory_space<vmem>>, vector<1x1x1024xf32>,
    return
  }
  func.func @transform_0(%arg0: i32, %arg1: i32) -> (i32, i32, i32) {
    %c0_i32 = arith.constant 0 : i32
    %c0_i32_0 = arith.constant 0 : i32
    return %arg0, %arg1, %c0_i32 : i32, i32, i32
  }
  func.func @transform_1(%arg0: i32, %arg1: i32) -> (i32, i32) {
    %c0_i32 = arith.constant 0 : i32
    %c0_i32_0 = arith.constant 0 : i32
    %c0_i32_1 = arith.constant 0 : i32
    return %c0_i32, %c0_i32_0 : i32, i32
  }
  func.func @transform_2(%arg0: i32, %arg1: i32) -> (i32, i32) {
    %c0_i32 = arith.constant 0 : i32
    %c0_i32_0 = arith.constant 0 : i32
    %c0_i32_1 = arith.constant 0 : i32
    return %c0_i32, %c0_i32_0 : i32, i32
  }
  func.func @transform_3(%arg0: i32, %arg1: i32) -> (i32, i32) {
    %c0_i32 = arith.constant 0 : i32
    %c0_i32_0 = arith.constant 0 : i32
    %c0_i32_1 = arith.constant 0 : i32
    return %c0_i32, %c0_i32_0 : i32, i32
  }
  func.func @transform_4(%arg0: i32, %arg1: i32) -> (i32, i32) {
    %c0_i32 = arith.constant 0 : i32
    %c0_i32_0 = arith.constant 0 : i32
    %c0_i32_1 = arith.constant 0 : i32
    return %c0_i32, %c0_i32_0 : i32, i32
  }
  func.func @transform_5(%arg0: i32, %arg1: i32) -> (i32, i32, i32) {
    %c0_i32 = arith.constant 0 : i32
    %c0_i32_0 = arith.constant 0 : i32
    %c0_i32_1 = arith.constant 0 : i32
    return %arg0, %c0_i32, %c0_i32_0 : i32, i32, i32
  }
  func.func @transform_6(%arg0: i32, %arg1: i32) -> (i32, i32, i32) {
    %c0_i32 = arith.constant 0 : i32
    %c0_i32_0 = arith.constant 0 : i32
    %c0_i32_1 = arith.constant 0 : i32
    return %arg0, %c0_i32, %c0_i32_0 : i32, i32, i32
  }
  func.func @transform_7(%arg0: i32, %arg1: i32) -> (i32, i32, i32) {
    %c0_i32 = arith.constant 0 : i32
    %c0_i32_0 = arith.constant 0 : i32
    %c0_i32_1 = arith.constant 0 : i32
    return %arg0, %c0_i32, %c0_i32_0 : i32, i32, i32
  }
  func.func @transform_8(%arg0: i32, %arg1: i32) -> (i32, i32, i32) {
    %c0_i32 = arith.constant 0 : i32
    %c0_i32_0 = arith.constant 0 : i32
    %c0_i32_1 = arith.constant 0 : i32
    return %arg0, %c0_i32, %c0_i32_0 : i32, i32, i32
  }
}

</mosaic_0001>

<bundles_post_ra>
// kernel: pointnet_encoder_forward.7
= control target key start
LH: loop header
LB: loop body
LE: loop exit
PB: predicated region body
PF: predicated region fallthrough
CT: control target
= control target key end

     0   :  { %10 = vsyncpa [#allocation3], 0  ;;  %s763_s15 = smov 0   ;;  %s765_s16 = smov 0   ;;  %s888_s0 = inlined_call_operand.vmem [shape: f32[4,64,3], index: 0, kind: input, shape index: {}]   ;;  %s889_s1 = inlined_call_operand.vmem [shape: f32[4,3,64], index: 1, kind: input, shape index: {}]   ;;  %s890_s2 = inlined_call_operand.hbm [shape: f32[1,64], index: 2, kind: input, shape index: {}]   ;;  %s891_s3 = inlined_call_operand.vmem [shape: f32[4,1,64], index: 3, kind: output, shape index: {0}]   ;;  %s892_s4 = inlined_call_operand.vmem [shape: f32[4,1,64], index: 4, kind: output, shape index: {1}]  }
   0x1   :  { %s767_s17 = smov 0  }
   0x2 LB: > { %s607_s18 = sadd.s32 4294967295, %s731_s17   ;;  %s28_s19 = sadd.s32 1, %s727_s16  ;;  %s731_s17 = sphi %s767_s17, %s16_s17   ;;  %s727_s16 = sphi %s765_s16, %s894_s16   ;;  %s723_s15 = sphi %s763_s15, %s893_s15  }
   0x3   : > { %p30_p0 = scmp.ge.s32.totalorder %s28_s19, 4  ;;  %p609_p1 = scmp.ge.s32.totalorder %s731_s17, 1 }
   0x4   : > { %p160_p2 = scmp.lt.s32.totalorder %s731_s17, 5  ;;  %p628_p4 = scmp.eq.s32.totalorder %s607_s18, 0 }
   0x5   : > { %s896_s19 = smov (%p30_p0, %s28_s19), 0  ;;  %s172_s22 = sshll.u32 %s890_s2, 4  ;;  %s173_s22 = int_to_ptr.hbm [resolvable:$true] %s172_s22 }
   0x6   : > { %p161_p3 = pnand %p609_p1, %p160_p2  ;;  %s733_s23 = smov [#allocation2]  }
   0x7   : > { %s174_s24 = sshll.u32 %s733_s23, 4  ;;  %s175_s24 = int_to_ptr.vmem [resolvable:$true] %s174_s24 }
   0x8   : > { %p624_p5 = pneg %p161_p3  ;;  %207 = sbr.rel (%p161_p3) target bundleno = 232 (0xe8), region = 32 }
   0xa   : > { %p625_p6 = pnand %p628_p4, %p624_p5 }
   0xc   : > { %627 = dma.hbm_to_vmem [thread:$0]  (!%p625_p6), %s173_s22, 16, %s175_s24, [#allocation3]  }
   0xd   : > { %718 = dma.done.wait (%p628_p4), [#allocation3], 16  }
   0xe   : > { %720 = vsyncadd (%p628_p4), [#allocation3], 4294967280  ;;  %p244_p7 = scmp.lt.s32.totalorder %s723_s15, 3  ;;  %v734_v0 = vmov 0   ;;  %v735_v9 = vmov 1   ;;  %v736_v10 = vmov 2  }
   0xf   : > { %661 = vset.pattern.permute.xlu2 %v734_v0  ;;  %660 = vset.pattern.permute.xlu1 %v734_v0  ;;  %vm435_vm0 = vcmask 516096   ;;  %v737_v27 = vmov 0.0   ;;  %v829_v47 = vld [vmem:[#allocation2] ss:$0 sm:$0xff]  ;;  %vm439_vm1 = vcmask 523264  }
  0x10   : > { %659 = vset.pattern.permute.xlu0 %v734_v0  ;;  %s898_s15 = smov (!%p244_p7, %s723_s15), 3 }
  0x11   : > { %s619_s25 = sshll.u32 %s898_s15, 6  ;;  %s616_s29 = sshll.u32 %s898_s15, 2 }
  0x12   : > { %s251_s28 = scalar_lea.vmem %s888_s0, %s619_s25  ;;  %s256_s6 = scalar_lea.vmem %s889_s1, %s616_s29 }
  0x13   : > { %v267_v1 = vld [vmem:[%s251_s28 + $0x20] sm:$0xff]  ;;  %v265_v2 = vld [vmem:[%s251_s28 + $0x10] sm:$0xff]  ;;  %v268_v4 = vld [vmem:[%s251_s28 + $0x28] sm:$0xff]  ;;  %s803_s9 = scalar_lea.vmem %s891_s3, %s898_s15  ;;  %s809_s12 = scalar_lea.vmem %s892_s4, %s898_s15 }
  0x14   : > { %v263_v3 = vld [vmem:[%s251_s28] sm:$0xff]  ;;  %295 = vperm.xlu2 %661, %v267_v1   ;;  %285 = vperm.xlu1 %660, %v265_v2   ;;  %v266_v5 = vld [vmem:[%s251_s28 + $0x18] sm:$0xff]  ;;  %v264_v6 = vld [vmem:[%s251_s28 + $0x8] sm:$0xff]  ;;  %436 = vst.msk [vmem:[%s803_s9] sm:$0x1] %vm435_vm0, %v737_v27 }
  0x15   : > { %275 = vperm.xlu0 %659, %v263_v3   ;;  %v270_v7 = vld [vmem:[%s251_s28 + $0x38] sm:$0xff]  ;;  %v269_v8 = vld [vmem:[%s251_s28 + $0x30] sm:$0xff]  ;;  %v271_v25 = vld [vmem:[%s256_s6] sm:$0x7]  ;;  %437 = vst.msk [vmem:[%s809_s12] sm:$0x1] %vm435_vm0, %v737_v27 }
  0x16   : > { %v813_v28 = vperm.slane %v271_v25, 1  ;;  %v817_v30 = vperm.slane %v271_v25, 0  ;;  %v822_v34 = vperm.slane %v271_v25, 2 }
  0x1c   : > { %300 = vperm.xlu2 %661, %v268_v4   ;;  %290 = vperm.xlu1 %660, %v266_v5  }
  0x1d   : > { %280 = vperm.xlu0 %659, %v264_v6  }
  0x24   : > { %662 = vset.pattern.permute.xlu2 %v735_v9  ;;  %310 = vperm.xlu1 %660, %v270_v7  }
  0x25   : > { %305 = vperm.xlu0 %659, %v269_v8   ;;  %323 = vperm.xlu2 %662, %v263_v3  }
  0x2c   : > { %664 = vset.pattern.permute.xlu1 %v735_v9 }
  0x2d   : > { %663 = vset.pattern.permute.xlu0 %v735_v9  ;;  %331 = vperm.xlu1 %664, %v265_v2  }
  0x2e   : > { %335 = vperm.xlu2 %662, %v266_v5   ;;  %327 = vperm.xlu0 %663, %v264_v6  }
  0x35   : > { %665 = vset.pattern.permute.xlu1 %v736_v10 }
  0x36   : > { %666 = vset.pattern.permute.xlu2 %v736_v10  ;;  %667 = vset.pattern.permute.xlu0 %v736_v10 }
  0x37   : > { %372 = vperm.xlu1 %665, %v263_v3   ;;  %376 = vperm.xlu2 %666, %v264_v6  }
  0x38   : > { %380 = vperm.xlu0 %667, %v265_v2  }
  0x3f   : > { %668 = vset.pattern.permute.xlu1 %v735_v9  ;;  %384 = vperm.xlu2 %666, %v266_v5  }
  0x40   : > { %669 = vset.pattern.permute.xlu0 %v735_v9  ;;  %339 = vperm.xlu1 %668, %v267_v1  }
  0x41   : > { %347 = vperm.xlu0 %669, %v269_v8  }
  0x47   : > { %388 = vperm.xlu2 %666, %v267_v1  }
  0x48   : > { %343 = vperm.xlu1 %668, %v268_v4  }
  0x49   : > { %673 = vset.pattern.permute.xlu0 %v736_v10 }
  0x4f   : > { %671 = vset.pattern.permute.xlu2 %v735_v9 }
  0x50   : > { %670 = vset.pattern.permute.xlu1 %v736_v10  ;;  %351 = vperm.xlu2 %671, %v270_v7  }
  0x51   : > { %392 = vperm.xlu1 %670, %v268_v4  }
  0x58   : > { %672 = vset.pattern.permute.xlu2 %v736_v10 }
  0x59   : > { %396 = vperm.xlu1 %670, %v269_v8   ;;  %400 = vperm.xlu2 %672, %v270_v7  }
  0x6e   : > { %v296_v11 = vpop.permute.xlu2 %295 }
  0x6f   : > { %v318_v53 = vmul.f32 %v817_v30, %v296_v11 }
  0x76   : > { %v301_v12 = vpop.permute.xlu2 %300 }
  0x77   : > { %v319_v2 = vmul.f32 %v817_v30, %v301_v12 }
  0x7f   : > { %v324_v14 = vpop.permute.xlu2 %323 }
  0x80   : > { %v355_v32 = vmul.f32 %v813_v28, %v324_v14 }
  0x86   : > { %v286_v13 = vpop.permute.xlu1 %285 }
  0x87   : > { %v276_v16 = vpop.permute.xlu0 %275  ;;  %v316_v46 = vmul.f32 %v817_v30, %v286_v13 }
  0x88   : > { %v336_v17 = vpop.permute.xlu2 %335  ;;  %v314_v33 = vmul.f32 %v817_v30, %v276_v16 }
  0x89   : > { %v358_v51 = vmul.f32 %v813_v28, %v336_v17 }
  0x8a   : > { %v363_v40 = vadd.f32 %v355_v32, %v314_v33 }
  0x8e   : > { %v291_v15 = vpop.permute.xlu1 %290 }
  0x8f   : > { %v281_v19 = vpop.permute.xlu0 %280  ;;  %v317_v52 = vmul.f32 %v817_v30, %v291_v15 }
  0x90   : > { %v315_v36 = vmul.f32 %v817_v30, %v281_v19 }
  0x91   : > { %v377_v20 = vpop.permute.xlu2 %376  ;;  %v366_v60 = vadd.f32 %v358_v51, %v317_v52 }
  0x92   : > { %v405_v38 = vmul.f32 %v822_v34, %v377_v20 }
  0x96   : > { %v791_v18 = vpop.permute.xlu1 %310 }
  0x97   : > { %v793_v22 = vpop.permute.xlu0 %305  ;;  %v321_v14 = vmul.f32 %v817_v30, %v791_v18 }
  0x98   : > { %v320_v32 = vmul.f32 %v817_v30, %v793_v22 }
  0x99   : > { %v385_v23 = vpop.permute.xlu2 %384 }
  0x9a   : > { %v407_v56 = vmul.f32 %v822_v34, %v385_v23 }
  0x9c   : > { %v415_v0 = vadd.f32 %v407_v56, %v366_v60 }
  0x9e   : > { %v426_v12 = vadd.f32 %v829_v47, %v415_v0 }
  0x9f   : > { %v332_v21 = vpop.permute.xlu1 %331 }
  0xa0   : > { %v328_v26 = vpop.permute.xlu0 %327  ;;  %v357_v42 = vmul.f32 %v813_v28, %v332_v21 }
  0xa1   : > { %v389_v29 = vpop.permute.xlu2 %388  ;;  %v356_v31 = vmul.f32 %v813_v28, %v328_v26 }
  0xa2   : > { %v365_v54 = vadd.f32 %v357_v42, %v316_v46  ;;  %v408_v61 = vmul.f32 %v822_v34, %v389_v29  ;;  %v468_v29 = vmul.f32 %v426_v12, %v426_v12 }
  0xa3   : > { %v364_v39 = vadd.f32 %v356_v31, %v315_v36 }
  0xa5   : > { %v413_v44 = vadd.f32 %v405_v38, %v364_v39 }
  0xa7   : > { %v424_v57 = vadd.f32 %v829_v47, %v413_v44 }
  0xa9   : > { %v373_v24 = vpop.permute.xlu1 %372  ;;  %v466_v1 = vmul.f32 %v424_v57, %v424_v57  ;;  %v441_v6 = vsel %vm439_vm1, %v424_v57, 0.0 }
  0xaa   : > { %v404_v37 = vmul.f32 %v822_v34, %v373_v24  ;;  %v381_v41 = vpop.permute.xlu0 %380  ;;  %v352_v45 = vpop.permute.xlu2 %351 }
  0xab   : > { %v406_v48 = vmul.f32 %v822_v34, %v381_v41  ;;  %v362_v10 = vmul.f32 %v813_v28, %v352_v45  ;;  %v474_v16 = vsel %vm439_vm1, %v466_v1, 0.0 }
  0xac   : > { %v412_v43 = vadd.f32 %v404_v37, %v363_v40  ;;  %v445_v37 = vsel %vm439_vm1, %v426_v12, 0.0 }
  0xad   : > { %v414_v58 = vadd.f32 %v406_v48, %v365_v54  ;;  %v370_v26 = vadd.f32 %v362_v10, %v321_v14 }
  0xae   : > { %v423_v55 = vadd.f32 %v829_v47, %v412_v43  ;;  %v478_v43 = vsel %vm439_vm1, %v468_v29, 0.0 }
  0xaf   : > { %v425_v4 = vadd.f32 %v829_v47, %v414_v58 }
  0xb0   : > { %v465_v62 = vmul.f32 %v423_v55, %v423_v55  ;;  %v440_v3 = vsel %vm439_vm1, %v423_v55, 0.0 }
  0xb1   : > { %v442_v15 = vadd.f32 %v441_v6, %v440_v3  ;;  %v467_v19 = vmul.f32 %v425_v4, %v425_v4  ;;  %v443_v25 = vsel %vm439_vm1, %v425_v4, 0.0 }
  0xb2   : > { %v340_v35 = vpop.permute.xlu1 %339  ;;  %v473_v9 = vsel %vm439_vm1, %v465_v62, 0.0 }
  0xb3   : > { %v359_v49 = vmul.f32 %v813_v28, %v340_v35  ;;  %v401_v7 = vpop.permute.xlu2 %400  ;;  %v348_v17 = vpop.permute.xlu0 %347  ;;  %v475_v24 = vadd.f32 %v474_v16, %v473_v9  ;;  %v444_v31 = vadd.f32 %v443_v25, %v442_v15  ;;  %v476_v33 = vsel %vm439_vm1, %v467_v19, 0.0 }
  0xb4   : > { %v411_v21 = vmul.f32 %v822_v34, %v401_v7  ;;  %v361_v27 = vmul.f32 %v813_v28, %v348_v17 }
  0xb5   : > { %v367_v59 = vadd.f32 %v359_v49, %v318_v53  ;;  %v477_v38 = vadd.f32 %v476_v33, %v475_v24  ;;  %v446_v44 = vadd.f32 %v445_v37, %v444_v31 }
  0xb6   : > { %v419_v36 = vadd.f32 %v411_v21, %v370_v26  ;;  %v369_v41 = vadd.f32 %v361_v27, %v320_v32 }
  0xb7   : > { %v416_v5 = vadd.f32 %v408_v61, %v367_v59  ;;  %v479_v48 = vadd.f32 %v478_v43, %v477_v38 }
  0xb8   : > { %v430_v22 = vadd.f32 %v829_v47, %v419_v36 }
  0xb9   : > { %v427_v20 = vadd.f32 %v829_v47, %v416_v5 }
  0xba   : > { %v344_v50 = vpop.permute.xlu1 %343  ;;  %v472_v54 = vmul.f32 %v430_v22, %v430_v22  ;;  %v453_v58 = vsel %vm439_vm1, %v430_v22, 0.0 }
  0xbb   : > { %v360_v63 = vmul.f32 %v813_v28, %v344_v50  ;;  %v469_v35 = vmul.f32 %v427_v20, %v427_v20  ;;  %v447_v40 = vsel %vm439_vm1, %v427_v20, 0.0 }
  0xbc   : > { %v448_v49 = vadd.f32 %v447_v40, %v446_v44  ;;  %v486_v62 = vsel %vm439_vm1, %v472_v54, 0.0 }
  0xbd   : > { %v368_v11 = vadd.f32 %v360_v63, %v319_v2  ;;  %v480_v45 = vsel %vm439_vm1, %v469_v35, 0.0 }
  0xbe   : > { %v481_v53 = vadd.f32 %v480_v45, %v479_v48 }
  0xc3   : > { %v393_v8 = vpop.permute.xlu1 %392 }
  0xc4   : > { %v409_v13 = vmul.f32 %v822_v34, %v393_v8  ;;  %v438_v8 = vld [vmem:[%s803_s9] sm:$0x1] }
  0xc6   : > { %v417_v23 = vadd.f32 %v409_v13, %v368_v11  ;;  %v464_v11 = vld [vmem:[%s809_s12] sm:$0x1] }
  0xc8   : > { %v428_v18 = vadd.f32 %v829_v47, %v417_v23 }
  0xca   : > { %v470_v42 = vmul.f32 %v428_v18, %v428_v18  ;;  %v449_v30 = vsel %vm439_vm1, %v428_v18, 0.0 }
  0xcb   : > { %v397_v39 = vpop.permute.xlu1 %396  ;;  %v450_v52 = vadd.f32 %v449_v30, %v448_v49 }
  0xcc   : > { %v410_v28 = vmul.f32 %v822_v34, %v397_v39  ;;  %v482_v50 = vsel %vm439_vm1, %v470_v42, 0.0 }
  0xcd   : > { %v483_v56 = vadd.f32 %v482_v50, %v481_v53 }
  0xce   : > { %v418_v46 = vadd.f32 %v410_v28, %v369_v41 }
  0xd0   : > { %v429_v51 = vadd.f32 %v829_v47, %v418_v46 }
  0xd2   : > { %v451_v34 = vsel %vm439_vm1, %v429_v51, 0.0  ;;  %v471_v55 = vmul.f32 %v429_v51, %v429_v51 }
  0xd3   : > { %v452_v57 = vadd.f32 %v451_v34, %v450_v52 }
  0xd4   : > { %v484_v59 = vsel %vm439_vm1, %v471_v55, 0.0 }
  0xd5   : > { %v454_v60 = vadd.f32 %v453_v58, %v452_v57  ;;  %v485_v61 = vadd.f32 %v484_v59, %v483_v56 }
  0xd7   : > { %v455_v63 = vrot.slane %v454_v60, 4  ;;  %v487_v47 = vadd.f32 %v486_v62, %v485_v61 }
  0xd9   : > { %v456_v0 = vadd.f32 %v455_v63, %v454_v60  ;;  %v488_v1 = vrot.slane %v487_v47, 4 }
  0xdb   : > { %v457_v2 = vrot.slane %v456_v0, 2  ;;  %v489_v3 = vadd.f32 %v488_v1, %v487_v47 }
  0xdd   : > { %v458_v4 = vadd.f32 %v457_v2, %v456_v0  ;;  %v490_v5 = vrot.slane %v489_v3, 2 }
  0xdf   : > { %v459_v6 = vrot.slane %v458_v4, 1  ;;  %v491_v7 = vadd.f32 %v490_v5, %v489_v3 }
  0xe1   : > { %v460_v9 = vadd.f32 %v459_v6, %v458_v4  ;;  %v492_v10 = vrot.slane %v491_v7, 1 }
  0xe3   : > { %v461_v13 = vadd.f32 %v460_v9, %v438_v8  ;;  %v493_v14 = vadd.f32 %v492_v10, %v491_v7 }
  0xe5   : > { %463 = vst.msk [vmem:[%s803_s9] sm:$0x1] %vm435_vm0, %v461_v13  ;;  %v494_v12 = vadd.f32 %v493_v14, %v464_v11 }
  0xe7   : > { %495 = vst.msk [vmem:[%s809_s12] sm:$0x1] %vm435_vm0, %v494_v12 }
  0xe8 PF: > { %s16_s17 = sadd.s32 1, %s731_s17   ;;  %s893_s15 = smov %s727_s16 }
  0xe9   : > { %p13_p8 = scmp.ge.s32.totalorder %s16_s17, 6   ;;  %s894_s16 = smov %s896_s19 }
  0xeb   :  { %15 = sbr.rel (!%p13_p8) target bundleno = 2 (0x2), region = 86 }
  0xf0   :  { %525 = vsyncpa [#allocation3], 1 }
  0xf1   :  { %527 = vsyncpa [#allocation3 + $0x1], 1 }

// kernel: pointnet_encoder_forward.8
= control target key start
LH: loop header
LB: loop body
LE: loop exit
PB: predicated region body
PF: predicated region fallthrough
CT: control target
= control target key end

     0   :  { %15 = vsyncpa [#allocation3], 0  ;;  %s1432_s0 = inlined_call_operand.vmem [shape: f32[4,64,3], index: 0, kind: input, shape index: {}]   ;;  %s1433_s1 = inlined_call_operand.vmem [shape: f32[4,3,64], index: 1, kind: input, shape index: {}]   ;;  %s1434_s2 = inlined_call_operand.hbm [shape: f32[1,64], index: 2, kind: input, shape index: {}]   ;;  %s1435_s3 = inlined_call_operand.vmem [shape: f32[1,64], index: 3, kind: input, shape index: {}]   ;;  %s1436_s4 = inlined_call_operand.vmem [shape: f32[1,64], index: 4, kind: input, shape index: {}]   ;;  %s1437_s5 = inlined_call_operand.vmem [shape: bf16[64,128], index: 5, kind: input, shape index: {}]   ;;  %s1438_s6 = inlined_call_operand.hbm [shape: f32[1,128], index: 6, kind: input, shape index: {}]   ;;  %s1439_s7 = inlined_call_operand.vmem [shape: bf16[4,64,128], index: 7, kind: output, shape index: {0}]   ;;  %s1440_s8 = inlined_call_operand.vmem [shape: f32[4,1,128], index: 8, kind: output, shape index: {1}]   ;;  %s1441_s9 = inlined_call_operand.vmem [shape: f32[4,1,128], index: 9, kind: output, shape index: {2}]  }
   0x1   :  { %16 = vsyncpa [#allocation5], 0  ;;  %s1246_s30 = smov 0   ;;  %s1248_s10 = smov 0  }
   0x2   :  { %s1250_s11 = smov 0  }
   0x3 LB: > { %s952_s12 = sadd.s32 4294967295, %s1188_s11   ;;  %s34_s13 = sadd.s32 1, %s1184_s10  ;;  %s1188_s11 = sphi %s1250_s11, %s22_s11   ;;  %s1184_s10 = sphi %s1248_s10, %s1445_s10   ;;  %s1180_s30 = sphi %s1246_s30, %s1444_s30  }
   0x4   : > { %p36_p0 = scmp.ge.s32.totalorder %s34_s13, 4  ;;  %p954_p1 = scmp.ge.s32.totalorder %s1188_s11, 1 }
   0x5   : > { %p278_p2 = scmp.lt.s32.totalorder %s1188_s11, 5  ;;  %p1271_p4 = scmp.eq.s32.totalorder %s952_s12, 0 }
   0x6   : > { %s1447_s13 = smov (%p36_p0, %s34_s13), 0  ;;  %s290_s18 = sshll.u32 %s1434_s2, 4  ;;  %s291_s18 = int_to_ptr.hbm [resolvable:$true] %s290_s18 }
   0x7   : > { %p1267_p3 = pnand %p954_p1, %p278_p2  ;;  %s1190_s19 = smov [#allocation2]  }
   0x8   : > { %s292_s20 = sshll.u32 %s1190_s19, 4  ;;  %s311_s23 = sshll.u32 %s1438_s6, 4  ;;  %s293_s20 = int_to_ptr.vmem [resolvable:$true] %s292_s20  ;;  %s312_s23 = int_to_ptr.hbm [resolvable:$true] %s311_s23 }
   0x9   : > { %p1037_p5 = pneg %p1267_p3  ;;  %s1191_s24 = smov [#allocation4]  }
   0xa   : > { %s313_s25 = sshll.u32 %s1191_s24, 4  ;;  %346 = sbr.rel (%p1267_p3) target bundleno = 384 (0x180), region = 48  ;;  %s314_s25 = int_to_ptr.vmem [resolvable:$true] %s313_s25 }
   0xb   : > { %p1038_p6 = pnand %p1271_p4, %p1037_p5 }
   0xd   : > { %1040 = dma.hbm_to_vmem [thread:$0]  (!%p1038_p6), %s291_s18, 16, %s293_s20, [#allocation3]  }
   0xe   : > { %1043 = dma.hbm_to_vmem [thread:$0]  (!%p1038_p6), %s312_s23, 16, %s314_s25, [#allocation5]  }
   0xf   : > { %1171 = dma.done.wait (%p1271_p4), [#allocation3], 16  }
  0x10   : > { %1173 = vsyncadd (%p1271_p4), [#allocation3], 4294967280 }
  0x11   : > { %1175 = dma.done.wait (%p1271_p4), [#allocation5], 16  }
  0x12   : > { %1177 = vsyncadd (%p1271_p4), [#allocation5], 4294967280  ;;  %p407_p7 = scmp.lt.s32.totalorder %s1180_s30, 3  ;;  %v1192_v0 = vmov 1   ;;  %v1193_v1 = vmov 0   ;;  %v1194_v7 = vmov 2  }
  0x13   : > { %1079 = vset.pattern.permute.xlu1 %v1192_v0  ;;  %1080 = vset.pattern.permute.xlu2 %v1193_v1  ;;  %v993_v13 = vld [vmem:[%s1437_s5 + $0x18] sm:$0xff]  ;;  %v992_v14 = vld [vmem:[%s1437_s5 + $0x10] sm:$0xff]  ;;  %v991_v17 = vld [vmem:[%s1437_s5 + $0x8] sm:$0xff]  ;;  %vm677_vm0 = vcmask 523264  }
  0x14   : > { %1078 = vset.pattern.permute.xlu0 %v1193_v1  ;;  %s1449_s30 = smov (!%p407_p7, %s1180_s30), 3  ;;  %694 = vmatpush.bf16.msra.mxu0 %v993_v13  ;;  %v990_v19 = vld [vmem:[%s1437_s5] sm:$0xff] }
  0x15   : > { %s988_s26 = sshll.u32 %s1449_s30, 6  ;;  %1018 = vmatpush.bf16.msra.mxu2 %v993_v13  ;;  %1017 = vmatpush.bf16.msra.mxu1 %v993_v13  ;;  %s963_s17 = sshll.u32 %s1449_s30, 2  ;;  %v1332_v34 = vld [vmem:[#allocation2] ss:$0 sm:$0xff] }
  0x16   : > { %s414_s29 = scalar_lea.vmem %s1432_s0, %s988_s26  ;;  %1019 = vmatpush.bf16.msra.mxu3 %v993_v13  ;;  %s419_s22 = scalar_lea.vmem %s1433_s1, %s963_s17  ;;  %v1340_v39 = vld [vmem:[%s1435_s3] ss:$0 sm:$0xff] }
  0x17   : > { %v441_v2 = vld [vmem:[%s414_s29 + $0x20] sm:$0xff]  ;;  %v442_v4 = vld [vmem:[%s414_s29 + $0x28] sm:$0xff]  ;;  %v440_v6 = vld [vmem:[%s414_s29 + $0x18] sm:$0xff]  ;;  %s1406_s18 = scalar_lea.vmem %s1440_s8, %s1449_s30  ;;  %s1412_s21 = scalar_lea.vmem %s1441_s9, %s1449_s30 }
  0x18   : > { %v437_v3 = vld [vmem:[%s414_s29] sm:$0xff]  ;;  %469 = vperm.xlu2 %1080, %v441_v2   ;;  %v438_v5 = vld [vmem:[%s414_s29 + $0x8] sm:$0xff]  ;;  %v443_v8 = vld [vmem:[%s414_s29 + $0x30] sm:$0xff]  ;;  %695 = vmatpush.bf16.msra.mxu0 %v992_v14 }
  0x19   : > { %497 = vperm.xlu1 %1079, %v437_v3   ;;  %449 = vperm.xlu0 %1078, %v437_v3   ;;  %v439_v9 = vld [vmem:[%s414_s29 + $0x10] sm:$0xff]  ;;  %v444_v10 = vld [vmem:[%s414_s29 + $0x38] sm:$0xff]  ;;  %v445_v20 = vld [vmem:[%s419_s22] sm:$0x7]  ;;  %s989_s29 = sshll.u32 %s1449_s30, 5 }
  0x1a   : > { %1021 = vmatpush.bf16.msra.mxu2 %v992_v14  ;;  %1020 = vmatpush.bf16.msra.mxu1 %v992_v14  ;;  %v1321_v22 = vperm.slane %v445_v20, 0  ;;  %v1323_v23 = vperm.slane %v445_v20, 1  ;;  %v1327_v26 = vperm.slane %v445_v20, 2  ;;  %v1347_v46 = vld [vmem:[%s1436_s4] ss:$0 sm:$0xff]  ;;  %s1399_s15 = scalar_lea.vmem %s1439_s7, %s989_s29 }
  0x1b   : > { %1022 = vmatpush.bf16.msra.mxu3 %v992_v14 }
  0x1c   : > { %696 = vmatpush.bf16.msra.mxu0 %v991_v17 }
  0x1e   : > { %1024 = vmatpush.bf16.msra.mxu2 %v991_v17  ;;  %1023 = vmatpush.bf16.msra.mxu1 %v991_v17 }
  0x1f   : > { %1025 = vmatpush.bf16.msra.mxu3 %v991_v17 }
  0x20   : > { %474 = vperm.xlu2 %1080, %v442_v4   ;;  %697 = vmatpush.bf16.msra.mxu0 %v990_v19 }
  0x21   : > { %501 = vperm.xlu1 %1079, %v438_v5   ;;  %454 = vperm.xlu0 %1078, %v438_v5  }
  0x22   : > { %1027 = vmatpush.bf16.msra.mxu2 %v990_v19  ;;  %1026 = vmatpush.bf16.msra.mxu1 %v990_v19 }
  0x23   : > { %1028 = vmatpush.bf16.msra.mxu3 %v990_v19 }
  0x28   : > { %1081 = vset.pattern.permute.xlu2 %v1194_v7 }
  0x29   : > { %517 = vperm.xlu1 %1079, %v442_v4   ;;  %464 = vperm.xlu0 %1078, %v440_v6  }
  0x2a   : > { %546 = vperm.xlu2 %1081, %v437_v3  }
  0x31   : > { %1082 = vset.pattern.permute.xlu1 %v1194_v7  ;;  %479 = vperm.xlu0 %1078, %v443_v8  }
  0x32   : > { %1083 = vset.pattern.permute.xlu2 %v1193_v1  ;;  %550 = vperm.xlu1 %1082, %v438_v5  }
  0x33   : > { %459 = vperm.xlu2 %1083, %v439_v9  }
  0x39   : > { %1088 = vset.pattern.permute.xlu0 %v1192_v0 }
  0x3a   : > { %1084 = vset.pattern.permute.xlu1 %v1192_v0  ;;  %513 = vperm.xlu0 %1088, %v441_v2  }
  0x3b   : > { %1085 = vset.pattern.permute.xlu2 %v1192_v0  ;;  %505 = vperm.xlu1 %1084, %v439_v9  }
  0x3c   : > { %509 = vperm.xlu2 %1085, %v440_v6  }
  0x42   : > { %525 = vperm.xlu0 %1088, %v444_v10  }
  0x43   : > { %1086 = vset.pattern.permute.xlu1 %v1194_v7 }
  0x44   : > { %1087 = vset.pattern.permute.xlu2 %v1194_v7  ;;  %562 = vperm.xlu1 %1086, %v441_v2  }
  0x45   : > { %566 = vperm.xlu2 %1087, %v442_v4  }
  0x4a   : > { %1093 = vset.pattern.permute.xlu0 %v1194_v7 }
  0x4c   : > { %1089 = vset.pattern.permute.xlu1 %v1193_v1 }
  0x4d   : > { %1090 = vset.pattern.permute.xlu2 %v1192_v0  ;;  %484 = vperm.xlu1 %1089, %v444_v10  }
  0x4e   : > { %521 = vperm.xlu2 %1090, %v443_v8  }
  0x55   : > { %1091 = vset.pattern.permute.xlu1 %v1194_v7 }
  0x56   : > { %1092 = vset.pattern.permute.xlu2 %v1194_v7  ;;  %554 = vperm.xlu1 %1091, %v439_v9  }
  0x57   : > { %558 = vperm.xlu2 %1092, %v440_v6  }
  0x5e   : > { %570 = vperm.xlu1 %1091, %v443_v8  }
  0x5f   : > { %574 = vperm.xlu2 %1092, %v444_v10  }
  0x72   : > { %v1303_v11 = vpop.permute.xlu2 %469 }
  0x73   : > { %v492_v0 = vmul.f32 %v1321_v22, %v1303_v11 }
  0x7a   : > { %v475_v12 = vpop.permute.xlu2 %474 }
  0x7b   : > { %v493_v52 = vmul.f32 %v1321_v22, %v475_v12 }
  0x84   : > { %v547_v15 = vpop.permute.xlu2 %546 }
  0x85   : > { %v578_v30 = vmul.f32 %v1327_v26, %v547_v15 }
  0x8b   : > { %v498_v16 = vpop.permute.xlu1 %497  ;;  %v450_v18 = vpop.permute.xlu0 %449 }
  0x8c   : > { %v529_v27 = vmul.f32 %v1323_v23, %v498_v16  ;;  %v488_v28 = vmul.f32 %v1321_v22, %v450_v18 }
  0x8d   : > { %v1325_v25 = vpop.permute.xlu2 %459 }
  0x8e   : > { %v537_v31 = vadd.f32 %v529_v27, %v488_v28 }
  0x90   : > { %v586_v35 = vadd.f32 %v578_v30, %v537_v31  ;;  %v490_v30 = vmul.f32 %v1321_v22, %v1325_v25 }
  0x92   : > { %v597_v38 = vadd.f32 %v1332_v34, %v586_v35 }
  0x93   : > { %v502_v21 = vpop.permute.xlu1 %501  ;;  %v455_v24 = vpop.permute.xlu0 %454 }
  0x94   : > { %v530_v36 = vmul.f32 %v1323_v23, %v502_v21  ;;  %v489_v37 = vmul.f32 %v1321_v22, %v455_v24  ;;  %v609_v45 = vmul.f32 %v1340_v39, %v597_v38 }
  0x96   : > { %v510_v33 = vpop.permute.xlu2 %509  ;;  %v538_v41 = vadd.f32 %v530_v36, %v489_v37  ;;  %v621_v51 = vadd.f32 %v1347_v46, %v609_v45 }
  0x97   : > { %v532_v9 = vmul.f32 %v1323_v23, %v510_v33 }
  0x98   : > { %v629_v57 = vmax.f32 %v621_v51, 0.0 }
  0x9b   : > { %v518_v29 = vpop.permute.xlu1 %517  ;;  %v465_v32 = vpop.permute.xlu0 %464 }
  0x9c   : > { %v534_v49 = vmul.f32 %v1323_v23, %v518_v29  ;;  %v491_v10 = vmul.f32 %v1321_v22, %v465_v32 }
  0x9e   : > { %v542_v56 = vadd.f32 %v534_v49, %v493_v52  ;;  %v540_v17 = vadd.f32 %v532_v9, %v491_v10 }
  0x9f   : > { %v567_v47 = vpop.permute.xlu2 %566 }
  0xa0   : > { %v583_v53 = vmul.f32 %v1327_v26, %v567_v47 }
  0xa2   : > { %v591_v60 = vadd.f32 %v583_v53, %v542_v56 }
  0xa3   : > { %v480_v43 = vpop.permute.xlu0 %479 }
  0xa4   : > { %v551_v40 = vpop.permute.xlu1 %550  ;;  %v602_v1 = vadd.f32 %v1332_v34, %v591_v60  ;;  %v494_v45 = vmul.f32 %v1321_v22, %v480_v43 }
  0xa5   : > { %v579_v42 = vmul.f32 %v1327_v26, %v551_v40 }
  0xa6   : > { %v614_v5 = vmul.f32 %v1340_v39, %v602_v1 }
  0xa7   : > { %v587_v44 = vadd.f32 %v579_v42, %v538_v41 }
  0xa8   : > { %v522_v62 = vpop.permute.xlu2 %521  ;;  %v626_v11 = vadd.f32 %v1347_v46, %v614_v5 }
  0xa9   : > { %v598_v48 = vadd.f32 %v1332_v34, %v587_v44  ;;  %v535_v42 = vmul.f32 %v1323_v23, %v522_v62  ;;  %v1097_v62 = vld [vmem:[#allocation4] ss:$0 sm:$0xff] }
  0xaa   : > { %v634_v19 = vmax.f32 %v626_v11, 0.0 }
  0xab   : > { %v610_v50 = vmul.f32 %v1340_v39, %v598_v48 }
  0xac   : > { %v514_v59 = vpop.permute.xlu0 %513 }
  0xad   : > { %v506_v54 = vpop.permute.xlu1 %505  ;;  %v622_v55 = vadd.f32 %v1347_v46, %v610_v50  ;;  %v533_v63 = vmul.f32 %v1323_v23, %v514_v59  ;;  %v543_v50 = vadd.f32 %v535_v42, %v494_v45 }
  0xae   : > { %v531_v29 = vmul.f32 %v1323_v23, %v506_v54 }
  0xaf   : > { %v630_v58 = vmax.f32 %v622_v55, 0.0  ;;  %v541_v3 = vadd.f32 %v533_v63, %v492_v0 }
  0xb0   : > { %v539_v36 = vadd.f32 %v531_v29, %v490_v30 }
  0xb1   : > { %v637_v61 = vpack.c.bf16 %v630_v58, %v629_v57  ;;  %v559_v8 = vpop.permute.xlu2 %558 }
  0xb2   : > { %v581_v13 = vmul.f32 %v1327_v26, %v559_v8 }
  0xb3   : > { %982 = vmatmul.msk.bf16.vlgmr.msra.gmra.mxu0 %vm677_vm0, %v637_v61 }
  0xb4   : > { %v526_v16 = vpop.permute.xlu0 %525  ;;  %v589_v20 = vadd.f32 %v581_v13, %v540_v17 }
  0xb5   : > { %v536_v24 = vmul.f32 %v1323_v23, %v526_v16 }
  0xb6   : > { %v563_v2 = vpop.permute.xlu1 %562  ;;  %v600_v31 = vadd.f32 %v1332_v34, %v589_v20 }
  0xb7   : > { %v582_v4 = vmul.f32 %v1327_v26, %v563_v2  ;;  %v1195_v2 = vmov 0.0  }
  0xb8   : > { %v612_v38 = vmul.f32 %v1340_v39, %v600_v31  ;;  %739 = vst [vmem:[%s1406_s18] sm:$0x1] %v1195_v2 }
  0xb9   : > { %v590_v6 = vadd.f32 %v582_v4, %v541_v3  ;;  %v575_v28 = vpop.permute.xlu2 %574  ;;  %740 = vst [vmem:[%s1412_s21] sm:$0x1] %v1195_v2 }
  0xba   : > { %v585_v33 = vmul.f32 %v1327_v26, %v575_v28  ;;  %v624_v48 = vadd.f32 %v1347_v46, %v612_v38 }
  0xbb   : > { %v601_v7 = vadd.f32 %v1332_v34, %v590_v6 }
  0xbc   : > { %v632_v55 = vmax.f32 %v624_v48, 0.0 }
  0xbd   : > { %v613_v12 = vmul.f32 %v1340_v39, %v601_v7 }
  0xbf   : > { %v485_v14 = vpop.permute.xlu1 %484  ;;  %v625_v15 = vadd.f32 %v1347_v46, %v613_v12 }
  0xc0   : > { %v495_v21 = vmul.f32 %v1321_v22, %v485_v14 }
  0xc1   : > { %v633_v18 = vmax.f32 %v625_v15, 0.0 }
  0xc2   : > { %v544_v32 = vadd.f32 %v536_v24, %v495_v21 }
  0xc3   : > { %v639_v27 = vpack.c.bf16 %v634_v19, %v633_v18 }
  0xc4   : > { %v593_v40 = vadd.f32 %v585_v33, %v544_v32 }
  0xc5   : > { %984 = vmatmul.msk.bf16.vlgmr.msra.gmra.mxu2 %vm677_vm0, %v639_v27 }
  0xc6   : > { %v604_v25 = vadd.f32 %v1332_v34, %v593_v40 }
  0xc8   : > { %v555_v35 = vpop.permute.xlu1 %554  ;;  %v616_v53 = vmul.f32 %v1340_v39, %v604_v25 }
  0xc9   : > { %v580_v37 = vmul.f32 %v1327_v26, %v555_v35 }
  0xca   : > { %v628_v57 = vadd.f32 %v1347_v46, %v616_v53 }
  0xcb   : > { %v588_v41 = vadd.f32 %v580_v37, %v539_v36 }
  0xcc   : > { %v636_v59 = vmax.f32 %v628_v57, 0.0 }
  0xcd   : > { %v599_v44 = vadd.f32 %v1332_v34, %v588_v41 }
  0xcf   : > { %v611_v47 = vmul.f32 %v1340_v39, %v599_v44 }
  0xd0   : > { %v571_v49 = vpop.permute.xlu1 %570 }
  0xd1   : > { %v584_v51 = vmul.f32 %v1327_v26, %v571_v49  ;;  %v623_v52 = vadd.f32 %v1347_v46, %v611_v47 }
  0xd3   : > { %v592_v23 = vadd.f32 %v584_v51, %v543_v50  ;;  %v631_v54 = vmax.f32 %v623_v52, 0.0 }
  0xd5   : > { %v603_v22 = vadd.f32 %v1332_v34, %v592_v23  ;;  %v638_v43 = vpack.c.bf16 %v632_v55, %v631_v54  ;;  %v741_v23 = vld [vmem:[%s1406_s18] sm:$0x1] }
  0xd7   : > { %v615_v56 = vmul.f32 %v1340_v39, %v603_v22  ;;  %983 = vmatmul.msk.bf16.vlgmr.msra.gmra.mxu1 %vm677_vm0, %v638_v43  ;;  %v757_v22 = vld [vmem:[%s1412_s21] sm:$0x1] }
  0xd9   : > { %v627_v26 = vadd.f32 %v1347_v46, %v615_v56 }
  0xdb   : > { %v635_v58 = vmax.f32 %v627_v26, 0.0 }
  0xdd   : > { %v640_v60 = vpack.c.bf16 %v636_v59, %v635_v58 }
  0xdf   : > { %985 = vmatmul.msk.bf16.vlgmr.msra.gmra.mxu3 %vm677_vm0, %v640_v60 }
 0x130   : > { %v699_v61 = vpop.f32.mrf.mxu0 }
 0x131   : > { %v700_v63 = vadd.f32 %v1097_v62, %v699_v61 }
 0x133   : > { %v758_v9 = vmul.f32 %v700_v63, %v700_v63 }
 0x138   : > { %v701_v34 = vpop.f32.mrf.mxu0 }
 0x139   : > { %v702_v0 = vadd.f32 %v1097_v62, %v701_v34 }
 0x13b   : > { %v997_v39 = vpack.c.bf16 %v702_v0, %v700_v63  ;;  %v759_v8 = vmul.f32 %v702_v0, %v702_v0  ;;  %v742_v10 = vadd.f32 %v702_v0, %v700_v63 }
 0x13d   : > { %998 = vst [vmem:[%s1399_s15] sm:$0xff] %v997_v39   ;;  %v766_v13 = vadd.f32 %v759_v8, %v758_v9 }
 0x148   : > { %v709_v46 = vpop.f32.mrf.mxu2 }
 0x149   : > { %v710_v3 = vadd.f32 %v1097_v62, %v709_v46 }
 0x14b   : > { %v762_v24 = vmul.f32 %v710_v3, %v710_v3 }
 0x150   : > { %v711_v1 = vpop.f32.mrf.mxu2 }
 0x151   : > { %v712_v4 = vadd.f32 %v1097_v62, %v711_v1 }
 0x153   : > { %v1007_v5 = vpack.c.bf16 %v712_v4, %v710_v3  ;;  %v763_v30 = vmul.f32 %v712_v4, %v712_v4 }
 0x154   : > { %v704_v6 = vpop.f32.mrf.mxu1 }
 0x155   : > { %1015 = vst [vmem:[%s1399_s15 + $0x10] sm:$0xff] %v1007_v5   ;;  %v705_v7 = vadd.f32 %v1097_v62, %v704_v6 }
 0x157   : > { %v760_v12 = vmul.f32 %v705_v7, %v705_v7  ;;  %v743_v14 = vadd.f32 %v742_v10, %v705_v7 }
 0x159   : > { %v767_v16 = vadd.f32 %v766_v13, %v760_v12 }
 0x15c   : > { %v706_v11 = vpop.f32.mrf.mxu1 }
 0x15d   : > { %v707_v15 = vadd.f32 %v1097_v62, %v706_v11 }
 0x15f   : > { %v1002_v17 = vpack.c.bf16 %v707_v15, %v705_v7  ;;  %v744_v18 = vadd.f32 %v743_v14, %v707_v15  ;;  %v761_v19 = vmul.f32 %v707_v15, %v707_v15 }
 0x161   : > { %1014 = vst [vmem:[%s1399_s15 + $0x8] sm:$0xff] %v1002_v17   ;;  %v768_v20 = vadd.f32 %v767_v16, %v761_v19  ;;  %v745_v27 = vadd.f32 %v744_v18, %v710_v3 }
 0x162   : > { %v714_v21 = vpop.f32.mrf.mxu3 }
 0x163   : > { %v769_v28 = vadd.f32 %v768_v20, %v762_v24  ;;  %v715_v29 = vadd.f32 %v1097_v62, %v714_v21  ;;  %v746_v31 = vadd.f32 %v745_v27, %v712_v4 }
 0x165   : > { %v764_v32 = vmul.f32 %v715_v29, %v715_v29  ;;  %v770_v33 = vadd.f32 %v769_v28, %v763_v30  ;;  %v747_v36 = vadd.f32 %v746_v31, %v715_v29 }
 0x167   : > { %v771_v38 = vadd.f32 %v770_v33, %v764_v32 }
 0x16a   : > { %v716_v35 = vpop.f32.mrf.mxu3 }
 0x16b   : > { %v717_v37 = vadd.f32 %v1097_v62, %v716_v35 }
 0x16d   : > { %v1012_v40 = vpack.c.bf16 %v717_v37, %v715_v29  ;;  %v748_v41 = vadd.f32 %v747_v36, %v717_v37  ;;  %v765_v42 = vmul.f32 %v717_v37, %v717_v37 }
 0x16f   : > { %1016 = vst [vmem:[%s1399_s15 + $0x18] sm:$0xff] %v1012_v40   ;;  %v749_v44 = vrot.slane %v748_v41, 4  ;;  %v772_v45 = vadd.f32 %v771_v38, %v765_v42 }
 0x171   : > { %v750_v25 = vadd.f32 %v749_v44, %v748_v41  ;;  %v773_v47 = vrot.slane %v772_v45, 4 }
 0x173   : > { %v751_v48 = vrot.slane %v750_v25, 2  ;;  %v774_v49 = vadd.f32 %v773_v47, %v772_v45 }
 0x175   : > { %v752_v50 = vadd.f32 %v751_v48, %v750_v25  ;;  %v775_v51 = vrot.slane %v774_v49, 2 }
 0x177   : > { %v753_v52 = vrot.slane %v752_v50, 1  ;;  %v776_v53 = vadd.f32 %v775_v51, %v774_v49 }
 0x179   : > { %v754_v54 = vadd.f32 %v753_v52, %v752_v50  ;;  %v777_v55 = vrot.slane %v776_v53, 1 }
 0x17b   : > { %v755_v43 = vadd.f32 %v754_v54, %v741_v23  ;;  %v778_v56 = vadd.f32 %v777_v55, %v776_v53 }
 0x17d   : > { %756 = vst [vmem:[%s1406_s18] sm:$0x1] %v755_v43  ;;  %v779_v57 = vadd.f32 %v778_v56, %v757_v22 }
 0x17f   : > { %780 = vst [vmem:[%s1412_s21] sm:$0x1] %v779_v57 }
 0x180 PF: > { %s22_s11 = sadd.s32 1, %s1188_s11   ;;  %s1444_s30 = smov %s1184_s10 }
 0x181   : > { %p19_p8 = scmp.ge.s32.totalorder %s22_s11, 6   ;;  %s1445_s10 = smov %s1447_s13 }
 0x183   :  { %21 = sbr.rel (!%p19_p8) target bundleno = 3 (0x3), region = 118 }
 0x188   :  { %835 = vsyncpa [#allocation3], 1 }
 0x189   :  { %837 = vsyncpa [#allocation3 + $0x1], 1 }
 0x18a   :  { %838 = vsyncpa [#allocation5], 1 }

// kernel: pointnet_encoder_forward.9
= control target key start
LH: loop header
LB: loop body
LE: loop exit
PB: predicated region body
PF: predicated region fallthrough
CT: control target
= control target key end

     0   :  { %14 = vsyncpa [#allocation3], 0  ;;  %s2335_s27 = smov 0   ;;  %s2337_s28 = smov 0   ;;  %s3151_s0 = inlined_call_operand.vmem [shape: bf16[4,64,128], index: 0, kind: input, shape index: {}]   ;;  %s3152_s1 = inlined_call_operand.vmem [shape: f32[1,128], index: 1, kind: input, shape index: {}]   ;;  %s3153_s2 = inlined_call_operand.vmem [shape: f32[1,128], index: 2, kind: input, shape index: {}]   ;;  %s3154_s3 = inlined_call_operand.vmem [shape: bf16[128,1024], index: 3, kind: input, shape index: {}]   ;;  %s3155_s4 = inlined_call_operand.hbm [shape: f32[1,1024], index: 4, kind: input, shape index: {}]   ;;  %s3156_s5 = inlined_call_operand.vmem [shape: f32[4,1,1024], index: 5, kind: output, shape index: {0}]   ;;  %s3157_s6 = inlined_call_operand.vmem [shape: f32[4,1,1024], index: 6, kind: output, shape index: {1}]   ;;  %s3158_s7 = inlined_call_operand.vmem [shape: f32[4,1,1024], index: 7, kind: output, shape index: {2}]   ;;  %s3159_s8 = inlined_call_operand.vmem [shape: f32[4,1,1024], index: 8, kind: output, shape index: {3}]  }
   0x1   :  { %s2339_s29 = smov 0  }
   0x2 LB: > { %s1836_s30 = sadd.s32 4294967295, %s2287_s29   ;;  %s32_s9 = sadd.s32 1, %s2283_s28  ;;  %s2287_s29 = sphi %s2339_s29, %s20_s29   ;;  %s2283_s28 = sphi %s2337_s28, %s3161_s28   ;;  %s2279_s27 = sphi %s2335_s27, %s3160_s27  }
   0x3   : > { %p34_p0 = scmp.ge.s32.totalorder %s32_s9, 4  ;;  %p1838_p1 = scmp.ge.s32.totalorder %s2287_s29, 1 }
   0x4   : > { %p253_p2 = scmp.lt.s32.totalorder %s2287_s29, 5  ;;  %p2199_p4 = scmp.eq.s32.totalorder %s1836_s30, 0 }
   0x5   : > { %s3163_s9 = smov (%p34_p0, %s32_s9), 0  ;;  %s274_s12 = sshll.u32 %s3155_s4, 4  ;;  %s275_s12 = int_to_ptr.hbm [resolvable:$true] %s274_s12 }
   0x6   : > { %p254_p3 = pnand %p1838_p1, %p253_p2  ;;  %s2289_s13 = smov [#allocation2]  }
   0x7   : > { %s276_s14 = sshll.u32 %s2289_s13, 4  ;;  %s277_s14 = int_to_ptr.vmem [resolvable:$true] %s276_s14 }
   0x8   : > { %p2195_p5 = pneg %p254_p3  ;;  %302 = sbr.rel (%p254_p3) target bundleno = 352 (0x160), region = 40 }
   0xa   : > { %p2196_p6 = pnand %p2199_p4, %p2195_p5 }
   0xc   : > { %2198 = dma.hbm_to_vmem [thread:$0]  (!%p2196_p6), %s275_s12, 128, %s277_s14, [#allocation3]  }
   0xd   : > { %2274 = dma.done.wait (%p2199_p4), [#allocation3], 128  }
   0xe   : > { %2276 = vsyncadd (%p2199_p4), [#allocation3], 4294967168  ;;  %p353_p7 = scmp.lt.s32.totalorder %s2279_s27, 3  ;;  %v2075_v0 = vld [vmem:[%s3154_s3 + $0x1c0] sm:$0xf]  ;;  %vm1192_vm0 = vcmask 1040384  }
   0xf   : > { %v2168_v1 = vld [vmem:[%s3154_s3 + $0x1dc] sm:$0xf0]  ;;  %v2164_v2 = vld [vmem:[%s3154_s3 + $0x1c4] sm:$0xf]  ;;  %v2083_v5 = vld [vmem:[%s3154_s3 + $0x1c8] sm:$0xf] }
  0x10   : > { %v2076_v3 = vor.u32 %v2168_v1, %v2075_v0  ;;  %v2077_v4 = vld [vmem:[%s3154_s3 + $0x1e0] sm:$0xf0]  ;;  %v2169_v6 = vld [vmem:[%s3154_s3 + $0x1e4] sm:$0xf0]  ;;  %v2165_v9 = vld [vmem:[%s3154_s3 + $0x1cc] sm:$0xf] }
  0x11   : > { %v2080_v7 = vor.u32 %v2164_v2, %v2077_v4  ;;  %v2084_v8 = vor.u32 %v2169_v6, %v2083_v5  ;;  %v2085_v10 = vld [vmem:[%s3154_s3 + $0x1e8] sm:$0xf0]  ;;  %v2043_v11 = vld [vmem:[%s3154_s3 + $0x180] sm:$0xf]  ;;  %v2156_v14 = vld [vmem:[%s3154_s3 + $0x184] sm:$0xf] }
  0x12   : > { %832 = vmatpush.bf16.msra.mxu0 %v2076_v3  ;;  %v2088_v12 = vor.u32 %v2165_v9, %v2085_v10  ;;  %v2160_v13 = vld [vmem:[%s3154_s3 + $0x19c] sm:$0xf0]  ;;  %v2045_v15 = vld [vmem:[%s3154_s3 + $0x1a0] sm:$0xf0]  ;;  %v2051_v18 = vld [vmem:[%s3154_s3 + $0x188] sm:$0xf] }
  0x13   : > { %861 = vmatpush.bf16.msra.mxu1 %v2080_v7  ;;  %890 = vmatpush.bf16.msra.mxu2 %v2084_v8  ;;  %v2044_v16 = vor.u32 %v2160_v13, %v2043_v11  ;;  %v2048_v17 = vor.u32 %v2156_v14, %v2045_v15  ;;  %v2161_v19 = vld [vmem:[%s3154_s3 + $0x1a4] sm:$0xf0]  ;;  %v2157_v20 = vld [vmem:[%s3154_s3 + $0x18c] sm:$0xf]  ;;  %v2011_v23 = vld [vmem:[%s3154_s3 + $0x140] sm:$0xf] }
  0x14   : > { %919 = vmatpush.bf16.msra.mxu3 %v2088_v12  ;;  %v2052_v21 = vor.u32 %v2161_v19, %v2051_v18  ;;  %v2053_v22 = vld [vmem:[%s3154_s3 + $0x1a8] sm:$0xf0]  ;;  %v2152_v24 = vld [vmem:[%s3154_s3 + $0x15c] sm:$0xf0]  ;;  %v2148_v26 = vld [vmem:[%s3154_s3 + $0x144] sm:$0xf] }
  0x15   : > { %v2056_v25 = vor.u32 %v2157_v20, %v2053_v22  ;;  %v2013_v27 = vld [vmem:[%s3154_s3 + $0x160] sm:$0xf0]  ;;  %v2019_v28 = vld [vmem:[%s3154_s3 + $0x148] sm:$0xf]  ;;  %v2012_v29 = vor.u32 %v2152_v24, %v2011_v23  ;;  %v2149_v31 = vld [vmem:[%s3154_s3 + $0x14c] sm:$0xf] }
  0x16   : > { %833 = vmatpush.bf16.msra.mxu0 %v2044_v16  ;;  %v2153_v30 = vld [vmem:[%s3154_s3 + $0x164] sm:$0xf0]  ;;  %v2021_v32 = vld [vmem:[%s3154_s3 + $0x168] sm:$0xf0]  ;;  %v2016_v33 = vor.u32 %v2148_v26, %v2013_v27  ;;  %v1979_v35 = vld [vmem:[%s3154_s3 + $0x100] sm:$0xf] }
  0x17   : > { %862 = vmatpush.bf16.msra.mxu1 %v2048_v17  ;;  %891 = vmatpush.bf16.msra.mxu2 %v2052_v21  ;;  %v2020_v34 = vor.u32 %v2153_v30, %v2019_v28  ;;  %v2144_v36 = vld [vmem:[%s3154_s3 + $0x11c] sm:$0xf0]  ;;  %v2140_v37 = vld [vmem:[%s3154_s3 + $0x104] sm:$0xf]  ;;  %v2024_v38 = vor.u32 %v2149_v31, %v2021_v32  ;;  %v1987_v40 = vld [vmem:[%s3154_s3 + $0x108] sm:$0xf] }
  0x18   : > { %920 = vmatpush.bf16.msra.mxu3 %v2056_v25  ;;  %v1981_v39 = vld [vmem:[%s3154_s3 + $0x120] sm:$0xf0]  ;;  %v2145_v41 = vld [vmem:[%s3154_s3 + $0x124] sm:$0xf0]  ;;  %v2141_v42 = vld [vmem:[%s3154_s3 + $0x10c] sm:$0xf]  ;;  %v1980_v44 = vor.u32 %v2144_v36, %v1979_v35 }
  0x19   : > { %v1989_v43 = vld [vmem:[%s3154_s3 + $0x128] sm:$0xf0]  ;;  %s3165_s27 = smov (!%p353_p7, %s2279_s27), 3  ;;  %v1984_v45 = vor.u32 %v2140_v37, %v1981_v39  ;;  %v1988_v46 = vor.u32 %v2145_v41, %v1987_v40  ;;  %v1947_v47 = vld [vmem:[%s3154_s3 + $0xc0] sm:$0xf]  ;;  %vm1194_vm1 = vcmask 1042434  }
  0x1a   : > { %834 = vmatpush.bf16.msra.mxu0 %v2012_v29  ;;  %v2136_v48 = vld [vmem:[%s3154_s3 + $0xdc] sm:$0xf0]  ;;  %v2132_v49 = vld [vmem:[%s3154_s3 + $0xc4] sm:$0xf]  ;;  %v1992_v50 = vor.u32 %v2141_v42, %v1989_v43  ;;  %v1955_v52 = vld [vmem:[%s3154_s3 + $0xc8] sm:$0xf] }
  0x1b   : > { %863 = vmatpush.bf16.msra.mxu1 %v2016_v33  ;;  %892 = vmatpush.bf16.msra.mxu2 %v2020_v34  ;;  %v1949_v51 = vld [vmem:[%s3154_s3 + $0xe0] sm:$0xf0]  ;;  %v2137_v53 = vld [vmem:[%s3154_s3 + $0xe4] sm:$0xf0]  ;;  %v2133_v54 = vld [vmem:[%s3154_s3 + $0xcc] sm:$0xf]  ;;  %v1948_v56 = vor.u32 %v2136_v48, %v1947_v47 }
  0x1c   : > { %921 = vmatpush.bf16.msra.mxu3 %v2024_v38  ;;  %v1957_v55 = vld [vmem:[%s3154_s3 + $0xe8] sm:$0xf0]  ;;  %s2107_s23 = sshll.u32 %s3165_s27, 5  ;;  %v1952_v57 = vor.u32 %v2132_v49, %v1949_v51  ;;  %v1956_v58 = vor.u32 %v2137_v53, %v1955_v52  ;;  %v1915_v59 = vld [vmem:[%s3154_s3 + $0x80] sm:$0xf]  ;;  %vm1196_vm2 = vcmask 1041408  }
  0x1d   : > { %v2128_v60 = vld [vmem:[%s3154_s3 + $0x9c] sm:$0xf0]  ;;  %v2124_v61 = vld [vmem:[%s3154_s3 + $0x84] sm:$0xf]  ;;  %v1960_v62 = vor.u32 %v2133_v54, %v1957_v55  ;;  %v1923_v0 = vld [vmem:[%s3154_s3 + $0x88] sm:$0xf]  ;;  %s2516_s30 = scalar_lea.vmem %s3151_s0, %s2107_s23 }
  0x1e   : > { %835 = vmatpush.bf16.msra.mxu0 %v1980_v44  ;;  %v1917_v63 = vld [vmem:[%s3154_s3 + $0xa0] sm:$0xf0]  ;;  %v2129_v1 = vld [vmem:[%s3154_s3 + $0xa4] sm:$0xf0]  ;;  %v2125_v2 = vld [vmem:[%s3154_s3 + $0x8c] sm:$0xf]  ;;  %v1916_v5 = vor.u32 %v2128_v60, %v1915_v59 }
  0x1f   : > { %864 = vmatpush.bf16.msra.mxu1 %v1984_v45  ;;  %893 = vmatpush.bf16.msra.mxu2 %v1988_v46  ;;  %v1925_v3 = vld [vmem:[%s3154_s3 + $0xa8] sm:$0xf0]  ;;  %v1883_v4 = vld [vmem:[%s3154_s3 + $0x40] sm:$0xf]  ;;  %v2116_v7 = vld [vmem:[%s3154_s3 + $0x44] sm:$0xf]  ;;  %v1920_v9 = vor.u32 %v2124_v61, %v1917_v63  ;;  %v1924_v10 = vor.u32 %v2129_v1, %v1923_v0 }
  0x20   : > { %922 = vmatpush.bf16.msra.mxu3 %v1992_v50  ;;  %v2120_v6 = vld [vmem:[%s3154_s3 + $0x5c] sm:$0xf0]  ;;  %v1885_v8 = vld [vmem:[%s3154_s3 + $0x60] sm:$0xf0]  ;;  %v1891_v11 = vld [vmem:[%s3154_s3 + $0x48] sm:$0xf]  ;;  %v1928_v14 = vor.u32 %v2125_v2, %v1925_v3 }
  0x21   : > { %v2121_v12 = vld [vmem:[%s3154_s3 + $0x64] sm:$0xf0]  ;;  %v2117_v13 = vld [vmem:[%s3154_s3 + $0x4c] sm:$0xf]  ;;  %v2173_v16 = vld [vmem:[%s2516_s30] sm:$0xff]   ;;  %v1884_v21 = vor.u32 %v2120_v6, %v1883_v4  ;;  %v1888_v22 = vor.u32 %v2116_v7, %v1885_v8  ;;  %vm1198_vm3 = vcmask 1044484  }
  0x22   : > { %836 = vmatpush.bf16.msra.mxu0 %v1948_v56  ;;  %v1893_v15 = vld [vmem:[%s3154_s3 + $0x68] sm:$0xf0]  ;;  %v2174_v17 = vunpack.c.l.bf16 %v2173_v16  ;;  %v2175_v18 = vunpack.c.h.bf16 %v2173_v16  ;;  %v2543_v19 = vld [vmem:[%s3152_s1] ss:$0 sm:$0xff]  ;;  %v1892_v24 = vor.u32 %v2121_v12, %v1891_v11  ;;  %v2108_v26 = vld [vmem:[%s3154_s3 + $0x4] sm:$0xf] }
  0x23   : > { %865 = vmatpush.bf16.msra.mxu1 %v1952_v57  ;;  %894 = vmatpush.bf16.msra.mxu2 %v1956_v58  ;;  %v2548_v20 = vld [vmem:[%s3153_s2] ss:$0 sm:$0xff]  ;;  %v1853_v27 = vld [vmem:[%s3154_s3 + $0x20] sm:$0xf0]  ;;  %v1896_v30 = vor.u32 %v2117_v13, %v1893_v15  ;;  %v1859_v31 = vld [vmem:[%s3154_s3 + $0x8] sm:$0xf] }
  0x24   : > { %923 = vmatpush.bf16.msra.mxu3 %v1960_v62  ;;  %v1851_v23 = vld [vmem:[%s3154_s3] sm:$0xf]  ;;  %v398_v28 = vmul.f32 %v2543_v19, %v2174_v17  ;;  %v399_v29 = vmul.f32 %v2543_v19, %v2175_v18  ;;  %v2113_v32 = vld [vmem:[%s3154_s3 + $0x24] sm:$0xf0]  ;;  %v2109_v33 = vld [vmem:[%s3154_s3 + $0xc] sm:$0xf]  ;;  %v1856_v42 = vor.u32 %v2108_v26, %v1853_v27 }
  0x25   : > { %v2112_v25 = vld [vmem:[%s3154_s3 + $0x1c] sm:$0xf0]  ;;  %v1861_v34 = vld [vmem:[%s3154_s3 + $0x28] sm:$0xf0]  ;;  %v2099_v37 = vld [vmem:[%s3154_s3 + $0x1d8] sm:$0xf]  ;;  %v1860_v43 = vor.u32 %v2113_v32, %v1859_v31 }
  0x26   : > { %837 = vmatpush.bf16.msra.mxu0 %v1916_v5  ;;  %v410_v35 = vadd.f32 %v2548_v20, %v398_v28  ;;  %v411_v36 = vadd.f32 %v2548_v20, %v399_v29  ;;  %v2171_v38 = vld [vmem:[%s3154_s3 + $0x1f4] sm:$0xf0]  ;;  %v1852_v39 = vor.u32 %v2112_v25, %v1851_v23  ;;  %v2167_v40 = vld [vmem:[%s3154_s3 + $0x1dc] sm:$0xf]  ;;  %v2188_v46 = vld [vmem:[%s2516_s30 + $0x8] sm:$0xff]   ;;  %v1864_v47 = vor.u32 %v2109_v33, %v1861_v34 }
  0x27   : > { %866 = vmatpush.bf16.msra.mxu1 %v1920_v9  ;;  %895 = vmatpush.bf16.msra.mxu2 %v1924_v10  ;;  %v2101_v41 = vld [vmem:[%s3154_s3 + $0x1f8] sm:$0xf0]  ;;  %v2100_v48 = vor.u32 %v2171_v38, %v2099_v37  ;;  %v2091_v49 = vld [vmem:[%s3154_s3 + $0x1d0] sm:$0xf]  ;;  %v2166_v51 = vld [vmem:[%s3154_s3 + $0x1d4] sm:$0xf]  ;;  %v2178_v57 = vunpack.c.l.bf16 %v2188_v46  ;;  %v2179_v58 = vunpack.c.h.bf16 %v2188_v46 }
  0x28   : > { %924 = vmatpush.bf16.msra.mxu3 %v1928_v14  ;;  %v418_v44 = vmax.f32 %v410_v35, 0.0  ;;  %v419_v45 = vmax.f32 %v411_v36, 0.0  ;;  %v2170_v50 = vld [vmem:[%s3154_s3 + $0x1ec] sm:$0xf0]  ;;  %v2104_v53 = vor.u32 %v2167_v40, %v2101_v41  ;;  %v2093_v54 = vld [vmem:[%s3154_s3 + $0x1f0] sm:$0xf0] }
  0x29   : > { %v2067_v55 = vld [vmem:[%s3154_s3 + $0x198] sm:$0xf]  ;;  %v2159_v59 = vld [vmem:[%s3154_s3 + $0x19c] sm:$0xf]  ;;  %v2092_v61 = vor.u32 %v2170_v50, %v2091_v49  ;;  %v2096_v62 = vor.u32 %v2166_v51, %v2093_v54  ;;  %v2059_v0 = vld [vmem:[%s3154_s3 + $0x190] sm:$0xf]  ;;  %v400_v5 = vmul.f32 %v2543_v19, %v2178_v57  ;;  %v401_v6 = vmul.f32 %v2543_v19, %v2179_v58 }
  0x2a   : > { %838 = vmatpush.bf16.msra.mxu0 %v1884_v21  ;;  %v2600_v52 = vpack.c.bf16 %v419_v45, %v418_v44  ;;  %v2163_v56 = vld [vmem:[%s3154_s3 + $0x1b4] sm:$0xf0]  ;;  %v2069_v60 = vld [vmem:[%s3154_s3 + $0x1b8] sm:$0xf0]  ;;  %v2162_v1 = vld [vmem:[%s3154_s3 + $0x1ac] sm:$0xf0] }
  0x2b   : > { %867 = vmatpush.bf16.msra.mxu1 %v1888_v22  ;;  %896 = vmatpush.bf16.msra.mxu2 %v1892_v24  ;;  %v2068_v63 = vor.u32 %v2163_v56, %v2067_v55  ;;  %v2158_v2 = vld [vmem:[%s3154_s3 + $0x194] sm:$0xf]  ;;  %v2072_v3 = vor.u32 %v2159_v59, %v2069_v60  ;;  %v2035_v7 = vld [vmem:[%s3154_s3 + $0x158] sm:$0xf]  ;;  %v2151_v9 = vld [vmem:[%s3154_s3 + $0x15c] sm:$0xf]  ;;  %v2060_v11 = vor.u32 %v2162_v1, %v2059_v0 }
  0x2c   : > { %925 = vmatpush.bf16.msra.mxu3 %v1896_v30  ;;  %v2061_v4 = vld [vmem:[%s3154_s3 + $0x1b0] sm:$0xf0]  ;;  %v2155_v8 = vld [vmem:[%s3154_s3 + $0x174] sm:$0xf0]  ;;  %v2037_v10 = vld [vmem:[%s3154_s3 + $0x178] sm:$0xf0]  ;;  %v412_v17 = vadd.f32 %v2548_v20, %v400_v5  ;;  %v413_v18 = vadd.f32 %v2548_v20, %v401_v6 }
  0x2d   : > { %v2064_v12 = vor.u32 %v2158_v2, %v2061_v4  ;;  %v2036_v13 = vor.u32 %v2155_v8, %v2035_v7  ;;  %v2027_v14 = vld [vmem:[%s3154_s3 + $0x150] sm:$0xf]  ;;  %v2150_v16 = vld [vmem:[%s3154_s3 + $0x154] sm:$0xf]  ;;  %v2040_v21 = vor.u32 %v2151_v9, %v2037_v10  ;;  %v2003_v23 = vld [vmem:[%s3154_s3 + $0x118] sm:$0xf] }
  0x2e   : > { %839 = vmatpush.bf16.msra.mxu0 %v1852_v39  ;;  %v2154_v15 = vld [vmem:[%s3154_s3 + $0x16c] sm:$0xf0]  ;;  %v2029_v22 = vld [vmem:[%s3154_s3 + $0x170] sm:$0xf0]  ;;  %v2147_v24 = vld [vmem:[%s3154_s3 + $0x134] sm:$0xf0] }
  0x2f   : > { %868 = vmatpush.bf16.msra.mxu1 %v1856_v42  ;;  %897 = vmatpush.bf16.msra.mxu2 %v1860_v43  ;;  %v2143_v25 = vld [vmem:[%s3154_s3 + $0x11c] sm:$0xf]  ;;  %v2028_v27 = vor.u32 %v2154_v15, %v2027_v14  ;;  %v1995_v28 = vld [vmem:[%s3154_s3 + $0x110] sm:$0xf]  ;;  %v2032_v29 = vor.u32 %v2150_v16, %v2029_v22  ;;  %v2004_v30 = vor.u32 %v2147_v24, %v2003_v23  ;;  %v2142_v32 = vld [vmem:[%s3154_s3 + $0x114] sm:$0xf] }
  0x30   : > { %926 = vmatpush.bf16.msra.mxu3 %v1864_v47  ;;  %v2005_v26 = vld [vmem:[%s3154_s3 + $0x138] sm:$0xf0]  ;;  %v2146_v31 = vld [vmem:[%s3154_s3 + $0x12c] sm:$0xf0]  ;;  %v1997_v33 = vld [vmem:[%s3154_s3 + $0x130] sm:$0xf0] }
  0x31   : > { %840 = vmatmul.bf16.vlgmr.msra.gmra.mxu0 %v2600_v52  ;;  %v420_v34 = vmax.f32 %v412_v17, 0.0  ;;  %v421_v35 = vmax.f32 %v413_v18, 0.0  ;;  %v2008_v36 = vor.u32 %v2143_v25, %v2005_v26  ;;  %v1971_v37 = vld [vmem:[%s3154_s3 + $0xd8] sm:$0xf]  ;;  %v2189_v39 = vld [vmem:[%s2516_s30 + $0x10] sm:$0xff]   ;;  %v1996_v42 = vor.u32 %v2146_v31, %v1995_v28 }
  0x32   : > { %869 = vmatmul.bf16.vlgmr.msra.gmra.mxu1 %v2600_v52  ;;  %898 = vmatmul.bf16.vlgmr.msra.gmra.mxu2 %v2600_v52  ;;  %v2139_v38 = vld [vmem:[%s3154_s3 + $0xf4] sm:$0xf0]  ;;  %v2135_v40 = vld [vmem:[%s3154_s3 + $0xdc] sm:$0xf]  ;;  %v2000_v43 = vor.u32 %v2142_v32, %v1997_v33  ;;  %v1963_v45 = vld [vmem:[%s3154_s3 + $0xd0] sm:$0xf]  ;;  %v2182_v49 = vunpack.c.l.bf16 %v2189_v39  ;;  %v2183_v50 = vunpack.c.h.bf16 %v2189_v39 }
  0x33   : > { %1006 = vmatpush.bf16.msrb.mxu2 %v2100_v48  ;;  %927 = vmatmul.bf16.vlgmr.msra.gmra.mxu3 %v2600_v52  ;;  %v1973_v41 = vld [vmem:[%s3154_s3 + $0xf8] sm:$0xf0]  ;;  %v1972_v44 = vor.u32 %v2139_v38, %v1971_v37  ;;  %v2138_v46 = vld [vmem:[%s3154_s3 + $0xec] sm:$0xf0]  ;;  %v2134_v47 = vld [vmem:[%s3154_s3 + $0xd4] sm:$0xf]  ;;  %v2707_v48 = vpack.c.bf16 %v421_v35, %v420_v34 }
  0x34   : > { %1035 = vmatpush.bf16.msrb.mxu3 %v2104_v53  ;;  %948 = vmatpush.bf16.msrb.mxu0 %v2092_v61  ;;  %v1976_v51 = vor.u32 %v2135_v40, %v1973_v41  ;;  %v1965_v53 = vld [vmem:[%s3154_s3 + $0xf0] sm:$0xf0]  ;;  %v1939_v54 = vld [vmem:[%s3154_s3 + $0x98] sm:$0xf]  ;;  %v2127_v56 = vld [vmem:[%s3154_s3 + $0x9c] sm:$0xf]  ;;  %v1964_v58 = vor.u32 %v2138_v46, %v1963_v45  ;;  %v403_v0 = vmul.f32 %v2543_v19, %v2183_v50 }
  0x35   : > { %977 = vmatpush.bf16.msrb.mxu1 %v2096_v62  ;;  %v2131_v55 = vld [vmem:[%s3154_s3 + $0xb4] sm:$0xf0]  ;;  %v1941_v57 = vld [vmem:[%s3154_s3 + $0xb8] sm:$0xf0]  ;;  %v1968_v59 = vor.u32 %v2134_v47, %v1965_v53  ;;  %v1931_v61 = vld [vmem:[%s3154_s3 + $0x90] sm:$0xf] }
  0x36   : > { %v1940_v60 = vor.u32 %v2131_v55, %v1939_v54  ;;  %v2130_v62 = vld [vmem:[%s3154_s3 + $0xac] sm:$0xf0]  ;;  %v1944_v1 = vor.u32 %v2127_v56, %v1941_v57  ;;  %v2126_v2 = vld [vmem:[%s3154_s3 + $0x94] sm:$0xf]  ;;  %v1907_v5 = vld [vmem:[%s3154_s3 + $0x58] sm:$0xf]  ;;  %v415_v14 = vadd.f32 %v2548_v20, %v403_v0 }
  0x37   : > { %1007 = vmatpush.bf16.msrb.mxu2 %v2068_v63  ;;  %v402_v63 = vmul.f32 %v2543_v19, %v2182_v49  ;;  %v1932_v4 = vor.u32 %v2130_v62, %v1931_v61  ;;  %v2123_v6 = vld [vmem:[%s3154_s3 + $0x74] sm:$0xf0]  ;;  %v2119_v7 = vld [vmem:[%s3154_s3 + $0x5c] sm:$0xf]  ;;  %v2118_v16 = vld [vmem:[%s3154_s3 + $0x54] sm:$0xf] }
  0x38   : > { %1036 = vmatpush.bf16.msrb.mxu3 %v2072_v3  ;;  %949 = vmatpush.bf16.msrb.mxu0 %v2060_v11  ;;  %v1933_v3 = vld [vmem:[%s3154_s3 + $0xb0] sm:$0xf0]  ;;  %v1908_v9 = vor.u32 %v2123_v6, %v1907_v5  ;;  %v1909_v10 = vld [vmem:[%s3154_s3 + $0x78] sm:$0xf0]  ;;  %v1899_v11 = vld [vmem:[%s3154_s3 + $0x50] sm:$0xf] }
  0x39   : > { %978 = vmatpush.bf16.msrb.mxu1 %v2064_v12  ;;  %v1936_v8 = vor.u32 %v2126_v2, %v1933_v3  ;;  %v2122_v12 = vld [vmem:[%s3154_s3 + $0x6c] sm:$0xf0]  ;;  %v1912_v15 = vor.u32 %v2119_v7, %v1909_v10  ;;  %v1901_v17 = vld [vmem:[%s3154_s3 + $0x70] sm:$0xf0]  ;;  %v1875_v18 = vld [vmem:[%s3154_s3 + $0x18] sm:$0xf] }
  0x3a   : > { %v2111_v22 = vld [vmem:[%s3154_s3 + $0x1c] sm:$0xf]  ;;  %v1900_v24 = vor.u32 %v2122_v12, %v1899_v11  ;;  %v1904_v25 = vor.u32 %v2118_v16, %v1901_v17  ;;  %v2114_v28 = vld [vmem:[%s3154_s3 + $0x2c] sm:$0xf0]  ;;  %v2110_v32 = vld [vmem:[%s3154_s3 + $0x14] sm:$0xf] }
  0x3b   : > { %1008 = vmatpush.bf16.msrb.mxu2 %v2036_v13  ;;  %v414_v13 = vadd.f32 %v2548_v20, %v402_v63  ;;  %v1877_v23 = vld [vmem:[%s3154_s3 + $0x38] sm:$0xf0]  ;;  %v1869_v33 = vld [vmem:[%s3154_s3 + $0x30] sm:$0xf0]  ;;  %vm1200_vm4 = vcmask 1046534   ;;  %vm1202_vm5 = vcmask 1045508  }
  0x3c   : > { %1037 = vmatpush.bf16.msrb.mxu3 %v2040_v21  ;;  %950 = vmatpush.bf16.msrb.mxu0 %v2028_v27  ;;  %v2115_v21 = vld [vmem:[%s3154_s3 + $0x34] sm:$0xf0]  ;;  %v1867_v27 = vld [vmem:[%s3154_s3 + $0x10] sm:$0xf]  ;;  %v1880_v31 = vor.u32 %v2111_v22, %v1877_v23  ;;  %vm1204_vm6 = vcmask 1043456  }
  0x3d   : > { %979 = vmatpush.bf16.msrb.mxu1 %v2032_v29  ;;  %v1876_v26 = vor.u32 %v2115_v21, %v1875_v18  ;;  %v422_v29 = vmax.f32 %v414_v13, 0.0  ;;  %v2190_v34 = vld [vmem:[%s2516_s30 + $0x18] sm:$0xff]   ;;  %v1868_v35 = vor.u32 %v2114_v28, %v1867_v27  ;;  %s1845_s30 = sshll.u32 %s3165_s27, 3 }
  0x3e   : > { %v2186_v38 = vunpack.c.l.bf16 %v2190_v34  ;;  %v2187_v39 = vunpack.c.h.bf16 %v2190_v34  ;;  %s373_s19 = scalar_lea.vmem %s3158_s7, %s1845_s30  ;;  %s365_s22 = scalar_lea.vmem %s3156_s5, %s1845_s30 }
  0x3f   : > { %1009 = vmatpush.bf16.msrb.mxu2 %v2004_v30  ;;  %v423_v30 = vmax.f32 %v415_v14, 0.0  ;;  %s369_s26 = scalar_lea.vmem %s3157_s6, %s1845_s30  ;;  %s377_s12 = scalar_lea.vmem %s3159_s8, %s1845_s30 }
  0x40   : > { %1038 = vmatpush.bf16.msrb.mxu3 %v2008_v36  ;;  %951 = vmatpush.bf16.msrb.mxu0 %v1996_v42  ;;  %v1872_v36 = vor.u32 %v2110_v32, %v1869_v33  ;;  %v404_v40 = vmul.f32 %v2543_v19, %v2186_v38  ;;  %v405_v41 = vmul.f32 %v2543_v19, %v2187_v39  ;;  %v2805_v19 = vld [vmem:[#allocation2] sm:$0xff] }
  0x41   : > { %980 = vmatpush.bf16.msrb.mxu1 %v2000_v43  ;;  %845 = vmatmul.bf16.gmra.mxu0 %v2707_v48  ;;  %v428_v37 = vpack.c.bf16 %v423_v30, %v422_v29  ;;  %v2808_v47 = vperm.slane %v2805_v19, 0  ;;  %v2811_v49 = vperm.slane %v2805_v19, 1  ;;  %v2816_v55 = vperm.slane %v2805_v19, 2 }
  0x42   : > { %874 = vmatmul.bf16.gmra.mxu1 %v2707_v48  ;;  %903 = vmatmul.bf16.gmra.mxu2 %v2707_v48  ;;  %v416_v42 = vadd.f32 %v2548_v20, %v404_v40  ;;  %v417_v43 = vadd.f32 %v2548_v20, %v405_v41  ;;  %v2819_v56 = vperm.slane %v2805_v19, 3 }
  0x43   : > { %1010 = vmatpush.bf16.msrb.mxu2 %v1972_v44  ;;  %932 = vmatmul.bf16.gmra.mxu3 %v2707_v48 }
  0x44   : > { %1039 = vmatpush.bf16.msrb.mxu3 %v1976_v51  ;;  %952 = vmatpush.bf16.msrb.mxu0 %v1964_v58  ;;  %v424_v44 = vmax.f32 %v416_v42, 0.0  ;;  %v425_v45 = vmax.f32 %v417_v43, 0.0 }
  0x45   : > { %981 = vmatpush.bf16.msrb.mxu1 %v1968_v59 }
  0x46   : > { %v429_v46 = vpack.c.bf16 %v425_v45, %v424_v44 }
  0x47   : > { %1011 = vmatpush.bf16.msrb.mxu2 %v1940_v60 }
  0x48   : > { %1040 = vmatpush.bf16.msrb.mxu3 %v1944_v1  ;;  %953 = vmatpush.bf16.msrb.mxu0 %v1932_v4 }
  0x49   : > { %982 = vmatpush.bf16.msrb.mxu1 %v1936_v8 }
  0x4b   : > { %1012 = vmatpush.bf16.msrb.mxu2 %v1908_v9 }
  0x4c   : > { %1041 = vmatpush.bf16.msrb.mxu3 %v1912_v15  ;;  %954 = vmatpush.bf16.msrb.mxu0 %v1900_v24 }
  0x4d   : > { %983 = vmatpush.bf16.msrb.mxu1 %v1904_v25 }
  0x4f   : > { %1013 = vmatpush.bf16.msrb.mxu2 %v1876_v26 }
  0x50   : > { %1042 = vmatpush.bf16.msrb.mxu3 %v1880_v31  ;;  %955 = vmatpush.bf16.msrb.mxu0 %v1868_v35 }
  0x51   : > { %984 = vmatpush.bf16.msrb.mxu1 %v1872_v36  ;;  %850 = vmatmul.bf16.gmra.mxu0 %v428_v37 }
  0x52   : > { %879 = vmatmul.bf16.gmra.mxu1 %v428_v37  ;;  %908 = vmatmul.bf16.gmra.mxu2 %v428_v37 }
  0x53   : > { %937 = vmatmul.bf16.gmra.mxu3 %v428_v37 }
  0x61   : > { %855 = vmatmul.bf16.gmra.mxu0 %v429_v46 }
  0x62   : > { %884 = vmatmul.bf16.gmra.mxu1 %v429_v46  ;;  %913 = vmatmul.bf16.gmra.mxu2 %v429_v46 }
  0x63   : > { %942 = vmatmul.bf16.gmra.mxu3 %v429_v46 }
  0x71   : > { %956 = vmatmul.bf16.vlgmr.msrb.gmra.mxu0 %v2600_v52 }
  0x72   : > { %985 = vmatmul.bf16.vlgmr.msrb.gmra.mxu1 %v2600_v52  ;;  %1014 = vmatmul.bf16.vlgmr.msrb.gmra.mxu2 %v2600_v52 }
  0x73   : > { %1043 = vmatmul.bf16.vlgmr.msrb.gmra.mxu3 %v2600_v52 }
  0x81   : > { %961 = vmatmul.bf16.gmra.mxu0 %v2707_v48 }
  0x82   : > { %990 = vmatmul.bf16.gmra.mxu1 %v2707_v48  ;;  %1019 = vmatmul.bf16.gmra.mxu2 %v2707_v48 }
  0x83   : > { %1048 = vmatmul.bf16.gmra.mxu3 %v2707_v48 }
  0x91   : > { %966 = vmatmul.bf16.gmra.mxu0 %v428_v37 }
  0x92   : > { %995 = vmatmul.bf16.gmra.mxu1 %v428_v37  ;;  %1024 = vmatmul.bf16.gmra.mxu2 %v428_v37 }
  0x93   : > { %1053 = vmatmul.bf16.gmra.mxu3 %v428_v37 }
  0xa1   : > { %971 = vmatmul.bf16.gmra.mxu0 %v429_v46 }
  0xa2   : > { %1000 = vmatmul.bf16.gmra.mxu1 %v429_v46  ;;  %1029 = vmatmul.bf16.gmra.mxu2 %v429_v46 }
  0xa3   : > { %1058 = vmatmul.bf16.gmra.mxu3 %v429_v46 }
  0xae   : > { %v841_v20 = vpop.f32.mrf.mxu0 }
  0xaf   : > { %v870_v52 = vpop.f32.mrf.mxu1  ;;  %v842_v48 = vadd.f32 %v841_v20, %v2808_v47 }
  0xb0   : > { %v871_v50 = vadd.f32 %v870_v52, %v2811_v49 }
  0xb1   : > { %v1210_v59 = vmul.f32 %v842_v48, %v842_v48 }
  0xb2   : > { %v1211_v61 = vmul.f32 %v871_v50, %v871_v50 }
  0xb5   : > { %v899_v51 = vpop.f32.mrf.mxu2 }
  0xb6   : > { %v928_v53 = vpop.f32.mrf.mxu3  ;;  %v843_v54 = vpop.f32.mrf.mxu0  ;;  %v900_v5 = vadd.f32 %v899_v51, %v2816_v55 }
  0xb7   : > { %v844_v57 = vadd.f32 %v843_v54, %v2808_v47  ;;  %v872_v58 = vpop.f32.mrf.mxu1  ;;  %v929_v6 = vadd.f32 %v928_v53, %v2819_v56 }
  0xb8   : > { %v873_v60 = vadd.f32 %v872_v58, %v2811_v49  ;;  %v1212_v14 = vmul.f32 %v900_v5, %v900_v5 }
  0xb9   : > { %v1073_v62 = vadd.f32 %v844_v57, %v842_v48  ;;  %v1218_v63 = vmul.f32 %v844_v57, %v844_v57  ;;  %v1404_v0 = vmax.f32 %v842_v48, %v844_v57  ;;  %v1534_v1 = vmin.f32 %v842_v48, %v844_v57 }
  0xba   : > { %v1086_v2 = vadd.f32 %v873_v60, %v871_v50  ;;  %v1219_v3 = vmul.f32 %v873_v60, %v873_v60  ;;  %v1417_v4 = vmax.f32 %v871_v50, %v873_v60  ;;  %v1547_v8 = vmin.f32 %v871_v50, %v873_v60 }
  0xbb   : > { %v1274_v7 = vadd.f32 %v1218_v63, %v1210_v59  ;;  %v1213_v15 = vmul.f32 %v929_v6, %v929_v6 }
  0xbc   : > { %v1287_v9 = vadd.f32 %v1219_v3, %v1211_v61 }
  0xbd   : > { %v901_v10 = vpop.f32.mrf.mxu2 }
  0xbe   : > { %v902_v11 = vadd.f32 %v901_v10, %v2816_v55  ;;  %v930_v12 = vpop.f32.mrf.mxu3  ;;  %v846_v13 = vpop.f32.mrf.mxu0 }
  0xbf   : > { %v931_v16 = vadd.f32 %v930_v12, %v2819_v56  ;;  %v847_v17 = vadd.f32 %v846_v13, %v2808_v47  ;;  %v875_v18 = vpop.f32.mrf.mxu1 }
  0xc0   : > { %v1099_v21 = vadd.f32 %v902_v11, %v900_v5  ;;  %v1220_v22 = vmul.f32 %v902_v11, %v902_v11  ;;  %v1430_v23 = vmax.f32 %v900_v5, %v902_v11  ;;  %v1560_v24 = vmin.f32 %v900_v5, %v902_v11 }
  0xc1   : > { %v1112_v25 = vadd.f32 %v931_v16, %v929_v6  ;;  %v1221_v26 = vmul.f32 %v931_v16, %v931_v16  ;;  %v1443_v27 = vmax.f32 %v929_v6, %v931_v16  ;;  %v1573_v28 = vmin.f32 %v929_v6, %v931_v16 }
  0xc2   : > { %v1300_v29 = vadd.f32 %v1220_v22, %v1212_v14  ;;  %v1074_v30 = vadd.f32 %v1073_v62, %v847_v17  ;;  %v1226_v31 = vmul.f32 %v847_v17, %v847_v17  ;;  %v1405_v32 = vmax.f32 %v1404_v0, %v847_v17 }
  0xc3   : > { %v1313_v33 = vadd.f32 %v1221_v26, %v1213_v15  ;;  %v1535_v34 = vmin.f32 %v1534_v1, %v847_v17  ;;  %v876_v35 = vadd.f32 %v875_v18, %v2811_v49 }
  0xc4   : > { %v1275_v36 = vadd.f32 %v1274_v7, %v1226_v31 }
  0xc5   : > { %v1087_v37 = vadd.f32 %v1086_v2, %v876_v35  ;;  %v1227_v38 = vmul.f32 %v876_v35, %v876_v35  ;;  %v1418_v39 = vmax.f32 %v1417_v4, %v876_v35  ;;  %v1548_v40 = vmin.f32 %v1547_v8, %v876_v35  ;;  %v904_v41 = vpop.f32.mrf.mxu2 }
  0xc6   : > { %v905_v42 = vadd.f32 %v904_v41, %v2816_v55  ;;  %v933_v43 = vpop.f32.mrf.mxu3  ;;  %v848_v44 = vpop.f32.mrf.mxu0 }
  0xc7   : > { %v1288_v45 = vadd.f32 %v1287_v9, %v1227_v38  ;;  %v934_v46 = vadd.f32 %v933_v43, %v2819_v56  ;;  %v849_v20 = vadd.f32 %v848_v44, %v2808_v47  ;;  %v877_v52 = vpop.f32.mrf.mxu1 }
  0xc8   : > { %v1100_v48 = vadd.f32 %v1099_v21, %v905_v42  ;;  %v1228_v50 = vmul.f32 %v905_v42, %v905_v42  ;;  %v1431_v51 = vmax.f32 %v1430_v23, %v905_v42  ;;  %v1561_v53 = vmin.f32 %v1560_v24, %v905_v42 }
  0xc9   : > { %v1113_v54 = vadd.f32 %v1112_v25, %v934_v46  ;;  %v1229_v57 = vmul.f32 %v934_v46, %v934_v46  ;;  %v1444_v58 = vmax.f32 %v1443_v27, %v934_v46  ;;  %v1574_v59 = vmin.f32 %v1573_v28, %v934_v46 }
  0xca   : > { %v1301_v60 = vadd.f32 %v1300_v29, %v1228_v50  ;;  %v1075_v61 = vadd.f32 %v1074_v30, %v849_v20  ;;  %v1234_v62 = vmul.f32 %v849_v20, %v849_v20  ;;  %v1406_v63 = vmax.f32 %v1405_v32, %v849_v20 }
  0xcb   : > { %v1314_v0 = vadd.f32 %v1313_v33, %v1229_v57  ;;  %v1536_v1 = vmin.f32 %v1535_v34, %v849_v20  ;;  %v878_v2 = vadd.f32 %v877_v52, %v2811_v49 }
  0xcc   : > { %v1276_v3 = vadd.f32 %v1275_v36, %v1234_v62 }
  0xcd   : > { %v1088_v4 = vadd.f32 %v1087_v37, %v878_v2  ;;  %v1235_v5 = vmul.f32 %v878_v2, %v878_v2  ;;  %v1419_v6 = vmax.f32 %v1418_v39, %v878_v2  ;;  %v1549_v7 = vmin.f32 %v1548_v40, %v878_v2  ;;  %v906_v8 = vpop.f32.mrf.mxu2 }
  0xce   : > { %v907_v9 = vadd.f32 %v906_v8, %v2816_v55  ;;  %v935_v10 = vpop.f32.mrf.mxu3  ;;  %v851_v11 = vpop.f32.mrf.mxu0 }
  0xcf   : > { %v1289_v12 = vadd.f32 %v1288_v45, %v1235_v5  ;;  %v936_v13 = vadd.f32 %v935_v10, %v2819_v56  ;;  %v852_v14 = vadd.f32 %v851_v11, %v2808_v47  ;;  %v880_v15 = vpop.f32.mrf.mxu1 }
  0xd0   : > { %v1101_v16 = vadd.f32 %v1100_v48, %v907_v9  ;;  %v1236_v17 = vmul.f32 %v907_v9, %v907_v9  ;;  %v1432_v18 = vmax.f32 %v1431_v51, %v907_v9  ;;  %v1562_v21 = vmin.f32 %v1561_v53, %v907_v9 }
  0xd1   : > { %v1114_v22 = vadd.f32 %v1113_v54, %v936_v13  ;;  %v1237_v23 = vmul.f32 %v936_v13, %v936_v13  ;;  %v1445_v24 = vmax.f32 %v1444_v58, %v936_v13  ;;  %v1575_v25 = vmin.f32 %v1574_v59, %v936_v13 }
  0xd2   : > { %v1302_v26 = vadd.f32 %v1301_v60, %v1236_v17  ;;  %v1076_v27 = vadd.f32 %v1075_v61, %v852_v14  ;;  %v1242_v28 = vmul.f32 %v852_v14, %v852_v14  ;;  %v1407_v29 = vmax.f32 %v1406_v63, %v852_v14 }
  0xd3   : > { %v1315_v30 = vadd.f32 %v1314_v0, %v1237_v23  ;;  %v1537_v31 = vmin.f32 %v1536_v1, %v852_v14  ;;  %v881_v32 = vadd.f32 %v880_v15, %v2811_v49 }
  0xd4   : > { %v1277_v33 = vadd.f32 %v1276_v3, %v1242_v28 }
  0xd5   : > { %v1089_v34 = vadd.f32 %v1088_v4, %v881_v32  ;;  %v1243_v35 = vmul.f32 %v881_v32, %v881_v32  ;;  %v1420_v36 = vmax.f32 %v1419_v6, %v881_v32  ;;  %v1550_v37 = vmin.f32 %v1549_v7, %v881_v32  ;;  %v909_v38 = vpop.f32.mrf.mxu2 }
  0xd6   : > { %v910_v39 = vadd.f32 %v909_v38, %v2816_v55  ;;  %v938_v40 = vpop.f32.mrf.mxu3  ;;  %v853_v41 = vpop.f32.mrf.mxu0 }
  0xd7   : > { %v1290_v42 = vadd.f32 %v1289_v12, %v1243_v35  ;;  %v939_v43 = vadd.f32 %v938_v40, %v2819_v56  ;;  %v854_v44 = vadd.f32 %v853_v41, %v2808_v47  ;;  %v882_v45 = vpop.f32.mrf.mxu1 }
  0xd8   : > { %v1102_v46 = vadd.f32 %v1101_v16, %v910_v39  ;;  %v1244_v20 = vmul.f32 %v910_v39, %v910_v39  ;;  %v1433_v52 = vmax.f32 %v1432_v18, %v910_v39  ;;  %v1563_v48 = vmin.f32 %v1562_v21, %v910_v39 }
  0xd9   : > { %v1115_v50 = vadd.f32 %v1114_v22, %v939_v43  ;;  %v1245_v51 = vmul.f32 %v939_v43, %v939_v43  ;;  %v1446_v53 = vmax.f32 %v1445_v24, %v939_v43  ;;  %v1576_v54 = vmin.f32 %v1575_v25, %v939_v43 }
  0xda   : > { %v1303_v57 = vadd.f32 %v1302_v26, %v1244_v20  ;;  %v1077_v58 = vadd.f32 %v1076_v27, %v854_v44  ;;  %v1250_v59 = vmul.f32 %v854_v44, %v854_v44  ;;  %v1408_v60 = vmax.f32 %v1407_v29, %v854_v44 }
  0xdb   : > { %v1316_v61 = vadd.f32 %v1315_v30, %v1245_v51  ;;  %v1538_v62 = vmin.f32 %v1537_v31, %v854_v44  ;;  %v883_v63 = vadd.f32 %v882_v45, %v2811_v49 }
  0xdc   : > { %v1278_v0 = vadd.f32 %v1277_v33, %v1250_v59 }
  0xdd   : > { %v1090_v1 = vadd.f32 %v1089_v34, %v883_v63  ;;  %v1251_v2 = vmul.f32 %v883_v63, %v883_v63  ;;  %v1421_v3 = vmax.f32 %v1420_v36, %v883_v63  ;;  %v1551_v4 = vmin.f32 %v1550_v37, %v883_v63  ;;  %v911_v5 = vpop.f32.mrf.mxu2 }
  0xde   : > { %v912_v6 = vadd.f32 %v911_v5, %v2816_v55  ;;  %v940_v7 = vpop.f32.mrf.mxu3  ;;  %v856_v8 = vpop.f32.mrf.mxu0 }
  0xdf   : > { %v1291_v9 = vadd.f32 %v1290_v42, %v1251_v2  ;;  %v941_v10 = vadd.f32 %v940_v7, %v2819_v56  ;;  %v857_v11 = vadd.f32 %v856_v8, %v2808_v47  ;;  %v885_v12 = vpop.f32.mrf.mxu1 }
  0xe0   : > { %v1103_v13 = vadd.f32 %v1102_v46, %v912_v6  ;;  %v1252_v14 = vmul.f32 %v912_v6, %v912_v6  ;;  %v1434_v15 = vmax.f32 %v1433_v52, %v912_v6  ;;  %v1564_v16 = vmin.f32 %v1563_v48, %v912_v6 }
  0xe1   : > { %v1116_v17 = vadd.f32 %v1115_v50, %v941_v10  ;;  %v1253_v18 = vmul.f32 %v941_v10, %v941_v10  ;;  %v1447_v21 = vmax.f32 %v1446_v53, %v941_v10  ;;  %v1577_v22 = vmin.f32 %v1576_v54, %v941_v10 }
  0xe2   : > { %v1304_v23 = vadd.f32 %v1303_v57, %v1252_v14  ;;  %v1078_v24 = vadd.f32 %v1077_v58, %v857_v11  ;;  %v1258_v25 = vmul.f32 %v857_v11, %v857_v11  ;;  %v1409_v26 = vmax.f32 %v1408_v60, %v857_v11 }
  0xe3   : > { %v1317_v27 = vadd.f32 %v1316_v61, %v1253_v18  ;;  %v1539_v28 = vmin.f32 %v1538_v62, %v857_v11  ;;  %v886_v29 = vadd.f32 %v885_v12, %v2811_v49 }
  0xe4   : > { %v1279_v30 = vadd.f32 %v1278_v0, %v1258_v25 }
  0xe5   : > { %v1091_v31 = vadd.f32 %v1090_v1, %v886_v29  ;;  %v1259_v32 = vmul.f32 %v886_v29, %v886_v29  ;;  %v1422_v33 = vmax.f32 %v1421_v3, %v886_v29  ;;  %v1552_v34 = vmin.f32 %v1551_v4, %v886_v29  ;;  %v914_v35 = vpop.f32.mrf.mxu2 }
  0xe6   : > { %v915_v36 = vadd.f32 %v914_v35, %v2816_v55  ;;  %v943_v37 = vpop.f32.mrf.mxu3  ;;  %v858_v38 = vpop.f32.mrf.mxu0 }
  0xe7   : > { %v1292_v39 = vadd.f32 %v1291_v9, %v1259_v32  ;;  %v944_v40 = vadd.f32 %v943_v37, %v2819_v56  ;;  %v859_v41 = vadd.f32 %v858_v38, %v2808_v47  ;;  %v887_v42 = vpop.f32.mrf.mxu1 }
  0xe8   : > { %v2848_v43 = vadd.f32 %v1103_v13, %v915_v36  ;;  %v1260_v44 = vmul.f32 %v915_v36, %v915_v36  ;;  %v2850_v45 = vmax.f32 %v1434_v15, %v915_v36  ;;  %v2852_v46 = vmin.f32 %v1564_v16, %v915_v36 }
  0xe9   : > { %v2854_v20 = vadd.f32 %v1116_v17, %v944_v40  ;;  %v1261_v52 = vmul.f32 %v944_v40, %v944_v40  ;;  %v2856_v48 = vmax.f32 %v1447_v21, %v944_v40  ;;  %v2858_v50 = vmin.f32 %v1577_v22, %v944_v40 }
  0xea   : > { %v2860_v51 = vadd.f32 %v1304_v23, %v1260_v44  ;;  %v1079_v53 = vadd.f32 %v1078_v24, %v859_v41  ;;  %v1266_v54 = vmul.f32 %v859_v41, %v859_v41  ;;  %v1410_v47 = vmax.f32 %v1409_v26, %v859_v41 }
  0xeb   : > { %v2862_v57 = vadd.f32 %v1317_v27, %v1261_v52  ;;  %v1540_v58 = vmin.f32 %v1539_v28, %v859_v41  ;;  %v888_v59 = vadd.f32 %v887_v42, %v2811_v49 }
  0xec   : > { %v1080_v60 = vrot.slane %v1079_v53, 4  ;;  %v1280_v61 = vadd.f32 %v1279_v30, %v1266_v54  ;;  %v1411_v62 = vrot.slane %v1410_v47, 4 }
  0xed   : > { %v1541_v63 = vrot.slane %v1540_v58, 4  ;;  %v1092_v0 = vadd.f32 %v1091_v31, %v888_v59  ;;  %v1267_v1 = vmul.f32 %v888_v59, %v888_v59  ;;  %v1423_v2 = vmax.f32 %v1422_v33, %v888_v59  ;;  %v916_v3 = vpop.f32.mrf.mxu2 }
  0xee   : > { %v1081_v4 = vadd.f32 %v1080_v60, %v1079_v53  ;;  %v1281_v5 = vrot.slane %v1280_v61, 4  ;;  %v1412_v6 = vmax.f32 %v1410_v47, %v1411_v62  ;;  %v1553_v7 = vmin.f32 %v1552_v34, %v888_v59  ;;  %v945_v8 = vpop.f32.mrf.mxu3  ;;  %v2865_v9 = vpop.f32.mrf.mxu0 }
  0xef   : > { %v1542_v10 = vmin.f32 %v1540_v58, %v1541_v63  ;;  %v1093_v11 = vrot.slane %v1092_v0, 4  ;;  %v1293_v12 = vadd.f32 %v1292_v39, %v1267_v1  ;;  %v1424_v13 = vrot.slane %v1423_v2, 4  ;;  %v2867_v49 = vpop.f32.mrf.mxu1 }
  0xf0   : > { %v1082_v14 = vrot.slane %v1081_v4, 2  ;;  %v1282_v15 = vadd.f32 %v1281_v5, %v1280_v61  ;;  %v1413_v16 = vrot.slane %v1412_v6, 2  ;;  %v1554_v17 = vrot.slane %v1553_v7, 4 }
  0xf1   : > { %v1543_v18 = vrot.slane %v1542_v10, 2  ;;  %v1094_v21 = vadd.f32 %v1093_v11, %v1092_v0  ;;  %v1294_v22 = vrot.slane %v1293_v12, 4  ;;  %v1425_v23 = vmax.f32 %v1423_v2, %v1424_v13 }
  0xf2   : > { %v1083_v24 = vadd.f32 %v1082_v14, %v1081_v4  ;;  %v1283_v25 = vrot.slane %v1282_v15, 2  ;;  %v1414_v26 = vmax.f32 %v1412_v6, %v1413_v16  ;;  %v1555_v27 = vmin.f32 %v1553_v7, %v1554_v17 }
  0xf3   : > { %v1544_v28 = vmin.f32 %v1542_v10, %v1543_v18  ;;  %v1095_v29 = vrot.slane %v1094_v21, 2  ;;  %v1295_v30 = vadd.f32 %v1294_v22, %v1293_v12  ;;  %v1426_v31 = vrot.slane %v1425_v23, 2 }
  0xf4   : > { %v1084_v32 = vrot.slane %v1083_v24, 1  ;;  %v1284_v33 = vadd.f32 %v1283_v25, %v1282_v15  ;;  %v1415_v34 = vrot.slane %v1414_v26, 1  ;;  %v1556_v35 = vrot.slane %v1555_v27, 2 }
  0xf5   : > { %v1545_v36 = vrot.slane %v1544_v28, 1  ;;  %v1096_v37 = vadd.f32 %v1095_v29, %v1094_v21  ;;  %v1296_v38 = vrot.slane %v1295_v30, 2  ;;  %v1427_v39 = vmax.f32 %v1425_v23, %v1426_v31  ;;  %v2869_v40 = vpop.f32.mrf.mxu2 }
  0xf6   : > { %v1085_v41 = vadd.f32 %v1084_v32, %v1083_v24  ;;  %v1285_v42 = vrot.slane %v1284_v33, 1  ;;  %v1557_v44 = vmin.f32 %v1555_v27, %v1556_v35  ;;  %v2871_v52 = vpop.f32.mrf.mxu0  ;;  %v1416_v53 = vmax.f32 %v1414_v26, %v1415_v34  ;;  %v2876_v0 = vpop.f32.mrf.mxu3 }
  0xf7   : > { %v1097_v54 = vrot.slane %v1096_v37, 1  ;;  %v1297_v47 = vadd.f32 %v1296_v38, %v1295_v30  ;;  %v1428_v58 = vrot.slane %v1427_v39, 1  ;;  %v2873_v59 = vpop.f32.mrf.mxu1  ;;  %v1546_v61 = vmin.f32 %v1544_v28, %v1545_v36 }
  0xf8   : > { %v1286_v60 = vadd.f32 %v1285_v42, %v1284_v33  ;;  %v1558_v62 = vrot.slane %v1557_v44, 1  ;;  %v917_v63 = vadd.f32 %v916_v3, %v2816_v55  ;;  %v946_v5 = vadd.f32 %v945_v8, %v2819_v56 }
  0xf9   : > { %v1098_v1 = vadd.f32 %v1097_v54, %v1096_v37  ;;  %v1298_v2 = vrot.slane %v1297_v47, 1  ;;  %v1429_v4 = vmax.f32 %v1427_v39, %v1428_v58 }
  0xfa   : > { %v1559_v6 = vmin.f32 %v1557_v44, %v1558_v62  ;;  %v1105_v7 = vadd.f32 %v2848_v43, %v917_v63  ;;  %v1268_v10 = vmul.f32 %v917_v63, %v917_v63  ;;  %v1436_v11 = vmax.f32 %v2850_v45, %v917_v63 }
  0xfb   : > { %v1185_v12 = vrot.slane %v1098_v1, 7  ;;  %v1299_v13 = vadd.f32 %v1298_v2, %v1297_v47  ;;  %v1516_v14 = vrot.slane %v1429_v4, 7  ;;  %v1566_v15 = vmin.f32 %v2852_v46, %v917_v63 }
  0xfc   : > { %v1646_v16 = vrot.slane %v1559_v6, 7  ;;  %v1106_v55 = vrot.slane %v1105_v7, 4  ;;  %v1306_v3 = vadd.f32 %v2860_v51, %v1268_v10  ;;  %v1437_v17 = vrot.slane %v1436_v11, 4 }
  0xfd   : > { %v2884_v18 = vsel %vm1192_vm0, %v1085_v41, %v1185_v12  ;;  %v1386_v56 = vrot.slane %v1299_v13, 7  ;;  %v2887_v8 = vsel %vm1192_vm0, %v1416_v53, %v1516_v14  ;;  %v1567_v43 = vrot.slane %v1566_v15, 4  ;;  %v2889_v21 = vpop.f32.mrf.mxu2 }
  0xfe   : > { %v2892_v45 = vsel %vm1192_vm0, %v1546_v61, %v1646_v16  ;;  %v1107_v22 = vadd.f32 %v1106_v55, %v1105_v7  ;;  %v1307_v46 = vrot.slane %v1306_v3, 4  ;;  %v1438_v23 = vmax.f32 %v1436_v11, %v1437_v17  ;;  %v2898_v26 = vpop.f32.mrf.mxu0 }
  0xff   : > { %v2895_v24 = vsel %vm1192_vm0, %v1286_v60, %v1386_v56  ;;  %v1568_v51 = vmin.f32 %v1566_v15, %v1567_v43  ;;  %v1118_v25 = vadd.f32 %v2854_v20, %v946_v5  ;;  %v2900_v27 = vpop.f32.mrf.mxu1  ;;  %v1269_v31 = vmul.f32 %v946_v5, %v946_v5  ;;  %v2905_v20 = vpop.f32.mrf.mxu3 }
 0x100   : > { %v1108_v28 = vrot.slane %v1107_v22, 2  ;;  %v1308_v29 = vadd.f32 %v1307_v46, %v1306_v3  ;;  %v1439_v30 = vrot.slane %v1438_v23, 2  ;;  %v1449_v34 = vmax.f32 %v2856_v48, %v946_v5 }
 0x101   : > { %v1569_v32 = vrot.slane %v1568_v51, 2  ;;  %v1119_v33 = vrot.slane %v1118_v25, 4  ;;  %v1579_v35 = vmin.f32 %v2858_v50, %v946_v5  ;;  %v1319_v39 = vadd.f32 %v2862_v57, %v1269_v31 }
 0x102   : > { %v1109_v36 = vadd.f32 %v1108_v28, %v1107_v22  ;;  %v1309_v37 = vrot.slane %v1308_v29, 2  ;;  %v1440_v38 = vmax.f32 %v1438_v23, %v1439_v30  ;;  %v1450_v44 = vrot.slane %v1449_v34, 4 }
 0x103   : > { %v1570_v41 = vmin.f32 %v1568_v51, %v1569_v32  ;;  %v1120_v42 = vadd.f32 %v1119_v33, %v1118_v25  ;;  %v1580_v53 = vrot.slane %v1579_v35, 4  ;;  %v1320_v60 = vrot.slane %v1319_v39, 4 }
 0x104   : > { %v1110_v54 = vrot.slane %v1109_v36, 1  ;;  %v1310_v47 = vadd.f32 %v1309_v37, %v1308_v29  ;;  %v1441_v58 = vrot.slane %v1440_v38, 1  ;;  %v1451_v48 = vmax.f32 %v1449_v34, %v1450_v44 }
 0x105   : > { %v1571_v61 = vrot.slane %v1570_v41, 1  ;;  %v1121_v62 = vrot.slane %v1120_v42, 2  ;;  %v1581_v63 = vmin.f32 %v1579_v35, %v1580_v53  ;;  %v1321_v1 = vadd.f32 %v1320_v60, %v1319_v39  ;;  %v2907_v6 = vpop.f32.mrf.mxu2 }
 0x106   : > { %v1311_v50 = vrot.slane %v1310_v47, 1  ;;  %v1111_v2 = vadd.f32 %v1110_v54, %v1109_v36  ;;  %v1452_v5 = vrot.slane %v1451_v48, 2  ;;  %v1442_v7 = vmax.f32 %v1440_v38, %v1441_v58  ;;  %v2915_v55 = vpop.f32.mrf.mxu0 }
 0x107   : > { %v1122_v4 = vadd.f32 %v1121_v62, %v1120_v42  ;;  %v1582_v57 = vrot.slane %v1581_v63, 2  ;;  %v1572_v10 = vmin.f32 %v1570_v41, %v1571_v61  ;;  %v1322_v11 = vrot.slane %v1321_v1, 2  ;;  %v2917_v3 = vpop.f32.mrf.mxu1  ;;  %v1049_v30 = vpop.f32.mrf.mxu3 }
 0x108   : > { %v2910_v12 = vperm.slane %v2805_v19, 4  ;;  %v1453_v14 = vmax.f32 %v1451_v48, %v1452_v5  ;;  %v2913_v16 = vperm.slane %v2805_v19, 5  ;;  %v1312_v17 = vadd.f32 %v1311_v50, %v1310_v47 }
 0x109   : > { %v1123_v13 = vrot.slane %v1122_v4, 1  ;;  %v1583_v15 = vmin.f32 %v1581_v63, %v1582_v57  ;;  %v1323_v56 = vadd.f32 %v1322_v11, %v1321_v1  ;;  %v2920_v43 = vperm.slane %v2805_v19, 6 }
 0x10a   : > { %v1186_v22 = vrot.slane %v1111_v2, 6  ;;  %v1454_v23 = vrot.slane %v1453_v14, 1  ;;  %v1517_v25 = vrot.slane %v1442_v7, 6  ;;  %v1647_v28 = vrot.slane %v1572_v10, 6 }
 0x10b   : > { %v1124_v46 = vadd.f32 %v1123_v13, %v1122_v4  ;;  %v1584_v51 = vrot.slane %v1583_v15, 1  ;;  %v1324_v29 = vrot.slane %v1323_v56, 1  ;;  %v2923_v34 = vperm.slane %v2805_v19, 7 }
 0x10c   : > { %v1455_v32 = vmax.f32 %v1453_v14, %v1454_v23  ;;  %v1387_v35 = vrot.slane %v1312_v17, 6  ;;  %v958_v37 = vadd.f32 %v2865_v9, %v2910_v12  ;;  %v960_v42 = vadd.f32 %v2871_v52, %v2910_v12 }
 0x10d   : > { %v1187_v31 = vrot.slane %v1124_v46, 5  ;;  %v1585_v33 = vmin.f32 %v1583_v15, %v1584_v51  ;;  %v1325_v36 = vadd.f32 %v1324_v29, %v1323_v56  ;;  %v987_v19 = vadd.f32 %v2867_v49, %v2913_v16 }
 0x10e   : > { %v1518_v39 = vrot.slane %v1455_v32, 5  ;;  %v2938_v54 = vadd.f32 %v2869_v40, %v2920_v43  ;;  %v2944_v58 = vadd.f32 %v2876_v0, %v2923_v34  ;;  %v989_v52 = vadd.f32 %v2873_v59, %v2913_v16  ;;  %v2963_v59 = vpop.f32.mrf.mxu0 }
 0x10f   : > { %v1195_v38 = vsel %vm1194_vm1, %v1186_v22, %v1187_v31  ;;  %v1648_v41 = vrot.slane %v1585_v33, 5  ;;  %v1388_v53 = vrot.slane %v1325_v36, 5  ;;  %v1018_v61 = vadd.f32 %v2889_v21, %v2920_v43  ;;  %v2965_v48 = vpop.f32.mrf.mxu1  ;;  %v1051_v57 = vpop.f32.mrf.mxu3 }
 0x110   : > { %v2932_v44 = vsel %vm1196_vm2, %v2884_v18, %v1195_v38  ;;  %v1524_v9 = vsel %vm1194_vm1, %v1517_v25, %v1518_v39  ;;  %v1022_v18 = vpop.f32.mrf.mxu2  ;;  %v1222_v62 = vmul.f32 %v960_v42, %v960_v42  ;;  %v1214_v63 = vmul.f32 %v958_v37, %v958_v37 }
 0x111   : > { %v1654_v47 = vsel %vm1194_vm1, %v1647_v28, %v1648_v41  ;;  %v1394_v60 = vsel %vm1194_vm1, %v1387_v35, %v1388_v53  ;;  %v2951_v49 = vsel %vm1196_vm2, %v2887_v8, %v1524_v9  ;;  %v1215_v50 = vmul.f32 %v987_v19, %v987_v19 }
 0x112   : > { %v2955_v40 = vsel %vm1196_vm2, %v2892_v45, %v1654_v47  ;;  %v2961_v0 = vsel %vm1196_vm2, %v2895_v24, %v1394_v60  ;;  %v1216_v8 = vmul.f32 %v2938_v54, %v2938_v54  ;;  %v1217_v45 = vmul.f32 %v2944_v58, %v2944_v58 }
 0x113   : > { %v1223_v1 = vmul.f32 %v989_v52, %v989_v52  ;;  %v1047_v21 = vadd.f32 %v2905_v20, %v2923_v34  ;;  %v1125_v2 = vadd.f32 %v960_v42, %v958_v37  ;;  %v1456_v24 = vmax.f32 %v958_v37, %v960_v42 }
 0x114   : > { %v1224_v4 = vmul.f32 %v1018_v61, %v1018_v61  ;;  %v963_v5 = vadd.f32 %v2898_v26, %v2910_v12  ;;  %v1326_v7 = vadd.f32 %v1222_v62, %v1214_v63  ;;  %v1586_v10 = vmin.f32 %v958_v37, %v960_v42 }
 0x115   : > { %v1138_v11 = vadd.f32 %v989_v52, %v987_v19  ;;  %v992_v13 = vadd.f32 %v2900_v27, %v2913_v16  ;;  %v1469_v14 = vmax.f32 %v987_v19, %v989_v52  ;;  %v1599_v15 = vmin.f32 %v987_v19, %v989_v52 }
 0x116   : > { %v1151_v17 = vadd.f32 %v1018_v61, %v2938_v54  ;;  %v1021_v20 = vadd.f32 %v2907_v6, %v2920_v43  ;;  %v1339_v56 = vadd.f32 %v1223_v1, %v1215_v50  ;;  %v1482_v22 = vmax.f32 %v2938_v54, %v1018_v61  ;;  %v969_v53 = vpop.f32.mrf.mxu0 }
 0x117   : > { %v1612_v46 = vmin.f32 %v2938_v54, %v1018_v61  ;;  %v1225_v26 = vmul.f32 %v1047_v21, %v1047_v21  ;;  %v1352_v23 = vadd.f32 %v1224_v4, %v1216_v8  ;;  %v1164_v51 = vadd.f32 %v1047_v21, %v2944_v58  ;;  %v998_v19 = vpop.f32.mrf.mxu1  ;;  %v1054_v8 = vpop.f32.mrf.mxu3 }
 0x118   : > { %v1495_v25 = vmax.f32 %v2944_v58, %v1047_v21  ;;  %v1230_v28 = vmul.f32 %v963_v5, %v963_v5  ;;  %v1625_v27 = vmin.f32 %v2944_v58, %v1047_v21  ;;  %v1126_v29 = vadd.f32 %v1125_v2, %v963_v5  ;;  %v1025_v33 = vpop.f32.mrf.mxu2 }
 0x119   : > { %v1231_v31 = vmul.f32 %v992_v13, %v992_v13  ;;  %v1050_v32 = vadd.f32 %v1049_v30, %v2923_v34  ;;  %v1457_v6 = vmax.f32 %v1456_v24, %v963_v5  ;;  %v1587_v35 = vmin.f32 %v1586_v10, %v963_v5 }
 0x11a   : > { %v1232_v36 = vmul.f32 %v1021_v20, %v1021_v20  ;;  %v965_v37 = vadd.f32 %v2915_v55, %v2910_v12  ;;  %v1365_v38 = vadd.f32 %v1225_v26, %v1217_v45  ;;  %v1139_v39 = vadd.f32 %v1138_v11, %v992_v13 }
 0x11b   : > { %v1470_v41 = vmax.f32 %v1469_v14, %v992_v13  ;;  %v994_v42 = vadd.f32 %v2917_v3, %v2913_v16  ;;  %v1327_v54 = vadd.f32 %v1326_v7, %v1230_v28  ;;  %v1600_v9 = vmin.f32 %v1599_v15, %v992_v13 }
 0x11c   : > { %v1152_v47 = vadd.f32 %v1151_v17, %v1021_v20  ;;  %v1023_v30 = vadd.f32 %v1022_v18, %v2920_v43  ;;  %v1340_v58 = vadd.f32 %v1339_v56, %v1231_v31  ;;  %v1483_v52 = vmax.f32 %v1482_v22, %v1021_v20 }
 0x11d   : > { %v1613_v60 = vmin.f32 %v1612_v46, %v1021_v20  ;;  %v1233_v61 = vmul.f32 %v1050_v32, %v1050_v32  ;;  %v1353_v62 = vadd.f32 %v1352_v23, %v1232_v36  ;;  %v1165_v63 = vadd.f32 %v1164_v51, %v1050_v32 }
 0x11e   : > { %v1496_v55 = vmax.f32 %v1495_v25, %v1050_v32  ;;  %v1238_v50 = vmul.f32 %v965_v37, %v965_v37  ;;  %v1626_v45 = vmin.f32 %v1625_v27, %v1050_v32  ;;  %v1127_v1 = vadd.f32 %v1126_v29, %v965_v37 }
 0x11f   : > { %v1239_v21 = vmul.f32 %v994_v42, %v994_v42  ;;  %v1052_v3 = vadd.f32 %v1051_v57, %v2923_v34  ;;  %v1458_v2 = vmax.f32 %v1457_v6, %v965_v37  ;;  %v1588_v24 = vmin.f32 %v1587_v35, %v965_v37  ;;  %v1001_v31 = vpop.f32.mrf.mxu1 }
 0x120   : > { %v1240_v4 = vmul.f32 %v1023_v30, %v1023_v30  ;;  %v968_v18 = vadd.f32 %v2963_v59, %v2910_v12  ;;  %v1366_v5 = vadd.f32 %v1365_v38, %v1233_v61  ;;  %v1140_v7 = vadd.f32 %v1139_v39, %v994_v42  ;;  %v1027_v46 = vpop.f32.mrf.mxu2 }
 0x121   : > { %v1471_v10 = vmax.f32 %v1470_v41, %v994_v42  ;;  %v997_v11 = vadd.f32 %v2965_v48, %v2913_v16  ;;  %v1328_v13 = vadd.f32 %v1327_v54, %v1238_v50  ;;  %v1601_v14 = vmin.f32 %v1600_v9, %v994_v42  ;;  %v972_v48 = vpop.f32.mrf.mxu0 }
 0x122   : > { %v1153_v15 = vadd.f32 %v1152_v47, %v1023_v30  ;;  %v1026_v17 = vadd.f32 %v1025_v33, %v2920_v43  ;;  %v1341_v20 = vadd.f32 %v1340_v58, %v1239_v21  ;;  %v1484_v56 = vmax.f32 %v1483_v52, %v1023_v30  ;;  %v1056_v47 = vpop.f32.mrf.mxu3 }
 0x123   : > { %v1614_v57 = vmin.f32 %v1613_v60, %v1023_v30  ;;  %v1241_v22 = vmul.f32 %v1052_v3, %v1052_v3  ;;  %v1354_v26 = vadd.f32 %v1353_v62, %v1240_v4  ;;  %v1166_v23 = vadd.f32 %v1165_v63, %v1052_v3 }
 0x124   : > { %v1497_v51 = vmax.f32 %v1496_v55, %v1052_v3  ;;  %v1246_v59 = vmul.f32 %v968_v18, %v968_v18  ;;  %v1627_v25 = vmin.f32 %v1626_v45, %v1052_v3  ;;  %v1128_v28 = vadd.f32 %v1127_v1, %v968_v18 }
 0x125   : > { %v1247_v27 = vmul.f32 %v997_v11, %v997_v11  ;;  %v1055_v29 = vadd.f32 %v1054_v8, %v2923_v34  ;;  %v1459_v32 = vmax.f32 %v1458_v2, %v968_v18  ;;  %v1248_v6 = vmul.f32 %v1026_v17, %v1026_v17 }
 0x126   : > { %v970_v33 = vadd.f32 %v969_v53, %v2910_v12  ;;  %v999_v35 = vadd.f32 %v998_v19, %v2913_v16  ;;  %v1367_v36 = vadd.f32 %v1366_v5, %v1241_v22  ;;  %v1589_v37 = vmin.f32 %v1588_v24, %v968_v18 }
 0x127   : > { %v1141_v38 = vadd.f32 %v1140_v7, %v997_v11  ;;  %v1472_v39 = vmax.f32 %v1471_v10, %v997_v11  ;;  %v1329_v41 = vadd.f32 %v1328_v13, %v1246_v59  ;;  %v1602_v42 = vmin.f32 %v1601_v14, %v997_v11 }
 0x128   : > { %v1154_v54 = vadd.f32 %v1153_v15, %v1026_v17  ;;  %v3001_v9 = vadd.f32 %v1027_v46, %v2920_v43  ;;  %v1342_v30 = vadd.f32 %v1341_v20, %v1247_v27  ;;  %v3003_v58 = vmax.f32 %v1484_v56, %v1026_v17  ;;  %v1030_v5 = vpop.f32.mrf.mxu2 }
 0x129   : > { %v3005_v52 = vmin.f32 %v1614_v57, %v1026_v17  ;;  %v1249_v60 = vmul.f32 %v1055_v29, %v1055_v29  ;;  %v1355_v53 = vadd.f32 %v1354_v26, %v1248_v6  ;;  %v1167_v61 = vadd.f32 %v1166_v23, %v1055_v29  ;;  %v974_v56 = vpop.f32.mrf.mxu0  ;;  %v1003_v57 = vpop.f32.mrf.mxu1 }
 0x12a   : > { %v1254_v19 = vmul.f32 %v970_v33, %v970_v33  ;;  %v1255_v62 = vmul.f32 %v999_v35, %v999_v35  ;;  %v3007_v63 = vmax.f32 %v1497_v51, %v1055_v29  ;;  %v3009_v55 = vmin.f32 %v1627_v25, %v1055_v29 }
 0x12b   : > { %v1129_v50 = vadd.f32 %v1128_v28, %v970_v33  ;;  %v1460_v8 = vmax.f32 %v1459_v32, %v970_v33  ;;  %v1256_v45 = vmul.f32 %v3001_v9, %v3001_v9  ;;  %v3014_v1 = vadd.f32 %v1056_v47, %v2923_v34 }
 0x12c   : > { %v973_v21 = vadd.f32 %v972_v48, %v2910_v12  ;;  %v1002_v3 = vadd.f32 %v1001_v31, %v2913_v16  ;;  %v3018_v2 = vadd.f32 %v1367_v36, %v1249_v60  ;;  %v1590_v24 = vmin.f32 %v1589_v37, %v970_v33  ;;  %v1059_v48 = vpop.f32.mrf.mxu3 }
 0x12d   : > { %v1142_v4 = vadd.f32 %v1141_v38, %v999_v35  ;;  %v1473_v18 = vmax.f32 %v1472_v39, %v999_v35  ;;  %v1330_v7 = vadd.f32 %v1329_v41, %v1254_v19  ;;  %v1343_v10 = vadd.f32 %v1342_v30, %v1255_v62 }
 0x12e   : > { %v1603_v11 = vmin.f32 %v1602_v42, %v999_v35  ;;  %v3021_v13 = vadd.f32 %v1154_v54, %v3001_v9  ;;  %v1486_v14 = vmax.f32 %v3003_v58, %v3001_v9  ;;  %v1616_v15 = vmin.f32 %v3005_v52, %v3001_v9 }
 0x12f   : > { %v1262_v17 = vmul.f32 %v973_v21, %v973_v21  ;;  %v1263_v20 = vmul.f32 %v1002_v3, %v1002_v3  ;;  %v3027_v22 = vadd.f32 %v1355_v53, %v1256_v45  ;;  %v3030_v46 = vadd.f32 %v1167_v61, %v3014_v1 }
 0x130   : > { %v3034_v26 = vmul.f32 %v3014_v1, %v3014_v1  ;;  %v3037_v23 = vadd.f32 %v1030_v5, %v2920_v43  ;;  %v1499_v51 = vmax.f32 %v3007_v63, %v3014_v1  ;;  %v1629_v59 = vmin.f32 %v3009_v55, %v3014_v1 }
 0x131   : > { %v1130_v25 = vadd.f32 %v1129_v50, %v973_v21  ;;  %v1461_v28 = vmax.f32 %v1460_v8, %v973_v21  ;;  %v1591_v27 = vmin.f32 %v1590_v24, %v973_v21  ;;  %v1143_v29 = vadd.f32 %v1142_v4, %v1002_v3 }
 0x132   : > { %v975_v31 = vadd.f32 %v974_v56, %v2910_v12  ;;  %v1004_v32 = vadd.f32 %v1003_v57, %v2913_v16  ;;  %v1331_v6 = vadd.f32 %v1330_v7, %v1262_v17  ;;  %v1344_v33 = vadd.f32 %v1343_v10, %v1263_v20 }
 0x133   : > { %v1474_v35 = vmax.f32 %v1473_v18, %v1002_v3  ;;  %v1604_v36 = vmin.f32 %v1603_v11, %v1002_v3  ;;  %v3046_v42 = vadd.f32 %v1059_v48, %v2923_v34 }
 0x134   : > { %v1131_v37 = vadd.f32 %v1130_v25, %v975_v31  ;;  %v1270_v38 = vmul.f32 %v975_v31, %v975_v31  ;;  %v1462_v39 = vmax.f32 %v1461_v28, %v975_v31  ;;  %v1592_v41 = vmin.f32 %v1591_v27, %v975_v31 }
 0x135   : > { %v1144_v54 = vadd.f32 %v1143_v29, %v1004_v32  ;;  %v1271_v47 = vmul.f32 %v1004_v32, %v1004_v32  ;;  %v1475_v30 = vmax.f32 %v1474_v35, %v1004_v32  ;;  %v1605_v50 = vmin.f32 %v1604_v36, %v1004_v32 }
 0x136   : > { %v1132_v60 = vrot.slane %v1131_v37, 4  ;;  %v1332_v53 = vadd.f32 %v1331_v6, %v1270_v38  ;;  %v1463_v61 = vrot.slane %v1462_v39, 4  ;;  %v1593_v12 = vrot.slane %v1592_v41, 4 }
 0x137   : > { %v1145_v19 = vrot.slane %v1144_v54, 4  ;;  %v1345_v16 = vadd.f32 %v1344_v33, %v1271_v47  ;;  %v1476_v62 = vrot.slane %v1475_v30, 4  ;;  %v1606_v5 = vrot.slane %v1605_v50, 4 }
 0x138   : > { %v1133_v8 = vadd.f32 %v1132_v60, %v1131_v37  ;;  %v1333_v45 = vrot.slane %v1332_v53, 4  ;;  %v1464_v21 = vmax.f32 %v1462_v39, %v1463_v61  ;;  %v1594_v3 = vmin.f32 %v1592_v41, %v1593_v12 }
 0x139   : > { %v1146_v24 = vadd.f32 %v1145_v19, %v1144_v54  ;;  %v1346_v4 = vrot.slane %v1345_v16, 4  ;;  %v1477_v18 = vmax.f32 %v1475_v30, %v1476_v62  ;;  %v1607_v25 = vmin.f32 %v1605_v50, %v1606_v5  ;;  %v1032_v50 = vpop.f32.mrf.mxu2 }
 0x13a   : > { %v1134_v7 = vrot.slane %v1133_v8, 2  ;;  %v1334_v10 = vadd.f32 %v1333_v45, %v1332_v53  ;;  %v1465_v11 = vrot.slane %v1464_v21, 2  ;;  %v1595_v17 = vrot.slane %v1594_v3, 2 }
 0x13b   : > { %v1147_v20 = vrot.slane %v1146_v24, 2  ;;  %v1347_v56 = vadd.f32 %v1346_v4, %v1345_v16  ;;  %v1478_v57 = vrot.slane %v1477_v18, 2  ;;  %v1608_v33 = vrot.slane %v1607_v25, 2 }
 0x13c   : > { %v1135_v28 = vadd.f32 %v1134_v7, %v1133_v8  ;;  %v1335_v27 = vrot.slane %v1334_v10, 2  ;;  %v1466_v29 = vmax.f32 %v1464_v21, %v1465_v11  ;;  %v1596_v48 = vmin.f32 %v1594_v3, %v1595_v17 }
 0x13d   : > { %v1148_v31 = vadd.f32 %v1147_v20, %v1146_v24  ;;  %v1348_v32 = vrot.slane %v1347_v56, 2  ;;  %v1479_v6 = vmax.f32 %v1477_v18, %v1478_v57  ;;  %v1264_v35 = vmul.f32 %v3037_v23, %v3037_v23 }
 0x13e   : > { %v1136_v36 = vrot.slane %v1135_v28, 1  ;;  %v1336_v37 = vadd.f32 %v1335_v27, %v1334_v10  ;;  %v1467_v38 = vrot.slane %v1466_v29, 1  ;;  %v1597_v39 = vrot.slane %v1596_v48, 1 }
 0x13f   : > { %v1149_v41 = vrot.slane %v1148_v31, 1  ;;  %v1349_v54 = vadd.f32 %v1348_v32, %v1347_v56  ;;  %v1480_v47 = vrot.slane %v1479_v6, 1  ;;  %v1369_v30 = vadd.f32 %v3018_v2, %v3034_v26 }
 0x140   : > { %v1156_v60 = vadd.f32 %v3021_v13, %v3037_v23  ;;  %v1265_v53 = vmul.f32 %v3046_v42, %v3046_v42  ;;  %v1609_v61 = vmin.f32 %v1607_v25, %v1608_v33  ;;  %v1487_v12 = vmax.f32 %v1486_v14, %v3037_v23  ;;  %v1061_v14 = vpop.f32.mrf.mxu3 }
 0x141   : > { %v3060_v19 = vadd.f32 %v1136_v36, %v1135_v28  ;;  %v1337_v16 = vrot.slane %v1336_v37, 1  ;;  %v3062_v62 = vmax.f32 %v1466_v29, %v1467_v38  ;;  %v1357_v2 = vadd.f32 %v3027_v22, %v1264_v35 }
 0x142   : > { %v1617_v13 = vmin.f32 %v1616_v15, %v3037_v23  ;;  %v1169_v26 = vadd.f32 %v3030_v46, %v3046_v42  ;;  %v1500_v58 = vmax.f32 %v1499_v51, %v3046_v42  ;;  %v3075_v8 = vmin.f32 %v1596_v48, %v1597_v39 }
 0x143   : > { %v3077_v45 = vadd.f32 %v1149_v41, %v1148_v31  ;;  %v1350_v21 = vrot.slane %v1349_v54, 1  ;;  %v3079_v22 = vmax.f32 %v1479_v6, %v1480_v47  ;;  %v1370_v3 = vadd.f32 %v1369_v30, %v1265_v53 }
 0x144   : > { %v1630_v9 = vmin.f32 %v1629_v59, %v3046_v42  ;;  %v1610_v52 = vrot.slane %v1609_v61, 1  ;;  %v1033_v15 = vadd.f32 %v1032_v50, %v2920_v43  ;;  %v1188_v63 = vrot.slane %v3060_v19, 4 }
 0x145   : > { %v3087_v46 = vadd.f32 %v1337_v16, %v1336_v37  ;;  %v1519_v23 = vrot.slane %v3062_v62, 4  ;;  %v1062_v51 = vadd.f32 %v1061_v14, %v2923_v34  ;;  %v1649_v7 = vrot.slane %v3075_v8, 4 }
 0x146   : > { %v1157_v24 = vadd.f32 %v1156_v60, %v1033_v15  ;;  %v1272_v4 = vmul.f32 %v1033_v15, %v1033_v15  ;;  %v1488_v18 = vmax.f32 %v1487_v12, %v1033_v15  ;;  %v1618_v5 = vmin.f32 %v1617_v13, %v1033_v15 }
 0x147   : > { %v1189_v55 = vrot.slane %v3077_v45, 3  ;;  %v3093_v1 = vadd.f32 %v1350_v21, %v1349_v54  ;;  %v1520_v43 = vrot.slane %v3079_v22, 3  ;;  %v1389_v17 = vrot.slane %v3087_v46, 4 }
 0x148   : > { %v1158_v59 = vrot.slane %v1157_v24, 4  ;;  %v1358_v42 = vadd.f32 %v1357_v2, %v1272_v4  ;;  %v1489_v10 = vrot.slane %v1488_v18, 4  ;;  %v1619_v11 = vrot.slane %v1618_v5, 4 }
 0x149   : > { %v3097_v34 = vmin.f32 %v1609_v61, %v1610_v52  ;;  %v1170_v20 = vadd.f32 %v1169_v26, %v1062_v51  ;;  %v1273_v29 = vmul.f32 %v1062_v51, %v1062_v51  ;;  %v1501_v48 = vmax.f32 %v1500_v58, %v1062_v51 }
 0x14a   : > { %v1159_v56 = vadd.f32 %v1158_v59, %v1157_v24  ;;  %v1359_v57 = vrot.slane %v1358_v42, 4  ;;  %v1490_v25 = vmax.f32 %v1488_v18, %v1489_v10  ;;  %v1620_v28 = vmin.f32 %v1618_v5, %v1619_v11 }
 0x14b   : > { %v1171_v27 = vrot.slane %v1170_v20, 4  ;;  %v1631_v31 = vmin.f32 %v1630_v9, %v1062_v51  ;;  %v1371_v37 = vadd.f32 %v1370_v3, %v1273_v29  ;;  %v1502_v38 = vrot.slane %v1501_v48, 4 }
 0x14c   : > { %v1160_v32 = vrot.slane %v1159_v56, 2  ;;  %v1360_v6 = vadd.f32 %v1359_v57, %v1358_v42  ;;  %v1491_v33 = vrot.slane %v1490_v25, 2  ;;  %v1621_v35 = vrot.slane %v1620_v28, 2 }
 0x14d   : > { %v1172_v36 = vadd.f32 %v1171_v27, %v1170_v20  ;;  %v1632_v39 = vrot.slane %v1631_v31, 4  ;;  %v1372_v53 = vrot.slane %v1371_v37, 4  ;;  %v1503_v61 = vmax.f32 %v1501_v48, %v1502_v38 }
 0x14e   : > { %v1161_v41 = vadd.f32 %v1160_v32, %v1159_v56  ;;  %v1361_v54 = vrot.slane %v1360_v6, 2  ;;  %v1492_v47 = vmax.f32 %v1490_v25, %v1491_v33  ;;  %v1622_v30 = vmin.f32 %v1620_v28, %v1621_v35 }
 0x14f   : > { %v1173_v60 = vrot.slane %v1172_v36, 2  ;;  %v1633_v12 = vmin.f32 %v1631_v31, %v1632_v39  ;;  %v1373_v26 = vadd.f32 %v1372_v53, %v1371_v37  ;;  %v1504_v58 = vrot.slane %v1503_v61, 2 }
 0x150   : > { %v1162_v19 = vrot.slane %v1161_v41, 1  ;;  %v1362_v16 = vadd.f32 %v1361_v54, %v1360_v6  ;;  %v1493_v50 = vrot.slane %v1492_v47, 1  ;;  %v1623_v2 = vrot.slane %v1622_v30, 1 }
 0x151   : > { %v1174_v13 = vadd.f32 %v1173_v60, %v1172_v36  ;;  %v1634_v14 = vrot.slane %v1633_v12, 2  ;;  %v1374_v15 = vrot.slane %v1373_v26, 2  ;;  %v1505_v51 = vmax.f32 %v1503_v61, %v1504_v58 }
 0x152   : > { %v1163_v45 = vadd.f32 %v1162_v19, %v1161_v41  ;;  %v1363_v21 = vrot.slane %v1362_v16, 1  ;;  %v1494_v3 = vmax.f32 %v1492_v47, %v1493_v50  ;;  %v1624_v9 = vmin.f32 %v1622_v30, %v1623_v2 }
 0x153   : > { %v1175_v52 = vrot.slane %v1174_v13, 1  ;;  %v1635_v24 = vmin.f32 %v1633_v12, %v1634_v14  ;;  %v1199_v4 = vsel %vm1198_vm3, %v1188_v63, %v1189_v55  ;;  %v1650_v18 = vrot.slane %v3097_v34, 3 }
 0x154   : > { %v1190_v5 = vrot.slane %v1163_v45, 2  ;;  %v1364_v59 = vadd.f32 %v1363_v21, %v1362_v16  ;;  %v1375_v10 = vadd.f32 %v1374_v15, %v1373_v26  ;;  %v1506_v11 = vrot.slane %v1505_v51, 1 }
 0x155   : > { %v1176_v42 = vadd.f32 %v1175_v52, %v1174_v13  ;;  %v1636_v20 = vrot.slane %v1635_v24, 1  ;;  %v1521_v56 = vrot.slane %v1494_v3, 2  ;;  %v1651_v57 = vrot.slane %v1624_v9, 2 }
 0x156   : > { %v1376_v28 = vrot.slane %v1375_v10, 1  ;;  %v1507_v27 = vmax.f32 %v1505_v51, %v1506_v11  ;;  %v1390_v48 = vrot.slane %v3093_v1, 3  ;;  %v1391_v63 = vrot.slane %v1364_v59, 2 }
 0x157   : > { %v1191_v25 = vrot.slane %v1176_v42, 1  ;;  %v1637_v29 = vmin.f32 %v1635_v24, %v1636_v20  ;;  %v1526_v6 = vsel %vm1198_vm3, %v1519_v23, %v1520_v43  ;;  %v1656_v33 = vsel %vm1198_vm3, %v1649_v7, %v1650_v18 }
 0x158   : > { %v1377_v34 = vadd.f32 %v1376_v28, %v1375_v10  ;;  %v1522_v31 = vrot.slane %v1507_v27, 1  ;;  %v1396_v7 = vsel %vm1198_vm3, %v1389_v17, %v1390_v48 }
 0x159   : > { %v1201_v55 = vsel %vm1200_vm4, %v1190_v5, %v1191_v25  ;;  %v1652_v32 = vrot.slane %v1637_v29, 1 }
 0x15a   : > { %v1203_v1 = vsel %vm1202_vm5, %v1199_v4, %v1201_v55  ;;  %v1392_v36 = vrot.slane %v1377_v34, 1  ;;  %v1527_v22 = vsel %vm1200_vm4, %v1521_v56, %v1522_v31 }
 0x15b   : > { %v1205_v35 = vsel %vm1204_vm6, %v2932_v44, %v1203_v1  ;;  %v1657_v62 = vsel %vm1200_vm4, %v1651_v57, %v1652_v32  ;;  %v1528_v23 = vsel %vm1202_vm5, %v1526_v6, %v1527_v22 }
 0x15c   : > { %v1658_v8 = vsel %vm1202_vm5, %v1656_v33, %v1657_v62  ;;  %v1397_v43 = vsel %vm1200_vm4, %v1391_v63, %v1392_v36  ;;  %v1529_v44 = vsel %vm1204_vm6, %v2951_v49, %v1528_v23  ;;  %1208 = vst [vmem:[%s373_s19] sm:$0xff] %v1205_v35 }
 0x15d   : > { %v1659_v37 = vsel %vm1204_vm6, %v2955_v40, %v1658_v8  ;;  %v1398_v46 = vsel %vm1202_vm5, %v1396_v7, %v1397_v43  ;;  %1532 = vst [vmem:[%s365_s22] sm:$0xff] %v1529_v44 }
 0x15e   : > { %v1399_v17 = vsel %vm1204_vm6, %v2961_v0, %v1398_v46  ;;  %1662 = vst [vmem:[%s369_s26] sm:$0xff] %v1659_v37 }
 0x15f   : > { %1402 = vst [vmem:[%s377_s12] sm:$0xff] %v1399_v17 }
 0x160 PF: > { %s20_s29 = sadd.s32 1, %s2287_s29   ;;  %s3160_s27 = smov %s2283_s28 }
 0x161   : > { %p17_p8 = scmp.ge.s32.totalorder %s20_s29, 6   ;;  %s3161_s28 = smov %s3163_s9 }
 0x163   :  { %19 = sbr.rel (!%p17_p8) target bundleno = 2 (0x2), region = 115 }
 0x168   :  { %1724 = vsyncpa [#allocation3], 1 }
 0x169   :  { %1726 = vsyncpa [#allocation3 + $0x1], 1 }

// kernel: pointnet_encoder_forward.11
= control target key start
LH: loop header
LB: loop body
LE: loop exit
PB: predicated region body
PF: predicated region fallthrough
CT: control target
= control target key end

     0   :  { %s687_s15 = smov 0   ;;  %s689_s16 = smov 0   ;;  %s811_s0 = inlined_call_operand.vmem [shape: f32[4,64,3], index: 0, kind: input, shape index: {}]   ;;  %s812_s1 = inlined_call_operand.vmem [shape: f32[4,3,64], index: 1, kind: input, shape index: {}]   ;;  %s813_s2 = inlined_call_operand.vmem [shape: f32[1,64], index: 2, kind: input, shape index: {}]   ;;  %s814_s3 = inlined_call_operand.vmem [shape: f32[4,1,64], index: 3, kind: output, shape index: {0}]   ;;  %s815_s4 = inlined_call_operand.vmem [shape: f32[4,1,64], index: 4, kind: output, shape index: {1}]  }
   0x1   :  { %s691_s17 = smov 0  }
   0x2 LB: > { %s27_s18 = sadd.s32 1, %s652_s16  ;;  %p583_p0 = scmp.ge.s32.totalorder %s656_s17, 1  ;;  %s656_s17 = sphi %s691_s17, %s15_s17   ;;  %s652_s16 = sphi %s689_s16, %s817_s16   ;;  %s648_s15 = sphi %s687_s15, %s816_s15  }
   0x3   : > { %p29_p1 = scmp.ge.s32.totalorder %s27_s18, 4  ;;  %p193_p2 = scmp.lt.s32.totalorder %s656_s17, 5 }
   0x5   : > { %s819_s18 = smov (%p29_p1, %s27_s18), 0  ;;  %p194_p3 = pnand %p583_p0, %p193_p2 }
   0x6   : > { %p229_p4 = scmp.lt.s32.totalorder (!%p194_p3), %s648_s15, 3 }
   0x7   : > { %197 = sbr.rel (%p194_p3) target bundleno = 228 (0xe4), region = 32 }
   0xc   : > { %v658_v0 = vmov 0   ;;  %s821_s15 = smov (!%p229_p4, %s648_s15), 3  ;;  %v659_v9 = vmov 1   ;;  %v660_v10 = vmov 2   ;;  %vm420_vm0 = vcmask 516096  }
   0xd   : > { %620 = vset.pattern.permute.xlu2 %v658_v0  ;;  %619 = vset.pattern.permute.xlu1 %v658_v0  ;;  %s589_s19 = sshll.u32 %s821_s15, 6  ;;  %s586_s23 = sshll.u32 %s821_s15, 2  ;;  %v661_v27 = vmov 0.0   ;;  %v752_v47 = vld [vmem:[%s813_s2] ss:$0 sm:$0xff]  ;;  %vm424_vm1 = vcmask 523264  }
   0xe   : > { %618 = vset.pattern.permute.xlu0 %v658_v0  ;;  %s236_s22 = scalar_lea.vmem %s811_s0, %s589_s19  ;;  %s241_s26 = scalar_lea.vmem %s812_s1, %s586_s23 }
   0xf   : > { %v252_v1 = vld [vmem:[%s236_s22 + $0x20] sm:$0xff]  ;;  %v250_v2 = vld [vmem:[%s236_s22 + $0x10] sm:$0xff]  ;;  %v253_v4 = vld [vmem:[%s236_s22 + $0x28] sm:$0xff]  ;;  %s723_s29 = scalar_lea.vmem %s814_s3, %s821_s15  ;;  %s729_s6 = scalar_lea.vmem %s815_s4, %s821_s15 }
  0x10   : > { %280 = vperm.xlu2 %620, %v252_v1   ;;  %270 = vperm.xlu1 %619, %v250_v2   ;;  %v248_v3 = vld [vmem:[%s236_s22] sm:$0xff]  ;;  %v251_v5 = vld [vmem:[%s236_s22 + $0x18] sm:$0xff]  ;;  %v249_v6 = vld [vmem:[%s236_s22 + $0x8] sm:$0xff]  ;;  %421 = vst.msk [vmem:[%s723_s29] sm:$0x1] %vm420_vm0, %v661_v27 }
  0x11   : > { %260 = vperm.xlu0 %618, %v248_v3   ;;  %v255_v7 = vld [vmem:[%s236_s22 + $0x38] sm:$0xff]  ;;  %v254_v8 = vld [vmem:[%s236_s22 + $0x30] sm:$0xff]  ;;  %v256_v25 = vld [vmem:[%s241_s26] sm:$0x7]  ;;  %422 = vst.msk [vmem:[%s729_s6] sm:$0x1] %vm420_vm0, %v661_v27 }
  0x12   : > { %v733_v28 = vperm.slane %v256_v25, 1  ;;  %v737_v30 = vperm.slane %v256_v25, 0  ;;  %v742_v34 = vperm.slane %v256_v25, 2 }
  0x18   : > { %285 = vperm.xlu2 %620, %v253_v4   ;;  %275 = vperm.xlu1 %619, %v251_v5  }
  0x19   : > { %265 = vperm.xlu0 %618, %v249_v6  }
  0x20   : > { %621 = vset.pattern.permute.xlu2 %v659_v9  ;;  %295 = vperm.xlu1 %619, %v255_v7  }
  0x21   : > { %290 = vperm.xlu0 %618, %v254_v8   ;;  %308 = vperm.xlu2 %621, %v248_v3  }
  0x28   : > { %623 = vset.pattern.permute.xlu1 %v659_v9 }
  0x29   : > { %622 = vset.pattern.permute.xlu0 %v659_v9  ;;  %316 = vperm.xlu1 %623, %v250_v2  }
  0x2a   : > { %320 = vperm.xlu2 %621, %v251_v5   ;;  %312 = vperm.xlu0 %622, %v249_v6  }
  0x31   : > { %624 = vset.pattern.permute.xlu1 %v660_v10 }
  0x32   : > { %625 = vset.pattern.permute.xlu2 %v660_v10  ;;  %626 = vset.pattern.permute.xlu0 %v660_v10 }
  0x33   : > { %357 = vperm.xlu1 %624, %v248_v3   ;;  %361 = vperm.xlu2 %625, %v249_v6  }
  0x34   : > { %365 = vperm.xlu0 %626, %v250_v2  }
  0x3b   : > { %627 = vset.pattern.permute.xlu1 %v659_v9  ;;  %369 = vperm.xlu2 %625, %v251_v5  }
  0x3c   : > { %628 = vset.pattern.permute.xlu0 %v659_v9  ;;  %324 = vperm.xlu1 %627, %v252_v1  }
  0x3d   : > { %332 = vperm.xlu0 %628, %v254_v8  }
  0x43   : > { %373 = vperm.xlu2 %625, %v252_v1  }
  0x44   : > { %328 = vperm.xlu1 %627, %v253_v4  }
  0x45   : > { %632 = vset.pattern.permute.xlu0 %v660_v10 }
  0x4b   : > { %630 = vset.pattern.permute.xlu2 %v659_v9 }
  0x4c   : > { %629 = vset.pattern.permute.xlu1 %v660_v10  ;;  %336 = vperm.xlu2 %630, %v255_v7  }
  0x4d   : > { %377 = vperm.xlu1 %629, %v253_v4  }
  0x54   : > { %631 = vset.pattern.permute.xlu2 %v660_v10 }
  0x55   : > { %381 = vperm.xlu1 %629, %v254_v8   ;;  %385 = vperm.xlu2 %631, %v255_v7  }
  0x6a   : > { %v281_v11 = vpop.permute.xlu2 %280 }
  0x6b   : > { %v303_v53 = vmul.f32 %v737_v30, %v281_v11 }
  0x72   : > { %v286_v12 = vpop.permute.xlu2 %285 }
  0x73   : > { %v304_v2 = vmul.f32 %v737_v30, %v286_v12 }
  0x7b   : > { %v309_v14 = vpop.permute.xlu2 %308 }
  0x7c   : > { %v340_v32 = vmul.f32 %v733_v28, %v309_v14 }
  0x82   : > { %v271_v13 = vpop.permute.xlu1 %270 }
  0x83   : > { %v261_v16 = vpop.permute.xlu0 %260  ;;  %v301_v46 = vmul.f32 %v737_v30, %v271_v13 }
  0x84   : > { %v321_v17 = vpop.permute.xlu2 %320  ;;  %v299_v33 = vmul.f32 %v737_v30, %v261_v16 }
  0x85   : > { %v343_v51 = vmul.f32 %v733_v28, %v321_v17 }
  0x86   : > { %v348_v40 = vadd.f32 %v340_v32, %v299_v33 }
  0x8a   : > { %v276_v15 = vpop.permute.xlu1 %275 }
  0x8b   : > { %v266_v19 = vpop.permute.xlu0 %265  ;;  %v302_v52 = vmul.f32 %v737_v30, %v276_v15 }
  0x8c   : > { %v300_v36 = vmul.f32 %v737_v30, %v266_v19 }
  0x8d   : > { %v362_v20 = vpop.permute.xlu2 %361  ;;  %v351_v60 = vadd.f32 %v343_v51, %v302_v52 }
  0x8e   : > { %v390_v38 = vmul.f32 %v742_v34, %v362_v20 }
  0x92   : > { %v711_v18 = vpop.permute.xlu1 %295 }
  0x93   : > { %v713_v22 = vpop.permute.xlu0 %290  ;;  %v306_v14 = vmul.f32 %v737_v30, %v711_v18 }
  0x94   : > { %v305_v32 = vmul.f32 %v737_v30, %v713_v22 }
  0x95   : > { %v370_v23 = vpop.permute.xlu2 %369 }
  0x96   : > { %v392_v56 = vmul.f32 %v742_v34, %v370_v23 }
  0x98   : > { %v400_v0 = vadd.f32 %v392_v56, %v351_v60 }
  0x9a   : > { %v411_v12 = vadd.f32 %v752_v47, %v400_v0 }
  0x9b   : > { %v317_v21 = vpop.permute.xlu1 %316 }
  0x9c   : > { %v313_v26 = vpop.permute.xlu0 %312  ;;  %v342_v42 = vmul.f32 %v733_v28, %v317_v21 }
  0x9d   : > { %v374_v29 = vpop.permute.xlu2 %373  ;;  %v341_v31 = vmul.f32 %v733_v28, %v313_v26 }
  0x9e   : > { %v350_v54 = vadd.f32 %v342_v42, %v301_v46  ;;  %v393_v61 = vmul.f32 %v742_v34, %v374_v29  ;;  %v453_v29 = vmul.f32 %v411_v12, %v411_v12 }
  0x9f   : > { %v349_v39 = vadd.f32 %v341_v31, %v300_v36 }
  0xa1   : > { %v398_v44 = vadd.f32 %v390_v38, %v349_v39 }
  0xa3   : > { %v409_v57 = vadd.f32 %v752_v47, %v398_v44 }
  0xa5   : > { %v358_v24 = vpop.permute.xlu1 %357  ;;  %v451_v1 = vmul.f32 %v409_v57, %v409_v57  ;;  %v426_v6 = vsel %vm424_vm1, %v409_v57, 0.0 }
  0xa6   : > { %v389_v37 = vmul.f32 %v742_v34, %v358_v24  ;;  %v366_v41 = vpop.permute.xlu0 %365  ;;  %v337_v45 = vpop.permute.xlu2 %336 }
  0xa7   : > { %v391_v48 = vmul.f32 %v742_v34, %v366_v41  ;;  %v347_v10 = vmul.f32 %v733_v28, %v337_v45  ;;  %v459_v16 = vsel %vm424_vm1, %v451_v1, 0.0 }
  0xa8   : > { %v397_v43 = vadd.f32 %v389_v37, %v348_v40  ;;  %v430_v37 = vsel %vm424_vm1, %v411_v12, 0.0 }
  0xa9   : > { %v399_v58 = vadd.f32 %v391_v48, %v350_v54  ;;  %v355_v26 = vadd.f32 %v347_v10, %v306_v14 }
  0xaa   : > { %v408_v55 = vadd.f32 %v752_v47, %v397_v43  ;;  %v463_v43 = vsel %vm424_vm1, %v453_v29, 0.0 }
  0xab   : > { %v410_v4 = vadd.f32 %v752_v47, %v399_v58 }
  0xac   : > { %v450_v62 = vmul.f32 %v408_v55, %v408_v55  ;;  %v425_v3 = vsel %vm424_vm1, %v408_v55, 0.0 }
  0xad   : > { %v427_v15 = vadd.f32 %v426_v6, %v425_v3  ;;  %v452_v19 = vmul.f32 %v410_v4, %v410_v4  ;;  %v428_v25 = vsel %vm424_vm1, %v410_v4, 0.0 }
  0xae   : > { %v325_v35 = vpop.permute.xlu1 %324  ;;  %v458_v9 = vsel %vm424_vm1, %v450_v62, 0.0 }
  0xaf   : > { %v344_v49 = vmul.f32 %v733_v28, %v325_v35  ;;  %v386_v7 = vpop.permute.xlu2 %385  ;;  %v333_v17 = vpop.permute.xlu0 %332  ;;  %v460_v24 = vadd.f32 %v459_v16, %v458_v9  ;;  %v429_v31 = vadd.f32 %v428_v25, %v427_v15  ;;  %v461_v33 = vsel %vm424_vm1, %v452_v19, 0.0 }
  0xb0   : > { %v396_v21 = vmul.f32 %v742_v34, %v386_v7  ;;  %v346_v27 = vmul.f32 %v733_v28, %v333_v17 }
  0xb1   : > { %v352_v59 = vadd.f32 %v344_v49, %v303_v53  ;;  %v462_v38 = vadd.f32 %v461_v33, %v460_v24  ;;  %v431_v44 = vadd.f32 %v430_v37, %v429_v31 }
  0xb2   : > { %v404_v36 = vadd.f32 %v396_v21, %v355_v26  ;;  %v354_v41 = vadd.f32 %v346_v27, %v305_v32 }
  0xb3   : > { %v401_v5 = vadd.f32 %v393_v61, %v352_v59  ;;  %v464_v48 = vadd.f32 %v463_v43, %v462_v38 }
  0xb4   : > { %v415_v22 = vadd.f32 %v752_v47, %v404_v36 }
  0xb5   : > { %v412_v20 = vadd.f32 %v752_v47, %v401_v5 }
  0xb6   : > { %v329_v50 = vpop.permute.xlu1 %328  ;;  %v457_v54 = vmul.f32 %v415_v22, %v415_v22  ;;  %v438_v58 = vsel %vm424_vm1, %v415_v22, 0.0 }
  0xb7   : > { %v345_v63 = vmul.f32 %v733_v28, %v329_v50  ;;  %v454_v35 = vmul.f32 %v412_v20, %v412_v20  ;;  %v432_v40 = vsel %vm424_vm1, %v412_v20, 0.0 }
  0xb8   : > { %v433_v49 = vadd.f32 %v432_v40, %v431_v44  ;;  %v471_v62 = vsel %vm424_vm1, %v457_v54, 0.0 }
  0xb9   : > { %v353_v11 = vadd.f32 %v345_v63, %v304_v2  ;;  %v465_v45 = vsel %vm424_vm1, %v454_v35, 0.0 }
  0xba   : > { %v466_v53 = vadd.f32 %v465_v45, %v464_v48 }
  0xbf   : > { %v378_v8 = vpop.permute.xlu1 %377 }
  0xc0   : > { %v394_v13 = vmul.f32 %v742_v34, %v378_v8  ;;  %v423_v8 = vld [vmem:[%s723_s29] sm:$0x1] }
  0xc2   : > { %v402_v23 = vadd.f32 %v394_v13, %v353_v11  ;;  %v449_v11 = vld [vmem:[%s729_s6] sm:$0x1] }
  0xc4   : > { %v413_v18 = vadd.f32 %v752_v47, %v402_v23 }
  0xc6   : > { %v455_v42 = vmul.f32 %v413_v18, %v413_v18  ;;  %v434_v30 = vsel %vm424_vm1, %v413_v18, 0.0 }
  0xc7   : > { %v382_v39 = vpop.permute.xlu1 %381  ;;  %v435_v52 = vadd.f32 %v434_v30, %v433_v49 }
  0xc8   : > { %v395_v28 = vmul.f32 %v742_v34, %v382_v39  ;;  %v467_v50 = vsel %vm424_vm1, %v455_v42, 0.0 }
  0xc9   : > { %v468_v56 = vadd.f32 %v467_v50, %v466_v53 }
  0xca   : > { %v403_v46 = vadd.f32 %v395_v28, %v354_v41 }
  0xcc   : > { %v414_v51 = vadd.f32 %v752_v47, %v403_v46 }
  0xce   : > { %v436_v34 = vsel %vm424_vm1, %v414_v51, 0.0  ;;  %v456_v55 = vmul.f32 %v414_v51, %v414_v51 }
  0xcf   : > { %v437_v57 = vadd.f32 %v436_v34, %v435_v52 }
  0xd0   : > { %v469_v59 = vsel %vm424_vm1, %v456_v55, 0.0 }
  0xd1   : > { %v439_v60 = vadd.f32 %v438_v58, %v437_v57  ;;  %v470_v61 = vadd.f32 %v469_v59, %v468_v56 }
  0xd3   : > { %v440_v63 = vrot.slane %v439_v60, 4  ;;  %v472_v47 = vadd.f32 %v471_v62, %v470_v61 }
  0xd5   : > { %v441_v0 = vadd.f32 %v440_v63, %v439_v60  ;;  %v473_v1 = vrot.slane %v472_v47, 4 }
  0xd7   : > { %v442_v2 = vrot.slane %v441_v0, 2  ;;  %v474_v3 = vadd.f32 %v473_v1, %v472_v47 }
  0xd9   : > { %v443_v4 = vadd.f32 %v442_v2, %v441_v0  ;;  %v475_v5 = vrot.slane %v474_v3, 2 }
  0xdb   : > { %v444_v6 = vrot.slane %v443_v4, 1  ;;  %v476_v7 = vadd.f32 %v475_v5, %v474_v3 }
  0xdd   : > { %v445_v9 = vadd.f32 %v444_v6, %v443_v4  ;;  %v477_v10 = vrot.slane %v476_v7, 1 }
  0xdf   : > { %v446_v13 = vadd.f32 %v445_v9, %v423_v8  ;;  %v478_v14 = vadd.f32 %v477_v10, %v476_v7 }
  0xe1   : > { %448 = vst.msk [vmem:[%s723_s29] sm:$0x1] %vm420_vm0, %v446_v13  ;;  %v479_v12 = vadd.f32 %v478_v14, %v449_v11 }
  0xe3   : > { %480 = vst.msk [vmem:[%s729_s6] sm:$0x1] %vm420_vm0, %v479_v12 }
  0xe4 PF: > { %s15_s17 = sadd.s32 1, %s656_s17   ;;  %s816_s15 = smov %s652_s16 }
  0xe5   : > { %p12_p5 = scmp.ge.s32.totalorder %s15_s17, 6   ;;  %s817_s16 = smov %s819_s18 }
  0xe7   :  { %14 = sbr.rel (!%p12_p5) target bundleno = 2 (0x2), region = 81 }

// kernel: pointnet_encoder_forward.12
= control target key start
LH: loop header
LB: loop body
LE: loop exit
PB: predicated region body
PF: predicated region fallthrough
CT: control target
= control target key end

     0   :  { %s1099_s30 = smov 0   ;;  %s1101_s10 = smov 0   ;;  %s1258_s0 = inlined_call_operand.vmem [shape: f32[4,64,3], index: 0, kind: input, shape index: {}]   ;;  %s1259_s1 = inlined_call_operand.vmem [shape: f32[4,3,64], index: 1, kind: input, shape index: {}]   ;;  %s1260_s2 = inlined_call_operand.vmem [shape: f32[1,64], index: 2, kind: input, shape index: {}]   ;;  %s1261_s3 = inlined_call_operand.vmem [shape: f32[1,64], index: 3, kind: input, shape index: {}]   ;;  %s1262_s4 = inlined_call_operand.vmem [shape: f32[1,64], index: 4, kind: input, shape index: {}]   ;;  %s1263_s5 = inlined_call_operand.vmem [shape: bf16[64,128], index: 5, kind: input, shape index: {}]   ;;  %s1264_s6 = inlined_call_operand.vmem [shape: f32[1,128], index: 6, kind: input, shape index: {}]   ;;  %s1265_s7 = inlined_call_operand.vmem [shape: bf16[4,64,128], index: 7, kind: output, shape index: {0}]   ;;  %s1266_s8 = inlined_call_operand.vmem [shape: f32[4,1,128], index: 8, kind: output, shape index: {1}]   ;;  %s1267_s9 = inlined_call_operand.vmem [shape: f32[4,1,128], index: 9, kind: output, shape index: {2}]  }
   0x1   :  { %s1103_s11 = smov 0  }
   0x2 LB: > { %s32_s12 = sadd.s32 1, %s1039_s10  ;;  %p904_p0 = scmp.ge.s32.totalorder %s1043_s11, 1  ;;  %s1043_s11 = sphi %s1103_s11, %s20_s11   ;;  %s1039_s10 = sphi %s1101_s10, %s1269_s10   ;;  %s1035_s30 = sphi %s1099_s30, %s1268_s30  }
   0x3   : > { %p34_p1 = scmp.ge.s32.totalorder %s32_s12, 4  ;;  %p322_p2 = scmp.lt.s32.totalorder %s1043_s11, 5 }
   0x5   : > { %s1271_s12 = smov (%p34_p1, %s32_s12), 0  ;;  %p323_p3 = pnand %p904_p0, %p322_p2 }
   0x6   : > { %p377_p4 = scmp.lt.s32.totalorder (!%p323_p3), %s1035_s30, 3 }
   0x7   : > { %326 = sbr.rel (%p323_p3) target bundleno = 376 (0x178), region = 48 }
   0xc   : > { %v1045_v0 = vmov 1   ;;  %v1046_v1 = vmov 0   ;;  %s1273_s30 = smov (!%p377_p4, %s1035_s30), 3  ;;  %v1047_v7 = vmov 2   ;;  %v937_v13 = vld [vmem:[%s1263_s5 + $0x18] sm:$0xff]  ;;  %v936_v14 = vld [vmem:[%s1263_s5 + $0x10] sm:$0xff] }
   0xd   : > { %1002 = vset.pattern.permute.xlu1 %v1045_v0  ;;  %1003 = vset.pattern.permute.xlu2 %v1046_v1  ;;  %s932_s13 = sshll.u32 %s1273_s30, 6  ;;  %s907_s21 = sshll.u32 %s1273_s30, 2  ;;  %v935_v17 = vld [vmem:[%s1263_s5 + $0x8] sm:$0xff]  ;;  %v934_v19 = vld [vmem:[%s1263_s5] sm:$0xff]  ;;  %vm647_vm0 = vcmask 523264  }
   0xe   : > { %1001 = vset.pattern.permute.xlu0 %v1046_v1  ;;  %s384_s16 = scalar_lea.vmem %s1258_s0, %s932_s13  ;;  %664 = vmatpush.bf16.msra.mxu0 %v937_v13  ;;  %s389_s26 = scalar_lea.vmem %s1259_s1, %s907_s21  ;;  %v1155_v34 = vld [vmem:[%s1260_s2] ss:$0 sm:$0xff] }
   0xf   : > { %v411_v2 = vld [vmem:[%s384_s16 + $0x20] sm:$0xff]  ;;  %v412_v4 = vld [vmem:[%s384_s16 + $0x28] sm:$0xff]  ;;  %v410_v6 = vld [vmem:[%s384_s16 + $0x18] sm:$0xff]  ;;  %962 = vmatpush.bf16.msra.mxu2 %v937_v13  ;;  %961 = vmatpush.bf16.msra.mxu1 %v937_v13  ;;  %s933_s20 = sshll.u32 %s1273_s30, 5  ;;  %s1238_s29 = scalar_lea.vmem %s1267_s9, %s1273_s30 }
  0x10   : > { %v407_v3 = vld [vmem:[%s384_s16] sm:$0xff]  ;;  %439 = vperm.xlu2 %1003, %v411_v2   ;;  %v408_v5 = vld [vmem:[%s384_s16 + $0x8] sm:$0xff]  ;;  %v413_v8 = vld [vmem:[%s384_s16 + $0x30] sm:$0xff]  ;;  %963 = vmatpush.bf16.msra.mxu3 %v937_v13  ;;  %s1225_s23 = scalar_lea.vmem %s1265_s7, %s933_s20 }
  0x11   : > { %467 = vperm.xlu1 %1002, %v407_v3   ;;  %419 = vperm.xlu0 %1001, %v407_v3   ;;  %v409_v9 = vld [vmem:[%s384_s16 + $0x10] sm:$0xff]  ;;  %v414_v10 = vld [vmem:[%s384_s16 + $0x38] sm:$0xff]  ;;  %v415_v20 = vld [vmem:[%s389_s26] sm:$0x7]  ;;  %s1232_s26 = scalar_lea.vmem %s1266_s8, %s1273_s30 }
  0x12   : > { %665 = vmatpush.bf16.msra.mxu0 %v936_v14  ;;  %v1141_v22 = vperm.slane %v415_v20, 0  ;;  %v1143_v23 = vperm.slane %v415_v20, 1  ;;  %v1147_v26 = vperm.slane %v415_v20, 2  ;;  %v1163_v39 = vld [vmem:[%s1261_s3] ss:$0 sm:$0xff] }
  0x13   : > { %965 = vmatpush.bf16.msra.mxu2 %v936_v14  ;;  %964 = vmatpush.bf16.msra.mxu1 %v936_v14  ;;  %v1170_v46 = vld [vmem:[%s1262_s4] ss:$0 sm:$0xff] }
  0x14   : > { %966 = vmatpush.bf16.msra.mxu3 %v936_v14 }
  0x16   : > { %666 = vmatpush.bf16.msra.mxu0 %v935_v17 }
  0x17   : > { %968 = vmatpush.bf16.msra.mxu2 %v935_v17  ;;  %967 = vmatpush.bf16.msra.mxu1 %v935_v17 }
  0x18   : > { %444 = vperm.xlu2 %1003, %v412_v4   ;;  %969 = vmatpush.bf16.msra.mxu3 %v935_v17 }
  0x19   : > { %471 = vperm.xlu1 %1002, %v408_v5   ;;  %424 = vperm.xlu0 %1001, %v408_v5  }
  0x1a   : > { %667 = vmatpush.bf16.msra.mxu0 %v934_v19 }
  0x1b   : > { %971 = vmatpush.bf16.msra.mxu2 %v934_v19  ;;  %970 = vmatpush.bf16.msra.mxu1 %v934_v19 }
  0x1c   : > { %972 = vmatpush.bf16.msra.mxu3 %v934_v19 }
  0x20   : > { %1004 = vset.pattern.permute.xlu2 %v1047_v7 }
  0x21   : > { %487 = vperm.xlu1 %1002, %v412_v4   ;;  %434 = vperm.xlu0 %1001, %v410_v6  }
  0x22   : > { %516 = vperm.xlu2 %1004, %v407_v3  }
  0x29   : > { %1005 = vset.pattern.permute.xlu1 %v1047_v7  ;;  %449 = vperm.xlu0 %1001, %v413_v8  }
  0x2a   : > { %1006 = vset.pattern.permute.xlu2 %v1046_v1  ;;  %520 = vperm.xlu1 %1005, %v408_v5  }
  0x2b   : > { %429 = vperm.xlu2 %1006, %v409_v9  }
  0x31   : > { %1011 = vset.pattern.permute.xlu0 %v1045_v0 }
  0x32   : > { %1007 = vset.pattern.permute.xlu1 %v1045_v0  ;;  %483 = vperm.xlu0 %1011, %v411_v2  }
  0x33   : > { %1008 = vset.pattern.permute.xlu2 %v1045_v0  ;;  %475 = vperm.xlu1 %1007, %v409_v9  }
  0x34   : > { %479 = vperm.xlu2 %1008, %v410_v6  }
  0x3a   : > { %495 = vperm.xlu0 %1011, %v414_v10  }
  0x3b   : > { %1009 = vset.pattern.permute.xlu1 %v1047_v7 }
  0x3c   : > { %1010 = vset.pattern.permute.xlu2 %v1047_v7  ;;  %532 = vperm.xlu1 %1009, %v411_v2  }
  0x3d   : > { %536 = vperm.xlu2 %1010, %v412_v4  }
  0x42   : > { %1016 = vset.pattern.permute.xlu0 %v1047_v7 }
  0x44   : > { %1012 = vset.pattern.permute.xlu1 %v1046_v1 }
  0x45   : > { %1013 = vset.pattern.permute.xlu2 %v1045_v0  ;;  %454 = vperm.xlu1 %1012, %v414_v10  }
  0x46   : > { %491 = vperm.xlu2 %1013, %v413_v8  }
  0x4d   : > { %1014 = vset.pattern.permute.xlu1 %v1047_v7 }
  0x4e   : > { %1015 = vset.pattern.permute.xlu2 %v1047_v7  ;;  %524 = vperm.xlu1 %1014, %v409_v9  }
  0x4f   : > { %528 = vperm.xlu2 %1015, %v410_v6  }
  0x56   : > { %540 = vperm.xlu1 %1014, %v413_v8  }
  0x57   : > { %544 = vperm.xlu2 %1015, %v414_v10  }
  0x6a   : > { %v1123_v11 = vpop.permute.xlu2 %439 }
  0x6b   : > { %v462_v0 = vmul.f32 %v1141_v22, %v1123_v11 }
  0x72   : > { %v445_v12 = vpop.permute.xlu2 %444 }
  0x73   : > { %v463_v52 = vmul.f32 %v1141_v22, %v445_v12 }
  0x7c   : > { %v517_v15 = vpop.permute.xlu2 %516 }
  0x7d   : > { %v548_v30 = vmul.f32 %v1147_v26, %v517_v15 }
  0x83   : > { %v468_v16 = vpop.permute.xlu1 %467  ;;  %v420_v18 = vpop.permute.xlu0 %419 }
  0x84   : > { %v499_v27 = vmul.f32 %v1143_v23, %v468_v16  ;;  %v458_v28 = vmul.f32 %v1141_v22, %v420_v18 }
  0x85   : > { %v1145_v25 = vpop.permute.xlu2 %429 }
  0x86   : > { %v507_v31 = vadd.f32 %v499_v27, %v458_v28 }
  0x88   : > { %v556_v35 = vadd.f32 %v548_v30, %v507_v31  ;;  %v460_v30 = vmul.f32 %v1141_v22, %v1145_v25 }
  0x8a   : > { %v567_v38 = vadd.f32 %v1155_v34, %v556_v35 }
  0x8b   : > { %v472_v21 = vpop.permute.xlu1 %471  ;;  %v425_v24 = vpop.permute.xlu0 %424 }
  0x8c   : > { %v500_v36 = vmul.f32 %v1143_v23, %v472_v21  ;;  %v459_v37 = vmul.f32 %v1141_v22, %v425_v24  ;;  %v579_v45 = vmul.f32 %v1163_v39, %v567_v38 }
  0x8e   : > { %v480_v33 = vpop.permute.xlu2 %479  ;;  %v508_v41 = vadd.f32 %v500_v36, %v459_v37  ;;  %v591_v51 = vadd.f32 %v1170_v46, %v579_v45 }
  0x8f   : > { %v502_v9 = vmul.f32 %v1143_v23, %v480_v33 }
  0x90   : > { %v599_v57 = vmax.f32 %v591_v51, 0.0 }
  0x93   : > { %v488_v29 = vpop.permute.xlu1 %487  ;;  %v435_v32 = vpop.permute.xlu0 %434 }
  0x94   : > { %v504_v49 = vmul.f32 %v1143_v23, %v488_v29  ;;  %v461_v10 = vmul.f32 %v1141_v22, %v435_v32 }
  0x96   : > { %v512_v56 = vadd.f32 %v504_v49, %v463_v52  ;;  %v510_v17 = vadd.f32 %v502_v9, %v461_v10 }
  0x97   : > { %v537_v47 = vpop.permute.xlu2 %536 }
  0x98   : > { %v553_v53 = vmul.f32 %v1147_v26, %v537_v47 }
  0x9a   : > { %v561_v60 = vadd.f32 %v553_v53, %v512_v56 }
  0x9b   : > { %v450_v43 = vpop.permute.xlu0 %449 }
  0x9c   : > { %v521_v40 = vpop.permute.xlu1 %520  ;;  %v572_v1 = vadd.f32 %v1155_v34, %v561_v60  ;;  %v464_v45 = vmul.f32 %v1141_v22, %v450_v43 }
  0x9d   : > { %v549_v42 = vmul.f32 %v1147_v26, %v521_v40 }
  0x9e   : > { %v584_v5 = vmul.f32 %v1163_v39, %v572_v1 }
  0x9f   : > { %v557_v44 = vadd.f32 %v549_v42, %v508_v41 }
  0xa0   : > { %v492_v62 = vpop.permute.xlu2 %491  ;;  %v596_v11 = vadd.f32 %v1170_v46, %v584_v5 }
  0xa1   : > { %v568_v48 = vadd.f32 %v1155_v34, %v557_v44  ;;  %v505_v42 = vmul.f32 %v1143_v23, %v492_v62 }
  0xa2   : > { %v604_v19 = vmax.f32 %v596_v11, 0.0 }
  0xa3   : > { %v580_v50 = vmul.f32 %v1163_v39, %v568_v48 }
  0xa4   : > { %v484_v59 = vpop.permute.xlu0 %483 }
  0xa5   : > { %v476_v54 = vpop.permute.xlu1 %475  ;;  %v592_v55 = vadd.f32 %v1170_v46, %v580_v50  ;;  %v503_v63 = vmul.f32 %v1143_v23, %v484_v59  ;;  %v513_v50 = vadd.f32 %v505_v42, %v464_v45 }
  0xa6   : > { %v501_v29 = vmul.f32 %v1143_v23, %v476_v54 }
  0xa7   : > { %v600_v58 = vmax.f32 %v592_v55, 0.0  ;;  %v511_v3 = vadd.f32 %v503_v63, %v462_v0 }
  0xa8   : > { %v509_v36 = vadd.f32 %v501_v29, %v460_v30 }
  0xa9   : > { %v607_v61 = vpack.c.bf16 %v600_v58, %v599_v57  ;;  %v529_v8 = vpop.permute.xlu2 %528 }
  0xaa   : > { %v551_v13 = vmul.f32 %v1147_v26, %v529_v8 }
  0xab   : > { %926 = vmatmul.msk.bf16.vlgmr.msra.gmra.mxu0 %vm647_vm0, %v607_v61 }
  0xac   : > { %v496_v16 = vpop.permute.xlu0 %495  ;;  %v559_v20 = vadd.f32 %v551_v13, %v510_v17 }
  0xad   : > { %v506_v24 = vmul.f32 %v1143_v23, %v496_v16 }
  0xae   : > { %v533_v2 = vpop.permute.xlu1 %532  ;;  %v570_v31 = vadd.f32 %v1155_v34, %v559_v20 }
  0xaf   : > { %v552_v4 = vmul.f32 %v1147_v26, %v533_v2  ;;  %v1048_v2 = vmov 0.0  }
  0xb0   : > { %v582_v38 = vmul.f32 %v1163_v39, %v570_v31  ;;  %709 = vst [vmem:[%s1232_s26] sm:$0x1] %v1048_v2 }
  0xb1   : > { %v560_v6 = vadd.f32 %v552_v4, %v511_v3  ;;  %v545_v28 = vpop.permute.xlu2 %544  ;;  %710 = vst [vmem:[%s1238_s29] sm:$0x1] %v1048_v2 }
  0xb2   : > { %v555_v33 = vmul.f32 %v1147_v26, %v545_v28  ;;  %v594_v48 = vadd.f32 %v1170_v46, %v582_v38 }
  0xb3   : > { %v571_v7 = vadd.f32 %v1155_v34, %v560_v6 }
  0xb4   : > { %v602_v55 = vmax.f32 %v594_v48, 0.0 }
  0xb5   : > { %v583_v12 = vmul.f32 %v1163_v39, %v571_v7 }
  0xb7   : > { %v455_v14 = vpop.permute.xlu1 %454  ;;  %v595_v15 = vadd.f32 %v1170_v46, %v583_v12 }
  0xb8   : > { %v465_v21 = vmul.f32 %v1141_v22, %v455_v14 }
  0xb9   : > { %v603_v18 = vmax.f32 %v595_v15, 0.0 }
  0xba   : > { %v514_v32 = vadd.f32 %v506_v24, %v465_v21 }
  0xbb   : > { %v609_v27 = vpack.c.bf16 %v604_v19, %v603_v18 }
  0xbc   : > { %v563_v40 = vadd.f32 %v555_v33, %v514_v32 }
  0xbd   : > { %928 = vmatmul.msk.bf16.vlgmr.msra.gmra.mxu2 %vm647_vm0, %v609_v27 }
  0xbe   : > { %v574_v25 = vadd.f32 %v1155_v34, %v563_v40 }
  0xc0   : > { %v525_v35 = vpop.permute.xlu1 %524  ;;  %v586_v53 = vmul.f32 %v1163_v39, %v574_v25 }
  0xc1   : > { %v550_v37 = vmul.f32 %v1147_v26, %v525_v35 }
  0xc2   : > { %v598_v57 = vadd.f32 %v1170_v46, %v586_v53 }
  0xc3   : > { %v558_v41 = vadd.f32 %v550_v37, %v509_v36 }
  0xc4   : > { %v606_v59 = vmax.f32 %v598_v57, 0.0 }
  0xc5   : > { %v569_v44 = vadd.f32 %v1155_v34, %v558_v41 }
  0xc7   : > { %v581_v47 = vmul.f32 %v1163_v39, %v569_v44 }
  0xc8   : > { %v541_v49 = vpop.permute.xlu1 %540 }
  0xc9   : > { %v554_v51 = vmul.f32 %v1147_v26, %v541_v49  ;;  %v593_v52 = vadd.f32 %v1170_v46, %v581_v47 }
  0xcb   : > { %v562_v23 = vadd.f32 %v554_v51, %v513_v50  ;;  %v601_v54 = vmax.f32 %v593_v52, 0.0 }
  0xcd   : > { %v573_v22 = vadd.f32 %v1155_v34, %v562_v23  ;;  %v608_v43 = vpack.c.bf16 %v602_v55, %v601_v54  ;;  %v1020_v34 = vld [vmem:[%s1264_s6] ss:$0 sm:$0xff] }
  0xce   : > { %v711_v23 = vld [vmem:[%s1232_s26] sm:$0x1] }
  0xcf   : > { %v585_v56 = vmul.f32 %v1163_v39, %v573_v22  ;;  %927 = vmatmul.msk.bf16.vlgmr.msra.gmra.mxu1 %vm647_vm0, %v608_v43  ;;  %v727_v22 = vld [vmem:[%s1238_s29] sm:$0x1] }
  0xd1   : > { %v597_v26 = vadd.f32 %v1170_v46, %v585_v56 }
  0xd3   : > { %v605_v58 = vmax.f32 %v597_v26, 0.0 }
  0xd5   : > { %v610_v60 = vpack.c.bf16 %v606_v59, %v605_v58 }
  0xd7   : > { %929 = vmatmul.msk.bf16.vlgmr.msra.gmra.mxu3 %vm647_vm0, %v610_v60 }
 0x128   : > { %v669_v61 = vpop.f32.mrf.mxu0 }
 0x129   : > { %v670_v62 = vadd.f32 %v1020_v34, %v669_v61 }
 0x12b   : > { %v728_v9 = vmul.f32 %v670_v62, %v670_v62 }
 0x130   : > { %v671_v39 = vpop.f32.mrf.mxu0 }
 0x131   : > { %v672_v63 = vadd.f32 %v1020_v34, %v671_v39 }
 0x133   : > { %v941_v46 = vpack.c.bf16 %v672_v63, %v670_v62  ;;  %v729_v8 = vmul.f32 %v672_v63, %v672_v63  ;;  %v712_v10 = vadd.f32 %v672_v63, %v670_v62 }
 0x135   : > { %942 = vst [vmem:[%s1225_s23] sm:$0xff] %v941_v46   ;;  %v736_v13 = vadd.f32 %v729_v8, %v728_v9 }
 0x140   : > { %v679_v0 = vpop.f32.mrf.mxu2 }
 0x141   : > { %v680_v3 = vadd.f32 %v1020_v34, %v679_v0 }
 0x143   : > { %v732_v24 = vmul.f32 %v680_v3, %v680_v3 }
 0x148   : > { %v681_v1 = vpop.f32.mrf.mxu2 }
 0x149   : > { %v682_v4 = vadd.f32 %v1020_v34, %v681_v1 }
 0x14b   : > { %v951_v5 = vpack.c.bf16 %v682_v4, %v680_v3  ;;  %v733_v30 = vmul.f32 %v682_v4, %v682_v4 }
 0x14c   : > { %v674_v6 = vpop.f32.mrf.mxu1 }
 0x14d   : > { %959 = vst [vmem:[%s1225_s23 + $0x10] sm:$0xff] %v951_v5   ;;  %v675_v7 = vadd.f32 %v1020_v34, %v674_v6 }
 0x14f   : > { %v730_v12 = vmul.f32 %v675_v7, %v675_v7  ;;  %v713_v14 = vadd.f32 %v712_v10, %v675_v7 }
 0x151   : > { %v737_v16 = vadd.f32 %v736_v13, %v730_v12 }
 0x154   : > { %v676_v11 = vpop.f32.mrf.mxu1 }
 0x155   : > { %v677_v15 = vadd.f32 %v1020_v34, %v676_v11 }
 0x157   : > { %v946_v17 = vpack.c.bf16 %v677_v15, %v675_v7  ;;  %v714_v18 = vadd.f32 %v713_v14, %v677_v15  ;;  %v731_v19 = vmul.f32 %v677_v15, %v677_v15 }
 0x159   : > { %958 = vst [vmem:[%s1225_s23 + $0x8] sm:$0xff] %v946_v17   ;;  %v738_v20 = vadd.f32 %v737_v16, %v731_v19  ;;  %v715_v27 = vadd.f32 %v714_v18, %v680_v3 }
 0x15a   : > { %v684_v21 = vpop.f32.mrf.mxu3 }
 0x15b   : > { %v739_v28 = vadd.f32 %v738_v20, %v732_v24  ;;  %v685_v29 = vadd.f32 %v1020_v34, %v684_v21  ;;  %v716_v31 = vadd.f32 %v715_v27, %v682_v4 }
 0x15d   : > { %v734_v32 = vmul.f32 %v685_v29, %v685_v29  ;;  %v740_v33 = vadd.f32 %v739_v28, %v733_v30  ;;  %v717_v36 = vadd.f32 %v716_v31, %v685_v29 }
 0x15f   : > { %v741_v38 = vadd.f32 %v740_v33, %v734_v32 }
 0x162   : > { %v686_v35 = vpop.f32.mrf.mxu3 }
 0x163   : > { %v687_v37 = vadd.f32 %v1020_v34, %v686_v35 }
 0x165   : > { %v956_v40 = vpack.c.bf16 %v687_v37, %v685_v29  ;;  %v718_v41 = vadd.f32 %v717_v36, %v687_v37  ;;  %v735_v42 = vmul.f32 %v687_v37, %v687_v37 }
 0x167   : > { %960 = vst [vmem:[%s1225_s23 + $0x18] sm:$0xff] %v956_v40   ;;  %v719_v44 = vrot.slane %v718_v41, 4  ;;  %v742_v45 = vadd.f32 %v741_v38, %v735_v42 }
 0x169   : > { %v720_v25 = vadd.f32 %v719_v44, %v718_v41  ;;  %v743_v47 = vrot.slane %v742_v45, 4 }
 0x16b   : > { %v721_v48 = vrot.slane %v720_v25, 2  ;;  %v744_v49 = vadd.f32 %v743_v47, %v742_v45 }
 0x16d   : > { %v722_v50 = vadd.f32 %v721_v48, %v720_v25  ;;  %v745_v51 = vrot.slane %v744_v49, 2 }
 0x16f   : > { %v723_v52 = vrot.slane %v722_v50, 1  ;;  %v746_v53 = vadd.f32 %v745_v51, %v744_v49 }
 0x171   : > { %v724_v54 = vadd.f32 %v723_v52, %v722_v50  ;;  %v747_v55 = vrot.slane %v746_v53, 1 }
 0x173   : > { %v725_v43 = vadd.f32 %v724_v54, %v711_v23  ;;  %v748_v56 = vadd.f32 %v747_v55, %v746_v53 }
 0x175   : > { %726 = vst [vmem:[%s1232_s26] sm:$0x1] %v725_v43  ;;  %v749_v57 = vadd.f32 %v748_v56, %v727_v22 }
 0x177   : > { %750 = vst [vmem:[%s1238_s29] sm:$0x1] %v749_v57 }
 0x178 PF: > { %s20_s11 = sadd.s32 1, %s1043_s11   ;;  %s1268_s30 = smov %s1039_s10 }
 0x179   : > { %p17_p5 = scmp.ge.s32.totalorder %s20_s11, 6   ;;  %s1269_s10 = smov %s1271_s12 }
 0x17b   :  { %19 = sbr.rel (!%p17_p5) target bundleno = 2 (0x2), region = 109 }

// kernel: pointnet_encoder_forward.13
= control target key start
LH: loop header
LB: loop body
LE: loop exit
PB: predicated region body
PF: predicated region fallthrough
CT: control target
= control target key end

     0   :  { %s2259_s27 = smov 0   ;;  %s2261_s28 = smov 0   ;;  %s3050_s0 = inlined_call_operand.vmem [shape: bf16[4,64,128], index: 0, kind: input, shape index: {}]   ;;  %s3051_s1 = inlined_call_operand.vmem [shape: f32[1,128], index: 1, kind: input, shape index: {}]   ;;  %s3052_s2 = inlined_call_operand.vmem [shape: f32[1,128], index: 2, kind: input, shape index: {}]   ;;  %s3053_s3 = inlined_call_operand.vmem [shape: bf16[128,1024], index: 3, kind: input, shape index: {}]   ;;  %s3054_s4 = inlined_call_operand.vmem [shape: f32[1,1024], index: 4, kind: input, shape index: {}]   ;;  %s3055_s5 = inlined_call_operand.vmem [shape: f32[4,1,1024], index: 5, kind: output, shape index: {0}]   ;;  %s3056_s6 = inlined_call_operand.vmem [shape: f32[4,1,1024], index: 6, kind: output, shape index: {1}]   ;;  %s3057_s7 = inlined_call_operand.vmem [shape: f32[4,1,1024], index: 7, kind: output, shape index: {2}]   ;;  %s3058_s8 = inlined_call_operand.vmem [shape: f32[4,1,1024], index: 8, kind: output, shape index: {3}]  }
   0x1   :  { %s2263_s29 = smov 0  }
   0x2 LB: > { %s31_s30 = sadd.s32 1, %s2208_s28  ;;  %p1812_p0 = scmp.ge.s32.totalorder %s2212_s29, 1  ;;  %s2212_s29 = sphi %s2263_s29, %s19_s29   ;;  %s2208_s28 = sphi %s2261_s28, %s3060_s28   ;;  %s2204_s27 = sphi %s2259_s27, %s3059_s27  }
   0x3   : > { %p33_p1 = scmp.ge.s32.totalorder %s31_s30, 4  ;;  %p288_p2 = scmp.lt.s32.totalorder %s2212_s29, 5 }
   0x5   : > { %s3062_s30 = smov (%p33_p1, %s31_s30), 0  ;;  %p289_p3 = pnand %p1812_p0, %p288_p2 }
   0x6   : > { %p338_p4 = scmp.lt.s32.totalorder (!%p289_p3), %s2204_s27, 3 }
   0x7   : > { %292 = sbr.rel (%p289_p3) target bundleno = 351 (0x15f), region = 40 }
   0xc   : > { %v2045_v0 = vld [vmem:[%s3053_s3 + $0x1c0] sm:$0xf]  ;;  %v2134_v2 = vld [vmem:[%s3053_s3 + $0x1c4] sm:$0xf]  ;;  %v2053_v5 = vld [vmem:[%s3053_s3 + $0x1c8] sm:$0xf] }
   0xd   : > { %v2138_v1 = vld [vmem:[%s3053_s3 + $0x1dc] sm:$0xf0]  ;;  %v2047_v4 = vld [vmem:[%s3053_s3 + $0x1e0] sm:$0xf0]  ;;  %v2139_v6 = vld [vmem:[%s3053_s3 + $0x1e4] sm:$0xf0] }
   0xe   : > { %v2046_v3 = vor.u32 %v2138_v1, %v2045_v0  ;;  %v2050_v7 = vor.u32 %v2134_v2, %v2047_v4  ;;  %v2054_v8 = vor.u32 %v2139_v6, %v2053_v5  ;;  %v2135_v9 = vld [vmem:[%s3053_s3 + $0x1cc] sm:$0xf]  ;;  %v2013_v11 = vld [vmem:[%s3053_s3 + $0x180] sm:$0xf]  ;;  %v2126_v14 = vld [vmem:[%s3053_s3 + $0x184] sm:$0xf] }
   0xf   : > { %v2055_v10 = vld [vmem:[%s3053_s3 + $0x1e8] sm:$0xf0]  ;;  %v2130_v13 = vld [vmem:[%s3053_s3 + $0x19c] sm:$0xf0]  ;;  %v2015_v15 = vld [vmem:[%s3053_s3 + $0x1a0] sm:$0xf0] }
  0x10   : > { %817 = vmatpush.bf16.msra.mxu0 %v2046_v3  ;;  %v2058_v12 = vor.u32 %v2135_v9, %v2055_v10  ;;  %846 = vmatpush.bf16.msra.mxu1 %v2050_v7  ;;  %v2014_v16 = vor.u32 %v2130_v13, %v2013_v11  ;;  %v2018_v17 = vor.u32 %v2126_v14, %v2015_v15  ;;  %v2021_v18 = vld [vmem:[%s3053_s3 + $0x188] sm:$0xf]  ;;  %v2127_v20 = vld [vmem:[%s3053_s3 + $0x18c] sm:$0xf]  ;;  %v1981_v23 = vld [vmem:[%s3053_s3 + $0x140] sm:$0xf] }
  0x11   : > { %875 = vmatpush.bf16.msra.mxu2 %v2054_v8  ;;  %v2131_v19 = vld [vmem:[%s3053_s3 + $0x1a4] sm:$0xf0]  ;;  %v2023_v22 = vld [vmem:[%s3053_s3 + $0x1a8] sm:$0xf0]  ;;  %v2122_v24 = vld [vmem:[%s3053_s3 + $0x15c] sm:$0xf0] }
  0x12   : > { %904 = vmatpush.bf16.msra.mxu3 %v2058_v12  ;;  %v2022_v21 = vor.u32 %v2131_v19, %v2021_v18  ;;  %v2026_v25 = vor.u32 %v2127_v20, %v2023_v22  ;;  %v2118_v26 = vld [vmem:[%s3053_s3 + $0x144] sm:$0xf]  ;;  %v1989_v28 = vld [vmem:[%s3053_s3 + $0x148] sm:$0xf]  ;;  %v1982_v29 = vor.u32 %v2122_v24, %v1981_v23  ;;  %v2119_v31 = vld [vmem:[%s3053_s3 + $0x14c] sm:$0xf] }
  0x13   : > { %v1983_v27 = vld [vmem:[%s3053_s3 + $0x160] sm:$0xf0]  ;;  %v2123_v30 = vld [vmem:[%s3053_s3 + $0x164] sm:$0xf0]  ;;  %v1991_v32 = vld [vmem:[%s3053_s3 + $0x168] sm:$0xf0] }
  0x14   : > { %818 = vmatpush.bf16.msra.mxu0 %v2014_v16  ;;  %847 = vmatpush.bf16.msra.mxu1 %v2018_v17  ;;  %v1986_v33 = vor.u32 %v2118_v26, %v1983_v27  ;;  %v1990_v34 = vor.u32 %v2123_v30, %v1989_v28  ;;  %v1949_v35 = vld [vmem:[%s3053_s3 + $0x100] sm:$0xf]  ;;  %v2110_v37 = vld [vmem:[%s3053_s3 + $0x104] sm:$0xf]  ;;  %v1994_v38 = vor.u32 %v2119_v31, %v1991_v32  ;;  %v1957_v40 = vld [vmem:[%s3053_s3 + $0x108] sm:$0xf] }
  0x15   : > { %876 = vmatpush.bf16.msra.mxu2 %v2022_v21  ;;  %v2114_v36 = vld [vmem:[%s3053_s3 + $0x11c] sm:$0xf0]  ;;  %v1951_v39 = vld [vmem:[%s3053_s3 + $0x120] sm:$0xf0]  ;;  %v2115_v41 = vld [vmem:[%s3053_s3 + $0x124] sm:$0xf0] }
  0x16   : > { %905 = vmatpush.bf16.msra.mxu3 %v2026_v25  ;;  %v2111_v42 = vld [vmem:[%s3053_s3 + $0x10c] sm:$0xf]  ;;  %v1950_v44 = vor.u32 %v2114_v36, %v1949_v35  ;;  %v1954_v45 = vor.u32 %v2110_v37, %v1951_v39  ;;  %v1958_v46 = vor.u32 %v2115_v41, %v1957_v40  ;;  %v1917_v47 = vld [vmem:[%s3053_s3 + $0xc0] sm:$0xf]  ;;  %v2102_v49 = vld [vmem:[%s3053_s3 + $0xc4] sm:$0xf] }
  0x17   : > { %v1959_v43 = vld [vmem:[%s3053_s3 + $0x128] sm:$0xf0]  ;;  %v2106_v48 = vld [vmem:[%s3053_s3 + $0xdc] sm:$0xf0]  ;;  %v1919_v51 = vld [vmem:[%s3053_s3 + $0xe0] sm:$0xf0] }
  0x18   : > { %819 = vmatpush.bf16.msra.mxu0 %v1982_v29  ;;  %848 = vmatpush.bf16.msra.mxu1 %v1986_v33  ;;  %v1962_v50 = vor.u32 %v2111_v42, %v1959_v43  ;;  %v1925_v52 = vld [vmem:[%s3053_s3 + $0xc8] sm:$0xf]  ;;  %v2103_v54 = vld [vmem:[%s3053_s3 + $0xcc] sm:$0xf]  ;;  %v1918_v56 = vor.u32 %v2106_v48, %v1917_v47  ;;  %v1922_v57 = vor.u32 %v2102_v49, %v1919_v51  ;;  %v1885_v59 = vld [vmem:[%s3053_s3 + $0x80] sm:$0xf] }
  0x19   : > { %877 = vmatpush.bf16.msra.mxu2 %v1990_v34  ;;  %v2107_v53 = vld [vmem:[%s3053_s3 + $0xe4] sm:$0xf0]  ;;  %v1927_v55 = vld [vmem:[%s3053_s3 + $0xe8] sm:$0xf0]  ;;  %v2098_v60 = vld [vmem:[%s3053_s3 + $0x9c] sm:$0xf0] }
  0x1a   : > { %906 = vmatpush.bf16.msra.mxu3 %v1994_v38  ;;  %v1926_v58 = vor.u32 %v2107_v53, %v1925_v52  ;;  %v2094_v61 = vld [vmem:[%s3053_s3 + $0x84] sm:$0xf]  ;;  %v1930_v62 = vor.u32 %v2103_v54, %v1927_v55  ;;  %v1893_v0 = vld [vmem:[%s3053_s3 + $0x88] sm:$0xf]  ;;  %v2095_v2 = vld [vmem:[%s3053_s3 + $0x8c] sm:$0xf]  ;;  %v1886_v5 = vor.u32 %v2098_v60, %v1885_v59 }
  0x1b   : > { %v1887_v63 = vld [vmem:[%s3053_s3 + $0xa0] sm:$0xf0]  ;;  %v2099_v1 = vld [vmem:[%s3053_s3 + $0xa4] sm:$0xf0]  ;;  %v1895_v3 = vld [vmem:[%s3053_s3 + $0xa8] sm:$0xf0] }
  0x1c   : > { %820 = vmatpush.bf16.msra.mxu0 %v1950_v44  ;;  %849 = vmatpush.bf16.msra.mxu1 %v1954_v45  ;;  %v1853_v4 = vld [vmem:[%s3053_s3 + $0x40] sm:$0xf]  ;;  %v2086_v7 = vld [vmem:[%s3053_s3 + $0x44] sm:$0xf]  ;;  %v1890_v9 = vor.u32 %v2094_v61, %v1887_v63  ;;  %v1894_v10 = vor.u32 %v2099_v1, %v1893_v0  ;;  %v1861_v11 = vld [vmem:[%s3053_s3 + $0x48] sm:$0xf]  ;;  %v1898_v14 = vor.u32 %v2095_v2, %v1895_v3 }
  0x1d   : > { %878 = vmatpush.bf16.msra.mxu2 %v1958_v46  ;;  %v2090_v6 = vld [vmem:[%s3053_s3 + $0x5c] sm:$0xf0]  ;;  %v1855_v8 = vld [vmem:[%s3053_s3 + $0x60] sm:$0xf0]  ;;  %v2091_v12 = vld [vmem:[%s3053_s3 + $0x64] sm:$0xf0] }
  0x1e   : > { %907 = vmatpush.bf16.msra.mxu3 %v1962_v50  ;;  %v2087_v13 = vld [vmem:[%s3053_s3 + $0x4c] sm:$0xf]  ;;  %v1821_v16 = vld [vmem:[%s3053_s3] sm:$0xf]  ;;  %v1854_v18 = vor.u32 %v2090_v6, %v1853_v4  ;;  %v2078_v19 = vld [vmem:[%s3053_s3 + $0x4] sm:$0xf]  ;;  %v1858_v22 = vor.u32 %v2086_v7, %v1855_v8  ;;  %v1862_v23 = vor.u32 %v2091_v12, %v1861_v11 }
  0x1f   : > { %v1863_v15 = vld [vmem:[%s3053_s3 + $0x68] sm:$0xf0]  ;;  %v2082_v17 = vld [vmem:[%s3053_s3 + $0x1c] sm:$0xf0]  ;;  %v1823_v20 = vld [vmem:[%s3053_s3 + $0x20] sm:$0xf0] }
  0x20   : > { %821 = vmatpush.bf16.msra.mxu0 %v1918_v56  ;;  %850 = vmatpush.bf16.msra.mxu1 %v1922_v57  ;;  %v1829_v21 = vld [vmem:[%s3053_s3 + $0x8] sm:$0xf]  ;;  %s3064_s27 = smov (!%p338_p4, %s2204_s27), 3  ;;  %v2079_v25 = vld [vmem:[%s3053_s3 + $0xc] sm:$0xf]  ;;  %v1866_v27 = vor.u32 %v2087_v13, %v1863_v15  ;;  %v1822_v33 = vor.u32 %v2082_v17, %v1821_v16  ;;  %v1826_v37 = vor.u32 %v2078_v19, %v1823_v20  ;;  %vm1177_vm0 = vcmask 1040384  }
  0x21   : > { %879 = vmatpush.bf16.msra.mxu2 %v1926_v58  ;;  %v2083_v24 = vld [vmem:[%s3053_s3 + $0x24] sm:$0xf0]  ;;  %v1831_v26 = vld [vmem:[%s3053_s3 + $0x28] sm:$0xf0]  ;;  %s2077_s11 = sshll.u32 %s3064_s27, 5  ;;  %vm1179_vm1 = vcmask 1042434  }
  0x22   : > { %908 = vmatpush.bf16.msra.mxu3 %v1930_v62  ;;  %v2479_v28 = vld [vmem:[%s3051_s1] ss:$0 sm:$0xff]  ;;  %v2069_v29 = vld [vmem:[%s3053_s3 + $0x1d8] sm:$0xf]  ;;  %s2487_s18 = scalar_lea.vmem %s3050_s0, %s2077_s11  ;;  %v2137_v31 = vld [vmem:[%s3053_s3 + $0x1dc] sm:$0xf]  ;;  %v1830_v38 = vor.u32 %v2083_v24, %v1829_v21  ;;  %v1834_v44 = vor.u32 %v2079_v25, %v1831_v26 }
  0x23   : > { %v2141_v30 = vld [vmem:[%s3053_s3 + $0x1f4] sm:$0xf0]  ;;  %v2071_v32 = vld [vmem:[%s3053_s3 + $0x1f8] sm:$0xf0]  ;;  %v2143_v34 = vld [vmem:[%s2487_s18] sm:$0xff]   ;;  %vm1181_vm2 = vcmask 1041408  }
  0x24   : > { %822 = vmatpush.bf16.msra.mxu0 %v1886_v5  ;;  %851 = vmatpush.bf16.msra.mxu1 %v1890_v9  ;;  %v2061_v35 = vld [vmem:[%s3053_s3 + $0x1d0] sm:$0xf]  ;;  %v2144_v39 = vunpack.c.l.bf16 %v2143_v34  ;;  %v2145_v40 = vunpack.c.h.bf16 %v2143_v34  ;;  %v2508_v41 = vld [vmem:[%s3052_s2] ss:$0 sm:$0xff]  ;;  %v2136_v42 = vld [vmem:[%s3053_s3 + $0x1d4] sm:$0xf]  ;;  %v2070_v45 = vor.u32 %v2141_v30, %v2069_v29  ;;  %v2074_v49 = vor.u32 %v2137_v31, %v2071_v32 }
  0x25   : > { %880 = vmatpush.bf16.msra.mxu2 %v1894_v10  ;;  %v2140_v36 = vld [vmem:[%s3053_s3 + $0x1ec] sm:$0xf0]  ;;  %v2063_v43 = vld [vmem:[%s3053_s3 + $0x1f0] sm:$0xf0]  ;;  %v2158_v46 = vld [vmem:[%s2487_s18 + $0x8] sm:$0xff]   ;;  %vm1183_vm3 = vcmask 1044484  }
  0x26   : > { %909 = vmatpush.bf16.msra.mxu3 %v1898_v14  ;;  %v383_v47 = vmul.f32 %v2479_v28, %v2144_v39  ;;  %v384_v48 = vmul.f32 %v2479_v28, %v2145_v40  ;;  %v2062_v50 = vor.u32 %v2140_v36, %v2061_v35  ;;  %v2037_v51 = vld [vmem:[%s3053_s3 + $0x198] sm:$0xf]  ;;  %v2066_v53 = vor.u32 %v2136_v42, %v2063_v43  ;;  %v2129_v56 = vld [vmem:[%s3053_s3 + $0x19c] sm:$0xf]  ;;  %v2029_v58 = vld [vmem:[%s3053_s3 + $0x190] sm:$0xf] }
  0x27   : > { %v2133_v52 = vld [vmem:[%s3053_s3 + $0x1b4] sm:$0xf0]  ;;  %v2039_v57 = vld [vmem:[%s3053_s3 + $0x1b8] sm:$0xf0]  ;;  %v2148_v59 = vunpack.c.l.bf16 %v2158_v46  ;;  %v2149_v60 = vunpack.c.h.bf16 %v2158_v46  ;;  %v2132_v62 = vld [vmem:[%s3053_s3 + $0x1ac] sm:$0xf0] }
  0x28   : > { %823 = vmatpush.bf16.msra.mxu0 %v1854_v18  ;;  %852 = vmatpush.bf16.msra.mxu1 %v1858_v22  ;;  %v395_v54 = vadd.f32 %v2508_v41, %v383_v47  ;;  %v396_v55 = vadd.f32 %v2508_v41, %v384_v48  ;;  %v2038_v61 = vor.u32 %v2133_v52, %v2037_v51  ;;  %v2128_v63 = vld [vmem:[%s3053_s3 + $0x194] sm:$0xf]  ;;  %v2005_v3 = vld [vmem:[%s3053_s3 + $0x158] sm:$0xf]  ;;  %v2121_v10 = vld [vmem:[%s3053_s3 + $0x15c] sm:$0xf] }
  0x29   : > { %881 = vmatpush.bf16.msra.mxu2 %v1862_v23  ;;  %v2031_v0 = vld [vmem:[%s3053_s3 + $0x1b0] sm:$0xf0]  ;;  %v2125_v4 = vld [vmem:[%s3053_s3 + $0x174] sm:$0xf0]  ;;  %v2042_v5 = vor.u32 %v2129_v56, %v2039_v57  ;;  %v2030_v7 = vor.u32 %v2132_v62, %v2029_v58  ;;  %v385_v8 = vmul.f32 %v2479_v28, %v2148_v59  ;;  %v386_v9 = vmul.f32 %v2479_v28, %v2149_v60  ;;  %v2007_v11 = vld [vmem:[%s3053_s3 + $0x178] sm:$0xf0] }
  0x2a   : > { %910 = vmatpush.bf16.msra.mxu3 %v1866_v27  ;;  %v403_v1 = vmax.f32 %v395_v54, 0.0  ;;  %v404_v2 = vmax.f32 %v396_v55, 0.0  ;;  %v2034_v12 = vor.u32 %v2128_v63, %v2031_v0  ;;  %v2006_v13 = vor.u32 %v2125_v4, %v2005_v3  ;;  %v1997_v14 = vld [vmem:[%s3053_s3 + $0x150] sm:$0xf]  ;;  %v2120_v16 = vld [vmem:[%s3053_s3 + $0x154] sm:$0xf] }
  0x2b   : > { %v2124_v15 = vld [vmem:[%s3053_s3 + $0x16c] sm:$0xf0]  ;;  %v1999_v17 = vld [vmem:[%s3053_s3 + $0x170] sm:$0xf0]  ;;  %v1973_v18 = vld [vmem:[%s3053_s3 + $0x118] sm:$0xf]  ;;  %v2010_v20 = vor.u32 %v2121_v10, %v2007_v11  ;;  %v397_v21 = vadd.f32 %v2508_v41, %v385_v8  ;;  %v398_v22 = vadd.f32 %v2508_v41, %v386_v9 }
  0x2c   : > { %824 = vmatpush.bf16.msra.mxu0 %v1822_v33  ;;  %853 = vmatpush.bf16.msra.mxu1 %v1826_v37  ;;  %v2551_v6 = vpack.c.bf16 %v404_v2, %v403_v1  ;;  %v2117_v19 = vld [vmem:[%s3053_s3 + $0x134] sm:$0xf0]  ;;  %v1998_v23 = vor.u32 %v2124_v15, %v1997_v14  ;;  %v2113_v24 = vld [vmem:[%s3053_s3 + $0x11c] sm:$0xf]  ;;  %v2002_v26 = vor.u32 %v2120_v16, %v1999_v17  ;;  %v1965_v29 = vld [vmem:[%s3053_s3 + $0x110] sm:$0xf] }
  0x2d   : > { %882 = vmatpush.bf16.msra.mxu2 %v1830_v38  ;;  %v1975_v25 = vld [vmem:[%s3053_s3 + $0x138] sm:$0xf0]  ;;  %v1974_v27 = vor.u32 %v2117_v19, %v1973_v18  ;;  %v2116_v30 = vld [vmem:[%s3053_s3 + $0x12c] sm:$0xf0]  ;;  %v2112_v31 = vld [vmem:[%s3053_s3 + $0x114] sm:$0xf] }
  0x2e   : > { %911 = vmatpush.bf16.msra.mxu3 %v1834_v44  ;;  %v1967_v32 = vld [vmem:[%s3053_s3 + $0x130] sm:$0xf0]  ;;  %v1941_v33 = vld [vmem:[%s3053_s3 + $0xd8] sm:$0xf]  ;;  %v405_v35 = vmax.f32 %v397_v21, 0.0  ;;  %v406_v36 = vmax.f32 %v398_v22, 0.0  ;;  %v1978_v37 = vor.u32 %v2113_v24, %v1975_v25  ;;  %v1966_v38 = vor.u32 %v2116_v30, %v1965_v29 }
  0x2f   : > { %825 = vmatmul.bf16.vlgmr.msra.gmra.mxu0 %v2551_v6  ;;  %854 = vmatmul.bf16.vlgmr.msra.gmra.mxu1 %v2551_v6  ;;  %v2109_v34 = vld [vmem:[%s3053_s3 + $0xf4] sm:$0xf0]  ;;  %v2105_v39 = vld [vmem:[%s3053_s3 + $0xdc] sm:$0xf]  ;;  %v1970_v42 = vor.u32 %v2112_v31, %v1967_v32  ;;  %v1933_v44 = vld [vmem:[%s3053_s3 + $0xd0] sm:$0xf] }
  0x30   : > { %933 = vmatpush.bf16.msrb.mxu0 %v2062_v50  ;;  %962 = vmatpush.bf16.msrb.mxu1 %v2066_v53  ;;  %v1943_v40 = vld [vmem:[%s3053_s3 + $0xf8] sm:$0xf0]  ;;  %v1942_v43 = vor.u32 %v2109_v34, %v1941_v33  ;;  %v2104_v46 = vld [vmem:[%s3053_s3 + $0xd4] sm:$0xf]  ;;  %v1909_v48 = vld [vmem:[%s3053_s3 + $0x98] sm:$0xf]  ;;  %v2646_v59 = vpack.c.bf16 %v406_v36, %v405_v35 }
  0x31   : > { %991 = vmatpush.bf16.msrb.mxu2 %v2070_v45  ;;  %912 = vmatmul.bf16.vlgmr.msra.gmra.mxu3 %v2551_v6  ;;  %v2108_v45 = vld [vmem:[%s3053_s3 + $0xec] sm:$0xf0]  ;;  %v1935_v47 = vld [vmem:[%s3053_s3 + $0xf0] sm:$0xf0]  ;;  %v1946_v51 = vor.u32 %v2105_v39, %v1943_v40  ;;  %v2097_v53 = vld [vmem:[%s3053_s3 + $0x9c] sm:$0xf] }
  0x32   : > { %1020 = vmatpush.bf16.msrb.mxu3 %v2074_v49  ;;  %883 = vmatmul.bf16.vlgmr.msra.gmra.mxu2 %v2551_v6  ;;  %v2101_v49 = vld [vmem:[%s3053_s3 + $0xb4] sm:$0xf0]  ;;  %v2159_v50 = vld [vmem:[%s2487_s18 + $0x10] sm:$0xff]   ;;  %v1934_v52 = vor.u32 %v2108_v45, %v1933_v44  ;;  %v1938_v54 = vor.u32 %v2104_v46, %v1935_v47  ;;  %v1911_v56 = vld [vmem:[%s3053_s3 + $0xb8] sm:$0xf0]  ;;  %vm1185_vm4 = vcmask 1046534  }
  0x33   : > { %v1910_v55 = vor.u32 %v2101_v49, %v1909_v48  ;;  %v1901_v57 = vld [vmem:[%s3053_s3 + $0x90] sm:$0xf]  ;;  %v2152_v60 = vunpack.c.l.bf16 %v2159_v50  ;;  %v2096_v62 = vld [vmem:[%s3053_s3 + $0x94] sm:$0xf]  ;;  %v1914_v0 = vor.u32 %v2097_v53, %v1911_v56  ;;  %v2089_v8 = vld [vmem:[%s3053_s3 + $0x5c] sm:$0xf] }
  0x34   : > { %934 = vmatpush.bf16.msrb.mxu0 %v2030_v7  ;;  %963 = vmatpush.bf16.msrb.mxu1 %v2034_v12  ;;  %v2100_v58 = vld [vmem:[%s3053_s3 + $0xac] sm:$0xf0]  ;;  %v1903_v63 = vld [vmem:[%s3053_s3 + $0xb0] sm:$0xf0]  ;;  %v2093_v7 = vld [vmem:[%s3053_s3 + $0x74] sm:$0xf0] }
  0x35   : > { %992 = vmatpush.bf16.msrb.mxu2 %v2038_v61  ;;  %v2153_v61 = vunpack.c.h.bf16 %v2159_v50  ;;  %v1902_v1 = vor.u32 %v2100_v58, %v1901_v57  ;;  %v1906_v2 = vor.u32 %v2096_v62, %v1903_v63  ;;  %v387_v3 = vmul.f32 %v2479_v28, %v2152_v60  ;;  %v1879_v10 = vld [vmem:[%s3053_s3 + $0x78] sm:$0xf0]  ;;  %v1869_v11 = vld [vmem:[%s3053_s3 + $0x50] sm:$0xf]  ;;  %v2088_v15 = vld [vmem:[%s3053_s3 + $0x54] sm:$0xf] }
  0x36   : > { %1021 = vmatpush.bf16.msrb.mxu3 %v2042_v5  ;;  %v1877_v5 = vld [vmem:[%s3053_s3 + $0x58] sm:$0xf]  ;;  %v2092_v12 = vld [vmem:[%s3053_s3 + $0x6c] sm:$0xf0]  ;;  %v1871_v16 = vld [vmem:[%s3053_s3 + $0x70] sm:$0xf0] }
  0x37   : > { %v388_v4 = vmul.f32 %v2479_v28, %v2153_v61  ;;  %v1878_v9 = vor.u32 %v2093_v7, %v1877_v5  ;;  %v1870_v14 = vor.u32 %v2092_v12, %v1869_v11  ;;  %v1845_v17 = vld [vmem:[%s3053_s3 + $0x18] sm:$0xf]  ;;  %v399_v18 = vadd.f32 %v2508_v41, %v387_v3  ;;  %v2081_v22 = vld [vmem:[%s3053_s3 + $0x1c] sm:$0xf]  ;;  %v1837_v25 = vld [vmem:[%s3053_s3 + $0x10] sm:$0xf] }
  0x38   : > { %935 = vmatpush.bf16.msrb.mxu0 %v1998_v23  ;;  %964 = vmatpush.bf16.msrb.mxu1 %v2002_v26  ;;  %v2085_v21 = vld [vmem:[%s3053_s3 + $0x34] sm:$0xf0]  ;;  %v1847_v23 = vld [vmem:[%s3053_s3 + $0x38] sm:$0xf0]  ;;  %v2084_v26 = vld [vmem:[%s3053_s3 + $0x2c] sm:$0xf0] }
  0x39   : > { %993 = vmatpush.bf16.msrb.mxu2 %v2006_v13  ;;  %v1882_v13 = vor.u32 %v2089_v8, %v1879_v10  ;;  %v400_v19 = vadd.f32 %v2508_v41, %v388_v4  ;;  %v1846_v24 = vor.u32 %v2085_v21, %v1845_v17  ;;  %v1850_v29 = vor.u32 %v2081_v22, %v1847_v23  ;;  %v1839_v31 = vld [vmem:[%s3053_s3 + $0x30] sm:$0xf0]  ;;  %v2160_v35 = vld [vmem:[%s2487_s18 + $0x18] sm:$0xff]   ;;  %s2998_s11 = sshll.u32 %s3064_s27, 3 }
  0x3a   : > { %1022 = vmatpush.bf16.msrb.mxu3 %v2010_v20  ;;  %v1874_v20 = vor.u32 %v2088_v15, %v1871_v16  ;;  %v1838_v30 = vor.u32 %v2084_v26, %v1837_v25  ;;  %v407_v33 = vmax.f32 %v399_v18, 0.0  ;;  %vm1187_vm5 = vcmask 1045508   ;;  %s358_s27 = scalar_lea.vmem %s3057_s7, %s2998_s11  ;;  %s350_s16 = scalar_lea.vmem %s3055_s5, %s2998_s11 }
  0x3b   : > { %v408_v34 = vmax.f32 %v400_v19, 0.0  ;;  %vm1189_vm6 = vcmask 1043456   ;;  %s354_s20 = scalar_lea.vmem %s3056_s6, %s2998_s11  ;;  %s362_s23 = scalar_lea.vmem %s3058_s8, %s2998_s11 }
  0x3c   : > { %936 = vmatpush.bf16.msrb.mxu0 %v1966_v38  ;;  %965 = vmatpush.bf16.msrb.mxu1 %v1970_v42  ;;  %v2157_v38 = vunpack.c.h.bf16 %v2160_v35 }
  0x3d   : > { %994 = vmatpush.bf16.msrb.mxu2 %v1974_v27  ;;  %v2080_v27 = vld [vmem:[%s3053_s3 + $0x14] sm:$0xf]  ;;  %v413_v36 = vpack.c.bf16 %v408_v34, %v407_v33 }
  0x3e   : > { %1023 = vmatpush.bf16.msrb.mxu3 %v1978_v37  ;;  %v1842_v32 = vor.u32 %v2080_v27, %v1839_v31  ;;  %v2156_v37 = vunpack.c.l.bf16 %v2160_v35  ;;  %v390_v40 = vmul.f32 %v2479_v28, %v2157_v38 }
  0x3f   : > { %830 = vmatmul.bf16.gmra.mxu0 %v2646_v59  ;;  %859 = vmatmul.bf16.gmra.mxu1 %v2646_v59 }
  0x40   : > { %937 = vmatpush.bf16.msrb.mxu0 %v1934_v52  ;;  %966 = vmatpush.bf16.msrb.mxu1 %v1938_v54  ;;  %v389_v39 = vmul.f32 %v2479_v28, %v2156_v37  ;;  %v2726_v28 = vld [vmem:[%s3054_s4] sm:$0xff] }
  0x41   : > { %995 = vmatpush.bf16.msrb.mxu2 %v1942_v43  ;;  %917 = vmatmul.bf16.gmra.mxu3 %v2646_v59  ;;  %v402_v43 = vadd.f32 %v2508_v41, %v390_v40  ;;  %v2729_v47 = vperm.slane %v2726_v28, 0  ;;  %v2732_v48 = vperm.slane %v2726_v28, 1  ;;  %v2740_v56 = vperm.slane %v2726_v28, 3 }
  0x42   : > { %1024 = vmatpush.bf16.msrb.mxu3 %v1946_v51  ;;  %888 = vmatmul.bf16.gmra.mxu2 %v2646_v59  ;;  %v401_v42 = vadd.f32 %v2508_v41, %v389_v39 }
  0x43   : > { %v410_v45 = vmax.f32 %v402_v43, 0.0 }
  0x44   : > { %938 = vmatpush.bf16.msrb.mxu0 %v1902_v1  ;;  %967 = vmatpush.bf16.msrb.mxu1 %v1906_v2  ;;  %v409_v44 = vmax.f32 %v401_v42, 0.0 }
  0x45   : > { %996 = vmatpush.bf16.msrb.mxu2 %v1910_v55  ;;  %v2737_v55 = vperm.slane %v2726_v28, 2 }
  0x46   : > { %1025 = vmatpush.bf16.msrb.mxu3 %v1914_v0  ;;  %v414_v46 = vpack.c.bf16 %v410_v45, %v409_v44 }
  0x48   : > { %939 = vmatpush.bf16.msrb.mxu0 %v1870_v14  ;;  %968 = vmatpush.bf16.msrb.mxu1 %v1874_v20 }
  0x49   : > { %997 = vmatpush.bf16.msrb.mxu2 %v1878_v9 }
  0x4a   : > { %1026 = vmatpush.bf16.msrb.mxu3 %v1882_v13 }
  0x4c   : > { %940 = vmatpush.bf16.msrb.mxu0 %v1838_v30  ;;  %969 = vmatpush.bf16.msrb.mxu1 %v1842_v32 }
  0x4d   : > { %998 = vmatpush.bf16.msrb.mxu2 %v1846_v24 }
  0x4e   : > { %1027 = vmatpush.bf16.msrb.mxu3 %v1850_v29 }
  0x4f   : > { %835 = vmatmul.bf16.gmra.mxu0 %v413_v36  ;;  %864 = vmatmul.bf16.gmra.mxu1 %v413_v36 }
  0x51   : > { %922 = vmatmul.bf16.gmra.mxu3 %v413_v36 }
  0x52   : > { %893 = vmatmul.bf16.gmra.mxu2 %v413_v36 }
  0x5f   : > { %840 = vmatmul.bf16.gmra.mxu0 %v414_v46  ;;  %869 = vmatmul.bf16.gmra.mxu1 %v414_v46 }
  0x61   : > { %927 = vmatmul.bf16.gmra.mxu3 %v414_v46 }
  0x62   : > { %898 = vmatmul.bf16.gmra.mxu2 %v414_v46 }
  0x6f   : > { %941 = vmatmul.bf16.vlgmr.msrb.gmra.mxu0 %v2551_v6  ;;  %970 = vmatmul.bf16.vlgmr.msrb.gmra.mxu1 %v2551_v6 }
  0x71   : > { %1028 = vmatmul.bf16.vlgmr.msrb.gmra.mxu3 %v2551_v6 }
  0x72   : > { %999 = vmatmul.bf16.vlgmr.msrb.gmra.mxu2 %v2551_v6 }
  0x7f   : > { %946 = vmatmul.bf16.gmra.mxu0 %v2646_v59  ;;  %975 = vmatmul.bf16.gmra.mxu1 %v2646_v59 }
  0x81   : > { %1033 = vmatmul.bf16.gmra.mxu3 %v2646_v59 }
  0x82   : > { %1004 = vmatmul.bf16.gmra.mxu2 %v2646_v59 }
  0x8f   : > { %951 = vmatmul.bf16.gmra.mxu0 %v413_v36  ;;  %980 = vmatmul.bf16.gmra.mxu1 %v413_v36 }
  0x91   : > { %1038 = vmatmul.bf16.gmra.mxu3 %v413_v36 }
  0x92   : > { %1009 = vmatmul.bf16.gmra.mxu2 %v413_v36 }
  0x9f   : > { %956 = vmatmul.bf16.gmra.mxu0 %v414_v46  ;;  %985 = vmatmul.bf16.gmra.mxu1 %v414_v46 }
  0xa1   : > { %1043 = vmatmul.bf16.gmra.mxu3 %v414_v46 }
  0xa2   : > { %1014 = vmatmul.bf16.gmra.mxu2 %v414_v46 }
  0xac   : > { %v826_v41 = vpop.f32.mrf.mxu0  ;;  %v855_v6 = vpop.f32.mrf.mxu1 }
  0xad   : > { %v827_v49 = vadd.f32 %v826_v41, %v2729_v47  ;;  %v856_v50 = vadd.f32 %v855_v6, %v2732_v48 }
  0xaf   : > { %v1195_v59 = vmul.f32 %v827_v49, %v827_v49  ;;  %v1196_v60 = vmul.f32 %v856_v50, %v856_v50 }
  0xb4   : > { %v913_v52 = vpop.f32.mrf.mxu3  ;;  %v828_v53 = vpop.f32.mrf.mxu0 }
  0xb5   : > { %v884_v51 = vpop.f32.mrf.mxu2  ;;  %v857_v54 = vpop.f32.mrf.mxu1  ;;  %v829_v57 = vadd.f32 %v828_v53, %v2729_v47  ;;  %v914_v7 = vadd.f32 %v913_v52, %v2740_v56 }
  0xb6   : > { %v858_v58 = vadd.f32 %v857_v54, %v2732_v48  ;;  %v885_v5 = vadd.f32 %v884_v51, %v2737_v55 }
  0xb7   : > { %v1058_v61 = vadd.f32 %v829_v57, %v827_v49  ;;  %v1203_v62 = vmul.f32 %v829_v57, %v829_v57  ;;  %v1389_v63 = vmax.f32 %v827_v49, %v829_v57  ;;  %v1519_v0 = vmin.f32 %v827_v49, %v829_v57 }
  0xb8   : > { %v1071_v1 = vadd.f32 %v858_v58, %v856_v50  ;;  %v1204_v2 = vmul.f32 %v858_v58, %v858_v58  ;;  %v1402_v3 = vmax.f32 %v856_v50, %v858_v58  ;;  %v1532_v4 = vmin.f32 %v856_v50, %v858_v58 }
  0xb9   : > { %v1259_v8 = vadd.f32 %v1203_v62, %v1195_v59  ;;  %v1197_v16 = vmul.f32 %v885_v5, %v885_v5  ;;  %v1198_v17 = vmul.f32 %v914_v7, %v914_v7 }
  0xba   : > { %v1272_v9 = vadd.f32 %v1204_v2, %v1196_v60 }
  0xbc   : > { %v915_v11 = vpop.f32.mrf.mxu3  ;;  %v831_v14 = vpop.f32.mrf.mxu0 }
  0xbd   : > { %v886_v10 = vpop.f32.mrf.mxu2  ;;  %v916_v13 = vadd.f32 %v915_v11, %v2740_v56  ;;  %v860_v15 = vpop.f32.mrf.mxu1  ;;  %v832_v18 = vadd.f32 %v831_v14, %v2729_v47 }
  0xbe   : > { %v887_v12 = vadd.f32 %v886_v10, %v2737_v55  ;;  %v861_v19 = vadd.f32 %v860_v15, %v2732_v48 }
  0xbf   : > { %v1097_v24 = vadd.f32 %v916_v13, %v914_v7  ;;  %v1206_v25 = vmul.f32 %v916_v13, %v916_v13  ;;  %v1428_v26 = vmax.f32 %v914_v7, %v916_v13  ;;  %v1558_v27 = vmin.f32 %v914_v7, %v916_v13 }
  0xc0   : > { %v1084_v20 = vadd.f32 %v887_v12, %v885_v5  ;;  %v1205_v21 = vmul.f32 %v887_v12, %v887_v12  ;;  %v1415_v22 = vmax.f32 %v885_v5, %v887_v12  ;;  %v1545_v23 = vmin.f32 %v885_v5, %v887_v12 }
  0xc1   : > { %v1059_v30 = vadd.f32 %v1058_v61, %v832_v18  ;;  %v1211_v31 = vmul.f32 %v832_v18, %v832_v18  ;;  %v1390_v32 = vmax.f32 %v1389_v63, %v832_v18  ;;  %v1298_v33 = vadd.f32 %v1206_v25, %v1198_v17 }
  0xc2   : > { %v1285_v29 = vadd.f32 %v1205_v21, %v1197_v16  ;;  %v1520_v34 = vmin.f32 %v1519_v0, %v832_v18  ;;  %v1072_v35 = vadd.f32 %v1071_v1, %v861_v19  ;;  %v1212_v36 = vmul.f32 %v861_v19, %v861_v19 }
  0xc3   : > { %v1260_v37 = vadd.f32 %v1259_v8, %v1211_v31  ;;  %v1403_v38 = vmax.f32 %v1402_v3, %v861_v19  ;;  %v1533_v39 = vmin.f32 %v1532_v4, %v861_v19 }
  0xc4   : > { %v1273_v40 = vadd.f32 %v1272_v9, %v1212_v36  ;;  %v918_v43 = vpop.f32.mrf.mxu3  ;;  %v833_v46 = vpop.f32.mrf.mxu0 }
  0xc5   : > { %v889_v42 = vpop.f32.mrf.mxu2  ;;  %v919_v45 = vadd.f32 %v918_v43, %v2740_v56  ;;  %v862_v41 = vpop.f32.mrf.mxu1  ;;  %v834_v6 = vadd.f32 %v833_v46, %v2729_v47 }
  0xc6   : > { %v890_v44 = vadd.f32 %v889_v42, %v2737_v55  ;;  %v863_v49 = vadd.f32 %v862_v41, %v2732_v48 }
  0xc7   : > { %v1098_v54 = vadd.f32 %v1097_v24, %v919_v45  ;;  %v1214_v57 = vmul.f32 %v919_v45, %v919_v45  ;;  %v1429_v58 = vmax.f32 %v1428_v26, %v919_v45  ;;  %v1559_v59 = vmin.f32 %v1558_v27, %v919_v45 }
  0xc8   : > { %v1085_v50 = vadd.f32 %v1084_v20, %v890_v44  ;;  %v1213_v51 = vmul.f32 %v890_v44, %v890_v44  ;;  %v1416_v52 = vmax.f32 %v1415_v22, %v890_v44  ;;  %v1546_v53 = vmin.f32 %v1545_v23, %v890_v44 }
  0xc9   : > { %v1060_v61 = vadd.f32 %v1059_v30, %v834_v6  ;;  %v1219_v62 = vmul.f32 %v834_v6, %v834_v6  ;;  %v1391_v63 = vmax.f32 %v1390_v32, %v834_v6  ;;  %v1299_v0 = vadd.f32 %v1298_v33, %v1214_v57 }
  0xca   : > { %v1286_v60 = vadd.f32 %v1285_v29, %v1213_v51  ;;  %v1521_v1 = vmin.f32 %v1520_v34, %v834_v6  ;;  %v1073_v2 = vadd.f32 %v1072_v35, %v863_v49  ;;  %v1220_v3 = vmul.f32 %v863_v49, %v863_v49 }
  0xcb   : > { %v1261_v4 = vadd.f32 %v1260_v37, %v1219_v62  ;;  %v1404_v5 = vmax.f32 %v1403_v38, %v863_v49  ;;  %v1534_v7 = vmin.f32 %v1533_v39, %v863_v49 }
  0xcc   : > { %v1274_v8 = vadd.f32 %v1273_v40, %v1220_v3  ;;  %v920_v10 = vpop.f32.mrf.mxu3  ;;  %v836_v13 = vpop.f32.mrf.mxu0 }
  0xcd   : > { %v891_v9 = vpop.f32.mrf.mxu2  ;;  %v921_v12 = vadd.f32 %v920_v10, %v2740_v56  ;;  %v865_v14 = vpop.f32.mrf.mxu1  ;;  %v837_v15 = vadd.f32 %v836_v13, %v2729_v47 }
  0xce   : > { %v892_v11 = vadd.f32 %v891_v9, %v2737_v55  ;;  %v866_v16 = vadd.f32 %v865_v14, %v2732_v48 }
  0xcf   : > { %v1099_v21 = vadd.f32 %v1098_v54, %v921_v12  ;;  %v1222_v22 = vmul.f32 %v921_v12, %v921_v12  ;;  %v1430_v23 = vmax.f32 %v1429_v58, %v921_v12  ;;  %v1560_v24 = vmin.f32 %v1559_v59, %v921_v12 }
  0xd0   : > { %v1086_v17 = vadd.f32 %v1085_v50, %v892_v11  ;;  %v1221_v18 = vmul.f32 %v892_v11, %v892_v11  ;;  %v1417_v19 = vmax.f32 %v1416_v52, %v892_v11  ;;  %v1547_v20 = vmin.f32 %v1546_v53, %v892_v11 }
  0xd1   : > { %v1061_v26 = vadd.f32 %v1060_v61, %v837_v15  ;;  %v1227_v27 = vmul.f32 %v837_v15, %v837_v15  ;;  %v1392_v29 = vmax.f32 %v1391_v63, %v837_v15  ;;  %v1300_v30 = vadd.f32 %v1299_v0, %v1222_v22 }
  0xd2   : > { %v1287_v25 = vadd.f32 %v1286_v60, %v1221_v18  ;;  %v1522_v31 = vmin.f32 %v1521_v1, %v837_v15  ;;  %v1074_v32 = vadd.f32 %v1073_v2, %v866_v16  ;;  %v1228_v33 = vmul.f32 %v866_v16, %v866_v16 }
  0xd3   : > { %v1262_v34 = vadd.f32 %v1261_v4, %v1227_v27  ;;  %v1405_v35 = vmax.f32 %v1404_v5, %v866_v16  ;;  %v1535_v36 = vmin.f32 %v1534_v7, %v866_v16 }
  0xd4   : > { %v1275_v37 = vadd.f32 %v1274_v8, %v1228_v33  ;;  %v923_v39 = vpop.f32.mrf.mxu3  ;;  %v838_v43 = vpop.f32.mrf.mxu0 }
  0xd5   : > { %v894_v38 = vpop.f32.mrf.mxu2  ;;  %v924_v42 = vadd.f32 %v923_v39, %v2740_v56  ;;  %v867_v44 = vpop.f32.mrf.mxu1  ;;  %v839_v45 = vadd.f32 %v838_v43, %v2729_v47 }
  0xd6   : > { %v895_v40 = vadd.f32 %v894_v38, %v2737_v55  ;;  %v868_v46 = vadd.f32 %v867_v44, %v2732_v48 }
  0xd7   : > { %v1100_v51 = vadd.f32 %v1099_v21, %v924_v42  ;;  %v1230_v52 = vmul.f32 %v924_v42, %v924_v42  ;;  %v1431_v53 = vmax.f32 %v1430_v23, %v924_v42  ;;  %v1561_v54 = vmin.f32 %v1560_v24, %v924_v42 }
  0xd8   : > { %v1087_v41 = vadd.f32 %v1086_v17, %v895_v40  ;;  %v1229_v6 = vmul.f32 %v895_v40, %v895_v40  ;;  %v1418_v49 = vmax.f32 %v1417_v19, %v895_v40  ;;  %v1548_v50 = vmin.f32 %v1547_v20, %v895_v40 }
  0xd9   : > { %v1062_v58 = vadd.f32 %v1061_v26, %v839_v45  ;;  %v1235_v59 = vmul.f32 %v839_v45, %v839_v45  ;;  %v1393_v60 = vmax.f32 %v1392_v29, %v839_v45  ;;  %v1301_v61 = vadd.f32 %v1300_v30, %v1230_v52 }
  0xda   : > { %v1288_v57 = vadd.f32 %v1287_v25, %v1229_v6  ;;  %v1523_v62 = vmin.f32 %v1522_v31, %v839_v45  ;;  %v1075_v63 = vadd.f32 %v1074_v32, %v868_v46  ;;  %v1236_v0 = vmul.f32 %v868_v46, %v868_v46 }
  0xdb   : > { %v1263_v1 = vadd.f32 %v1262_v34, %v1235_v59  ;;  %v1406_v2 = vmax.f32 %v1405_v35, %v868_v46  ;;  %v1536_v3 = vmin.f32 %v1535_v36, %v868_v46 }
  0xdc   : > { %v1276_v4 = vadd.f32 %v1275_v37, %v1236_v0  ;;  %v925_v7 = vpop.f32.mrf.mxu3  ;;  %v841_v10 = vpop.f32.mrf.mxu0 }
  0xdd   : > { %v896_v5 = vpop.f32.mrf.mxu2  ;;  %v926_v9 = vadd.f32 %v925_v7, %v2740_v56  ;;  %v870_v11 = vpop.f32.mrf.mxu1  ;;  %v842_v12 = vadd.f32 %v841_v10, %v2729_v47 }
  0xde   : > { %v897_v8 = vadd.f32 %v896_v5, %v2737_v55  ;;  %v871_v13 = vadd.f32 %v870_v11, %v2732_v48 }
  0xdf   : > { %v1101_v18 = vadd.f32 %v1100_v51, %v926_v9  ;;  %v1238_v19 = vmul.f32 %v926_v9, %v926_v9  ;;  %v1432_v20 = vmax.f32 %v1431_v53, %v926_v9  ;;  %v1562_v21 = vmin.f32 %v1561_v54, %v926_v9 }
  0xe0   : > { %v1088_v14 = vadd.f32 %v1087_v41, %v897_v8  ;;  %v1237_v15 = vmul.f32 %v897_v8, %v897_v8  ;;  %v1419_v16 = vmax.f32 %v1418_v49, %v897_v8  ;;  %v1549_v17 = vmin.f32 %v1548_v50, %v897_v8 }
  0xe1   : > { %v1063_v23 = vadd.f32 %v1062_v58, %v842_v12  ;;  %v1243_v24 = vmul.f32 %v842_v12, %v842_v12  ;;  %v1394_v25 = vmax.f32 %v1393_v60, %v842_v12  ;;  %v1302_v26 = vadd.f32 %v1301_v61, %v1238_v19 }
  0xe2   : > { %v1289_v22 = vadd.f32 %v1288_v57, %v1237_v15  ;;  %v1524_v27 = vmin.f32 %v1523_v62, %v842_v12  ;;  %v1076_v29 = vadd.f32 %v1075_v63, %v871_v13  ;;  %v1244_v30 = vmul.f32 %v871_v13, %v871_v13 }
  0xe3   : > { %v1264_v31 = vadd.f32 %v1263_v1, %v1243_v24  ;;  %v1407_v32 = vmax.f32 %v1406_v2, %v871_v13  ;;  %v1537_v33 = vmin.f32 %v1536_v3, %v871_v13 }
  0xe4   : > { %v1277_v34 = vadd.f32 %v1276_v4, %v1244_v30  ;;  %v928_v36 = vpop.f32.mrf.mxu3  ;;  %v843_v39 = vpop.f32.mrf.mxu0 }
  0xe5   : > { %v899_v35 = vpop.f32.mrf.mxu2  ;;  %v929_v38 = vadd.f32 %v928_v36, %v2740_v56  ;;  %v872_v40 = vpop.f32.mrf.mxu1  ;;  %v844_v42 = vadd.f32 %v843_v39, %v2729_v47 }
  0xe6   : > { %v900_v37 = vadd.f32 %v899_v35, %v2737_v55  ;;  %v873_v43 = vadd.f32 %v872_v40, %v2732_v48 }
  0xe7   : > { %v2776_v6 = vadd.f32 %v1101_v18, %v929_v38  ;;  %v1246_v49 = vmul.f32 %v929_v38, %v929_v38  ;;  %v2778_v50 = vmax.f32 %v1432_v20, %v929_v38  ;;  %v2780_v51 = vmin.f32 %v1562_v21, %v929_v38 }
  0xe8   : > { %v2770_v44 = vadd.f32 %v1088_v14, %v900_v37  ;;  %v1245_v45 = vmul.f32 %v900_v37, %v900_v37  ;;  %v2772_v46 = vmax.f32 %v1419_v16, %v900_v37  ;;  %v2774_v41 = vmin.f32 %v1549_v17, %v900_v37 }
  0xe9   : > { %v1064_v53 = vadd.f32 %v1063_v23, %v844_v42  ;;  %v1251_v47 = vmul.f32 %v844_v42, %v844_v42  ;;  %v1395_v54 = vmax.f32 %v1394_v25, %v844_v42  ;;  %v2784_v48 = vadd.f32 %v1302_v26, %v1246_v49 }
  0xea   : > { %v2782_v52 = vadd.f32 %v1289_v22, %v1245_v45  ;;  %v1525_v57 = vmin.f32 %v1524_v27, %v844_v42  ;;  %v1077_v58 = vadd.f32 %v1076_v29, %v873_v43  ;;  %v1252_v59 = vmul.f32 %v873_v43, %v873_v43 }
  0xeb   : > { %v1065_v60 = vrot.slane %v1064_v53, 4  ;;  %v1265_v61 = vadd.f32 %v1264_v31, %v1251_v47  ;;  %v1396_v62 = vrot.slane %v1395_v54, 4  ;;  %v1408_v63 = vmax.f32 %v1407_v32, %v873_v43 }
  0xec   : > { %v1526_v0 = vrot.slane %v1525_v57, 4  ;;  %v1078_v1 = vrot.slane %v1077_v58, 4  ;;  %v1278_v2 = vadd.f32 %v1277_v34, %v1252_v59  ;;  %v1538_v3 = vmin.f32 %v1537_v33, %v873_v43  ;;  %v930_v5 = vpop.f32.mrf.mxu3  ;;  %v2786_v11 = vpop.f32.mrf.mxu0 }
  0xed   : > { %v901_v4 = vpop.f32.mrf.mxu2  ;;  %v1066_v7 = vadd.f32 %v1065_v60, %v1064_v53  ;;  %v1266_v8 = vrot.slane %v1265_v61, 4  ;;  %v1397_v9 = vmax.f32 %v1395_v54, %v1396_v62  ;;  %v1409_v10 = vrot.slane %v1408_v63, 4  ;;  %v2788_v12 = vpop.f32.mrf.mxu1 }
  0xee   : > { %v1527_v13 = vmin.f32 %v1525_v57, %v1526_v0  ;;  %v1079_v14 = vadd.f32 %v1078_v1, %v1077_v58  ;;  %v1279_v15 = vrot.slane %v1278_v2, 4  ;;  %v1539_v16 = vrot.slane %v1538_v3, 4 }
  0xef   : > { %v1067_v17 = vrot.slane %v1066_v7, 2  ;;  %v1267_v18 = vadd.f32 %v1266_v8, %v1265_v61  ;;  %v1398_v19 = vrot.slane %v1397_v9, 2  ;;  %v1410_v20 = vmax.f32 %v1408_v63, %v1409_v10 }
  0xf0   : > { %v1528_v21 = vrot.slane %v1527_v13, 2  ;;  %v1080_v22 = vrot.slane %v1079_v14, 2  ;;  %v1280_v23 = vadd.f32 %v1279_v15, %v1278_v2  ;;  %v1540_v24 = vmin.f32 %v1538_v3, %v1539_v16 }
  0xf1   : > { %v1068_v25 = vadd.f32 %v1067_v17, %v1066_v7  ;;  %v1268_v26 = vrot.slane %v1267_v18, 2  ;;  %v1399_v27 = vmax.f32 %v1397_v9, %v1398_v19  ;;  %v1411_v29 = vrot.slane %v1410_v20, 2 }
  0xf2   : > { %v1529_v30 = vmin.f32 %v1527_v13, %v1528_v21  ;;  %v1081_v31 = vadd.f32 %v1080_v22, %v1079_v14  ;;  %v1281_v32 = vrot.slane %v1280_v23, 2  ;;  %v1541_v33 = vrot.slane %v1540_v24, 2 }
  0xf3   : > { %v1069_v34 = vrot.slane %v1068_v25, 1  ;;  %v1269_v35 = vadd.f32 %v1268_v26, %v1267_v18  ;;  %v1400_v36 = vrot.slane %v1399_v27, 1  ;;  %v1412_v37 = vmax.f32 %v1410_v20, %v1411_v29 }
  0xf4   : > { %v1530_v38 = vrot.slane %v1529_v30, 1  ;;  %v1082_v39 = vrot.slane %v1081_v31, 1  ;;  %v1282_v40 = vadd.f32 %v1281_v32, %v1280_v23  ;;  %v1542_v42 = vmin.f32 %v1540_v24, %v1541_v33  ;;  %v2792_v45 = vpop.f32.mrf.mxu3  ;;  %v2794_v54 = vpop.f32.mrf.mxu0 }
  0xf5   : > { %v2790_v43 = vpop.f32.mrf.mxu2  ;;  %v1070_v49 = vadd.f32 %v1069_v34, %v1068_v25  ;;  %v1270_v53 = vrot.slane %v1269_v35, 1  ;;  %v1413_v47 = vrot.slane %v1412_v37, 1  ;;  %v2796_v57 = vpop.f32.mrf.mxu1  ;;  %v1401_v58 = vmax.f32 %v1399_v27, %v1400_v36 }
  0xf6   : > { %v1083_v59 = vadd.f32 %v1082_v39, %v1081_v31  ;;  %v1283_v60 = vrot.slane %v1282_v40, 1  ;;  %v1543_v61 = vrot.slane %v1542_v42, 1  ;;  %v1531_v63 = vmin.f32 %v1529_v30, %v1530_v38 }
  0xf7   : > { %v1271_v62 = vadd.f32 %v1270_v53, %v1269_v35  ;;  %v1414_v0 = vmax.f32 %v1412_v37, %v1413_v47  ;;  %v902_v1 = vadd.f32 %v901_v4, %v2737_v55  ;;  %v931_v8 = vadd.f32 %v930_v5, %v2740_v56 }
  0xf8   : > { %v1170_v2 = vrot.slane %v1083_v59, 7  ;;  %v1284_v3 = vadd.f32 %v1283_v60, %v1282_v40  ;;  %v1544_v7 = vmin.f32 %v1542_v42, %v1543_v61 }
  0xf9   : > { %v1501_v9 = vrot.slane %v1414_v0, 7  ;;  %v1090_v10 = vadd.f32 %v2770_v44, %v902_v1  ;;  %v1253_v13 = vmul.f32 %v902_v1, %v902_v1  ;;  %v1421_v14 = vmax.f32 %v2772_v46, %v902_v1 }
  0xfa   : > { %v2803_v15 = vsel %vm1177_vm0, %v1070_v49, %v1170_v2  ;;  %v1371_v16 = vrot.slane %v1284_v3, 7  ;;  %v1631_v17 = vrot.slane %v1544_v7, 7  ;;  %v1551_v18 = vmin.f32 %v2774_v41, %v902_v1 }
  0xfb   : > { %v2807_v55 = vsel %vm1177_vm0, %v1401_v58, %v1501_v9  ;;  %v1091_v4 = vrot.slane %v1090_v10, 4  ;;  %v1291_v19 = vadd.f32 %v2782_v52, %v1253_v13  ;;  %v1422_v56 = vrot.slane %v1421_v14, 4 }
  0xfc   : > { %v2811_v5 = vsel %vm1177_vm0, %v1271_v62, %v1371_v16  ;;  %v2814_v44 = vsel %vm1177_vm0, %v1531_v63, %v1631_v17  ;;  %v1552_v46 = vrot.slane %v1551_v18, 4  ;;  %v1103_v20 = vadd.f32 %v2776_v6, %v931_v8  ;;  %v2817_v41 = vpop.f32.mrf.mxu0  ;;  %v2825_v6 = vpop.f32.mrf.mxu3 }
  0xfd   : > { %v1092_v21 = vadd.f32 %v1091_v4, %v1090_v10  ;;  %v1292_v22 = vrot.slane %v1291_v19, 4  ;;  %v1423_v23 = vmax.f32 %v1421_v14, %v1422_v56  ;;  %v2819_v24 = vpop.f32.mrf.mxu1  ;;  %v1254_v52 = vmul.f32 %v931_v8, %v931_v8  ;;  %v2822_v29 = vpop.f32.mrf.mxu2 }
  0xfe   : > { %v1553_v25 = vmin.f32 %v1551_v18, %v1552_v46  ;;  %v1104_v26 = vrot.slane %v1103_v20, 4  ;;  %v1434_v27 = vmax.f32 %v2778_v50, %v931_v8  ;;  %v1564_v33 = vmin.f32 %v2780_v51, %v931_v8 }
  0xff   : > { %v1093_v30 = vrot.slane %v1092_v21, 2  ;;  %v1293_v31 = vadd.f32 %v1292_v22, %v1291_v19  ;;  %v1424_v32 = vrot.slane %v1423_v23, 2  ;;  %v1304_v36 = vadd.f32 %v2784_v48, %v1254_v52 }
 0x100   : > { %v1554_v34 = vrot.slane %v1553_v25, 2  ;;  %v1105_v35 = vadd.f32 %v1104_v26, %v1103_v20  ;;  %v1435_v37 = vrot.slane %v1434_v27, 4  ;;  %v1565_v42 = vrot.slane %v1564_v33, 4 }
 0x101   : > { %v1094_v38 = vadd.f32 %v1093_v30, %v1092_v21  ;;  %v1294_v39 = vrot.slane %v1293_v31, 2  ;;  %v1425_v40 = vmax.f32 %v1423_v23, %v1424_v32  ;;  %v1305_v53 = vrot.slane %v1304_v36, 4 }
 0x102   : > { %v1555_v49 = vmin.f32 %v1553_v25, %v1554_v34  ;;  %v1106_v50 = vrot.slane %v1105_v35, 2  ;;  %v1436_v47 = vmax.f32 %v1434_v27, %v1435_v37  ;;  %v1566_v61 = vmin.f32 %v1564_v33, %v1565_v42 }
 0x103   : > { %v1095_v58 = vrot.slane %v1094_v38, 1  ;;  %v1295_v59 = vadd.f32 %v1294_v39, %v1293_v31  ;;  %v1426_v60 = vrot.slane %v1425_v40, 1  ;;  %v1306_v63 = vadd.f32 %v1305_v53, %v1304_v36 }
 0x104   : > { %v1556_v51 = vrot.slane %v1555_v49, 1  ;;  %v1107_v62 = vadd.f32 %v1106_v50, %v1105_v35  ;;  %v1437_v0 = vrot.slane %v1436_v47, 2  ;;  %v1567_v48 = vrot.slane %v1566_v61, 2  ;;  %v2828_v3 = vpop.f32.mrf.mxu0  ;;  %v1034_v21 = vpop.f32.mrf.mxu3 }
 0x105   : > { %v1096_v1 = vadd.f32 %v1095_v58, %v1094_v38  ;;  %v1296_v2 = vrot.slane %v1295_v59, 1  ;;  %v1427_v7 = vmax.f32 %v1425_v40, %v1426_v60  ;;  %v1307_v9 = vrot.slane %v1306_v63, 2  ;;  %v2830_v13 = vpop.f32.mrf.mxu1  ;;  %v1005_v46 = vpop.f32.mrf.mxu2 }
 0x106   : > { %v1108_v8 = vrot.slane %v1107_v62, 1  ;;  %v1438_v10 = vmax.f32 %v1436_v47, %v1437_v0  ;;  %v1557_v16 = vmin.f32 %v1555_v49, %v1556_v51  ;;  %v1568_v17 = vmin.f32 %v1566_v61, %v1567_v48 }
 0x107   : > { %v1297_v14 = vadd.f32 %v1296_v2, %v1295_v59  ;;  %v1171_v18 = vrot.slane %v1096_v1, 6  ;;  %v1308_v19 = vadd.f32 %v1307_v9, %v1306_v63  ;;  %v1502_v22 = vrot.slane %v1427_v7, 6 }
 0x108   : > { %v1109_v4 = vadd.f32 %v1108_v8, %v1107_v62  ;;  %v1439_v56 = vrot.slane %v1438_v10, 1  ;;  %v1569_v20 = vrot.slane %v1568_v17, 1  ;;  %v1632_v27 = vrot.slane %v1557_v16, 6 }
 0x109   : > { %v1309_v25 = vrot.slane %v1308_v19, 1  ;;  %v1372_v52 = vrot.slane %v1297_v14, 6  ;;  %v2833_v31 = vperm.slane %v2726_v28, 4  ;;  %v2837_v35 = vperm.slane %v2726_v28, 5 }
 0x10a   : > { %v1172_v23 = vrot.slane %v1109_v4, 5  ;;  %v1440_v26 = vmax.f32 %v1438_v10, %v1439_v56  ;;  %v1570_v30 = vmin.f32 %v1568_v17, %v1569_v20  ;;  %v2844_v38 = vperm.slane %v2726_v28, 6 }
 0x10b   : > { %v1310_v33 = vadd.f32 %v1309_v25, %v1308_v19  ;;  %v2847_v39 = vperm.slane %v2726_v28, 7  ;;  %v945_v49 = vadd.f32 %v2794_v54, %v2833_v31  ;;  %v943_v53 = vadd.f32 %v2786_v11, %v2833_v31 }
 0x10c   : > { %v1180_v32 = vsel %vm1179_vm1, %v1171_v18, %v1172_v23  ;;  %v1503_v34 = vrot.slane %v1440_v26, 5  ;;  %v1633_v37 = vrot.slane %v1570_v30, 5  ;;  %v2859_v47 = vpop.f32.mrf.mxu0  ;;  %v972_v54 = vadd.f32 %v2788_v12, %v2837_v35  ;;  %v1036_v62 = vpop.f32.mrf.mxu3 }
 0x10d   : > { %v2841_v36 = vsel %vm1181_vm2, %v2803_v15, %v1180_v32  ;;  %v1373_v40 = vrot.slane %v1310_v33, 5  ;;  %v2870_v59 = vpop.f32.mrf.mxu1  ;;  %v1001_v11 = vadd.f32 %v2790_v43, %v2844_v38  ;;  %v1030_v61 = vadd.f32 %v2792_v45, %v2847_v39  ;;  %v1007_v51 = vpop.f32.mrf.mxu2 }
 0x10e   : > { %v1509_v42 = vsel %vm1179_vm1, %v1502_v22, %v1503_v34  ;;  %v1639_v15 = vsel %vm1179_vm1, %v1632_v27, %v1633_v37  ;;  %v1003_v12 = vadd.f32 %v2822_v29, %v2844_v38  ;;  %v1199_v63 = vmul.f32 %v943_v53, %v943_v53 }
 0x10f   : > { %v2854_v50 = vsel %vm1181_vm2, %v2807_v55, %v1509_v42  ;;  %v1379_v28 = vsel %vm1179_vm1, %v1372_v52, %v1373_v40  ;;  %v2864_v58 = vsel %vm1181_vm2, %v2814_v44, %v1639_v15  ;;  %v974_v55 = vadd.f32 %v2796_v57, %v2837_v35 }
 0x110   : > { %v2874_v60 = vsel %vm1181_vm2, %v2811_v5, %v1379_v28  ;;  %v1207_v44 = vmul.f32 %v945_v49, %v945_v49  ;;  %v1032_v57 = vadd.f32 %v2825_v6, %v2847_v39  ;;  %v1200_v0 = vmul.f32 %v972_v54, %v972_v54 }
 0x111   : > { %v1208_v1 = vmul.f32 %v974_v55, %v974_v55  ;;  %v948_v5 = vadd.f32 %v2817_v41, %v2833_v31  ;;  %v1201_v2 = vmul.f32 %v1001_v11, %v1001_v11  ;;  %v1202_v43 = vmul.f32 %v1030_v61, %v1030_v61 }
 0x112   : > { %v1110_v48 = vadd.f32 %v945_v49, %v943_v53  ;;  %v1441_v7 = vmax.f32 %v943_v53, %v945_v49  ;;  %v1311_v45 = vadd.f32 %v1207_v44, %v1199_v63  ;;  %v1571_v8 = vmin.f32 %v943_v53, %v945_v49 }
 0x113   : > { %v1123_v9 = vadd.f32 %v974_v55, %v972_v54  ;;  %v977_v29 = vadd.f32 %v2819_v24, %v2837_v35  ;;  %v1454_v10 = vmax.f32 %v972_v54, %v974_v55  ;;  %v1584_v14 = vmin.f32 %v972_v54, %v974_v55 }
 0x114   : > { %v1209_v6 = vmul.f32 %v1003_v12, %v1003_v12  ;;  %v1210_v16 = vmul.f32 %v1032_v57, %v1032_v57  ;;  %v1324_v17 = vadd.f32 %v1208_v1, %v1200_v0  ;;  %v1215_v18 = vmul.f32 %v948_v5, %v948_v5  ;;  %v954_v23 = vpop.f32.mrf.mxu0  ;;  %v1039_v28 = vpop.f32.mrf.mxu3 }
 0x115   : > { %v1006_v4 = vadd.f32 %v1005_v46, %v2844_v38  ;;  %v1035_v41 = vadd.f32 %v1034_v21, %v2847_v39  ;;  %v1136_v19 = vadd.f32 %v1003_v12, %v1001_v11  ;;  %v1467_v56 = vmax.f32 %v1001_v11, %v1003_v12  ;;  %v983_v27 = vpop.f32.mrf.mxu1  ;;  %v1010_v42 = vpop.f32.mrf.mxu2 }
 0x116   : > { %v1597_v20 = vmin.f32 %v1001_v11, %v1003_v12  ;;  %v2892_v22 = vadd.f32 %v2828_v3, %v2833_v31  ;;  %v1149_v25 = vadd.f32 %v1032_v57, %v1030_v61  ;;  %v1480_v24 = vmax.f32 %v1030_v61, %v1032_v57 }
 0x117   : > { %v1610_v26 = vmin.f32 %v1030_v61, %v1032_v57  ;;  %v1216_v52 = vmul.f32 %v977_v29, %v977_v29  ;;  %v1337_v30 = vadd.f32 %v1209_v6, %v1201_v2  ;;  %v1350_v32 = vadd.f32 %v1210_v16, %v1202_v43 }
 0x118   : > { %v1111_v33 = vadd.f32 %v1110_v48, %v948_v5  ;;  %v1442_v34 = vmax.f32 %v1441_v7, %v948_v5  ;;  %v1312_v46 = vadd.f32 %v1311_v45, %v1215_v18  ;;  %v1572_v37 = vmin.f32 %v1571_v8, %v948_v5 }
 0x119   : > { %v1124_v21 = vadd.f32 %v1123_v9, %v977_v29  ;;  %v1217_v40 = vmul.f32 %v1006_v4, %v1006_v4  ;;  %v1455_v49 = vmax.f32 %v1454_v10, %v977_v29  ;;  %v1585_v15 = vmin.f32 %v1584_v14, %v977_v29 }
 0x11a   : > { %v1218_v53 = vmul.f32 %v1035_v41, %v1035_v41  ;;  %v979_v3 = vadd.f32 %v2830_v13, %v2837_v35  ;;  %v1325_v54 = vadd.f32 %v1324_v17, %v1216_v52  ;;  %v1137_v55 = vadd.f32 %v1136_v19, %v1006_v4 }
 0x11b   : > { %v1223_v11 = vmul.f32 %v2892_v22, %v2892_v22  ;;  %v1008_v61 = vadd.f32 %v1007_v51, %v2844_v38  ;;  %v1468_v44 = vmax.f32 %v1467_v56, %v1006_v4  ;;  %v1598_v12 = vmin.f32 %v1597_v20, %v1006_v4 }
 0x11c   : > { %v1150_v57 = vadd.f32 %v1149_v25, %v1035_v41  ;;  %v1037_v63 = vadd.f32 %v1036_v62, %v2847_v39  ;;  %v1338_v0 = vadd.f32 %v1337_v30, %v1217_v40  ;;  %v1481_v1 = vmax.f32 %v1480_v24, %v1035_v41  ;;  %v957_v6 = vpop.f32.mrf.mxu0 }
 0x11d   : > { %v1611_v5 = vmin.f32 %v1610_v26, %v1035_v41  ;;  %v953_v2 = vadd.f32 %v2859_v47, %v2833_v31  ;;  %v1351_v13 = vadd.f32 %v1350_v32, %v1218_v53  ;;  %v1112_v43 = vadd.f32 %v1111_v33, %v2892_v22  ;;  %v986_v4 = vpop.f32.mrf.mxu1  ;;  %v1012_v26 = vpop.f32.mrf.mxu2 }
 0x11e   : > { %v1443_v48 = vmax.f32 %v1442_v34, %v2892_v22  ;;  %v1224_v7 = vmul.f32 %v979_v3, %v979_v3  ;;  %v1313_v45 = vadd.f32 %v1312_v46, %v1223_v11  ;;  %v1573_v51 = vmin.f32 %v1572_v37, %v2892_v22  ;;  %v1041_v34 = vpop.f32.mrf.mxu3 }
 0x11f   : > { %v1225_v8 = vmul.f32 %v1008_v61, %v1008_v61  ;;  %v982_v9 = vadd.f32 %v2870_v59, %v2837_v35  ;;  %v1125_v62 = vadd.f32 %v1124_v21, %v979_v3  ;;  %v1456_v29 = vmax.f32 %v1455_v49, %v979_v3 }
 0x120   : > { %v1586_v10 = vmin.f32 %v1585_v15, %v979_v3  ;;  %v1226_v14 = vmul.f32 %v1037_v63, %v1037_v63  ;;  %v1138_v16 = vadd.f32 %v1137_v55, %v1008_v61  ;;  %v1469_v47 = vmax.f32 %v1468_v44, %v1008_v61 }
 0x121   : > { %v1599_v17 = vmin.f32 %v1598_v12, %v1008_v61  ;;  %v1231_v18 = vmul.f32 %v953_v2, %v953_v2  ;;  %v1326_v41 = vadd.f32 %v1325_v54, %v1224_v7  ;;  %v1151_v19 = vadd.f32 %v1150_v57, %v1037_v63 }
 0x122   : > { %v1011_v56 = vadd.f32 %v1010_v42, %v2844_v38  ;;  %v1040_v20 = vadd.f32 %v1039_v28, %v2847_v39  ;;  %v1339_v22 = vadd.f32 %v1338_v0, %v1225_v8  ;;  %v1482_v25 = vmax.f32 %v1481_v1, %v1037_v63 }
 0x123   : > { %v1232_v24 = vmul.f32 %v982_v9, %v982_v9  ;;  %v955_v59 = vadd.f32 %v954_v23, %v2833_v31  ;;  %v1352_v52 = vadd.f32 %v1351_v13, %v1226_v14  ;;  %v1612_v30 = vmin.f32 %v1611_v5, %v1037_v63 }
 0x124   : > { %v1113_v32 = vadd.f32 %v1112_v43, %v953_v2  ;;  %v1444_v33 = vmax.f32 %v1443_v48, %v953_v2  ;;  %v1314_v46 = vadd.f32 %v1313_v45, %v1231_v18  ;;  %v1574_v37 = vmin.f32 %v1573_v51, %v953_v2  ;;  %v959_v13 = vpop.f32.mrf.mxu0 }
 0x125   : > { %v1126_v21 = vadd.f32 %v1125_v62, %v982_v9  ;;  %v984_v40 = vadd.f32 %v983_v27, %v2837_v35  ;;  %v1457_v49 = vmax.f32 %v1456_v29, %v982_v9  ;;  %v1587_v42 = vmin.f32 %v1586_v10, %v982_v9  ;;  %v988_v51 = vpop.f32.mrf.mxu1 }
 0x126   : > { %v1233_v15 = vmul.f32 %v1011_v56, %v1011_v56  ;;  %v1234_v53 = vmul.f32 %v1040_v20, %v1040_v20  ;;  %v1327_v3 = vadd.f32 %v1326_v41, %v1232_v24  ;;  %v1239_v28 = vmul.f32 %v955_v59, %v955_v59 }
 0x127   : > { %v2912_v54 = vadd.f32 %v1012_v26, %v2844_v38  ;;  %v2915_v23 = vadd.f32 %v1041_v34, %v2847_v39  ;;  %v1139_v55 = vadd.f32 %v1138_v16, %v1011_v56  ;;  %v2917_v11 = vmax.f32 %v1469_v47, %v1011_v56  ;;  %v1015_v16 = vpop.f32.mrf.mxu2 }
 0x128   : > { %v2919_v61 = vmin.f32 %v1599_v17, %v1011_v56  ;;  %v958_v44 = vadd.f32 %v957_v6, %v2833_v31  ;;  %v1152_v27 = vadd.f32 %v1151_v19, %v1040_v20  ;;  %v2922_v12 = vmax.f32 %v1482_v25, %v1040_v20 }
 0x129   : > { %v2924_v57 = vmin.f32 %v1612_v30, %v1040_v20  ;;  %v1240_v63 = vmul.f32 %v984_v40, %v984_v40  ;;  %v2926_v0 = vadd.f32 %v1339_v22, %v1233_v15  ;;  %v2928_v1 = vadd.f32 %v1352_v52, %v1234_v53 }
 0x12a   : > { %v1114_v5 = vadd.f32 %v1113_v32, %v955_v59  ;;  %v1445_v2 = vmax.f32 %v1444_v33, %v955_v59  ;;  %v1315_v43 = vadd.f32 %v1314_v46, %v1239_v28  ;;  %v1575_v48 = vmin.f32 %v1574_v37, %v955_v59 }
 0x12b   : > { %v1127_v7 = vadd.f32 %v1126_v21, %v984_v40  ;;  %v1458_v45 = vmax.f32 %v1457_v49, %v984_v40  ;;  %v1588_v8 = vmin.f32 %v1587_v42, %v984_v40  ;;  %v2931_v9 = vadd.f32 %v1139_v55, %v2912_v54 }
 0x12c   : > { %v1247_v62 = vmul.f32 %v958_v44, %v958_v44  ;;  %v987_v29 = vadd.f32 %v986_v4, %v2837_v35  ;;  %v1328_v10 = vadd.f32 %v1327_v3, %v1240_v63  ;;  %v1241_v14 = vmul.f32 %v2912_v54, %v2912_v54  ;;  %v1044_v4 = vpop.f32.mrf.mxu3 }
 0x12d   : > { %v1471_v6 = vmax.f32 %v2917_v11, %v2912_v54  ;;  %v960_v47 = vadd.f32 %v959_v13, %v2833_v31  ;;  %v1601_v17 = vmin.f32 %v2919_v61, %v2912_v54  ;;  %v2942_v18 = vadd.f32 %v1152_v27, %v2915_v23 }
 0x12e   : > { %v1242_v41 = vmul.f32 %v2915_v23, %v2915_v23  ;;  %v989_v19 = vadd.f32 %v988_v51, %v2837_v35  ;;  %v1484_v56 = vmax.f32 %v2922_v12, %v2915_v23  ;;  %v1115_v20 = vadd.f32 %v1114_v5, %v958_v44 }
 0x12f   : > { %v1446_v22 = vmax.f32 %v1445_v2, %v958_v44  ;;  %v1248_v25 = vmul.f32 %v987_v29, %v987_v29  ;;  %v1316_v24 = vadd.f32 %v1315_v43, %v1247_v62  ;;  %v1576_v31 = vmin.f32 %v1575_v48, %v958_v44 }
 0x130   : > { %v1128_v59 = vadd.f32 %v1127_v7, %v987_v29  ;;  %v1016_v26 = vadd.f32 %v1015_v16, %v2844_v38  ;;  %v1459_v52 = vmax.f32 %v1458_v45, %v987_v29  ;;  %v2951_v30 = vadd.f32 %v1044_v4, %v2847_v39 }
 0x131   : > { %v1116_v32 = vadd.f32 %v1115_v20, %v960_v47  ;;  %v1255_v33 = vmul.f32 %v960_v47, %v960_v47  ;;  %v1589_v34 = vmin.f32 %v1588_v8, %v987_v29  ;;  %v1447_v46 = vmax.f32 %v1446_v22, %v960_v47 }
 0x132   : > { %v1577_v35 = vmin.f32 %v1576_v31, %v960_v47  ;;  %v1129_v37 = vadd.f32 %v1128_v59, %v989_v19  ;;  %v1329_v21 = vadd.f32 %v1328_v10, %v1248_v25  ;;  %v1256_v42 = vmul.f32 %v989_v19, %v989_v19 }
 0x133   : > { %v1117_v40 = vrot.slane %v1116_v32, 4  ;;  %v1317_v49 = vadd.f32 %v1316_v24, %v1255_v33  ;;  %v1448_v15 = vrot.slane %v1447_v46, 4  ;;  %v1460_v28 = vmax.f32 %v1459_v52, %v989_v19 }
 0x134   : > { %v1578_v53 = vrot.slane %v1577_v35, 4  ;;  %v1130_v3 = vrot.slane %v1129_v37, 4  ;;  %v1330_v27 = vadd.f32 %v1329_v21, %v1256_v42  ;;  %v1590_v63 = vmin.f32 %v1589_v34, %v989_v19 }
 0x135   : > { %v1118_v55 = vadd.f32 %v1117_v40, %v1116_v32  ;;  %v1318_v44 = vrot.slane %v1317_v49, 4  ;;  %v1449_v5 = vmax.f32 %v1447_v46, %v1448_v15  ;;  %v1461_v43 = vrot.slane %v1460_v28, 4 }
 0x136   : > { %v1579_v2 = vmin.f32 %v1577_v35, %v1578_v53  ;;  %v1131_v13 = vadd.f32 %v1130_v3, %v1129_v37  ;;  %v1331_v45 = vrot.slane %v1330_v27, 4  ;;  %v1591_v51 = vrot.slane %v1590_v63, 4  ;;  %v1046_v3 = vpop.f32.mrf.mxu3 }
 0x137   : > { %v1119_v48 = vrot.slane %v1118_v55, 2  ;;  %v1319_v7 = vadd.f32 %v1318_v44, %v1317_v49  ;;  %v1450_v8 = vrot.slane %v1449_v5, 2  ;;  %v1462_v10 = vmax.f32 %v1460_v28, %v1461_v43 }
 0x138   : > { %v1580_v62 = vrot.slane %v1579_v2, 2  ;;  %v1132_v29 = vrot.slane %v1131_v13, 2  ;;  %v1332_v4 = vadd.f32 %v1331_v45, %v1330_v27  ;;  %v1592_v20 = vmin.f32 %v1590_v63, %v1591_v51 }
 0x139   : > { %v1120_v16 = vadd.f32 %v1119_v48, %v1118_v55  ;;  %v1320_v47 = vrot.slane %v1319_v7, 2  ;;  %v1451_v22 = vmax.f32 %v1449_v5, %v1450_v8  ;;  %v1463_v19 = vrot.slane %v1462_v10, 2 }
 0x13a   : > { %v1581_v25 = vmin.f32 %v1579_v2, %v1580_v62  ;;  %v1133_v24 = vadd.f32 %v1132_v29, %v1131_v13  ;;  %v1614_v31 = vmin.f32 %v2924_v57, %v2915_v23  ;;  %v1333_v32 = vrot.slane %v1332_v4, 2 }
 0x13b   : > { %v1121_v59 = vrot.slane %v1120_v16, 1  ;;  %v1321_v52 = vadd.f32 %v1320_v47, %v1319_v7  ;;  %v1341_v33 = vadd.f32 %v2926_v0, %v1241_v14  ;;  %v1249_v34 = vmul.f32 %v1016_v26, %v1016_v26  ;;  %v1017_v0 = vpop.f32.mrf.mxu2 }
 0x13c   : > { %v1452_v46 = vrot.slane %v1451_v22, 1  ;;  %v1593_v35 = vrot.slane %v1592_v20, 2  ;;  %v1354_v37 = vadd.f32 %v2928_v1, %v1242_v41  ;;  %v1141_v21 = vadd.f32 %v2931_v9, %v1016_v26 }
 0x13d   : > { %v1582_v40 = vrot.slane %v1581_v25, 1  ;;  %v1134_v49 = vrot.slane %v1133_v24, 1  ;;  %v1472_v42 = vmax.f32 %v1471_v6, %v1016_v26  ;;  %v1250_v57 = vmul.f32 %v2951_v30, %v2951_v30 }
 0x13e   : > { %v2963_v15 = vadd.f32 %v1121_v59, %v1120_v16  ;;  %v1464_v53 = vmax.f32 %v1462_v10, %v1463_v19  ;;  %v1602_v14 = vmin.f32 %v1601_v17, %v1016_v26  ;;  %v1154_v1 = vadd.f32 %v2942_v18, %v2951_v30 }
 0x13f   : > { %v1322_v9 = vrot.slane %v1321_v52, 1  ;;  %v1334_v41 = vadd.f32 %v1333_v32, %v1332_v4  ;;  %v1342_v28 = vadd.f32 %v1341_v33, %v1249_v34  ;;  %v1485_v11 = vmax.f32 %v1484_v56, %v2951_v30 }
 0x140   : > { %v2974_v6 = vmax.f32 %v1451_v22, %v1452_v46  ;;  %v1594_v55 = vmin.f32 %v1592_v20, %v1593_v35  ;;  %v1615_v44 = vmin.f32 %v1614_v31, %v2951_v30  ;;  %v2977_v27 = vmin.f32 %v1581_v25, %v1582_v40 }
 0x141   : > { %v1135_v54 = vadd.f32 %v1134_v49, %v1133_v24  ;;  %v1018_v61 = vadd.f32 %v1017_v0, %v2844_v38  ;;  %v1355_v17 = vadd.f32 %v1354_v37, %v1250_v57  ;;  %v1173_v18 = vrot.slane %v2963_v15, 4 }
 0x142   : > { %v1465_v26 = vrot.slane %v1464_v53, 1  ;;  %v1047_v63 = vadd.f32 %v1046_v3, %v2847_v39  ;;  %v2982_v5 = vadd.f32 %v1322_v9, %v1321_v52  ;;  %v1335_v23 = vrot.slane %v1334_v41, 1 }
 0x143   : > { %v1142_v12 = vadd.f32 %v1141_v21, %v1018_v61  ;;  %v1257_v56 = vmul.f32 %v1018_v61, %v1018_v61  ;;  %v1504_v2 = vrot.slane %v2974_v6, 4  ;;  %v1595_v13 = vrot.slane %v1594_v55, 1 }
 0x144   : > { %v1473_v30 = vmax.f32 %v1472_v42, %v1018_v61  ;;  %v1603_v43 = vmin.f32 %v1602_v14, %v1018_v61  ;;  %v1634_v48 = vrot.slane %v2977_v27, 4  ;;  %v1174_v7 = vrot.slane %v1135_v54, 3 }
 0x145   : > { %v1143_v38 = vrot.slane %v1142_v12, 4  ;;  %v1343_v45 = vadd.f32 %v1342_v28, %v1257_v56  ;;  %v2986_v51 = vmax.f32 %v1464_v53, %v1465_v26  ;;  %v1155_v62 = vadd.f32 %v1154_v1, %v1047_v63 }
 0x146   : > { %v1474_v8 = vrot.slane %v1473_v30, 4  ;;  %v1604_v39 = vrot.slane %v1603_v43, 4  ;;  %v1374_v29 = vrot.slane %v2982_v5, 4  ;;  %v2989_v10 = vadd.f32 %v1335_v23, %v1334_v41 }
 0x147   : > { %v1144_v16 = vadd.f32 %v1143_v38, %v1142_v12  ;;  %v1344_v47 = vrot.slane %v1343_v45, 4  ;;  %v2991_v4 = vmin.f32 %v1594_v55, %v1595_v13  ;;  %v1156_v25 = vrot.slane %v1155_v62, 4 }
 0x148   : > { %v1475_v20 = vmax.f32 %v1473_v30, %v1474_v8  ;;  %v1605_v22 = vmin.f32 %v1603_v43, %v1604_v39  ;;  %v1258_v31 = vmul.f32 %v1047_v63, %v1047_v63  ;;  %v1486_v59 = vmax.f32 %v1485_v11, %v1047_v63 }
 0x149   : > { %v1145_v24 = vrot.slane %v1144_v16, 2  ;;  %v1345_v19 = vadd.f32 %v1344_v47, %v1343_v45  ;;  %v1157_v33 = vadd.f32 %v1156_v25, %v1155_v62  ;;  %v1616_v34 = vmin.f32 %v1615_v44, %v1047_v63 }
 0x14a   : > { %v1476_v52 = vrot.slane %v1475_v20, 2  ;;  %v1606_v32 = vrot.slane %v1605_v22, 2  ;;  %v1356_v37 = vadd.f32 %v1355_v17, %v1258_v31  ;;  %v1487_v21 = vrot.slane %v1486_v59, 4 }
 0x14b   : > { %v1146_v46 = vadd.f32 %v1145_v24, %v1144_v16  ;;  %v1346_v35 = vrot.slane %v1345_v19, 2  ;;  %v1158_v42 = vrot.slane %v1157_v33, 2  ;;  %v1617_v57 = vrot.slane %v1616_v34, 4 }
 0x14c   : > { %v1477_v40 = vmax.f32 %v1475_v20, %v1476_v52  ;;  %v1607_v49 = vmin.f32 %v1605_v22, %v1606_v32  ;;  %v1357_v0 = vrot.slane %v1356_v37, 4  ;;  %v1488_v14 = vmax.f32 %v1486_v59, %v1487_v21 }
 0x14d   : > { %v1147_v15 = vrot.slane %v1146_v46, 1  ;;  %v1347_v53 = vadd.f32 %v1346_v35, %v1345_v19  ;;  %v1159_v41 = vadd.f32 %v1158_v42, %v1157_v33  ;;  %v1618_v3 = vmin.f32 %v1616_v34, %v1617_v57 }
 0x14e   : > { %v1478_v1 = vrot.slane %v1477_v40, 1  ;;  %v1608_v9 = vrot.slane %v1607_v49, 1  ;;  %v1358_v55 = vadd.f32 %v1357_v0, %v1356_v37  ;;  %v1489_v44 = vrot.slane %v1488_v14, 2 }
 0x14f   : > { %v1148_v28 = vadd.f32 %v1147_v15, %v1146_v46  ;;  %v1348_v11 = vrot.slane %v1347_v53, 1  ;;  %v1184_v54 = vsel %vm1183_vm3, %v1173_v18, %v1174_v7  ;;  %v1505_v61 = vrot.slane %v2986_v51, 3 }
 0x150   : > { %v1160_v17 = vrot.slane %v1159_v41, 1  ;;  %v1619_v26 = vrot.slane %v1618_v3, 2  ;;  %v1375_v63 = vrot.slane %v2989_v10, 3  ;;  %v1479_v23 = vmax.f32 %v1477_v40, %v1478_v1 }
 0x151   : > { %v1359_v12 = vrot.slane %v1358_v55, 2  ;;  %v1490_v56 = vmax.f32 %v1488_v14, %v1489_v44  ;;  %v1175_v13 = vrot.slane %v1148_v28, 2  ;;  %v1609_v30 = vmin.f32 %v1607_v49, %v1608_v9 }
 0x152   : > { %v1161_v43 = vadd.f32 %v1160_v17, %v1159_v41  ;;  %v1620_v38 = vmin.f32 %v1618_v3, %v1619_v26  ;;  %v1349_v45 = vadd.f32 %v1348_v11, %v1347_v53  ;;  %v1635_v18 = vrot.slane %v2991_v4, 3 }
 0x153   : > { %v1360_v8 = vadd.f32 %v1359_v12, %v1358_v55  ;;  %v1491_v39 = vrot.slane %v1490_v56, 1  ;;  %v1506_v62 = vrot.slane %v1479_v23, 2  ;;  %v1636_v47 = vrot.slane %v1609_v30, 2 }
 0x154   : > { %v1176_v7 = vrot.slane %v1161_v43, 1  ;;  %v1621_v51 = vrot.slane %v1620_v38, 1  ;;  %v1376_v25 = vrot.slane %v1349_v45, 2  ;;  %v1511_v52 = vsel %vm1183_vm3, %v1504_v2, %v1505_v61 }
 0x155   : > { %v1361_v10 = vrot.slane %v1360_v8, 1  ;;  %v1492_v16 = vmax.f32 %v1490_v56, %v1491_v39  ;;  %v1641_v34 = vsel %vm1183_vm3, %v1634_v48, %v1635_v18 }
 0x156   : > { %v1186_v20 = vsel %vm1185_vm4, %v1175_v13, %v1176_v7  ;;  %v1622_v22 = vmin.f32 %v1620_v38, %v1621_v51 }
 0x157   : > { %v1188_v24 = vsel %vm1187_vm5, %v1184_v54, %v1186_v20  ;;  %v1362_v19 = vadd.f32 %v1361_v10, %v1360_v8  ;;  %v1507_v4 = vrot.slane %v1492_v16, 1 }
 0x158   : > { %v1190_v31 = vsel %vm1189_vm6, %v2841_v36, %v1188_v24  ;;  %v1637_v59 = vrot.slane %v1622_v22, 1  ;;  %v1381_v36 = vsel %vm1183_vm3, %v1374_v29, %v1375_v63 }
 0x159   : > { %v1377_v32 = vrot.slane %v1362_v19, 1  ;;  %v1512_v33 = vsel %vm1185_vm4, %v1506_v62, %v1507_v4  ;;  %1193 = vst [vmem:[%s358_s27] sm:$0xff] %v1190_v31 }
 0x15a   : > { %v1513_v46 = vsel %vm1187_vm5, %v1511_v52, %v1512_v33  ;;  %v1642_v35 = vsel %vm1185_vm4, %v1636_v47, %v1637_v59 }
 0x15b   : > { %v1382_v6 = vsel %vm1185_vm4, %v1376_v25, %v1377_v32  ;;  %v1514_v27 = vsel %vm1189_vm6, %v2854_v50, %v1513_v46  ;;  %v1643_v2 = vsel %vm1187_vm5, %v1641_v34, %v1642_v35 }
 0x15c   : > { %v1383_v5 = vsel %vm1187_vm5, %v1381_v36, %v1382_v6  ;;  %v1644_v48 = vsel %vm1189_vm6, %v2864_v58, %v1643_v2  ;;  %1517 = vst [vmem:[%s350_s16] sm:$0xff] %v1514_v27 }
 0x15d   : > { %v1384_v29 = vsel %vm1189_vm6, %v2874_v60, %v1383_v5  ;;  %1647 = vst [vmem:[%s354_s20] sm:$0xff] %v1644_v48 }
 0x15e   : > { %1387 = vst [vmem:[%s362_s23] sm:$0xff] %v1384_v29 }
 0x15f PF: > { %s19_s29 = sadd.s32 1, %s2212_s29   ;;  %s3059_s27 = smov %s2208_s28 }
 0x160   : > { %p16_p5 = scmp.ge.s32.totalorder %s19_s29, 6   ;;  %s3060_s28 = smov %s3062_s30 }
 0x162   :  { %18 = sbr.rel (!%p16_p5) target bundleno = 2 (0x2), region = 110 }

// kernel: pointnet_encoder_forward.10
= control target key start
LH: loop header
LB: loop body
LE: loop exit
PB: predicated region body
PF: predicated region fallthrough
CT: control target
= control target key end

     0   :  { %vm2031_vm0 = vcmask 1041408   ;;  %s6841_s1 = inlined_call_operand.vmem [shape: bf16[1024,512], index: 1, kind: input, shape index: {}]   ;;  %s6842_s0 = inlined_call_operand.vmem [shape: f32[2,1024], index: 0, kind: input, shape index: {}]   ;;  %s6843_s2 = inlined_call_operand.vmem [shape: f32[1,512], index: 2, kind: input, shape index: {}]   ;;  %s6844_s5 = inlined_call_operand.vmem [shape: bf16[512,256], index: 5, kind: input, shape index: {}]   ;;  %s6845_s3 = inlined_call_operand.vmem [shape: f32[1,512], index: 3, kind: input, shape index: {}]   ;;  %s6846_s4 = inlined_call_operand.vmem [shape: f32[1,512], index: 4, kind: input, shape index: {}]   ;;  %s6847_s6 = inlined_call_operand.vmem [shape: f32[1,256], index: 6, kind: input, shape index: {}]   ;;  %s6848_s10 = inlined_call_operand.vmem [shape: f32[1,9], index: 10, kind: input, shape index: {}]   ;;  %s6849_s9 = inlined_call_operand.vmem [shape: bf16[256,9], index: 9, kind: input, shape index: {}]   ;;  %s6850_s7 = inlined_call_operand.vmem [shape: f32[1,256], index: 7, kind: input, shape index: {}]   ;;  %s6851_s8 = inlined_call_operand.vmem [shape: f32[1,256], index: 8, kind: input, shape index: {}]   ;;  %s6852_s11 = inlined_call_operand.vmem [shape: f32[2,9], index: 11, kind: output, shape index: {}]  }
   0x1   :  { %v3047_v0 = vld [vmem:[%s6841_s1 + $0xe0] sm:$0xf]  ;;  %v4307_v1 = vld [vmem:[%s6841_s1 + $0xec] sm:$0xf0] }
   0x2   :  { %v3175_v2 = vld [vmem:[%s6841_s1 + $0x1e0] sm:$0xf]  ;;  %v3048_v3 = vor.u32 %v4307_v1, %v3047_v0  ;;  %v4339_v4 = vld [vmem:[%s6841_s1 + $0x1ec] sm:$0xf0] }
   0x3   :  { %v3303_v5 = vld [vmem:[%s6841_s1 + $0x2e0] sm:$0xf]  ;;  %v4371_v6 = vld [vmem:[%s6841_s1 + $0x2ec] sm:$0xf0]  ;;  %v3176_v7 = vor.u32 %v4339_v4, %v3175_v2 }
   0x4   :  { %v3304_v8 = vor.u32 %v4371_v6, %v3303_v5  ;;  %v3431_v9 = vld [vmem:[%s6841_s1 + $0x3e0] sm:$0xf]  ;;  %v4403_v10 = vld [vmem:[%s6841_s1 + $0x3ec] sm:$0xf0]  ;;  %1615 = vmatpush.bf16.msra.mxu0 %v3048_v3 }
   0x5   :  { %v3031_v11 = vld [vmem:[%s6841_s1 + $0xc0] sm:$0xf]  ;;  %v3432_v12 = vor.u32 %v4403_v10, %v3431_v9  ;;  %v4303_v13 = vld [vmem:[%s6841_s1 + $0xcc] sm:$0xf0]  ;;  %1628 = vmatpush.bf16.msra.mxu1 %v3176_v7 }
   0x6   :  { %v3159_v14 = vld [vmem:[%s6841_s1 + $0x1c0] sm:$0xf]  ;;  %v4335_v15 = vld [vmem:[%s6841_s1 + $0x1cc] sm:$0xf0]  ;;  %1641 = vmatpush.bf16.msra.mxu2 %v3304_v8  ;;  %v3032_v16 = vor.u32 %v4303_v13, %v3031_v11 }
   0x7   :  { %v3160_v17 = vor.u32 %v4335_v15, %v3159_v14  ;;  %v3287_v18 = vld [vmem:[%s6841_s1 + $0x2c0] sm:$0xf]  ;;  %v4367_v19 = vld [vmem:[%s6841_s1 + $0x2cc] sm:$0xf0]  ;;  %1654 = vmatpush.bf16.msra.mxu3 %v3432_v12 }
   0x8   :  { %v3415_v20 = vld [vmem:[%s6841_s1 + $0x3c0] sm:$0xf]  ;;  %v3288_v21 = vor.u32 %v4367_v19, %v3287_v18  ;;  %v4399_v22 = vld [vmem:[%s6841_s1 + $0x3cc] sm:$0xf0]  ;;  %1616 = vmatpush.bf16.msra.mxu0 %v3032_v16 }
   0x9   :  { %v3015_v23 = vld [vmem:[%s6841_s1 + $0xa0] sm:$0xf]  ;;  %v4299_v24 = vld [vmem:[%s6841_s1 + $0xac] sm:$0xf0]  ;;  %v3416_v25 = vor.u32 %v4399_v22, %v3415_v20  ;;  %1629 = vmatpush.bf16.msra.mxu1 %v3160_v17 }
   0xa   :  { %v3143_v26 = vld [vmem:[%s6841_s1 + $0x1a0] sm:$0xf]  ;;  %v4331_v27 = vld [vmem:[%s6841_s1 + $0x1ac] sm:$0xf0]  ;;  %v3016_v29 = vor.u32 %v4299_v24, %v3015_v23  ;;  %1642 = vmatpush.bf16.msra.mxu2 %v3288_v21 }
   0xb   :  { %v3271_v28 = vld [vmem:[%s6841_s1 + $0x2a0] sm:$0xf]  ;;  %v4363_v30 = vld [vmem:[%s6841_s1 + $0x2ac] sm:$0xf0]  ;;  %v3144_v33 = vor.u32 %v4331_v27, %v3143_v26  ;;  %1655 = vmatpush.bf16.msra.mxu3 %v3416_v25 }
   0xc   :  { %v3399_v31 = vld [vmem:[%s6841_s1 + $0x3a0] sm:$0xf]  ;;  %v4395_v32 = vld [vmem:[%s6841_s1 + $0x3ac] sm:$0xf0]  ;;  %v3272_v34 = vor.u32 %v4363_v30, %v3271_v28  ;;  %1617 = vmatpush.bf16.msra.mxu0 %v3016_v29 }
   0xd   :  { %v2999_v35 = vld [vmem:[%s6841_s1 + $0x80] sm:$0xf]  ;;  %v4295_v36 = vld [vmem:[%s6841_s1 + $0x8c] sm:$0xf0]  ;;  %v3400_v38 = vor.u32 %v4395_v32, %v3399_v31  ;;  %1630 = vmatpush.bf16.msra.mxu1 %v3144_v33 }
   0xe   :  { %v3127_v37 = vld [vmem:[%s6841_s1 + $0x180] sm:$0xf]  ;;  %v4327_v39 = vld [vmem:[%s6841_s1 + $0x18c] sm:$0xf0]  ;;  %v3000_v44 = vor.u32 %v4295_v36, %v2999_v35  ;;  %1643 = vmatpush.bf16.msra.mxu2 %v3272_v34 }
   0xf   :  { %v3255_v40 = vld [vmem:[%s6841_s1 + $0x280] sm:$0xf]  ;;  %v4359_v41 = vld [vmem:[%s6841_s1 + $0x28c] sm:$0xf0]  ;;  %v3128_v45 = vor.u32 %v4327_v39, %v3127_v37  ;;  %1656 = vmatpush.bf16.msra.mxu3 %v3400_v38 }
  0x10   :  { %v3383_v42 = vld [vmem:[%s6841_s1 + $0x380] sm:$0xf]  ;;  %v4391_v43 = vld [vmem:[%s6841_s1 + $0x38c] sm:$0xf0]  ;;  %v3256_v46 = vor.u32 %v4359_v41, %v3255_v40  ;;  %1618 = vmatpush.bf16.msra.mxu0 %v3000_v44 }
  0x11   :  { %v2983_v47 = vld [vmem:[%s6841_s1 + $0x60] sm:$0xf]  ;;  %v4291_v48 = vld [vmem:[%s6841_s1 + $0x6c] sm:$0xf0]  ;;  %v3384_v50 = vor.u32 %v4391_v43, %v3383_v42  ;;  %1631 = vmatpush.bf16.msra.mxu1 %v3128_v45 }
  0x12   :  { %v3111_v49 = vld [vmem:[%s6841_s1 + $0x160] sm:$0xf]  ;;  %v4323_v51 = vld [vmem:[%s6841_s1 + $0x16c] sm:$0xf0]  ;;  %v2984_v56 = vor.u32 %v4291_v48, %v2983_v47  ;;  %1644 = vmatpush.bf16.msra.mxu2 %v3256_v46 }
  0x13   :  { %v3239_v52 = vld [vmem:[%s6841_s1 + $0x260] sm:$0xf]  ;;  %v4355_v53 = vld [vmem:[%s6841_s1 + $0x26c] sm:$0xf0]  ;;  %v3112_v57 = vor.u32 %v4323_v51, %v3111_v49  ;;  %1657 = vmatpush.bf16.msra.mxu3 %v3384_v50 }
  0x14   :  { %v3367_v54 = vld [vmem:[%s6841_s1 + $0x360] sm:$0xf]  ;;  %v4387_v55 = vld [vmem:[%s6841_s1 + $0x36c] sm:$0xf0]  ;;  %v3240_v58 = vor.u32 %v4355_v53, %v3239_v52  ;;  %1619 = vmatpush.bf16.msra.mxu0 %v2984_v56 }
  0x15   :  { %v2967_v59 = vld [vmem:[%s6841_s1 + $0x40] sm:$0xf]  ;;  %v4287_v60 = vld [vmem:[%s6841_s1 + $0x4c] sm:$0xf0]  ;;  %v3368_v62 = vor.u32 %v4387_v55, %v3367_v54  ;;  %1632 = vmatpush.bf16.msra.mxu1 %v3112_v57 }
  0x16   :  { %v3095_v61 = vld [vmem:[%s6841_s1 + $0x140] sm:$0xf]  ;;  %v4319_v63 = vld [vmem:[%s6841_s1 + $0x14c] sm:$0xf0]  ;;  %v2968_v4 = vor.u32 %v4287_v60, %v2967_v59  ;;  %1645 = vmatpush.bf16.msra.mxu2 %v3240_v58 }
  0x17   :  { %v3223_v0 = vld [vmem:[%s6841_s1 + $0x240] sm:$0xf]  ;;  %v4351_v1 = vld [vmem:[%s6841_s1 + $0x24c] sm:$0xf0]  ;;  %v3096_v5 = vor.u32 %v4319_v63, %v3095_v61  ;;  %1658 = vmatpush.bf16.msra.mxu3 %v3368_v62 }
  0x18   :  { %v3351_v2 = vld [vmem:[%s6841_s1 + $0x340] sm:$0xf]  ;;  %v4383_v3 = vld [vmem:[%s6841_s1 + $0x34c] sm:$0xf0]  ;;  %v3224_v6 = vor.u32 %v4351_v1, %v3223_v0  ;;  %1620 = vmatpush.bf16.msra.mxu0 %v2968_v4 }
  0x19   :  { %v2951_v7 = vld [vmem:[%s6841_s1 + $0x20] sm:$0xf]  ;;  %v4283_v8 = vld [vmem:[%s6841_s1 + $0x2c] sm:$0xf0]  ;;  %v3352_v10 = vor.u32 %v4383_v3, %v3351_v2  ;;  %1633 = vmatpush.bf16.msra.mxu1 %v3096_v5 }
  0x1a   :  { %v3079_v9 = vld [vmem:[%s6841_s1 + $0x120] sm:$0xf]  ;;  %v4315_v11 = vld [vmem:[%s6841_s1 + $0x12c] sm:$0xf0]  ;;  %v2952_v16 = vor.u32 %v4283_v8, %v2951_v7  ;;  %1646 = vmatpush.bf16.msra.mxu2 %v3224_v6 }
  0x1b   :  { %v3207_v12 = vld [vmem:[%s6841_s1 + $0x220] sm:$0xf]  ;;  %v4347_v13 = vld [vmem:[%s6841_s1 + $0x22c] sm:$0xf0]  ;;  %v3080_v19 = vor.u32 %v4315_v11, %v3079_v9  ;;  %1659 = vmatpush.bf16.msra.mxu3 %v3352_v10 }
  0x1c   :  { %v3335_v14 = vld [vmem:[%s6841_s1 + $0x320] sm:$0xf]  ;;  %v4379_v15 = vld [vmem:[%s6841_s1 + $0x32c] sm:$0xf0]  ;;  %v3208_v20 = vor.u32 %v4347_v13, %v3207_v12  ;;  %1621 = vmatpush.bf16.msra.mxu0 %v2952_v16 }
  0x1d   :  { %v2935_v17 = vld [vmem:[%s6841_s1] sm:$0xf]  ;;  %v4279_v18 = vld [vmem:[%s6841_s1 + $0xc] sm:$0xf0]  ;;  %v3336_v24 = vor.u32 %v4379_v15, %v3335_v14  ;;  %1634 = vmatpush.bf16.msra.mxu1 %v3080_v19 }
  0x1e   :  { %v3063_v21 = vld [vmem:[%s6841_s1 + $0x100] sm:$0xf]  ;;  %v4311_v22 = vld [vmem:[%s6841_s1 + $0x10c] sm:$0xf0]  ;;  %v2936_v31 = vor.u32 %v4279_v18, %v2935_v17  ;;  %1647 = vmatpush.bf16.msra.mxu2 %v3208_v20 }
  0x1f   :  { %v3191_v23 = vld [vmem:[%s6841_s1 + $0x200] sm:$0xf]  ;;  %v4343_v25 = vld [vmem:[%s6841_s1 + $0x20c] sm:$0xf0]  ;;  %v3064_v35 = vor.u32 %v4311_v22, %v3063_v21  ;;  %1660 = vmatpush.bf16.msra.mxu3 %v3336_v24 }
  0x20   :  { %v3319_v26 = vld [vmem:[%s6841_s1 + $0x300] sm:$0xf]  ;;  %v4375_v27 = vld [vmem:[%s6841_s1 + $0x30c] sm:$0xf0]  ;;  %v3192_v36 = vor.u32 %v4343_v25, %v3191_v23  ;;  %1622 = vmatpush.bf16.msra.mxu0 %v2936_v31 }
  0x21   :  { %v3559_v28 = vld [vmem:[%s6841_s1 + $0x4e0] sm:$0xf]  ;;  %v4435_v29 = vld [vmem:[%s6841_s1 + $0x4ec] sm:$0xf0]  ;;  %v3320_v39 = vor.u32 %v4375_v27, %v3319_v26  ;;  %1635 = vmatpush.bf16.msra.mxu1 %v3064_v35 }
  0x22   :  { %v3687_v30 = vld [vmem:[%s6841_s1 + $0x5e0] sm:$0xf]  ;;  %v4467_v32 = vld [vmem:[%s6841_s1 + $0x5ec] sm:$0xf0]  ;;  %v3560_v40 = vor.u32 %v4435_v29, %v3559_v28  ;;  %1648 = vmatpush.bf16.msra.mxu2 %v3192_v36 }
  0x23   :  { %v3815_v33 = vld [vmem:[%s6841_s1 + $0x6e0] sm:$0xf]  ;;  %v4499_v34 = vld [vmem:[%s6841_s1 + $0x6ec] sm:$0xf0]  ;;  %v3688_v41 = vor.u32 %v4467_v32, %v3687_v30  ;;  %1661 = vmatpush.bf16.msra.mxu3 %v3320_v39 }
  0x24   :  { %v3943_v37 = vld [vmem:[%s6841_s1 + $0x7e0] sm:$0xf]  ;;  %v4531_v38 = vld [vmem:[%s6841_s1 + $0x7ec] sm:$0xf0]  ;;  %v3816_v42 = vor.u32 %v4499_v34, %v3815_v33  ;;  %1667 = vmatpush.bf16.msrb.mxu0 %v3560_v40 }
  0x25   :  { %v3543_v43 = vld [vmem:[%s6841_s1 + $0x4c0] sm:$0xf]  ;;  %v4431_v44 = vld [vmem:[%s6841_s1 + $0x4cc] sm:$0xf0]  ;;  %v3944_v46 = vor.u32 %v4531_v38, %v3943_v37  ;;  %1680 = vmatpush.bf16.msrb.mxu1 %v3688_v41 }
  0x26   :  { %v3671_v45 = vld [vmem:[%s6841_s1 + $0x5c0] sm:$0xf]  ;;  %v4463_v47 = vld [vmem:[%s6841_s1 + $0x5cc] sm:$0xf0]  ;;  %v3544_v53 = vor.u32 %v4431_v44, %v3543_v43  ;;  %1693 = vmatpush.bf16.msrb.mxu2 %v3816_v42 }
  0x27   :  { %v3799_v48 = vld [vmem:[%s6841_s1 + $0x6c0] sm:$0xf]  ;;  %v4495_v49 = vld [vmem:[%s6841_s1 + $0x6cc] sm:$0xf0]  ;;  %v3672_v54 = vor.u32 %v4463_v47, %v3671_v45  ;;  %1706 = vmatpush.bf16.msrb.mxu3 %v3944_v46  ;;  %v39_v45 = vld [vmem:[%s6842_s0 + $0x8] sm:$0xff] }
  0x28   :  { %v3927_v50 = vld [vmem:[%s6841_s1 + $0x7c0] sm:$0xf]  ;;  %v4527_v51 = vld [vmem:[%s6841_s1 + $0x7cc] sm:$0xf0]  ;;  %v3800_v55 = vor.u32 %v4495_v49, %v3799_v48  ;;  %1668 = vmatpush.bf16.msrb.mxu0 %v3544_v53  ;;  %44 = vst [vmem:[#allocation1 + $0x20] ss:$4 sm:$0xff] %v39_v45 }
  0x29   :  { %v38_v52 = vld [vmem:[%s6842_s0] sm:$0xff]  ;;  %v4427_v57 = vld [vmem:[%s6841_s1 + $0x4ac] sm:$0xf0]  ;;  %v3928_v59 = vor.u32 %v4527_v51, %v3927_v50  ;;  %1681 = vmatpush.bf16.msrb.mxu1 %v3672_v54 }
  0x2a   :  { %42 = vst [vmem:[#allocation1] ss:$4 sm:$0xff] %v38_v52  ;;  %v3527_v56 = vld [vmem:[%s6841_s1 + $0x4a0] sm:$0xf]  ;;  %v4459_v60 = vld [vmem:[%s6841_s1 + $0x5ac] sm:$0xf0]  ;;  %1694 = vmatpush.bf16.msrb.mxu2 %v3800_v55 }
  0x2b   :  { %v3655_v58 = vld [vmem:[%s6841_s1 + $0x5a0] sm:$0xf]  ;;  %v4491_v62 = vld [vmem:[%s6841_s1 + $0x6ac] sm:$0xf0]  ;;  %v3528_v1 = vor.u32 %v4427_v57, %v3527_v56  ;;  %1707 = vmatpush.bf16.msrb.mxu3 %v3928_v59  ;;  %v4297_v45 = vld [vmem:[%s6841_s1 + $0xa4] sm:$0xf] }
  0x2c   :  { %v3783_v61 = vld [vmem:[%s6841_s1 + $0x6a0] sm:$0xf]  ;;  %v4523_v0 = vld [vmem:[%s6841_s1 + $0x7ac] sm:$0xf0]  ;;  %v3656_v4 = vor.u32 %v4459_v60, %v3655_v58 }
  0x2d   :  { %v3911_v63 = vld [vmem:[%s6841_s1 + $0x7a0] sm:$0xf]  ;;  %v4423_v3 = vld [vmem:[%s6841_s1 + $0x48c] sm:$0xf0]  ;;  %v3784_v5 = vor.u32 %v4491_v62, %v3783_v61  ;;  %1669 = vmatpush.bf16.msrb.mxu0 %v3528_v1 }
  0x2e   :  { %v3511_v2 = vld [vmem:[%s6841_s1 + $0x480] sm:$0xf]  ;;  %v4455_v7 = vld [vmem:[%s6841_s1 + $0x58c] sm:$0xf0]  ;;  %v3912_v9 = vor.u32 %v4523_v0, %v3911_v63  ;;  %1682 = vmatpush.bf16.msrb.mxu1 %v3656_v4 }
  0x2f   :  { %v3639_v6 = vld [vmem:[%s6841_s1 + $0x580] sm:$0xf]  ;;  %v4487_v10 = vld [vmem:[%s6841_s1 + $0x68c] sm:$0xf0]  ;;  %v3512_v15 = vor.u32 %v4423_v3, %v3511_v2  ;;  %1695 = vmatpush.bf16.msrb.mxu2 %v3784_v5 }
  0x30   :  { %v3767_v8 = vld [vmem:[%s6841_s1 + $0x680] sm:$0xf]  ;;  %v4519_v12 = vld [vmem:[%s6841_s1 + $0x78c] sm:$0xf0]  ;;  %v3640_v16 = vor.u32 %v4455_v7, %v3639_v6  ;;  %1708 = vmatpush.bf16.msrb.mxu3 %v3912_v9  ;;  %v4305_v6 = vld [vmem:[%s6841_s1 + $0xe4] sm:$0xf] }
  0x31   :  { %v3895_v11 = vld [vmem:[%s6841_s1 + $0x780] sm:$0xf]  ;;  %v47_v13 = vld.sshfl [vmem:[#allocation1 + $0x10] sm:$0xff pattern:$0x73625140]  ;;  %v3768_v21 = vor.u32 %v4487_v10, %v3767_v8  ;;  %1670 = vmatpush.bf16.msrb.mxu0 %v3512_v15 }
  0x32   :  { %v45_v14 = vld.sshfl [vmem:[#allocation1] sm:$0xff pattern:$0x73625140]  ;;  %v4982_v17 = vpack.c.bf16 %v47_v13, %v47_v13  ;;  %v48_v19 = vld.sshfl [vmem:[#allocation1 + $0x18] sm:$0xff pattern:$0x73625140]  ;;  %v3896_v27 = vor.u32 %v4519_v12, %v3895_v11  ;;  %1683 = vmatpush.bf16.msrb.mxu1 %v3640_v16 }
  0x33   :  { %v4984_v18 = vpack.c.bf16 %v45_v14, %v45_v14  ;;  %v46_v20 = vld.sshfl [vmem:[#allocation1 + $0x8] sm:$0xff pattern:$0x73625140]  ;;  %v3495_v22 = vld [vmem:[%s6841_s1 + $0x460] sm:$0xf]  ;;  %v4995_v25 = vpack.c.bf16 %v48_v19, %v48_v19  ;;  %1696 = vmatpush.bf16.msrb.mxu2 %v3768_v21 }
  0x34   :  { %v4419_v23 = vld [vmem:[%s6841_s1 + $0x46c] sm:$0xf0]  ;;  %v3623_v24 = vld [vmem:[%s6841_s1 + $0x560] sm:$0xf]  ;;  %v4997_v26 = vpack.c.bf16 %v46_v20, %v46_v20  ;;  %1649 = vmatmul.bf16.vlgmr.msra.gmra.mxu2 %v4982_v17  ;;  %1709 = vmatpush.bf16.msrb.mxu3 %v3896_v27  ;;  %v3049_v7 = vld [vmem:[%s6841_s1 + $0xf0] sm:$0xf0] }
  0x35   :  { %v4451_v28 = vld [vmem:[%s6841_s1 + $0x56c] sm:$0xf0]  ;;  %v3751_v29 = vld [vmem:[%s6841_s1 + $0x660] sm:$0xf]  ;;  %1623 = vmatmul.bf16.vlgmr.msra.gmra.mxu0 %v4984_v18  ;;  %1662 = vmatmul.bf16.vlgmr.msra.gmra.mxu3 %v4995_v25  ;;  %v3496_v33 = vor.u32 %v4419_v23, %v3495_v22  ;;  %v4337_v8 = vld [vmem:[%s6841_s1 + $0x1e4] sm:$0xf]  ;;  %v3052_v23 = vor.u32 %v4305_v6, %v3049_v7 }
  0x36   :  { %v4483_v30 = vld [vmem:[%s6841_s1 + $0x66c] sm:$0xf0]  ;;  %v3879_v31 = vld [vmem:[%s6841_s1 + $0x760] sm:$0xf]  ;;  %1636 = vmatmul.bf16.vlgmr.msra.gmra.mxu1 %v4997_v26  ;;  %v3624_v34 = vor.u32 %v4451_v28, %v3623_v24  ;;  %v3177_v9 = vld [vmem:[%s6841_s1 + $0x1f0] sm:$0xf0] }
  0x37   :  { %v4515_v32 = vld [vmem:[%s6841_s1 + $0x76c] sm:$0xf0]  ;;  %v3752_v35 = vor.u32 %v4483_v30, %v3751_v29  ;;  %v3479_v36 = vld [vmem:[%s6841_s1 + $0x440] sm:$0xf]  ;;  %1671 = vmatpush.bf16.msrb.mxu0 %v3496_v33  ;;  %v4369_v10 = vld [vmem:[%s6841_s1 + $0x2e4] sm:$0xf]  ;;  %v3180_v28 = vor.u32 %v4337_v8, %v3177_v9 }
  0x38   :  { %v4415_v37 = vld [vmem:[%s6841_s1 + $0x44c] sm:$0xf0]  ;;  %v3607_v38 = vld [vmem:[%s6841_s1 + $0x540] sm:$0xf]  ;;  %v3880_v39 = vor.u32 %v4515_v32, %v3879_v31  ;;  %1684 = vmatpush.bf16.msrb.mxu1 %v3624_v34  ;;  %v3305_v12 = vld [vmem:[%s6841_s1 + $0x2f0] sm:$0xf0] }
  0x39   :  { %v4447_v40 = vld [vmem:[%s6841_s1 + $0x54c] sm:$0xf0]  ;;  %v3735_v41 = vld [vmem:[%s6841_s1 + $0x640] sm:$0xf]  ;;  %v3480_v46 = vor.u32 %v4415_v37, %v3479_v36  ;;  %1697 = vmatpush.bf16.msrb.mxu2 %v3752_v35  ;;  %v4401_v13 = vld [vmem:[%s6841_s1 + $0x3e4] sm:$0xf]  ;;  %v3308_v29 = vor.u32 %v4369_v10, %v3305_v12 }
  0x3a   :  { %v4479_v42 = vld [vmem:[%s6841_s1 + $0x64c] sm:$0xf0]  ;;  %v3863_v43 = vld [vmem:[%s6841_s1 + $0x740] sm:$0xf]  ;;  %v3608_v47 = vor.u32 %v4447_v40, %v3607_v38  ;;  %1710 = vmatpush.bf16.msrb.mxu3 %v3880_v39  ;;  %v3433_v14 = vld [vmem:[%s6841_s1 + $0x3f0] sm:$0xf0] }
  0x3b   :  { %v4511_v44 = vld [vmem:[%s6841_s1 + $0x74c] sm:$0xf0]  ;;  %v3736_v48 = vor.u32 %v4479_v42, %v3735_v41  ;;  %v3463_v49 = vld [vmem:[%s6841_s1 + $0x420] sm:$0xf]  ;;  %1672 = vmatpush.bf16.msrb.mxu0 %v3480_v46  ;;  %v4301_v20 = vld [vmem:[%s6841_s1 + $0xc4] sm:$0xf]  ;;  %v3436_v32 = vor.u32 %v4401_v13, %v3433_v14 }
  0x3c   :  { %v4411_v50 = vld [vmem:[%s6841_s1 + $0x42c] sm:$0xf0]  ;;  %v3591_v51 = vld [vmem:[%s6841_s1 + $0x520] sm:$0xf]  ;;  %v3864_v52 = vor.u32 %v4511_v44, %v3863_v43  ;;  %1685 = vmatpush.bf16.msrb.mxu1 %v3608_v47  ;;  %v3033_v21 = vld [vmem:[%s6841_s1 + $0xd0] sm:$0xf0] }
  0x3d   :  { %v4443_v53 = vld [vmem:[%s6841_s1 + $0x52c] sm:$0xf0]  ;;  %v3719_v54 = vld [vmem:[%s6841_s1 + $0x620] sm:$0xf]  ;;  %v3464_v59 = vor.u32 %v4411_v50, %v3463_v49  ;;  %1698 = vmatpush.bf16.msrb.mxu2 %v3736_v48  ;;  %v4333_v30 = vld [vmem:[%s6841_s1 + $0x1c4] sm:$0xf]  ;;  %v3036_v41 = vor.u32 %v4301_v20, %v3033_v21 }
  0x3e   :  { %v4475_v55 = vld [vmem:[%s6841_s1 + $0x62c] sm:$0xf0]  ;;  %v3847_v56 = vld [vmem:[%s6841_s1 + $0x720] sm:$0xf]  ;;  %v3592_v63 = vor.u32 %v4443_v53, %v3591_v51  ;;  %1711 = vmatpush.bf16.msrb.mxu3 %v3864_v52  ;;  %v3161_v34 = vld [vmem:[%s6841_s1 + $0x1d0] sm:$0xf0] }
  0x3f   :  { %v4507_v57 = vld [vmem:[%s6841_s1 + $0x72c] sm:$0xf0]  ;;  %v3447_v58 = vld [vmem:[%s6841_s1 + $0x400] sm:$0xf]  ;;  %v3720_v0 = vor.u32 %v4475_v55, %v3719_v54  ;;  %1673 = vmatpush.bf16.msrb.mxu0 %v3464_v59  ;;  %v4365_v35 = vld [vmem:[%s6841_s1 + $0x2c4] sm:$0xf]  ;;  %v3164_v43 = vor.u32 %v4333_v30, %v3161_v34 }
  0x40   :  { %v4407_v60 = vld [vmem:[%s6841_s1 + $0x40c] sm:$0xf0]  ;;  %v3575_v61 = vld [vmem:[%s6841_s1 + $0x500] sm:$0xf]  ;;  %v3848_v4 = vor.u32 %v4507_v57, %v3847_v56  ;;  %1686 = vmatpush.bf16.msrb.mxu1 %v3592_v63  ;;  %v3289_v36 = vld [vmem:[%s6841_s1 + $0x2d0] sm:$0xf0] }
  0x41   :  { %v4439_v62 = vld [vmem:[%s6841_s1 + $0x50c] sm:$0xf0]  ;;  %v3703_v1 = vld [vmem:[%s6841_s1 + $0x600] sm:$0xf]  ;;  %v3448_v11 = vor.u32 %v4407_v60, %v3447_v58  ;;  %1699 = vmatpush.bf16.msrb.mxu2 %v3720_v0  ;;  %v4397_v39 = vld [vmem:[%s6841_s1 + $0x3c4] sm:$0xf]  ;;  %v3292_v44 = vor.u32 %v4365_v35, %v3289_v36 }
  0x42   :  { %v4471_v2 = vld [vmem:[%s6841_s1 + $0x60c] sm:$0xf0]  ;;  %v3831_v3 = vld [vmem:[%s6841_s1 + $0x700] sm:$0xf]  ;;  %v3576_v15 = vor.u32 %v4439_v62, %v3575_v61  ;;  %1712 = vmatpush.bf16.msrb.mxu3 %v3848_v4  ;;  %v3417_v40 = vld [vmem:[%s6841_s1 + $0x3d0] sm:$0xf0] }
  0x43   :  { %v4503_v5 = vld [vmem:[%s6841_s1 + $0x70c] sm:$0xf0]  ;;  %v3704_v16 = vor.u32 %v4471_v2, %v3703_v1  ;;  %v49_v24 = vld.sshfl [vmem:[#allocation1 + $0x20] sm:$0xff pattern:$0x73625140]  ;;  %1674 = vmatpush.bf16.msrb.mxu0 %v3448_v11  ;;  %v3420_v48 = vor.u32 %v4397_v39, %v3417_v40 }
  0x44   :  { %v51_v19 = vld.sshfl [vmem:[#allocation1 + $0x30] sm:$0xff pattern:$0x73625140]  ;;  %v3832_v22 = vor.u32 %v4503_v5, %v3831_v3  ;;  %v52_v27 = vld.sshfl [vmem:[#allocation1 + $0x38] sm:$0xff pattern:$0x73625140]  ;;  %1687 = vmatpush.bf16.msrb.mxu1 %v3576_v15  ;;  %v5137_v37 = vpack.c.bf16 %v49_v24, %v49_v24 }
  0x45   :  { %v50_v31 = vld.sshfl [vmem:[#allocation1 + $0x28] sm:$0xff pattern:$0x73625140]  ;;  %v5126_v33 = vpack.c.bf16 %v51_v19, %v51_v19  ;;  %1700 = vmatpush.bf16.msrb.mxu2 %v3704_v16  ;;  %v5139_v38 = vpack.c.bf16 %v52_v27, %v52_v27  ;;  %v3017_v46 = vld [vmem:[%s6841_s1 + $0xb0] sm:$0xf0] }
  0x46   :  { %1713 = vmatpush.bf16.msrb.mxu3 %v3832_v22  ;;  %v5147_v42 = vpack.c.bf16 %v50_v31, %v50_v31  ;;  %v4329_v47 = vld [vmem:[%s6841_s1 + $0x1a4] sm:$0xf]  ;;  %v3145_v49 = vld [vmem:[%s6841_s1 + $0x1b0] sm:$0xf0]  ;;  %1675 = vmatmul.bf16.vlgmr.msrb.gmra.mxu0 %v5137_v37  ;;  %v3020_v54 = vor.u32 %v4297_v45, %v3017_v46 }
  0x47   :  { %1719 = vmatpush.bf16.msra.mxu0 %v3052_v23  ;;  %v4361_v50 = vld [vmem:[%s6841_s1 + $0x2a4] sm:$0xf]  ;;  %v3273_v51 = vld [vmem:[%s6841_s1 + $0x2b0] sm:$0xf0]  ;;  %v3148_v55 = vor.u32 %v4329_v47, %v3145_v49 }
  0x48   :  { %1732 = vmatpush.bf16.msra.mxu1 %v3180_v28  ;;  %1701 = vmatmul.bf16.vlgmr.msrb.gmra.mxu2 %v5126_v33  ;;  %v4393_v52 = vld [vmem:[%s6841_s1 + $0x3a4] sm:$0xf]  ;;  %v3401_v53 = vld [vmem:[%s6841_s1 + $0x3b0] sm:$0xf0]  ;;  %v3276_v56 = vor.u32 %v4361_v50, %v3273_v51 }
  0x49   :  { %1745 = vmatpush.bf16.msra.mxu2 %v3308_v29  ;;  %1714 = vmatmul.bf16.vlgmr.msrb.gmra.mxu3 %v5139_v38  ;;  %v4293_v57 = vld [vmem:[%s6841_s1 + $0x84] sm:$0xf]  ;;  %v3001_v58 = vld [vmem:[%s6841_s1 + $0x90] sm:$0xf0]  ;;  %v3404_v60 = vor.u32 %v4393_v52, %v3401_v53 }
  0x4a   :  { %1758 = vmatpush.bf16.msra.mxu3 %v3436_v32  ;;  %1688 = vmatmul.bf16.vlgmr.msrb.gmra.mxu1 %v5147_v42  ;;  %v4325_v59 = vld [vmem:[%s6841_s1 + $0x184] sm:$0xf]  ;;  %v3129_v61 = vld [vmem:[%s6841_s1 + $0x190] sm:$0xf0]  ;;  %v3004_v2 = vor.u32 %v4293_v57, %v3001_v58 }
  0x4b   :  { %1720 = vmatpush.bf16.msra.mxu0 %v3036_v41  ;;  %v4357_v62 = vld [vmem:[%s6841_s1 + $0x284] sm:$0xf]  ;;  %v3257_v63 = vld [vmem:[%s6841_s1 + $0x290] sm:$0xf0]  ;;  %v3132_v3 = vor.u32 %v4325_v59, %v3129_v61 }
  0x4c   :  { %1733 = vmatpush.bf16.msra.mxu1 %v3164_v43  ;;  %v4389_v0 = vld [vmem:[%s6841_s1 + $0x384] sm:$0xf]  ;;  %v3385_v1 = vld [vmem:[%s6841_s1 + $0x390] sm:$0xf0]  ;;  %v3260_v4 = vor.u32 %v4357_v62, %v3257_v63 }
  0x4d   :  { %1746 = vmatpush.bf16.msra.mxu2 %v3292_v44  ;;  %v4289_v5 = vld [vmem:[%s6841_s1 + $0x64] sm:$0xf]  ;;  %v2985_v6 = vld [vmem:[%s6841_s1 + $0x70] sm:$0xf0]  ;;  %v3388_v8 = vor.u32 %v4389_v0, %v3385_v1 }
  0x4e   :  { %1759 = vmatpush.bf16.msra.mxu3 %v3420_v48  ;;  %v4321_v7 = vld [vmem:[%s6841_s1 + $0x164] sm:$0xf]  ;;  %v3113_v9 = vld [vmem:[%s6841_s1 + $0x170] sm:$0xf0]  ;;  %v2988_v14 = vor.u32 %v4289_v5, %v2985_v6 }
  0x4f   :  { %1721 = vmatpush.bf16.msra.mxu0 %v3020_v54  ;;  %v4353_v10 = vld [vmem:[%s6841_s1 + $0x264] sm:$0xf]  ;;  %v3241_v11 = vld [vmem:[%s6841_s1 + $0x270] sm:$0xf0]  ;;  %v3116_v15 = vor.u32 %v4321_v7, %v3113_v9 }
  0x50   :  { %1734 = vmatpush.bf16.msra.mxu1 %v3148_v55  ;;  %v4385_v12 = vld [vmem:[%s6841_s1 + $0x364] sm:$0xf]  ;;  %v3369_v13 = vld [vmem:[%s6841_s1 + $0x370] sm:$0xf0]  ;;  %v3244_v16 = vor.u32 %v4353_v10, %v3241_v11 }
  0x51   :  { %1747 = vmatpush.bf16.msra.mxu2 %v3276_v56  ;;  %v4285_v19 = vld [vmem:[%s6841_s1 + $0x44] sm:$0xf]  ;;  %v2969_v20 = vld [vmem:[%s6841_s1 + $0x50] sm:$0xf0]  ;;  %v3372_v22 = vor.u32 %v4385_v12, %v3369_v13 }
  0x52   :  { %1760 = vmatpush.bf16.msra.mxu3 %v3404_v60  ;;  %v4317_v21 = vld [vmem:[%s6841_s1 + $0x144] sm:$0xf]  ;;  %v3097_v23 = vld [vmem:[%s6841_s1 + $0x150] sm:$0xf0]  ;;  %v2972_v30 = vor.u32 %v4285_v19, %v2969_v20 }
  0x53   :  { %1722 = vmatpush.bf16.msra.mxu0 %v3004_v2  ;;  %v4349_v24 = vld [vmem:[%s6841_s1 + $0x244] sm:$0xf]  ;;  %v3225_v27 = vld [vmem:[%s6841_s1 + $0x250] sm:$0xf0]  ;;  %v3100_v31 = vor.u32 %v4317_v21, %v3097_v23 }
  0x54   :  { %1735 = vmatpush.bf16.msra.mxu1 %v3132_v3  ;;  %v4381_v28 = vld [vmem:[%s6841_s1 + $0x344] sm:$0xf]  ;;  %v3353_v29 = vld [vmem:[%s6841_s1 + $0x350] sm:$0xf0]  ;;  %v3228_v32 = vor.u32 %v4349_v24, %v3225_v27 }
  0x55   :  { %1748 = vmatpush.bf16.msra.mxu2 %v3260_v4  ;;  %v4281_v34 = vld [vmem:[%s6841_s1 + $0x24] sm:$0xf]  ;;  %v2953_v35 = vld [vmem:[%s6841_s1 + $0x30] sm:$0xf0]  ;;  %v3356_v39 = vor.u32 %v4381_v28, %v3353_v29 }
  0x56   :  { %1761 = vmatpush.bf16.msra.mxu3 %v3388_v8  ;;  %v4313_v36 = vld [vmem:[%s6841_s1 + $0x124] sm:$0xf]  ;;  %v3081_v40 = vld [vmem:[%s6841_s1 + $0x130] sm:$0xf0]  ;;  %v2956_v46 = vor.u32 %v4281_v34, %v2953_v35 }
  0x57   :  { %1723 = vmatpush.bf16.msra.mxu0 %v2988_v14  ;;  %v4345_v41 = vld [vmem:[%s6841_s1 + $0x224] sm:$0xf]  ;;  %v3209_v43 = vld [vmem:[%s6841_s1 + $0x230] sm:$0xf0]  ;;  %v3084_v49 = vor.u32 %v4313_v36, %v3081_v40 }
  0x58   :  { %1736 = vmatpush.bf16.msra.mxu1 %v3116_v15  ;;  %v4377_v44 = vld [vmem:[%s6841_s1 + $0x324] sm:$0xf]  ;;  %v3337_v45 = vld [vmem:[%s6841_s1 + $0x330] sm:$0xf0]  ;;  %v3212_v50 = vor.u32 %v4345_v41, %v3209_v43 }
  0x59   :  { %1749 = vmatpush.bf16.msra.mxu2 %v3244_v16  ;;  %v4277_v47 = vld [vmem:[%s6841_s1 + $0x4] sm:$0xf]  ;;  %v2937_v48 = vld [vmem:[%s6841_s1 + $0x10] sm:$0xf0]  ;;  %v3340_v54 = vor.u32 %v4377_v44, %v3337_v45 }
  0x5a   :  { %1762 = vmatpush.bf16.msra.mxu3 %v3372_v22  ;;  %v4309_v51 = vld [vmem:[%s6841_s1 + $0x104] sm:$0xf]  ;;  %v3065_v52 = vld [vmem:[%s6841_s1 + $0x110] sm:$0xf0]  ;;  %v2940_v61 = vor.u32 %v4277_v47, %v2937_v48 }
  0x5b   :  { %1724 = vmatpush.bf16.msra.mxu0 %v2972_v30  ;;  %v4341_v53 = vld [vmem:[%s6841_s1 + $0x204] sm:$0xf]  ;;  %v3193_v55 = vld [vmem:[%s6841_s1 + $0x210] sm:$0xf0]  ;;  %v3068_v1 = vor.u32 %v4309_v51, %v3065_v52 }
  0x5c   :  { %1737 = vmatpush.bf16.msra.mxu1 %v3100_v31  ;;  %v4373_v56 = vld [vmem:[%s6841_s1 + $0x304] sm:$0xf]  ;;  %v3321_v57 = vld [vmem:[%s6841_s1 + $0x310] sm:$0xf0]  ;;  %v3196_v2 = vor.u32 %v4341_v53, %v3193_v55 }
  0x5d   :  { %1750 = vmatpush.bf16.msra.mxu2 %v3228_v32  ;;  %v4433_v58 = vld [vmem:[%s6841_s1 + $0x4e4] sm:$0xf]  ;;  %v3561_v59 = vld [vmem:[%s6841_s1 + $0x4f0] sm:$0xf0]  ;;  %v3324_v5 = vor.u32 %v4373_v56, %v3321_v57 }
  0x5e   :  { %1763 = vmatpush.bf16.msra.mxu3 %v3356_v39  ;;  %v4465_v60 = vld [vmem:[%s6841_s1 + $0x5e4] sm:$0xf]  ;;  %v3689_v62 = vld [vmem:[%s6841_s1 + $0x5f0] sm:$0xf0]  ;;  %v3564_v6 = vor.u32 %v4433_v58, %v3561_v59 }
  0x5f   :  { %1725 = vmatpush.bf16.msra.mxu0 %v2956_v46  ;;  %v4497_v63 = vld [vmem:[%s6841_s1 + $0x6e4] sm:$0xf]  ;;  %v3817_v0 = vld [vmem:[%s6841_s1 + $0x6f0] sm:$0xf0]  ;;  %v3692_v7 = vor.u32 %v4465_v60, %v3689_v62 }
  0x60   :  { %1738 = vmatpush.bf16.msra.mxu1 %v3084_v49  ;;  %v4529_v3 = vld [vmem:[%s6841_s1 + $0x7e4] sm:$0xf]  ;;  %v3945_v4 = vld [vmem:[%s6841_s1 + $0x7f0] sm:$0xf0]  ;;  %v3820_v8 = vor.u32 %v4497_v63, %v3817_v0 }
  0x61   :  { %1751 = vmatpush.bf16.msra.mxu2 %v3212_v50  ;;  %v4429_v9 = vld [vmem:[%s6841_s1 + $0x4c4] sm:$0xf]  ;;  %v3545_v10 = vld [vmem:[%s6841_s1 + $0x4d0] sm:$0xf0]  ;;  %v3948_v12 = vor.u32 %v4529_v3, %v3945_v4 }
  0x62   :  { %1764 = vmatpush.bf16.msra.mxu3 %v3340_v54  ;;  %v4461_v11 = vld [vmem:[%s6841_s1 + $0x5c4] sm:$0xf]  ;;  %v3673_v13 = vld [vmem:[%s6841_s1 + $0x5d0] sm:$0xf0]  ;;  %v3548_v20 = vor.u32 %v4429_v9, %v3545_v10 }
  0x63   :  { %1726 = vmatpush.bf16.msra.mxu0 %v2940_v61  ;;  %v4493_v14 = vld [vmem:[%s6841_s1 + $0x6c4] sm:$0xf]  ;;  %v3801_v15 = vld [vmem:[%s6841_s1 + $0x6d0] sm:$0xf0]  ;;  %v3676_v21 = vor.u32 %v4461_v11, %v3673_v13 }
  0x64   :  { %1739 = vmatpush.bf16.msra.mxu1 %v3068_v1  ;;  %v4525_v16 = vld [vmem:[%s6841_s1 + $0x7c4] sm:$0xf]  ;;  %v3929_v19 = vld [vmem:[%s6841_s1 + $0x7d0] sm:$0xf0]  ;;  %v3804_v22 = vor.u32 %v4493_v14, %v3801_v15 }
  0x65   :  { %1752 = vmatpush.bf16.msra.mxu2 %v3196_v2  ;;  %v4425_v23 = vld [vmem:[%s6841_s1 + $0x4a4] sm:$0xf]  ;;  %v3529_v24 = vld [vmem:[%s6841_s1 + $0x4b0] sm:$0xf0]  ;;  %v3932_v28 = vor.u32 %v4525_v16, %v3929_v19 }
  0x66   :  { %1765 = vmatpush.bf16.msra.mxu3 %v3324_v5  ;;  %v4457_v27 = vld [vmem:[%s6841_s1 + $0x5a4] sm:$0xf]  ;;  %v3657_v29 = vld [vmem:[%s6841_s1 + $0x5b0] sm:$0xf0]  ;;  %1727 = vmatmul.bf16.vlgmr.msra.gmra.mxu0 %v4984_v18  ;;  %v3532_v35 = vor.u32 %v4425_v23, %v3529_v24 }
  0x67   :  { %1771 = vmatpush.bf16.msrb.mxu0 %v3564_v6  ;;  %v4489_v30 = vld [vmem:[%s6841_s1 + $0x6a4] sm:$0xf]  ;;  %v3785_v31 = vld [vmem:[%s6841_s1 + $0x6b0] sm:$0xf0]  ;;  %1740 = vmatmul.bf16.vlgmr.msra.gmra.mxu1 %v4997_v26  ;;  %v3660_v36 = vor.u32 %v4457_v27, %v3657_v29 }
  0x68   :  { %1784 = vmatpush.bf16.msrb.mxu1 %v3692_v7  ;;  %1753 = vmatmul.bf16.vlgmr.msra.gmra.mxu2 %v4982_v17  ;;  %v4521_v32 = vld [vmem:[%s6841_s1 + $0x7a4] sm:$0xf]  ;;  %v3913_v34 = vld [vmem:[%s6841_s1 + $0x7b0] sm:$0xf0]  ;;  %v3788_v39 = vor.u32 %v4489_v30, %v3785_v31 }
  0x69   :  { %1797 = vmatpush.bf16.msrb.mxu2 %v3820_v8  ;;  %1766 = vmatmul.bf16.vlgmr.msra.gmra.mxu3 %v4995_v25  ;;  %v4421_v40 = vld [vmem:[%s6841_s1 + $0x484] sm:$0xf]  ;;  %v3513_v41 = vld [vmem:[%s6841_s1 + $0x490] sm:$0xf0]  ;;  %v3916_v44 = vor.u32 %v4521_v32, %v3913_v34 }
  0x6a   :  { %1810 = vmatpush.bf16.msrb.mxu3 %v3948_v12  ;;  %v4453_v43 = vld [vmem:[%s6841_s1 + $0x584] sm:$0xf]  ;;  %v3641_v45 = vld [vmem:[%s6841_s1 + $0x590] sm:$0xf0]  ;;  %v3516_v50 = vor.u32 %v4421_v40, %v3513_v41  ;;  %v3055_v41 = vld [vmem:[%s6841_s1 + $0xe8] sm:$0xf] }
  0x6b   :  { %1772 = vmatpush.bf16.msrb.mxu0 %v3548_v20  ;;  %v4485_v46 = vld [vmem:[%s6841_s1 + $0x684] sm:$0xf]  ;;  %v3769_v47 = vld [vmem:[%s6841_s1 + $0x690] sm:$0xf0]  ;;  %v3644_v51 = vor.u32 %v4453_v43, %v3641_v45  ;;  %v4308_v43 = vld [vmem:[%s6841_s1 + $0xf4] sm:$0xf0] }
  0x6c   :  { %1785 = vmatpush.bf16.msrb.mxu1 %v3676_v21  ;;  %v4517_v48 = vld [vmem:[%s6841_s1 + $0x784] sm:$0xf]  ;;  %v3897_v49 = vld [vmem:[%s6841_s1 + $0x790] sm:$0xf0]  ;;  %v3772_v52 = vor.u32 %v4485_v46, %v3769_v47  ;;  %v4340_v46 = vld [vmem:[%s6841_s1 + $0x1f4] sm:$0xf0] }
  0x6d   :  { %1798 = vmatpush.bf16.msrb.mxu2 %v3804_v22  ;;  %v4417_v53 = vld [vmem:[%s6841_s1 + $0x464] sm:$0xf]  ;;  %v3497_v54 = vld [vmem:[%s6841_s1 + $0x470] sm:$0xf0]  ;;  %v3900_v56 = vor.u32 %v4517_v48, %v3897_v49  ;;  %v3311_v47 = vld [vmem:[%s6841_s1 + $0x2e8] sm:$0xf] }
  0x6e   :  { %1811 = vmatpush.bf16.msrb.mxu3 %v3932_v28  ;;  %v4449_v55 = vld [vmem:[%s6841_s1 + $0x564] sm:$0xf]  ;;  %v3625_v57 = vld [vmem:[%s6841_s1 + $0x570] sm:$0xf0]  ;;  %v3500_v62 = vor.u32 %v4417_v53, %v3497_v54  ;;  %v4372_v48 = vld [vmem:[%s6841_s1 + $0x2f4] sm:$0xf0]  ;;  %v3056_v54 = vor.u32 %v4308_v43, %v3055_v41 }
  0x6f   :  { %1773 = vmatpush.bf16.msrb.mxu0 %v3532_v35  ;;  %v4481_v58 = vld [vmem:[%s6841_s1 + $0x664] sm:$0xf]  ;;  %v3753_v59 = vld [vmem:[%s6841_s1 + $0x670] sm:$0xf0]  ;;  %v3628_v63 = vor.u32 %v4449_v55, %v3625_v57  ;;  %v3039_v57 = vld [vmem:[%s6841_s1 + $0xc8] sm:$0xf] }
  0x70   :  { %1786 = vmatpush.bf16.msrb.mxu1 %v3660_v36  ;;  %v4513_v60 = vld [vmem:[%s6841_s1 + $0x764] sm:$0xf]  ;;  %v3881_v61 = vld [vmem:[%s6841_s1 + $0x770] sm:$0xf0]  ;;  %v3756_v0 = vor.u32 %v4481_v58, %v3753_v59  ;;  %v4304_v58 = vld [vmem:[%s6841_s1 + $0xd4] sm:$0xf0] }
  0x71   :  { %1799 = vmatpush.bf16.msrb.mxu2 %v3788_v39  ;;  %v4413_v1 = vld [vmem:[%s6841_s1 + $0x444] sm:$0xf]  ;;  %v3481_v2 = vld [vmem:[%s6841_s1 + $0x450] sm:$0xf0]  ;;  %v3884_v4 = vor.u32 %v4513_v60, %v3881_v61  ;;  %v3167_v59 = vld [vmem:[%s6841_s1 + $0x1c8] sm:$0xf] }
  0x72   :  { %1812 = vmatpush.bf16.msrb.mxu3 %v3916_v44  ;;  %v4445_v3 = vld [vmem:[%s6841_s1 + $0x544] sm:$0xf]  ;;  %v3609_v5 = vld [vmem:[%s6841_s1 + $0x550] sm:$0xf0]  ;;  %v3484_v10 = vor.u32 %v4413_v1, %v3481_v2  ;;  %v3183_v44 = vld [vmem:[%s6841_s1 + $0x1e8] sm:$0xf]  ;;  %v3040_v2 = vor.u32 %v4304_v58, %v3039_v57 }
  0x73   :  { %1774 = vmatpush.bf16.msrb.mxu0 %v3516_v50  ;;  %v4477_v6 = vld [vmem:[%s6841_s1 + $0x644] sm:$0xf]  ;;  %v3737_v7 = vld [vmem:[%s6841_s1 + $0x650] sm:$0xf0]  ;;  %v3612_v11 = vor.u32 %v4445_v3, %v3609_v5  ;;  %v3184_v55 = vor.u32 %v4340_v46, %v3183_v44  ;;  %v4336_v61 = vld [vmem:[%s6841_s1 + $0x1d4] sm:$0xf0] }
  0x74   :  { %1787 = vmatpush.bf16.msrb.mxu1 %v3644_v51  ;;  %v4509_v8 = vld [vmem:[%s6841_s1 + $0x744] sm:$0xf]  ;;  %v3865_v9 = vld [vmem:[%s6841_s1 + $0x750] sm:$0xf0]  ;;  %v3740_v12 = vor.u32 %v4477_v6, %v3737_v7  ;;  %v3439_v51 = vld [vmem:[%s6841_s1 + $0x3e8] sm:$0xf]  ;;  %v3168_v3 = vor.u32 %v4336_v61, %v3167_v59 }
  0x75   :  { %1800 = vmatpush.bf16.msrb.mxu2 %v3772_v52  ;;  %v4409_v13 = vld [vmem:[%s6841_s1 + $0x424] sm:$0xf]  ;;  %v3465_v14 = vld [vmem:[%s6841_s1 + $0x430] sm:$0xf0]  ;;  %v3868_v16 = vor.u32 %v4509_v8, %v3865_v9  ;;  %v4404_v52 = vld [vmem:[%s6841_s1 + $0x3f4] sm:$0xf0] }
  0x76   :  { %1813 = vmatpush.bf16.msrb.mxu3 %v3900_v56  ;;  %v4441_v15 = vld [vmem:[%s6841_s1 + $0x524] sm:$0xf]  ;;  %v3593_v19 = vld [vmem:[%s6841_s1 + $0x530] sm:$0xf0]  ;;  %v3468_v24 = vor.u32 %v4409_v13, %v3465_v14  ;;  %v3312_v56 = vor.u32 %v4372_v48, %v3311_v47  ;;  %v3440_v60 = vor.u32 %v4404_v52, %v3439_v51  ;;  %v4400_v1 = vld [vmem:[%s6841_s1 + $0x3d4] sm:$0xf0] }
  0x77   :  { %1775 = vmatpush.bf16.msrb.mxu0 %v3500_v62  ;;  %v4473_v20 = vld [vmem:[%s6841_s1 + $0x624] sm:$0xf]  ;;  %v3721_v21 = vld [vmem:[%s6841_s1 + $0x630] sm:$0xf0]  ;;  %v3596_v29 = vor.u32 %v4441_v15, %v3593_v19  ;;  %v3295_v62 = vld [vmem:[%s6841_s1 + $0x2c8] sm:$0xf] }
  0x78   :  { %1788 = vmatpush.bf16.msrb.mxu1 %v3628_v63  ;;  %v4505_v22 = vld [vmem:[%s6841_s1 + $0x724] sm:$0xf]  ;;  %v3849_v23 = vld [vmem:[%s6841_s1 + $0x730] sm:$0xf0]  ;;  %v3724_v30 = vor.u32 %v4473_v20, %v3721_v21  ;;  %v4368_v63 = vld [vmem:[%s6841_s1 + $0x2d4] sm:$0xf0] }
  0x79   :  { %1801 = vmatpush.bf16.msrb.mxu2 %v3756_v0  ;;  %v4405_v27 = vld [vmem:[%s6841_s1 + $0x404] sm:$0xf]  ;;  %v3449_v28 = vld [vmem:[%s6841_s1 + $0x410] sm:$0xf0]  ;;  %v3852_v35 = vor.u32 %v4505_v22, %v3849_v23  ;;  %v3423_v0 = vld [vmem:[%s6841_s1 + $0x3c8] sm:$0xf] }
  0x7a   :  { %1814 = vmatpush.bf16.msrb.mxu3 %v3884_v4  ;;  %v4437_v31 = vld [vmem:[%s6841_s1 + $0x504] sm:$0xf]  ;;  %v3577_v32 = vld [vmem:[%s6841_s1 + $0x510] sm:$0xf0]  ;;  %v3452_v45 = vor.u32 %v4405_v27, %v3449_v28  ;;  %v3296_v4 = vor.u32 %v4368_v63, %v3295_v62  ;;  %v3023_v5 = vld [vmem:[%s6841_s1 + $0xa8] sm:$0xf]  ;;  %v3424_v8 = vor.u32 %v4400_v1, %v3423_v0 }
  0x7b   :  { %1776 = vmatpush.bf16.msrb.mxu0 %v3484_v10  ;;  %v4469_v34 = vld [vmem:[%s6841_s1 + $0x604] sm:$0xf]  ;;  %v3705_v36 = vld [vmem:[%s6841_s1 + $0x610] sm:$0xf0]  ;;  %v3580_v49 = vor.u32 %v4437_v31, %v3577_v32  ;;  %v4300_v6 = vld [vmem:[%s6841_s1 + $0xb4] sm:$0xf0] }
  0x7c   :  { %1789 = vmatpush.bf16.msrb.mxu1 %v3612_v11  ;;  %v4501_v39 = vld [vmem:[%s6841_s1 + $0x704] sm:$0xf]  ;;  %v3833_v40 = vld [vmem:[%s6841_s1 + $0x710] sm:$0xf0]  ;;  %v3708_v50 = vor.u32 %v4469_v34, %v3705_v36  ;;  %v3151_v7 = vld [vmem:[%s6841_s1 + $0x1a8] sm:$0xf]  ;;  %v3024_v14 = vor.u32 %v4300_v6, %v3023_v5 }
  0x7d   :  { %1802 = vmatpush.bf16.msrb.mxu2 %v3740_v12  ;;  %v3836_v53 = vor.u32 %v4501_v39, %v3833_v40  ;;  %v4332_v9 = vld [vmem:[%s6841_s1 + $0x1b4] sm:$0xf0]  ;;  %v3279_v10 = vld [vmem:[%s6841_s1 + $0x2a8] sm:$0xf] }
  0x7e   :  { %1815 = vmatpush.bf16.msrb.mxu3 %v3868_v16  ;;  %v4364_v11 = vld [vmem:[%s6841_s1 + $0x2b4] sm:$0xf0]  ;;  %v3407_v12 = vld [vmem:[%s6841_s1 + $0x3a8] sm:$0xf]  ;;  %v3152_v15 = vor.u32 %v4332_v9, %v3151_v7 }
  0x7f   :  { %1777 = vmatpush.bf16.msrb.mxu0 %v3468_v24  ;;  %v4396_v13 = vld [vmem:[%s6841_s1 + $0x3b4] sm:$0xf0]  ;;  %v3280_v16 = vor.u32 %v4364_v11, %v3279_v10  ;;  %v3007_v19 = vld [vmem:[%s6841_s1 + $0x88] sm:$0xf] }
  0x80   :  { %1790 = vmatpush.bf16.msrb.mxu1 %v3596_v29  ;;  %v4296_v20 = vld [vmem:[%s6841_s1 + $0x94] sm:$0xf0]  ;;  %v3135_v21 = vld [vmem:[%s6841_s1 + $0x188] sm:$0xf]  ;;  %v3408_v22 = vor.u32 %v4396_v13, %v3407_v12 }
  0x81   :  { %1803 = vmatpush.bf16.msrb.mxu2 %v3724_v30  ;;  %v4328_v23 = vld [vmem:[%s6841_s1 + $0x194] sm:$0xf0]  ;;  %v3263_v24 = vld [vmem:[%s6841_s1 + $0x288] sm:$0xf]  ;;  %v3008_v30 = vor.u32 %v4296_v20, %v3007_v19 }
  0x82   :  { %1816 = vmatpush.bf16.msrb.mxu3 %v3852_v35  ;;  %v4360_v27 = vld [vmem:[%s6841_s1 + $0x294] sm:$0xf0]  ;;  %v3391_v28 = vld [vmem:[%s6841_s1 + $0x388] sm:$0xf]  ;;  %v3136_v31 = vor.u32 %v4328_v23, %v3135_v21 }
  0x83   :  { %1778 = vmatpush.bf16.msrb.mxu0 %v3452_v45  ;;  %v4392_v29 = vld [vmem:[%s6841_s1 + $0x394] sm:$0xf0]  ;;  %v3264_v32 = vor.u32 %v4360_v27, %v3263_v24  ;;  %v2991_v34 = vld [vmem:[%s6841_s1 + $0x68] sm:$0xf] }
  0x84   :  { %1791 = vmatpush.bf16.msrb.mxu1 %v3580_v49  ;;  %v4292_v35 = vld [vmem:[%s6841_s1 + $0x74] sm:$0xf0]  ;;  %v3119_v36 = vld [vmem:[%s6841_s1 + $0x168] sm:$0xf]  ;;  %v3392_v39 = vor.u32 %v4392_v29, %v3391_v28 }
  0x85   :  { %1804 = vmatpush.bf16.msrb.mxu2 %v3708_v50  ;;  %v4324_v40 = vld [vmem:[%s6841_s1 + $0x174] sm:$0xf0]  ;;  %v3247_v41 = vld [vmem:[%s6841_s1 + $0x268] sm:$0xf]  ;;  %v2992_v46 = vor.u32 %v4292_v35, %v2991_v34 }
  0x86   :  { %1817 = vmatpush.bf16.msrb.mxu3 %v3836_v53  ;;  %1779 = vmatmul.bf16.vlgmr.msrb.gmra.mxu0 %v5137_v37  ;;  %v4356_v43 = vld [vmem:[%s6841_s1 + $0x274] sm:$0xf0]  ;;  %v3375_v44 = vld [vmem:[%s6841_s1 + $0x368] sm:$0xf]  ;;  %v3120_v47 = vor.u32 %v4324_v40, %v3119_v36 }
  0x87   :  { %1823 = vmatpush.bf16.msra.mxu0 %v3056_v54  ;;  %1792 = vmatmul.bf16.vlgmr.msrb.gmra.mxu1 %v5147_v42  ;;  %v4388_v45 = vld [vmem:[%s6841_s1 + $0x374] sm:$0xf0]  ;;  %v3248_v48 = vor.u32 %v4356_v43, %v3247_v41  ;;  %v2975_v49 = vld [vmem:[%s6841_s1 + $0x48] sm:$0xf] }
  0x88   :  { %1836 = vmatpush.bf16.msra.mxu1 %v3184_v55  ;;  %1805 = vmatmul.bf16.vlgmr.msrb.gmra.mxu2 %v5126_v33  ;;  %v4288_v50 = vld [vmem:[%s6841_s1 + $0x54] sm:$0xf0]  ;;  %v3103_v51 = vld [vmem:[%s6841_s1 + $0x148] sm:$0xf]  ;;  %v3376_v52 = vor.u32 %v4388_v45, %v3375_v44 }
  0x89   :  { %1849 = vmatpush.bf16.msra.mxu2 %v3312_v56  ;;  %1818 = vmatmul.bf16.vlgmr.msrb.gmra.mxu3 %v5139_v38  ;;  %v4320_v53 = vld [vmem:[%s6841_s1 + $0x154] sm:$0xf0]  ;;  %v3231_v54 = vld [vmem:[%s6841_s1 + $0x248] sm:$0xf]  ;;  %v2976_v58 = vor.u32 %v4288_v50, %v2975_v49 }
  0x8a   :  { %1862 = vmatpush.bf16.msra.mxu3 %v3440_v60  ;;  %v4352_v55 = vld [vmem:[%s6841_s1 + $0x254] sm:$0xf0]  ;;  %v3359_v56 = vld [vmem:[%s6841_s1 + $0x348] sm:$0xf]  ;;  %v3104_v59 = vor.u32 %v4320_v53, %v3103_v51 }
  0x8b   :  { %1824 = vmatpush.bf16.msra.mxu0 %v3040_v2  ;;  %v4384_v57 = vld [vmem:[%s6841_s1 + $0x354] sm:$0xf0]  ;;  %v3232_v60 = vor.u32 %v4352_v55, %v3231_v54  ;;  %v2959_v61 = vld [vmem:[%s6841_s1 + $0x28] sm:$0xf] }
  0x8c   :  { %1837 = vmatpush.bf16.msra.mxu1 %v3168_v3  ;;  %v4284_v62 = vld [vmem:[%s6841_s1 + $0x34] sm:$0xf0]  ;;  %v3087_v63 = vld [vmem:[%s6841_s1 + $0x128] sm:$0xf]  ;;  %v3360_v0 = vor.u32 %v4384_v57, %v3359_v56 }
  0x8d   :  { %1850 = vmatpush.bf16.msra.mxu2 %v3296_v4  ;;  %v4316_v1 = vld [vmem:[%s6841_s1 + $0x134] sm:$0xf0]  ;;  %v3215_v2 = vld [vmem:[%s6841_s1 + $0x228] sm:$0xf]  ;;  %v2960_v6 = vor.u32 %v4284_v62, %v2959_v61 }
  0x8e   :  { %1863 = vmatpush.bf16.msra.mxu3 %v3424_v8  ;;  %v4348_v3 = vld [vmem:[%s6841_s1 + $0x234] sm:$0xf0]  ;;  %v3343_v4 = vld [vmem:[%s6841_s1 + $0x328] sm:$0xf]  ;;  %v3088_v9 = vor.u32 %v4316_v1, %v3087_v63 }
  0x8f   :  { %1825 = vmatpush.bf16.msra.mxu0 %v3024_v14  ;;  %v4380_v5 = vld [vmem:[%s6841_s1 + $0x334] sm:$0xf0]  ;;  %v2943_v7 = vld [vmem:[%s6841_s1 + $0x8] sm:$0xf]  ;;  %v3216_v10 = vor.u32 %v4348_v3, %v3215_v2 }
  0x90   :  { %1838 = vmatpush.bf16.msra.mxu1 %v3152_v15  ;;  %v4280_v8 = vld [vmem:[%s6841_s1 + $0x14] sm:$0xf0]  ;;  %v3071_v11 = vld [vmem:[%s6841_s1 + $0x108] sm:$0xf]  ;;  %v3344_v14 = vor.u32 %v4380_v5, %v3343_v4 }
  0x91   :  { %1851 = vmatpush.bf16.msra.mxu2 %v3280_v16  ;;  %v4312_v12 = vld [vmem:[%s6841_s1 + $0x114] sm:$0xf0]  ;;  %v3199_v13 = vld [vmem:[%s6841_s1 + $0x208] sm:$0xf]  ;;  %v2944_v23 = vor.u32 %v4280_v8, %v2943_v7 }
  0x92   :  { %1864 = vmatpush.bf16.msra.mxu3 %v3408_v22  ;;  %v4344_v15 = vld [vmem:[%s6841_s1 + $0x214] sm:$0xf0]  ;;  %v3327_v16 = vld [vmem:[%s6841_s1 + $0x308] sm:$0xf]  ;;  %v3072_v29 = vor.u32 %v4312_v12, %v3071_v11 }
  0x93   :  { %1826 = vmatpush.bf16.msra.mxu0 %v3008_v30  ;;  %v4376_v19 = vld [vmem:[%s6841_s1 + $0x314] sm:$0xf0]  ;;  %v3567_v20 = vld [vmem:[%s6841_s1 + $0x4e8] sm:$0xf]  ;;  %v3200_v30 = vor.u32 %v4344_v15, %v3199_v13 }
  0x94   :  { %1839 = vmatpush.bf16.msra.mxu1 %v3136_v31  ;;  %v4436_v21 = vld [vmem:[%s6841_s1 + $0x4f4] sm:$0xf0]  ;;  %v3695_v22 = vld [vmem:[%s6841_s1 + $0x5e8] sm:$0xf]  ;;  %v3328_v34 = vor.u32 %v4376_v19, %v3327_v16 }
  0x95   :  { %1852 = vmatpush.bf16.msra.mxu2 %v3264_v32  ;;  %v4468_v24 = vld [vmem:[%s6841_s1 + $0x5f4] sm:$0xf0]  ;;  %v3823_v27 = vld [vmem:[%s6841_s1 + $0x6e8] sm:$0xf]  ;;  %v3568_v35 = vor.u32 %v4436_v21, %v3567_v20 }
  0x96   :  { %1865 = vmatpush.bf16.msra.mxu3 %v3392_v39  ;;  %v4500_v28 = vld [vmem:[%s6841_s1 + $0x6f4] sm:$0xf0]  ;;  %v3951_v31 = vld [vmem:[%s6841_s1 + $0x7e8] sm:$0xf]  ;;  %v3696_v36 = vor.u32 %v4468_v24, %v3695_v22 }
  0x97   :  { %1827 = vmatpush.bf16.msra.mxu0 %v2992_v46  ;;  %v4532_v32 = vld [vmem:[%s6841_s1 + $0x7f4] sm:$0xf0]  ;;  %v3824_v39 = vor.u32 %v4500_v28, %v3823_v27  ;;  %v3551_v40 = vld [vmem:[%s6841_s1 + $0x4c8] sm:$0xf] }
  0x98   :  { %1840 = vmatpush.bf16.msra.mxu1 %v3120_v47  ;;  %v4432_v41 = vld [vmem:[%s6841_s1 + $0x4d4] sm:$0xf0]  ;;  %v3679_v43 = vld [vmem:[%s6841_s1 + $0x5c8] sm:$0xf]  ;;  %v3952_v44 = vor.u32 %v4532_v32, %v3951_v31 }
  0x99   :  { %1853 = vmatpush.bf16.msra.mxu2 %v3248_v48  ;;  %v4464_v45 = vld [vmem:[%s6841_s1 + $0x5d4] sm:$0xf0]  ;;  %v3807_v46 = vld [vmem:[%s6841_s1 + $0x6c8] sm:$0xf]  ;;  %v3552_v50 = vor.u32 %v4432_v41, %v3551_v40 }
  0x9a   :  { %1866 = vmatpush.bf16.msra.mxu3 %v3376_v52  ;;  %v4496_v47 = vld [vmem:[%s6841_s1 + $0x6d4] sm:$0xf0]  ;;  %v3935_v48 = vld [vmem:[%s6841_s1 + $0x7c8] sm:$0xf]  ;;  %v3680_v51 = vor.u32 %v4464_v45, %v3679_v43  ;;  %v5840_v43 = vld [vmem:[%s6843_s2] sm:$0xf] }
  0x9b   :  { %1828 = vmatpush.bf16.msra.mxu0 %v2976_v58  ;;  %v4528_v49 = vld [vmem:[%s6841_s1 + $0x7d4] sm:$0xf0]  ;;  %v3808_v52 = vor.u32 %v4496_v47, %v3807_v46  ;;  %v3535_v53 = vld [vmem:[%s6841_s1 + $0x4a8] sm:$0xf] }
  0x9c   :  { %1841 = vmatpush.bf16.msra.mxu1 %v3104_v59  ;;  %v4428_v54 = vld [vmem:[%s6841_s1 + $0x4b4] sm:$0xf0]  ;;  %v3663_v55 = vld [vmem:[%s6841_s1 + $0x5a8] sm:$0xf]  ;;  %v3936_v56 = vor.u32 %v4528_v49, %v3935_v48 }
  0x9d   :  { %1854 = vmatpush.bf16.msra.mxu2 %v3232_v60  ;;  %v4460_v57 = vld [vmem:[%s6841_s1 + $0x5b4] sm:$0xf0]  ;;  %v3791_v58 = vld [vmem:[%s6841_s1 + $0x6a8] sm:$0xf]  ;;  %v3536_v62 = vor.u32 %v4428_v54, %v3535_v53 }
  0x9e   :  { %1867 = vmatpush.bf16.msra.mxu3 %v3360_v0  ;;  %v4492_v59 = vld [vmem:[%s6841_s1 + $0x6b4] sm:$0xf0]  ;;  %v3919_v60 = vld [vmem:[%s6841_s1 + $0x7a8] sm:$0xf]  ;;  %v3664_v63 = vor.u32 %v4460_v57, %v3663_v55  ;;  %v327_v57 = vperm.slane %v5840_v43, 0 }
  0x9f   :  { %1829 = vmatpush.bf16.msra.mxu0 %v2960_v6  ;;  %v4524_v61 = vld [vmem:[%s6841_s1 + $0x7b4] sm:$0xf0]  ;;  %v3792_v0 = vor.u32 %v4492_v59, %v3791_v58  ;;  %v3519_v1 = vld [vmem:[%s6841_s1 + $0x488] sm:$0xf] }
  0xa0   :  { %1842 = vmatpush.bf16.msra.mxu1 %v3088_v9  ;;  %v4424_v2 = vld [vmem:[%s6841_s1 + $0x494] sm:$0xf0]  ;;  %v3647_v3 = vld [vmem:[%s6841_s1 + $0x588] sm:$0xf]  ;;  %v3920_v4 = vor.u32 %v4524_v61, %v3919_v60 }
  0xa1   :  { %1855 = vmatpush.bf16.msra.mxu2 %v3216_v10  ;;  %v4456_v5 = vld [vmem:[%s6841_s1 + $0x594] sm:$0xf0]  ;;  %v3775_v6 = vld [vmem:[%s6841_s1 + $0x688] sm:$0xf]  ;;  %v3520_v10 = vor.u32 %v4424_v2, %v3519_v1 }
  0xa2   :  { %1868 = vmatpush.bf16.msra.mxu3 %v3344_v14  ;;  %v4488_v7 = vld [vmem:[%s6841_s1 + $0x694] sm:$0xf0]  ;;  %v3903_v8 = vld [vmem:[%s6841_s1 + $0x788] sm:$0xf]  ;;  %v3648_v11 = vor.u32 %v4456_v5, %v3647_v3 }
  0xa3   :  { %1830 = vmatpush.bf16.msra.mxu0 %v2944_v23  ;;  %v4520_v9 = vld [vmem:[%s6841_s1 + $0x794] sm:$0xf0]  ;;  %v3776_v12 = vor.u32 %v4488_v7, %v3775_v6  ;;  %v3503_v13 = vld [vmem:[%s6841_s1 + $0x468] sm:$0xf] }
  0xa4   :  { %1843 = vmatpush.bf16.msra.mxu1 %v3072_v29  ;;  %v4420_v14 = vld [vmem:[%s6841_s1 + $0x474] sm:$0xf0]  ;;  %v3631_v15 = vld [vmem:[%s6841_s1 + $0x568] sm:$0xf]  ;;  %v3904_v16 = vor.u32 %v4520_v9, %v3903_v8  ;;  %v4306_v9 = vld [vmem:[%s6841_s1 + $0xec] sm:$0xf] }
  0xa5   :  { %1856 = vmatpush.bf16.msra.mxu2 %v3200_v30  ;;  %v4452_v19 = vld [vmem:[%s6841_s1 + $0x574] sm:$0xf0]  ;;  %v3759_v20 = vld [vmem:[%s6841_s1 + $0x668] sm:$0xf]  ;;  %v3504_v24 = vor.u32 %v4420_v14, %v3503_v13  ;;  %v3185_v13 = vld [vmem:[%s6841_s1 + $0x1f8] sm:$0xf0] }
  0xa6   :  { %1869 = vmatpush.bf16.msra.mxu3 %v3328_v34  ;;  %1831 = vmatmul.bf16.vlgmr.msra.gmra.mxu0 %v4984_v18  ;;  %v4484_v21 = vld [vmem:[%s6841_s1 + $0x674] sm:$0xf0]  ;;  %v3887_v22 = vld [vmem:[%s6841_s1 + $0x768] sm:$0xf]  ;;  %v3632_v27 = vor.u32 %v4452_v19, %v3631_v15  ;;  %v4370_v14 = vld [vmem:[%s6841_s1 + $0x2ec] sm:$0xf] }
  0xa7   :  { %1875 = vmatpush.bf16.msrb.mxu0 %v3568_v35  ;;  %1844 = vmatmul.bf16.vlgmr.msra.gmra.mxu1 %v4997_v26  ;;  %v4516_v23 = vld [vmem:[%s6841_s1 + $0x774] sm:$0xf0]  ;;  %v3760_v28 = vor.u32 %v4484_v21, %v3759_v20  ;;  %v3487_v29 = vld [vmem:[%s6841_s1 + $0x448] sm:$0xf]  ;;  %v3313_v15 = vld [vmem:[%s6841_s1 + $0x2f8] sm:$0xf0] }
  0xa8   :  { %1888 = vmatpush.bf16.msrb.mxu1 %v3696_v36  ;;  %1857 = vmatmul.bf16.vlgmr.msra.gmra.mxu2 %v4982_v17  ;;  %v4416_v30 = vld [vmem:[%s6841_s1 + $0x454] sm:$0xf0]  ;;  %v3615_v31 = vld [vmem:[%s6841_s1 + $0x548] sm:$0xf]  ;;  %v3888_v32 = vor.u32 %v4516_v23, %v3887_v22  ;;  %v4402_v21 = vld [vmem:[%s6841_s1 + $0x3ec] sm:$0xf] }
  0xa9   :  { %1901 = vmatpush.bf16.msrb.mxu2 %v3824_v39  ;;  %1870 = vmatmul.bf16.vlgmr.msra.gmra.mxu3 %v4995_v25  ;;  %v4448_v34 = vld [vmem:[%s6841_s1 + $0x554] sm:$0xf0]  ;;  %v3743_v35 = vld [vmem:[%s6841_s1 + $0x648] sm:$0xf]  ;;  %v3488_v41 = vor.u32 %v4416_v30, %v3487_v29  ;;  %v3441_v22 = vld [vmem:[%s6841_s1 + $0x3f8] sm:$0xf0]  ;;  %v3316_v30 = vor.u32 %v4370_v14, %v3313_v15 }
  0xaa   :  { %1914 = vmatpush.bf16.msrb.mxu3 %v3952_v44  ;;  %v4480_v36 = vld [vmem:[%s6841_s1 + $0x654] sm:$0xf0]  ;;  %v3871_v39 = vld [vmem:[%s6841_s1 + $0x748] sm:$0xf]  ;;  %v3616_v45 = vor.u32 %v4448_v34, %v3615_v31  ;;  %v4302_v31 = vld [vmem:[%s6841_s1 + $0xcc] sm:$0xf] }
  0xab   :  { %1876 = vmatpush.bf16.msrb.mxu0 %v3552_v50  ;;  %v4512_v40 = vld [vmem:[%s6841_s1 + $0x754] sm:$0xf0]  ;;  %v3744_v46 = vor.u32 %v4480_v36, %v3743_v35  ;;  %v3471_v47 = vld [vmem:[%s6841_s1 + $0x428] sm:$0xf]  ;;  %v4334_v34 = vld [vmem:[%s6841_s1 + $0x1cc] sm:$0xf]  ;;  %v3444_v35 = vor.u32 %v4402_v21, %v3441_v22 }
  0xac   :  { %1889 = vmatpush.bf16.msrb.mxu1 %v3680_v51  ;;  %v4412_v48 = vld [vmem:[%s6841_s1 + $0x434] sm:$0xf0]  ;;  %v3599_v49 = vld [vmem:[%s6841_s1 + $0x528] sm:$0xf]  ;;  %v3872_v51 = vor.u32 %v4512_v40, %v3871_v39  ;;  %v3169_v36 = vld [vmem:[%s6841_s1 + $0x1d8] sm:$0xf0] }
  0xad   :  { %1902 = vmatpush.bf16.msrb.mxu2 %v3808_v52  ;;  %v4444_v52 = vld [vmem:[%s6841_s1 + $0x534] sm:$0xf0]  ;;  %v3727_v53 = vld [vmem:[%s6841_s1 + $0x628] sm:$0xf]  ;;  %v3472_v58 = vor.u32 %v4412_v48, %v3471_v47  ;;  %v4366_v39 = vld [vmem:[%s6841_s1 + $0x2cc] sm:$0xf] }
  0xae   :  { %1915 = vmatpush.bf16.msrb.mxu3 %v3936_v56  ;;  %v4476_v54 = vld [vmem:[%s6841_s1 + $0x634] sm:$0xf0]  ;;  %v3855_v55 = vld [vmem:[%s6841_s1 + $0x728] sm:$0xf]  ;;  %v3600_v61 = vor.u32 %v4444_v52, %v3599_v49  ;;  %v3297_v40 = vld [vmem:[%s6841_s1 + $0x2d8] sm:$0xf0]  ;;  %v3172_v49 = vor.u32 %v4334_v34, %v3169_v36 }
  0xaf   :  { %1877 = vmatpush.bf16.msrb.mxu0 %v3536_v62  ;;  %v4508_v56 = vld [vmem:[%s6841_s1 + $0x734] sm:$0xf0]  ;;  %v3455_v59 = vld [vmem:[%s6841_s1 + $0x408] sm:$0xf]  ;;  %v3728_v62 = vor.u32 %v4476_v54, %v3727_v53  ;;  %v3025_v52 = vld [vmem:[%s6841_s1 + $0xb8] sm:$0xf0] }
  0xb0   :  { %1890 = vmatpush.bf16.msrb.mxu1 %v3664_v63  ;;  %v4408_v60 = vld [vmem:[%s6841_s1 + $0x414] sm:$0xf0]  ;;  %v3583_v63 = vld [vmem:[%s6841_s1 + $0x508] sm:$0xf]  ;;  %v3856_v3 = vor.u32 %v4508_v56, %v3855_v55  ;;  %v4330_v53 = vld [vmem:[%s6841_s1 + $0x1ac] sm:$0xf] }
  0xb1   :  { %1903 = vmatpush.bf16.msrb.mxu2 %v3792_v0  ;;  %v4440_v0 = vld [vmem:[%s6841_s1 + $0x514] sm:$0xf0]  ;;  %v3711_v1 = vld [vmem:[%s6841_s1 + $0x608] sm:$0xf]  ;;  %v3153_v55 = vld [vmem:[%s6841_s1 + $0x1b8] sm:$0xf0] }
  0xb2   :  { %1916 = vmatpush.bf16.msrb.mxu3 %v3920_v4  ;;  %v1624_v44 = vpop.f32.mrf.mxu0  ;;  %v4472_v4 = vld [vmem:[%s6841_s1 + $0x614] sm:$0xf0]  ;;  %v3839_v5 = vld [vmem:[%s6841_s1 + $0x708] sm:$0xf]  ;;  %v3584_v19 = vor.u32 %v4440_v0, %v3583_v63  ;;  %v4362_v56 = vld [vmem:[%s6841_s1 + $0x2ac] sm:$0xf]  ;;  %v3156_v63 = vor.u32 %v4330_v53, %v3153_v55 }
  0xb3   :  { %1878 = vmatpush.bf16.msrb.mxu0 %v3520_v10  ;;  %v1637_v50 = vpop.f32.mrf.mxu1  ;;  %v4504_v6 = vld [vmem:[%s6841_s1 + $0x714] sm:$0xf0]  ;;  %v1625_v8 = vadd.f32 %v1624_v44, %v327_v57  ;;  %v3057_v10 = vld [vmem:[%s6841_s1 + $0xf8] sm:$0xf0]  ;;  %v3712_v20 = vor.u32 %v4472_v4, %v3711_v1  ;;  %v4294_v1 = vld [vmem:[%s6841_s1 + $0x8c] sm:$0xf] }
  0xb4   :  { %1891 = vmatpush.bf16.msrb.mxu1 %v3648_v11  ;;  %v4338_v11 = vld [vmem:[%s6841_s1 + $0x1ec] sm:$0xf]  ;;  %v3425_v44 = vld [vmem:[%s6841_s1 + $0x3d8] sm:$0xf0] }
  0xb5   :  { %1904 = vmatpush.bf16.msrb.mxu2 %v3776_v12  ;;  %v3456_v12 = vor.u32 %v4408_v60, %v3455_v59  ;;  %v3188_v29 = vor.u32 %v4338_v11, %v3185_v13  ;;  %v3281_v57 = vld [vmem:[%s6841_s1 + $0x2b8] sm:$0xf0]  ;;  %v4630_v60 = vmov 2.0   ;;  %v4322_v21 = vld [vmem:[%s6841_s1 + $0x16c] sm:$0xf] }
  0xb6   :  { %1917 = vmatpush.bf16.msrb.mxu3 %v3904_v16  ;;  %v3409_v59 = vld [vmem:[%s6841_s1 + $0x3b8] sm:$0xf0]  ;;  %4615 = vrcp.f32 %v4630_v60  ;;  %v3284_v0 = vor.u32 %v4362_v56, %v3281_v57  ;;  %v4282_v55 = vld [vmem:[%s6841_s1 + $0x2c] sm:$0xf] }
  0xb7   :  { %1879 = vmatpush.bf16.msrb.mxu0 %v3504_v24  ;;  %v1650_v2 = vpop.f32.mrf.mxu2  ;;  %v3840_v24 = vor.u32 %v4504_v6, %v3839_v5  ;;  %v3137_v5 = vld [vmem:[%s6841_s1 + $0x198] sm:$0xf0]  ;;  %v4358_v6 = vld [vmem:[%s6841_s1 + $0x28c] sm:$0xf] }
  0xb8   :  { %1892 = vmatpush.bf16.msrb.mxu1 %v3632_v27  ;;  %v5891_v7 = vpop.f32.mrf.mxu3  ;;  %v3060_v27 = vor.u32 %v4306_v9, %v3057_v10  ;;  %v3393_v9 = vld [vmem:[%s6841_s1 + $0x398] sm:$0xf0]  ;;  %v4314_v60 = vld [vmem:[%s6841_s1 + $0x12c] sm:$0xf] }
  0xb9   :  { %1905 = vmatpush.bf16.msrb.mxu2 %v3760_v28  ;;  %v1638_v28 = vadd.f32 %v1637_v50, %v1625_v8  ;;  %v3300_v50 = vor.u32 %v4366_v39, %v3297_v40  ;;  %v4390_v8 = vld [vmem:[%s6841_s1 + $0x38c] sm:$0xf]  ;;  %v2977_v40 = vld [vmem:[%s6841_s1 + $0x58] sm:$0xf0] }
  0xba   :  { %1918 = vmatpush.bf16.msrb.mxu3 %v3888_v32  ;;  %v1626_v16 = vpop.f32.mrf.mxu0  ;;  %v3041_v32 = vld [vmem:[%s6841_s1 + $0xd8] sm:$0xf0]  ;;  %v3396_v22 = vor.u32 %v4390_v8, %v3393_v9  ;;  %v4286_v39 = vld [vmem:[%s6841_s1 + $0x4c] sm:$0xf] }
  0xbb   :  { %1880 = vmatpush.bf16.msrb.mxu0 %v3488_v41  ;;  %v1639_v23 = vpop.f32.mrf.mxu1  ;;  %v4398_v41 = vld [vmem:[%s6841_s1 + $0x3cc] sm:$0xf]  ;;  %v1651_v48 = vadd.f32 %v1650_v2, %v1638_v28  ;;  %v3009_v2 = vld [vmem:[%s6841_s1 + $0x98] sm:$0xf0] }
  0xbc   :  { %1893 = vmatpush.bf16.msrb.mxu1 %v3616_v45  ;;  %v3428_v54 = vor.u32 %v4398_v41, %v3425_v44  ;;  %v3012_v10 = vor.u32 %v4294_v1, %v3009_v2  ;;  %v3121_v23 = vld [vmem:[%s6841_s1 + $0x178] sm:$0xf0]  ;;  %v4318_v41 = vld [vmem:[%s6841_s1 + $0x14c] sm:$0xf] }
  0xbd   :  { %1906 = vmatpush.bf16.msrb.mxu2 %v3744_v46  ;;  %v3044_v46 = vor.u32 %v4302_v31, %v3041_v32  ;;  %v3124_v34 = vor.u32 %v4322_v21, %v3121_v23  ;;  %v4346_v1 = vld [vmem:[%s6841_s1 + $0x22c] sm:$0xf]  ;;  %v3217_v2 = vld [vmem:[%s6841_s1 + $0x238] sm:$0xf0] }
  0xbe   :  { %1919 = vmatpush.bf16.msrb.mxu3 %v3872_v51  ;;  %v4298_v51 = vld [vmem:[%s6841_s1 + $0xac] sm:$0xf]  ;;  %v2945_v9 = vld [vmem:[%s6841_s1 + $0x18] sm:$0xf0] }
  0xbf   :  { %1881 = vmatpush.bf16.msrb.mxu0 %v3472_v58  ;;  %v1652_v45 = vpop.f32.mrf.mxu2  ;;  %v4394_v58 = vld [vmem:[%s6841_s1 + $0x3ac] sm:$0xf]  ;;  %v3329_v23 = vld [vmem:[%s6841_s1 + $0x318] sm:$0xf0] }
  0xc0   :  { %1894 = vmatpush.bf16.msrb.mxu1 %v3600_v61  ;;  %v1665_v47 = vpop.f32.mrf.mxu3  ;;  %v3028_v61 = vor.u32 %v4298_v51, %v3025_v52  ;;  %v3412_v4 = vor.u32 %v4394_v58, %v3409_v59  ;;  %v3361_v51 = vld [vmem:[%s6841_s1 + $0x358] sm:$0xf0]  ;;  %v4278_v8 = vld [vmem:[%s6841_s1 + $0xc] sm:$0xf] }
  0xc1   :  { %1907 = vmatpush.bf16.msrb.mxu2 %v3728_v62  ;;  %v1664_v62 = vadd.f32 %v5891_v7, %v1651_v48  ;;  %v3265_v7 = vld [vmem:[%s6841_s1 + $0x298] sm:$0xf0]  ;;  %v4350_v48 = vld [vmem:[%s6841_s1 + $0x24c] sm:$0xf] }
  0xc2   :  { %1920 = vmatpush.bf16.msrb.mxu3 %v3856_v3  ;;  %v4326_v3 = vld [vmem:[%s6841_s1 + $0x18c] sm:$0xf]  ;;  %v3268_v14 = vor.u32 %v4358_v6, %v3265_v7  ;;  %v3105_v47 = vld [vmem:[%s6841_s1 + $0x158] sm:$0xf0] }
  0xc3   :  { %1882 = vmatpush.bf16.msrb.mxu0 %v3456_v12  ;;  %v1676_v11 = vpop.f32.mrf.mxu0  ;;  %v5994_v12 = vpop.eup %4615  ;;  %v3140_v13 = vor.u32 %v4326_v3, %v3137_v5  ;;  %v3108_v57 = vor.u32 %v4318_v41, %v3105_v47  ;;  %v2961_v59 = vld [vmem:[%s6841_s1 + $0x38] sm:$0xf0] }
  0xc4   :  { %1895 = vmatpush.bf16.msrb.mxu1 %v3584_v19  ;;  %v1677_v15 = vadd.f32 %v1676_v11, %v1664_v62  ;;  %v4290_v19 = vld [vmem:[%s6841_s1 + $0x6c] sm:$0xf]  ;;  %v2061_v32 = vmul.f32 2.0, %v5994_v12  ;;  %v3345_v5 = vld [vmem:[%s6841_s1 + $0x338] sm:$0xf0]  ;;  %v2964_v7 = vor.u32 %v4282_v55, %v2961_v59  ;;  %vm2065_vm1 = vweird.f32 %v5994_v12 }
  0xc5   :  { %1908 = vmatpush.bf16.msrb.mxu2 %v3712_v20  ;;  %v2993_v20 = vld [vmem:[%s6841_s1 + $0x78] sm:$0xf0] }
  0xc6   :  { %1921 = vmatpush.bf16.msrb.mxu3 %v3840_v24  ;;  %1883 = vmatmul.bf16.vlgmr.msrb.gmra.mxu0 %v5137_v37  ;;  %v4354_v24 = vld [vmem:[%s6841_s1 + $0x26c] sm:$0xf]  ;;  %v2996_v31 = vor.u32 %v4290_v19, %v2993_v20  ;;  %v2062_v53 = vsub.f32 1.0, %v2061_v32  ;;  %v3201_v19 = vld [vmem:[%s6841_s1 + $0x218] sm:$0xf0]  ;;  %v2948_v32 = vor.u32 %v4278_v8, %v2945_v9 }
  0xc7   :  { %1927 = vmatpush.bf16.msra.mxu0 %v3060_v27  ;;  %1896 = vmatmul.bf16.vlgmr.msrb.gmra.mxu1 %v5147_v42  ;;  %v1689_v16 = vpop.f32.mrf.mxu1  ;;  %v3249_v27 = vld [vmem:[%s6841_s1 + $0x278] sm:$0xf0] }
  0xc8   :  { %1940 = vmatpush.bf16.msra.mxu1 %v3188_v29  ;;  %1909 = vmatmul.bf16.vlgmr.msrb.gmra.mxu2 %v5126_v33  ;;  %v1690_v28 = vadd.f32 %v1689_v16, %v1677_v15  ;;  %v4386_v29 = vld [vmem:[%s6841_s1 + $0x36c] sm:$0xf]  ;;  %v2063_v6 = vmul.f32 %v5994_v12, %v2062_v53  ;;  %v3073_v15 = vld [vmem:[%s6841_s1 + $0x118] sm:$0xf0] }
  0xc9   :  { %1953 = vmatpush.bf16.msra.mxu2 %v3316_v30  ;;  %1922 = vmatmul.bf16.vlgmr.msrb.gmra.mxu3 %v5139_v38  ;;  %v3377_v30 = vld [vmem:[%s6841_s1 + $0x378] sm:$0xf0]  ;;  %v4342_v16 = vld [vmem:[%s6841_s1 + $0x20c] sm:$0xf] }
  0xca   :  { %1966 = vmatpush.bf16.msra.mxu3 %v3444_v35  ;;  %v3252_v35 = vor.u32 %v4354_v24, %v3249_v27  ;;  %v3380_v44 = vor.u32 %v4386_v29, %v3377_v30  ;;  %v4434_v24 = vld [vmem:[%s6841_s1 + $0x4ec] sm:$0xf]  ;;  %v3569_v29 = vld [vmem:[%s6841_s1 + $0x4f8] sm:$0xf0]  ;;  %v3204_v41 = vor.u32 %v4342_v16, %v3201_v19 }
  0xcb   :  { %1928 = vmatpush.bf16.msra.mxu0 %v3044_v46  ;;  %v1702_v36 = vpop.f32.mrf.mxu2  ;;  %v1678_v56 = vpop.f32.mrf.mxu0  ;;  %v4466_v30 = vld [vmem:[%s6841_s1 + $0x5ec] sm:$0xf]  ;;  %v3572_v47 = vor.u32 %v4434_v24, %v3569_v29  ;;  %v3553_v53 = vld [vmem:[%s6841_s1 + $0x4d8] sm:$0xf0] }
  0xcc   :  { %1941 = vmatpush.bf16.msra.mxu1 %v3172_v49  ;;  %v1703_v45 = vadd.f32 %v1702_v36, %v1690_v28  ;;  %v1715_v46 = vpop.f32.mrf.mxu3  ;;  %v3233_v49 = vld [vmem:[%s6841_s1 + $0x258] sm:$0xf0]  ;;  %v4486_v19 = vld [vmem:[%s6841_s1 + $0x68c] sm:$0xf] }
  0xcd   :  { %1954 = vmatpush.bf16.msra.mxu2 %v3300_v50  ;;  %v4382_v50 = vld [vmem:[%s6841_s1 + $0x34c] sm:$0xf]  ;;  %v3236_v58 = vor.u32 %v4350_v48, %v3233_v49  ;;  %v3825_v36 = vld [vmem:[%s6841_s1 + $0x6f8] sm:$0xf0] }
  0xce   :  { %1967 = vmatpush.bf16.msra.mxu3 %v3428_v54  ;;  %v6045_v52 = vadd.f32 %v1715_v46, %v1703_v45  ;;  %v2980_v54 = vor.u32 %v4286_v39, %v2977_v40  ;;  %v3953_v45 = vld [vmem:[%s6841_s1 + $0x7f8] sm:$0xf0]  ;;  %v4430_v48 = vld [vmem:[%s6841_s1 + $0x4cc] sm:$0xf] }
  0xcf   :  { %1929 = vmatpush.bf16.msra.mxu0 %v3028_v61  ;;  %v3089_v61 = vld [vmem:[%s6841_s1 + $0x138] sm:$0xf0]  ;;  %v1691_v62 = vpop.f32.mrf.mxu1 }
  0xd0   :  { %1942 = vmatpush.bf16.msra.mxu1 %v3156_v63  ;;  %v2032_v63 = vsel %vm2031_vm0, %v6045_v52, 0.0  ;;  %v3809_v59 = vld [vmem:[%s6841_s1 + $0x6d8] sm:$0xf0]  ;;  %v3556_v62 = vor.u32 %v4430_v48, %v3553_v53 }
  0xd1   :  { %1955 = vmatpush.bf16.msra.mxu2 %v3284_v0  ;;  %v3364_v0 = vor.u32 %v4382_v50, %v3361_v51  ;;  %v2033_v3 = vrot.slane %v2032_v63, 4  ;;  %v3793_v8 = vld [vmem:[%s6841_s1 + $0x6b8] sm:$0xf0] }
  0xd2   :  { %1968 = vmatpush.bf16.msra.mxu3 %v3412_v4  ;;  %v4378_v4 = vld [vmem:[%s6841_s1 + $0x32c] sm:$0xf]  ;;  %v3649_v16 = vld [vmem:[%s6841_s1 + $0x598] sm:$0xf0] }
  0xd3   :  { %1930 = vmatpush.bf16.msra.mxu0 %v3012_v10  ;;  %v4310_v10 = vld [vmem:[%s6841_s1 + $0x10c] sm:$0xf]  ;;  %v2034_v11 = vadd.f32 %v2033_v3, %v2032_v63  ;;  %v1704_v20 = vpop.f32.mrf.mxu2  ;;  %v3348_v21 = vor.u32 %v4378_v4, %v3345_v5  ;;  %v3537_v3 = vld [vmem:[%s6841_s1 + $0x4b8] sm:$0xf0] }
  0xd4   :  { %1943 = vmatpush.bf16.msra.mxu1 %v3140_v13  ;;  %v3092_v13 = vor.u32 %v4314_v60, %v3089_v61  ;;  %v1717_v27 = vpop.f32.mrf.mxu3  ;;  %v3076_v40 = vor.u32 %v4310_v10, %v3073_v15  ;;  %v3937_v61 = vld [vmem:[%s6841_s1 + $0x7d8] sm:$0xf0]  ;;  %v4458_v4 = vld [vmem:[%s6841_s1 + $0x5ac] sm:$0xf] }
  0xd5   :  { %1956 = vmatpush.bf16.msra.mxu2 %v3268_v14  ;;  %v3220_v14 = vor.u32 %v4346_v1, %v3217_v2  ;;  %v2035_v28 = vrot.slane %v2034_v11, 2  ;;  %v4426_v2 = vld [vmem:[%s6841_s1 + $0x4ac] sm:$0xf]  ;;  %v3777_v20 = vld [vmem:[%s6841_s1 + $0x698] sm:$0xf0] }
  0xd6   :  { %1969 = vmatpush.bf16.msra.mxu3 %v3396_v22  ;;  %v4374_v22 = vld [vmem:[%s6841_s1 + $0x30c] sm:$0xf]  ;;  %v3489_v53 = vld [vmem:[%s6841_s1 + $0x458] sm:$0xf0] }
  0xd7   :  { %1931 = vmatpush.bf16.msra.mxu0 %v2996_v31  ;;  %v2064_v31 = vadd.f32 %v5994_v12, %v2063_v6  ;;  %v2036_v39 = vadd.f32 %v2035_v28, %v2034_v11  ;;  %v3332_v46 = vor.u32 %v4374_v22, %v3329_v23  ;;  %v3665_v6 = vld [vmem:[%s6841_s1 + $0x5b8] sm:$0xf0]  ;;  %v4522_v10 = vld [vmem:[%s6841_s1 + $0x7ac] sm:$0xf]  ;;  %v3540_v11 = vor.u32 %v4426_v2, %v3537_v3 }
  0xd8   :  { %1944 = vmatpush.bf16.msra.mxu1 %v3124_v34  ;;  %v3697_v34 = vld [vmem:[%s6841_s1 + $0x5f8] sm:$0xf0]  ;;  %v4422_v15 = vld [vmem:[%s6841_s1 + $0x48c] sm:$0xf] }
  0xd9   :  { %1957 = vmatpush.bf16.msra.mxu2 %v3252_v35  ;;  %v4498_v35 = vld [vmem:[%s6841_s1 + $0x6ec] sm:$0xf]  ;;  %v2037_v49 = vrot.slane %v2036_v39, 1  ;;  %v3700_v50 = vor.u32 %v4466_v30, %v3697_v34  ;;  %v6136_v55 = vsel %vm2065_vm1, %v5994_v12, %v2064_v31  ;;  %v3905_v23 = vld [vmem:[%s6841_s1 + $0x798] sm:$0xf0]  ;;  %v3780_v30 = vor.u32 %v4486_v19, %v3777_v20 }
  0xda   :  { %1970 = vmatpush.bf16.msra.mxu3 %v3380_v44  ;;  %v4530_v44 = vld [vmem:[%s6841_s1 + $0x7ec] sm:$0xf]  ;;  %v3828_v51 = vor.u32 %v4498_v35, %v3825_v36  ;;  %v3457_v19 = vld [vmem:[%s6841_s1 + $0x418] sm:$0xf0] }
  0xdb   :  { %1932 = vmatpush.bf16.msra.mxu0 %v2980_v54  ;;  %v4462_v54 = vld [vmem:[%s6841_s1 + $0x5cc] sm:$0xf]  ;;  %v3956_v56 = vor.u32 %v4530_v44, %v3953_v45  ;;  %v2038_v60 = vadd.f32 %v2037_v49, %v2036_v39  ;;  %v3761_v44 = vld [vmem:[%s6841_s1 + $0x678] sm:$0xf0] }
  0xdc   :  { %1945 = vmatpush.bf16.msra.mxu1 %v3108_v57  ;;  %v3681_v57 = vld [vmem:[%s6841_s1 + $0x5d8] sm:$0xf0]  ;;  %v4526_v12 = vld [vmem:[%s6841_s1 + $0x7cc] sm:$0xf] }
  0xdd   :  { %1958 = vmatpush.bf16.msra.mxu2 %v3236_v58  ;;  %v4494_v58 = vld [vmem:[%s6841_s1 + $0x6cc] sm:$0xf]  ;;  %v2067_v63 = vmul.f32 %v6136_v55, %v2038_v60  ;;  %v3940_v5 = vor.u32 %v4526_v12, %v3937_v61  ;;  %v3745_v12 = vld [vmem:[%s6841_s1 + $0x658] sm:$0xf0] }
  0xde   :  { %1971 = vmatpush.bf16.msra.mxu3 %v3364_v0  ;;  %v3684_v0 = vor.u32 %v4462_v54, %v3681_v57  ;;  %v3812_v1 = vor.u32 %v4494_v58, %v3809_v59  ;;  %v4518_v22 = vld [vmem:[%s6841_s1 + $0x78c] sm:$0xf]  ;;  %v3617_v59 = vld [vmem:[%s6841_s1 + $0x558] sm:$0xf0] }
  0xdf   :  { %1933 = vmatpush.bf16.msra.mxu0 %v2964_v7  ;;  %v4490_v7 = vld [vmem:[%s6841_s1 + $0x6ac] sm:$0xf]  ;;  %v6174_v9 = vsub.f32 %v6045_v52, %v2067_v63  ;;  %v3908_v39 = vor.u32 %v4518_v22, %v3905_v23  ;;  %v3873_v63 = vld [vmem:[%s6841_s1 + $0x758] sm:$0xf0] }
  0xe0   :  { %1946 = vmatpush.bf16.msra.mxu1 %v3092_v13  ;;  %v3668_v13 = vor.u32 %v4458_v4, %v3665_v6  ;;  %v4418_v31 = vld [vmem:[%s6841_s1 + $0x46c] sm:$0xf]  ;;  %v3473_v6 = vld [vmem:[%s6841_s1 + $0x438] sm:$0xf0] }
  0xe1   :  { %1959 = vmatpush.bf16.msra.mxu2 %v3220_v14  ;;  %v2075_v52 = vmul.f32 %v6174_v9, %v6174_v9  ;;  %v3796_v14 = vor.u32 %v4490_v7, %v3793_v8  ;;  %v4450_v34 = vld [vmem:[%s6841_s1 + $0x56c] sm:$0xf]  ;;  %v3585_v22 = vld [vmem:[%s6841_s1 + $0x518] sm:$0xf0] }
  0xe2   :  { %1972 = vmatpush.bf16.msra.mxu3 %v3348_v21  ;;  %v4514_v45 = vld [vmem:[%s6841_s1 + $0x76c] sm:$0xf] }
  0xe3   :  { %1934 = vmatpush.bf16.msra.mxu0 %v2948_v32  ;;  %v2079_v21 = vsel %vm2031_vm0, %v2075_v52, 0.0  ;;  %v6212_v28 = vpop.f32.mrf.mxu0  ;;  %v3505_v32 = vld [vmem:[%s6841_s1 + $0x478] sm:$0xf0]  ;;  %v4446_v54 = vld [vmem:[%s6841_s1 + $0x54c] sm:$0xf] }
  0xe4   :  { %1947 = vmatpush.bf16.msra.mxu1 %v3076_v40  ;;  %v2080_v24 = vrot.slane %v2079_v21, 4  ;;  %v6223_v35 = vpop.f32.mrf.mxu1  ;;  %v3633_v40 = vld [vmem:[%s6841_s1 + $0x578] sm:$0xf0]  ;;  %v3508_v48 = vor.u32 %v4418_v31, %v3505_v32  ;;  %v4478_v60 = vld [vmem:[%s6841_s1 + $0x64c] sm:$0xf]  ;;  %v3620_v3 = vor.u32 %v4446_v54, %v3617_v59 }
  0xe5   :  { %1960 = vmatpush.bf16.msra.mxu2 %v3204_v41  ;;  %v4482_v41 = vld [vmem:[%s6841_s1 + $0x66c] sm:$0xf]  ;;  %v3636_v49 = vor.u32 %v4450_v34, %v3633_v40  ;;  %v3748_v4 = vor.u32 %v4478_v60, %v3745_v12  ;;  %v4548_v40 = vld [vmem:[%s6844_s5 + $0x74] sm:$0xf0]  ;;  %v3991_v60 = vld [vmem:[%s6844_s5 + $0x40] sm:$0xf] }
  0xe6   :  { %1973 = vmatpush.bf16.msra.mxu3 %v3332_v46  ;;  %1935 = vmatmul.bf16.vlgmr.msra.gmra.mxu0 %v4984_v18  ;;  %v3521_v18 = vld [vmem:[%s6841_s1 + $0x498] sm:$0xf0]  ;;  %v2081_v36 = vadd.f32 %v2080_v24, %v2079_v21  ;;  %v4442_v7 = vld [vmem:[%s6841_s1 + $0x52c] sm:$0xf]  ;;  %v4542_v12 = vld [vmem:[%s6844_s5 + $0x44] sm:$0xf0] }
  0xe7   :  { %1979 = vmatpush.bf16.msrb.mxu0 %v3572_v47  ;;  %1948 = vmatmul.bf16.vlgmr.msra.gmra.mxu1 %v4997_v26  ;;  %v3524_v27 = vor.u32 %v4422_v15, %v3521_v18  ;;  %v3889_v46 = vld [vmem:[%s6841_s1 + $0x778] sm:$0xf0]  ;;  %v4474_v52 = vld [vmem:[%s6841_s1 + $0x62c] sm:$0xf]  ;;  %v328_v18 = vperm.slane %v5840_v43, 1 }
  0xe8   :  { %1992 = vmatpush.bf16.msrb.mxu1 %v3700_v50  ;;  %1961 = vmatmul.bf16.vlgmr.msra.gmra.mxu2 %v4982_v17  ;;  %v3921_v17 = vld [vmem:[%s6841_s1 + $0x7b8] sm:$0xf0]  ;;  %v2082_v47 = vrot.slane %v2081_v36, 2  ;;  %v3764_v50 = vor.u32 %v4482_v41, %v3761_v44  ;;  %v3892_v58 = vor.u32 %v4514_v45, %v3889_v46  ;;  %v4438_v43 = vld [vmem:[%s6841_s1 + $0x50c] sm:$0xf] }
  0xe9   :  { %2005 = vmatpush.bf16.msrb.mxu2 %v3828_v51  ;;  %1974 = vmatmul.bf16.vlgmr.msra.gmra.mxu3 %v4995_v25  ;;  %v4454_v25 = vld [vmem:[%s6841_s1 + $0x58c] sm:$0xf]  ;;  %v3924_v26 = vor.u32 %v4522_v10, %v3921_v17  ;;  %v3857_v15 = vld [vmem:[%s6841_s1 + $0x738] sm:$0xf0]  ;;  %v1729_v34 = vadd.f32 %v6212_v28, %v328_v18  ;;  %v3588_v44 = vor.u32 %v4438_v43, %v3585_v22  ;;  %v4560_v43 = vld [vmem:[%s6844_s5 + $0xd4] sm:$0xf0] }
  0xea   :  { %2018 = vmatpush.bf16.msrb.mxu3 %v3956_v56  ;;  %v3652_v29 = vor.u32 %v4454_v25, %v3649_v16  ;;  %v4414_v51 = vld [vmem:[%s6841_s1 + $0x44c] sm:$0xf]  ;;  %v2083_v57 = vadd.f32 %v2082_v47, %v2081_v36  ;;  %v3841_v36 = vld [vmem:[%s6841_s1 + $0x718] sm:$0xf0] }
  0xeb   :  { %1980 = vmatpush.bf16.msrb.mxu0 %v3556_v62  ;;  %v6249_v56 = vpop.f32.mrf.mxu2  ;;  %v4510_v62 = vld [vmem:[%s6841_s1 + $0x74c] sm:$0xf]  ;;  %v1730_v2 = vpop.f32.mrf.mxu0  ;;  %v1742_v47 = vadd.f32 %v6223_v35, %v1729_v34  ;;  %v3999_v35 = vld [vmem:[%s6844_s5 + $0x50] sm:$0xf] }
  0xec   :  { %1993 = vmatpush.bf16.msrb.mxu1 %v3684_v0  ;;  %v6260_v61 = vpop.f32.mrf.mxu3  ;;  %v2084_v0 = vrot.slane %v2083_v57, 1  ;;  %v1743_v8 = vpop.f32.mrf.mxu1  ;;  %v3876_v17 = vor.u32 %v4510_v62, %v3873_v63  ;;  %v4406_v16 = vld [vmem:[%s6841_s1 + $0x40c] sm:$0xf]  ;;  %v3983_v2 = vld [vmem:[%s6844_s5 + $0x30] sm:$0xf] }
  0xed   :  { %2006 = vmatpush.bf16.msrb.mxu2 %v3812_v1  ;;  %v3492_v1 = vor.u32 %v4414_v51, %v3489_v53  ;;  %v4470_v23 = vld [vmem:[%s6841_s1 + $0x60c] sm:$0xf]  ;;  %v3460_v41 = vor.u32 %v4406_v16, %v3457_v19  ;;  %v1755_v54 = vadd.f32 %v6249_v56, %v1742_v47  ;;  %v6384_v16 = vld [vmem:[%s6846_s4] sm:$0xf]  ;;  %v4547_v47 = vld [vmem:[%s6844_s5 + $0x74] sm:$0xf] }
  0xee   :  { %2019 = vmatpush.bf16.msrb.mxu3 %v3940_v5  ;;  %v4410_v5 = vld [vmem:[%s6841_s1 + $0x42c] sm:$0xf]  ;;  %v2085_v10 = vadd.f32 %v2084_v0, %v2083_v57  ;;  %v4544_v57 = vld [vmem:[%s6844_s5 + $0x54] sm:$0xf0] }
  0xef   :  { %1981 = vmatpush.bf16.msrb.mxu0 %v3540_v11  ;;  %v3601_v11 = vld [vmem:[%s6841_s1 + $0x538] sm:$0xf0]  ;;  %v4502_v31 = vld [vmem:[%s6841_s1 + $0x70c] sm:$0xf]  ;;  %v4000_v59 = vor.u32 %v4544_v57, %v3999_v35 }
  0xf0   :  { %1994 = vmatpush.bf16.msrb.mxu1 %v3668_v13  ;;  %v3729_v13 = vld [vmem:[%s6841_s1 + $0x638] sm:$0xf0]  ;;  %v2107_v25 = vmul.f32 %v2085_v10, %v6136_v55  ;;  %v3604_v20 = vor.u32 %v4442_v7, %v3601_v11  ;;  %v3844_v28 = vor.u32 %v4502_v31, %v3841_v36  ;;  %v4071_v10 = vld [vmem:[%s6844_s5 + $0xe0] sm:$0xf] }
  0xf1   :  { %2007 = vmatpush.bf16.msrb.mxu2 %v3796_v14  ;;  %v4506_v14 = vld [vmem:[%s6841_s1 + $0x72c] sm:$0xf]  ;;  %v3732_v21 = vor.u32 %v4474_v52, %v3729_v13  ;;  %v4055_v36 = vld [vmem:[%s6844_s5 + $0xc0] sm:$0xf] }
  0xf2   :  { %2020 = vmatpush.bf16.msrb.mxu3 %v3924_v26  ;;  %v3476_v26 = vor.u32 %v4410_v5, %v3473_v6  ;;  %v6365_v5 = vld [vmem:[%s6845_s3] sm:$0xf] }
  0xf3   :  { %1982 = vmatpush.bf16.msrb.mxu0 %v3524_v27  ;;  %v1756_v24 = vpop.f32.mrf.mxu2  ;;  %v2111_v27 = vadd.f32 1e-05, %v2107_v25  ;;  %v2161_v52 = vperm.slane %v6365_v5, 0 }
  0xf4   :  { %1995 = vmatpush.bf16.msrb.mxu1 %v3652_v29  ;;  %v3860_v29 = vor.u32 %v4506_v14, %v3857_v15  ;;  %v1769_v32 = vpop.f32.mrf.mxu3  ;;  %v3975_v14 = vld [vmem:[%s6844_s5 + $0x20] sm:$0xf]  ;;  %v4538_v15 = vld [vmem:[%s6844_s5 + $0x24] sm:$0xf0]  ;;  %v4536_v24 = vld [vmem:[%s6844_s5 + $0x14] sm:$0xf0] }
  0xf5   :  { %2008 = vmatpush.bf16.msrb.mxu2 %v3780_v30  ;;  %v3713_v30 = vld [vmem:[%s6841_s1 + $0x618] sm:$0xf0]  ;;  %4617 = vrsqrt.f32 %v2111_v27  ;;  %vm2121_vm3 = vweird.f32 %v2111_v27  ;;  %v3976_v19 = vor.u32 %v4538_v15, %v3975_v14 }
  0xf6   :  { %2021 = vmatpush.bf16.msrb.mxu3 %v3908_v39  ;;  %v4015_v39 = vld [vmem:[%s6844_s5 + $0x70] sm:$0xf]  ;;  %v3716_v45 = vor.u32 %v4470_v23, %v3713_v30 }
  0xf7   :  { %1983 = vmatpush.bf16.msrb.mxu0 %v3508_v48  ;;  %v4016_v46 = vor.u32 %v4548_v40, %v4015_v39  ;;  %v4007_v48 = vld [vmem:[%s6844_s5 + $0x60] sm:$0xf]  ;;  %v3967_v23 = vld [vmem:[%s6844_s5 + $0x10] sm:$0xf]  ;;  %v4558_v39 = vld [vmem:[%s6844_s5 + $0xc4] sm:$0xf0] }
  0xf8   :  { %1996 = vmatpush.bf16.msrb.mxu1 %v3636_v49  ;;  %v4546_v49 = vld [vmem:[%s6844_s5 + $0x64] sm:$0xf0]  ;;  %v3968_v34 = vor.u32 %v4536_v24, %v3967_v23  ;;  %v4561_v24 = vld [vmem:[%s6844_s5 + $0xe4] sm:$0xf] }
  0xf9   :  { %2009 = vmatpush.bf16.msrb.mxu2 %v3764_v50  ;;  %v4008_v51 = vor.u32 %v4546_v49, %v4007_v48  ;;  %v4017_v48 = vld [vmem:[%s6844_s5 + $0x78] sm:$0xf0] }
  0xfa   :  { %2022 = vmatpush.bf16.msrb.mxu3 %v3892_v58  ;;  %v4020_v57 = vor.u32 %v4547_v47, %v4017_v48 }
  0xfb   :  { %1984 = vmatpush.bf16.msrb.mxu0 %v3492_v1  ;;  %v4618_v50 = vpop.eup %4617 }
  0xfc   :  { %1997 = vmatpush.bf16.msrb.mxu1 %v3620_v3  ;;  %v2116_v53 = vmul.f32 %v4618_v50, %v2111_v27  ;;  %vm2122_vm2 = vweird.f32 %v4618_v50  ;;  %v4540_v3 = vld [vmem:[%s6844_s5 + $0x34] sm:$0xf0]  ;;  %v2175_v27 = vperm.slane %v6384_v16, 0 }
  0xfd   :  { %2010 = vmatpush.bf16.msrb.mxu2 %v3748_v4  ;;  %vm2123_vm4 = vmor %vm2121_vm3, %vm2122_vm2  ;;  %v3984_v8 = vor.u32 %v4540_v3, %v3983_v2  ;;  %v4031_v2 = vld [vmem:[%s6844_s5 + $0x90] sm:$0xf]  ;;  %v4552_v3 = vld [vmem:[%s6844_s5 + $0x94] sm:$0xf0] }
  0xfe   :  { %2023 = vmatpush.bf16.msrb.mxu3 %v3876_v17  ;;  %v2117_v58 = vmul.f32 %v4618_v50, %v2116_v53  ;;  %v4562_v17 = vld [vmem:[%s6844_s5 + $0xe4] sm:$0xf0]  ;;  %v4047_v53 = vld [vmem:[%s6844_s5 + $0xb0] sm:$0xf] }
  0xff   :  { %1985 = vmatpush.bf16.msrb.mxu0 %v3476_v26  ;;  %v4072_v18 = vor.u32 %v4562_v17, %v4071_v10  ;;  %v3993_v10 = vld [vmem:[%s6844_s5 + $0x48] sm:$0xf0] }
 0x100   :  { %1998 = vmatpush.bf16.msrb.mxu1 %v3604_v20  ;;  %v2118_v56 = vmul.f32 0.5, %v2117_v58 }
 0x101   :  { %2011 = vmatpush.bf16.msrb.mxu2 %v3732_v21  ;;  %v4063_v21 = vld [vmem:[%s6844_s5 + $0xd0] sm:$0xf] }
 0x102   :  { %2024 = vmatpush.bf16.msrb.mxu3 %v3860_v29  ;;  %v2119_v62 = vsub.f32 1.5, %v2118_v56  ;;  %v4064_v30 = vor.u32 %v4560_v43, %v4063_v21  ;;  %v4545_v56 = vld [vmem:[%s6844_s5 + $0x64] sm:$0xf] }
 0x103   :  { %1986 = vmatpush.bf16.msrb.mxu0 %v3460_v41  ;;  %v3959_v41 = vld [vmem:[%s6844_s5] sm:$0xf] }
 0x104   :  { %1999 = vmatpush.bf16.msrb.mxu1 %v3588_v44  ;;  %v2120_v63 = vmul.f32 %v4618_v50, %v2119_v62  ;;  %v1793_v1 = vpop.f32.mrf.mxu1  ;;  %v4534_v44 = vld [vmem:[%s6844_s5 + $0x4] sm:$0xf0] }
 0x105   :  { %2012 = vmatpush.bf16.msrb.mxu2 %v3716_v45  ;;  %v4554_v62 = vld [vmem:[%s6844_s5 + $0xa4] sm:$0xf0] }
 0x106   :  { %2025 = vmatpush.bf16.msrb.mxu3 %v3844_v28  ;;  %1987 = vmatmul.bf16.vlgmr.msrb.gmra.mxu0 %v5137_v37  ;;  %v1768_v37 = vadd.f32 %v6260_v61, %v1755_v54  ;;  %v4564_v61 = vld [vmem:[%s6844_s5 + $0xf4] sm:$0xf0]  ;;  %v2124_v6 = vsel %vm2123_vm4, %v4618_v50, %v2120_v63  ;;  %v4543_v63 = vld [vmem:[%s6844_s5 + $0x54] sm:$0xf]  ;;  %vm2927_vm4 = vcmask 66560  }
 0x107   :  { %2585 = vmatpush.bf16.msra.mxu0 %v4016_v46  ;;  %2000 = vmatmul.bf16.vlgmr.msrb.gmra.mxu1 %v5147_v42  ;;  %v1780_v42 = vpop.f32.mrf.mxu0  ;;  %v2155_v11 = vmul.f32 %v2124_v6, %v6174_v9  ;;  %v4056_v46 = vor.u32 %v4558_v39, %v4055_v36  ;;  %v4556_v54 = vld [vmem:[%s6844_s5 + $0xb4] sm:$0xf0] }
 0x108   :  { %2013 = vmatmul.bf16.vlgmr.msrb.gmra.mxu2 %v5126_v33  ;;  %v3992_v33 = vor.u32 %v4542_v12, %v3991_v60  ;;  %v1781_v0 = vadd.f32 %v1780_v42, %v1768_v37  ;;  %v4009_v37 = vld [vmem:[%s6844_s5 + $0x68] sm:$0xf0]  ;;  %v4039_v12 = vld [vmem:[%s6844_s5 + $0xa0] sm:$0xf] }
 0x109   :  { %2026 = vmatmul.bf16.vlgmr.msrb.gmra.mxu3 %v5139_v38  ;;  %v4079_v38 = vld [vmem:[%s6844_s5 + $0xf0] sm:$0xf]  ;;  %v2169_v22 = vmul.f32 %v2161_v52, %v2155_v11  ;;  %v4023_v11 = vld [vmem:[%s6844_s5 + $0x80] sm:$0xf]  ;;  %v4550_v52 = vld [vmem:[%s6844_s5 + $0x84] sm:$0xf0] }
 0x10a   :  { %v4080_v4 = vor.u32 %v4564_v61, %v4079_v38  ;;  %v1794_v7 = vadd.f32 %v1793_v1, %v1781_v0  ;;  %v4012_v38 = vor.u32 %v4545_v56, %v4009_v37  ;;  %v4040_v61 = vor.u32 %v4554_v62, %v4039_v12  ;;  %v4001_v0 = vld [vmem:[%s6844_s5 + $0x58] sm:$0xf0]  ;;  %v3961_v56 = vld [vmem:[%s6844_s5 + $0x8] sm:$0xf0] }
 0x10b   :  { %2586 = vmatpush.bf16.msra.mxu0 %v4008_v51  ;;  %v1806_v13 = vpop.f32.mrf.mxu2  ;;  %v2183_v45 = vadd.f32 %v2175_v27, %v2169_v22  ;;  %v3960_v51 = vor.u32 %v4534_v44, %v3959_v41  ;;  %v4004_v6 = vor.u32 %v4543_v63, %v4001_v0  ;;  %v4024_v15 = vor.u32 %v4550_v52, %v4023_v11  ;;  %v4073_v27 = vld [vmem:[%s6844_s5 + $0xe8] sm:$0xf0]  ;;  %v4559_v41 = vld [vmem:[%s6844_s5 + $0xd4] sm:$0xf]  ;;  %v4065_v44 = vld [vmem:[%s6844_s5 + $0xd8] sm:$0xf0] }
 0x10c   :  { %2598 = vmatpush.bf16.msra.mxu1 %v4080_v4  ;;  %v1807_v25 = vadd.f32 %v1806_v13, %v1794_v7  ;;  %v1819_v26 = vpop.f32.mrf.mxu3  ;;  %v1795_v29 = vpop.f32.mrf.mxu1  ;;  %v4032_v7 = vor.u32 %v4552_v3, %v4031_v2  ;;  %v4068_v48 = vor.u32 %v4559_v41, %v4065_v44  ;;  %v4049_v63 = vld [vmem:[%s6844_s5 + $0xb8] sm:$0xf0]  ;;  %v4553_v2 = vld [vmem:[%s6844_s5 + $0xa4] sm:$0xf]  ;;  %v4041_v3 = vld [vmem:[%s6844_s5 + $0xa8] sm:$0xf0] }
 0x10d   :  { %v2187_v58 = vmax.f32 %v2183_v45, 0.0  ;;  %v4033_v11 = vld [vmem:[%s6844_s5 + $0x98] sm:$0xf0] }
 0x10e   :  { %v1820_v9 = vadd.f32 %v1819_v26, %v1807_v25  ;;  %v4081_v25 = vld [vmem:[%s6844_s5 + $0xf8] sm:$0xf0] }
 0x10f   :  { %2587 = vmatpush.bf16.msra.mxu0 %v4000_v59  ;;  %v1782_v20 = vpop.f32.mrf.mxu0  ;;  %v4048_v59 = vor.u32 %v4556_v54, %v4047_v53  ;;  %v6436_v42 = vpack.c.bf16 %v2187_v58, %v2187_v58  ;;  %v6508_v53 = vld [vmem:[%s6843_s2] sm:$0xf] }
 0x110   :  { %2599 = vmatpush.bf16.msra.mxu1 %v4072_v18  ;;  %v2039_v31 = vsel %vm2031_vm0, %v1820_v9, 0.0  ;;  %v4563_v18 = vld [vmem:[%s6844_s5 + $0xf4] sm:$0xf]  ;;  %v329_v54 = vperm.slane %v6508_v53, 2 }
 0x111   :  { %v2040_v32 = vrot.slane %v2039_v31, 4  ;;  %v4084_v21 = vor.u32 %v4563_v18, %v4081_v25  ;;  %v4025_v18 = vld [vmem:[%s6844_s5 + $0x88] sm:$0xf0] }
 0x113   :  { %2588 = vmatpush.bf16.msra.mxu0 %v3992_v33  ;;  %v2041_v40 = vadd.f32 %v2040_v32, %v2039_v31  ;;  %v1808_v28 = vpop.f32.mrf.mxu2  ;;  %v3977_v31 = vld [vmem:[%s6844_s5 + $0x28] sm:$0xf0]  ;;  %v4076_v32 = vor.u32 %v4561_v24, %v4073_v27  ;;  %v2162_v24 = vperm.slane %v6365_v5, 1  ;;  %v4135_v27 = vld [vmem:[%s6844_s5 + $0x160] sm:$0xf] }
 0x114   :  { %2600 = vmatpush.bf16.msra.mxu1 %v4064_v30  ;;  %v1821_v49 = vpop.f32.mrf.mxu3  ;;  %v4537_v30 = vld [vmem:[%s6844_s5 + $0x24] sm:$0xf]  ;;  %v4535_v28 = vld [vmem:[%s6844_s5 + $0x14] sm:$0xf] }
 0x115   :  { %v2042_v50 = vrot.slane %v2041_v40, 2 }
 0x117   :  { %2589 = vmatpush.bf16.msra.mxu0 %v3984_v8  ;;  %v2043_v35 = vadd.f32 %v2042_v50, %v2041_v40  ;;  %v4541_v8 = vld [vmem:[%s6844_s5 + $0x44] sm:$0xf]  ;;  %v3980_v40 = vor.u32 %v4537_v30, %v3977_v31 }
 0x118   :  { %2601 = vmatpush.bf16.msra.mxu1 %v4056_v46  ;;  %v3996_v14 = vor.u32 %v4541_v8, %v3993_v10  ;;  %v3969_v46 = vld [vmem:[%s6844_s5 + $0x18] sm:$0xf0] }
 0x119   :  { %v2044_v60 = vrot.slane %v2043_v35, 1 }
 0x11b   :  { %2590 = vmatpush.bf16.msra.mxu0 %v3976_v19  ;;  %v2045_v33 = vadd.f32 %v2044_v60, %v2043_v35  ;;  %v3985_v19 = vld [vmem:[%s6844_s5 + $0x38] sm:$0xf0]  ;;  %v4557_v35 = vld [vmem:[%s6844_s5 + $0xc4] sm:$0xf] }
 0x11c   :  { %2602 = vmatpush.bf16.msra.mxu1 %v4048_v59  ;;  %v4533_v59 = vld [vmem:[%s6844_s5 + $0x4] sm:$0xf] }
 0x11d   :  { %v2068_v1 = vmul.f32 %v6136_v55, %v2045_v33 }
 0x11f   :  { %2591 = vmatpush.bf16.msra.mxu0 %v3968_v34  ;;  %v6452_v4 = vsub.f32 %v1820_v9, %v2068_v1  ;;  %v4539_v9 = vld [vmem:[%s6844_s5 + $0x34] sm:$0xf] }
 0x120   :  { %2603 = vmatpush.bf16.msra.mxu1 %v4040_v61  ;;  %v3988_v23 = vor.u32 %v4539_v9, %v3985_v19  ;;  %v4555_v61 = vld [vmem:[%s6844_s5 + $0xb4] sm:$0xf]  ;;  %v4580_v9 = vld [vmem:[%s6844_s5 + $0x174] sm:$0xf0] }
 0x121   :  { %v2076_v17 = vmul.f32 %v6452_v4, %v6452_v4  ;;  %v4052_v0 = vor.u32 %v4555_v61, %v4049_v63  ;;  %v4103_v63 = vld [vmem:[%s6844_s5 + $0x120] sm:$0xf] }
 0x123   :  { %2592 = vmatpush.bf16.msra.mxu0 %v3960_v51  ;;  %v2086_v13 = vsel %vm2031_vm0, %v2076_v17, 0.0  ;;  %v1832_v20 = vpop.f32.mrf.mxu0  ;;  %v3972_v51 = vor.u32 %v4535_v28, %v3969_v46  ;;  %v4551_v17 = vld [vmem:[%s6844_s5 + $0x94] sm:$0xf]  ;;  %v4576_v28 = vld [vmem:[%s6844_s5 + $0x154] sm:$0xf0] }
 0x124   :  { %2604 = vmatpush.bf16.msra.mxu1 %v4032_v7  ;;  %v2087_v26 = vrot.slane %v2086_v13, 4  ;;  %v1845_v43 = vpop.f32.mrf.mxu1  ;;  %v1833_v33 = vadd.f32 %v1832_v20, %v329_v54  ;;  %v4036_v52 = vor.u32 %v4551_v17, %v4033_v11  ;;  %v4119_v54 = vld [vmem:[%s6844_s5 + $0x140] sm:$0xf] }
 0x125   :  { %v4087_v11 = vld [vmem:[%s6844_s5 + $0x100] sm:$0xf] }
 0x126   :  { %2593 = vmatmul.bf16.vlgmr.msra.gmra.mxu0 %v6436_v42  ;;  %v2088_v22 = vadd.f32 %v2087_v26, %v2086_v13  ;;  %v1846_v1 = vadd.f32 %v1845_v43, %v1833_v33  ;;  %v4143_v26 = vld [vmem:[%s6844_s5 + $0x170] sm:$0xf] }
 0x127   :  { %2637 = vmatpush.bf16.msrb.mxu0 %v4020_v57  ;;  %v4057_v57 = vld [vmem:[%s6844_s5 + $0xc8] sm:$0xf0]  ;;  %v4144_v20 = vor.u32 %v4580_v9, %v4143_v26 }
 0x128   :  { %2605 = vmatpush.bf16.msra.mxu1 %v4024_v15  ;;  %v2089_v29 = vrot.slane %v2088_v22, 2  ;;  %v4060_v37 = vor.u32 %v4557_v35, %v4057_v57  ;;  %v4574_v35 = vld [vmem:[%s6844_s5 + $0x144] sm:$0xf0] }
 0x129   :  { %2611 = vmatpush.bf16.msra.mxu2 %v4144_v20  ;;  %v4577_v20 = vld [vmem:[%s6844_s5 + $0x164] sm:$0xf] }
 0x12a   :  { %v2090_v36 = vadd.f32 %v2089_v29, %v2088_v22  ;;  %v4578_v29 = vld [vmem:[%s6844_s5 + $0x164] sm:$0xf0] }
 0x12b   :  { %2638 = vmatpush.bf16.msrb.mxu0 %v4012_v38  ;;  %v1858_v34 = vpop.f32.mrf.mxu2  ;;  %v1834_v47 = vpop.f32.mrf.mxu0  ;;  %v3964_v38 = vor.u32 %v4533_v59, %v3961_v56 }
 0x12c   :  { %2650 = vmatpush.bf16.msrb.mxu1 %v4084_v21  ;;  %v1871_v39 = vpop.f32.mrf.mxu3  ;;  %v2091_v45 = vrot.slane %v2090_v36, 1  ;;  %v1847_v49 = vpop.f32.mrf.mxu1  ;;  %v1859_v10 = vadd.f32 %v1858_v34, %v1846_v1 }
 0x12e   :  { %v2092_v50 = vadd.f32 %v2091_v45, %v2090_v36  ;;  %v1872_v15 = vadd.f32 %v1871_v39, %v1859_v10  ;;  %v2176_v36 = vperm.slane %v6384_v16, 1  ;;  %v4127_v45 = vld [vmem:[%s6844_s5 + $0x150] sm:$0xf] }
 0x12f   :  { %2639 = vmatpush.bf16.msrb.mxu0 %v4004_v6  ;;  %v4044_v6 = vor.u32 %v4553_v2, %v4041_v3  ;;  %v4128_v46 = vor.u32 %v4576_v28, %v4127_v45 }
 0x130   :  { %2651 = vmatpush.bf16.msrb.mxu1 %v4076_v32  ;;  %v2108_v58 = vmul.f32 %v2092_v50, %v6136_v55  ;;  %v4136_v32 = vor.u32 %v4578_v29, %v4135_v27  ;;  %v4575_v27 = vld [vmem:[%s6844_s5 + $0x154] sm:$0xf]  ;;  %v4129_v29 = vld [vmem:[%s6844_s5 + $0x158] sm:$0xf0] }
 0x132   :  { %v2112_v12 = vadd.f32 1e-05, %v2108_v58  ;;  %2612 = vmatpush.bf16.msra.mxu2 %v4136_v32  ;;  %v4120_v58 = vor.u32 %v4574_v35, %v4119_v54  ;;  %v4132_v32 = vor.u32 %v4575_v27, %v4129_v29  ;;  %v4105_v35 = vld [vmem:[%s6844_s5 + $0x128] sm:$0xf0] }
 0x133   :  { %2640 = vmatpush.bf16.msrb.mxu0 %v3996_v14  ;;  %v1860_v60 = vpop.f32.mrf.mxu2 }
 0x134   :  { %2652 = vmatpush.bf16.msrb.mxu1 %v4068_v48  ;;  %v1873_v62 = vpop.f32.mrf.mxu3  ;;  %4619 = vrsqrt.f32 %v2112_v12  ;;  %vm2131_vm6 = vweird.f32 %v2112_v12 }
 0x135   :  { %v4572_v62 = vld [vmem:[%s6844_s5 + $0x134] sm:$0xf0] }
 0x136   :  { %2613 = vmatpush.bf16.msra.mxu2 %v4128_v46  ;;  %v330_v46 = vperm.slane %v6508_v53, 3  ;;  %v4569_v53 = vld [vmem:[%s6844_s5 + $0x124] sm:$0xf] }
 0x137   :  { %2641 = vmatpush.bf16.msrb.mxu0 %v3988_v23 }
 0x138   :  { %2653 = vmatpush.bf16.msrb.mxu1 %v4060_v37 }
 0x13a   :  { %v4620_v7 = vpop.eup %4619  ;;  %2614 = vmatpush.bf16.msra.mxu2 %v4120_v58 }
 0x13b   :  { %2642 = vmatpush.bf16.msrb.mxu0 %v3980_v40  ;;  %v2126_v8 = vmul.f32 %v4620_v7, %v2112_v12  ;;  %vm2132_vm5 = vweird.f32 %v4620_v7  ;;  %v4111_v12 = vld [vmem:[%s6844_s5 + $0x130] sm:$0xf] }
 0x13c   :  { %2654 = vmatpush.bf16.msrb.mxu1 %v4052_v0  ;;  %vm2133_vm7 = vmor %vm2131_vm6, %vm2132_vm5  ;;  %v4570_v0 = vld [vmem:[%s6844_s5 + $0x124] sm:$0xf0] }
 0x13d   :  { %v2127_v13 = vmul.f32 %v4620_v7, %v2126_v8  ;;  %v4104_v2 = vor.u32 %v4570_v0, %v4103_v63  ;;  %v4207_v0 = vld [vmem:[%s6844_s5 + $0x1f0] sm:$0xf] }
 0x13f   :  { %2643 = vmatpush.bf16.msrb.mxu0 %v3972_v51  ;;  %v2128_v14 = vmul.f32 0.5, %v2127_v13 }
 0x140   :  { %2655 = vmatpush.bf16.msrb.mxu1 %v4044_v6  ;;  %v4095_v6 = vld [vmem:[%s6844_s5 + $0x110] sm:$0xf] }
 0x141   :  { %v2129_v19 = vsub.f32 1.5, %v2128_v14 }
 0x143   :  { %2644 = vmatpush.bf16.msrb.mxu0 %v3964_v38  ;;  %v1884_v21 = vpop.f32.mrf.mxu0  ;;  %v2130_v43 = vmul.f32 %v4620_v7, %v2129_v19  ;;  %v4112_v38 = vor.u32 %v4572_v62, %v4111_v12 }
 0x144   :  { %2656 = vmatpush.bf16.msrb.mxu1 %v4036_v52  ;;  %v1885_v22 = vadd.f32 %v1884_v21, %v1872_v15  ;;  %v1897_v23 = vpop.f32.mrf.mxu1  ;;  %v4566_v52 = vld [vmem:[%s6844_s5 + $0x104] sm:$0xf0]  ;;  %v4579_v15 = vld [vmem:[%s6844_s5 + $0x174] sm:$0xf]  ;;  %v4137_v21 = vld [vmem:[%s6844_s5 + $0x168] sm:$0xf0] }
 0x145   :  { %v2134_v30 = vsel %vm2133_vm7, %v4620_v7, %v2130_v43  ;;  %2615 = vmatpush.bf16.msra.mxu2 %v4112_v38  ;;  %v4568_v7 = vld [vmem:[%s6844_s5 + $0x114] sm:$0xf0]  ;;  %v4088_v14 = vor.u32 %v4566_v52, %v4087_v11  ;;  %v4565_v38 = vld [vmem:[%s6844_s5 + $0x104] sm:$0xf]  ;;  %v4199_v52 = vld [vmem:[%s6844_s5 + $0x1e0] sm:$0xf] }
 0x146   :  { %2645 = vmatmul.bf16.vlgmr.msrb.gmra.mxu0 %v6436_v42  ;;  %v4549_v42 = vld [vmem:[%s6844_s5 + $0x84] sm:$0xf]  ;;  %v1898_v31 = vadd.f32 %v1897_v23, %v1885_v22  ;;  %v2156_v34 = vmul.f32 %v2134_v30, %v6452_v4  ;;  %v4096_v10 = vor.u32 %v4568_v7, %v4095_v6  ;;  %v4140_v22 = vor.u32 %v4577_v20, %v4137_v21  ;;  %v4592_v20 = vld [vmem:[%s6844_s5 + $0x1d4] sm:$0xf0] }
 0x147   :  { %v4028_v25 = vor.u32 %v4549_v42, %v4025_v18  ;;  %v4145_v42 = vld [vmem:[%s6844_s5 + $0x178] sm:$0xf0] }
 0x148   :  { %v2170_v40 = vmul.f32 %v2162_v24, %v2156_v34  ;;  %v4148_v18 = vor.u32 %v4579_v15, %v4145_v42  ;;  %v2163_v42 = vperm.slane %v6365_v5, 2 }
 0x149   :  { %2657 = vmatpush.bf16.msrb.mxu1 %v4028_v25  ;;  %2616 = vmatpush.bf16.msra.mxu2 %v4104_v2 }
 0x14a   :  { %v2184_v48 = vadd.f32 %v2176_v36, %v2170_v40  ;;  %v4573_v40 = vld [vmem:[%s6844_s5 + $0x144] sm:$0xf] }
 0x14b   :  { %v1910_v39 = vpop.f32.mrf.mxu2  ;;  %v1886_v49 = vpop.f32.mrf.mxu0 }
 0x14c   :  { %v1911_v41 = vadd.f32 %v1910_v39, %v1898_v31  ;;  %v1923_v44 = vpop.f32.mrf.mxu3  ;;  %v1899_v4 = vpop.f32.mrf.mxu1  ;;  %v2188_v51 = vmax.f32 %v2184_v48, 0.0  ;;  %v4571_v48 = vld [vmem:[%s6844_s5 + $0x134] sm:$0xf]  ;;  %v4113_v49 = vld [vmem:[%s6844_s5 + $0x138] sm:$0xf0] }
 0x14d   :  { %2617 = vmatpush.bf16.msra.mxu2 %v4096_v10 }
 0x14e   :  { %v1924_v47 = vadd.f32 %v1923_v44, %v1911_v41  ;;  %v2192_v59 = vpack.c.bf16 %v2188_v51, %v2188_v51  ;;  %v4121_v41 = vld [vmem:[%s6844_s5 + $0x148] sm:$0xf0]  ;;  %v4116_v51 = vor.u32 %v4571_v48, %v4113_v49 }
 0x14f   :  { %v4124_v45 = vor.u32 %v4573_v40, %v4121_v41 }
 0x150   :  { %v2046_v50 = vsel %vm2031_vm0, %v1924_v47, 0.0  ;;  %2606 = vmatmul.bf16.vlgmr.msra.gmra.mxu1 %v2192_v59 }
 0x151   :  { %v2047_v57 = vrot.slane %v2046_v50, 4  ;;  %2618 = vmatpush.bf16.msra.mxu2 %v4088_v14 }
 0x153   :  { %v2048_v56 = vadd.f32 %v2047_v57, %v2046_v50  ;;  %v1912_v37 = vpop.f32.mrf.mxu2  ;;  %v4108_v57 = vor.u32 %v4569_v53, %v4105_v35  ;;  %v4159_v35 = vld [vmem:[%s6844_s5 + $0x190] sm:$0xf] }
 0x154   :  { %v1925_v60 = vpop.f32.mrf.mxu3 }
 0x155   :  { %v2049_v33 = vrot.slane %v2048_v56, 2  ;;  %2663 = vmatpush.bf16.msrb.mxu2 %v4148_v18 }
 0x157   :  { %v2050_v61 = vadd.f32 %v2049_v33, %v2048_v56  ;;  %v4097_v56 = vld [vmem:[%s6844_s5 + $0x118] sm:$0xf0] }
 0x159   :  { %v2051_v1 = vrot.slane %v2050_v61, 1  ;;  %2664 = vmatpush.bf16.msrb.mxu2 %v4140_v22 }
 0x15b   :  { %v2052_v3 = vadd.f32 %v2051_v1, %v2050_v61  ;;  %v4089_v61 = vld [vmem:[%s6844_s5 + $0x108] sm:$0xf0]  ;;  %v4596_v1 = vld [vmem:[%s6844_s5 + $0x1f4] sm:$0xf0] }
 0x15c   :  { %v4092_v63 = vor.u32 %v4565_v38, %v4089_v61  ;;  %v4209_v38 = vld [vmem:[%s6844_s5 + $0x1f8] sm:$0xf0] }
 0x15d   :  { %v2069_v8 = vmul.f32 %v6136_v55, %v2052_v3  ;;  %2665 = vmatpush.bf16.msrb.mxu2 %v4132_v32  ;;  %v4208_v3 = vor.u32 %v4596_v1, %v4207_v0  ;;  %v4590_v32 = vld [vmem:[%s6844_s5 + $0x1c4] sm:$0xf0] }
 0x15f   :  { %v6596_v17 = vsub.f32 %v1924_v47, %v2069_v8  ;;  %2624 = vmatpush.bf16.msra.mxu3 %v4208_v3  ;;  %v4201_v3 = vld [vmem:[%s6844_s5 + $0x1e8] sm:$0xf0] }
 0x160   :  { %2658 = vmatmul.bf16.vlgmr.msrb.gmra.mxu1 %v2192_v59  ;;  %v4567_v59 = vld [vmem:[%s6844_s5 + $0x114] sm:$0xf] }
 0x161   :  { %v2077_v13 = vmul.f32 %v6596_v17, %v6596_v17  ;;  %2666 = vmatpush.bf16.msrb.mxu2 %v4124_v45  ;;  %v4100_v60 = vor.u32 %v4567_v59, %v4097_v56  ;;  %v4588_v45 = vld [vmem:[%s6844_s5 + $0x1b4] sm:$0xf0] }
 0x163   :  { %v2093_v25 = vsel %vm2031_vm0, %v2077_v13, 0.0  ;;  %v1936_v9 = vpop.f32.mrf.mxu0  ;;  %v4594_v13 = vld [vmem:[%s6844_s5 + $0x1e4] sm:$0xf0] }
 0x164   :  { %v2094_v26 = vrot.slane %v2093_v25, 4  ;;  %v1949_v19 = vpop.f32.mrf.mxu1  ;;  %v1937_v54 = vadd.f32 %v1936_v9, %v330_v46  ;;  %v4200_v15 = vor.u32 %v4594_v13, %v4199_v52  ;;  %v2177_v9 = vperm.slane %v6384_v16, 2 }
 0x165   :  { %2667 = vmatpush.bf16.msrb.mxu2 %v4116_v51 }
 0x166   :  { %v2095_v43 = vadd.f32 %v2094_v26, %v2093_v25  ;;  %v1950_v58 = vadd.f32 %v1949_v19, %v1937_v54  ;;  %2625 = vmatpush.bf16.msra.mxu3 %v4200_v15  ;;  %v4191_v19 = vld [vmem:[%s6844_s5 + $0x1d0] sm:$0xf]  ;;  %v4185_v15 = vld [vmem:[%s6844_s5 + $0x1c8] sm:$0xf0] }
 0x168   :  { %v2096_v23 = vrot.slane %v2095_v43, 2 }
 0x169   :  { %2668 = vmatpush.bf16.msrb.mxu2 %v4108_v57  ;;  %v4584_v57 = vld [vmem:[%s6844_s5 + $0x194] sm:$0xf0] }
 0x16a   :  { %v2097_v30 = vadd.f32 %v2096_v23, %v2095_v43  ;;  %v4192_v43 = vor.u32 %v4592_v20, %v4191_v19  ;;  %v4160_v59 = vor.u32 %v4584_v57, %v4159_v35  ;;  %v4587_v19 = vld [vmem:[%s6844_s5 + $0x1b4] sm:$0xf]  ;;  %v4177_v20 = vld [vmem:[%s6844_s5 + $0x1b8] sm:$0xf0] }
 0x16b   :  { %v1962_v24 = vpop.f32.mrf.mxu2  ;;  %v1938_v36 = vpop.f32.mrf.mxu0 }
 0x16c   :  { %v1975_v31 = vpop.f32.mrf.mxu3  ;;  %v2098_v34 = vrot.slane %v2097_v30, 1  ;;  %v1951_v39 = vpop.f32.mrf.mxu1  ;;  %v1963_v62 = vadd.f32 %v1962_v24, %v1950_v58  ;;  %2626 = vmatpush.bf16.msra.mxu3 %v4192_v43  ;;  %v4180_v43 = vor.u32 %v4587_v19, %v4177_v20 }
 0x16d   :  { %2669 = vmatpush.bf16.msrb.mxu2 %v4100_v60  ;;  %v4582_v60 = vld [vmem:[%s6844_s5 + $0x184] sm:$0xf0] }
 0x16e   :  { %v2099_v44 = vadd.f32 %v2098_v34, %v2097_v30  ;;  %v1976_v6 = vadd.f32 %v1975_v31, %v1963_v62  ;;  %v4183_v31 = vld [vmem:[%s6844_s5 + $0x1c0] sm:$0xf] }
 0x16f   :  { %v4184_v34 = vor.u32 %v4590_v32, %v4183_v31  ;;  %v4581_v31 = vld [vmem:[%s6844_s5 + $0x184] sm:$0xf]  ;;  %v4153_v32 = vld [vmem:[%s6844_s5 + $0x188] sm:$0xf0] }
 0x170   :  { %v2109_v28 = vmul.f32 %v2099_v44, %v6136_v55  ;;  %v4175_v44 = vld [vmem:[%s6844_s5 + $0x1b0] sm:$0xf] }
 0x171   :  { %2670 = vmatpush.bf16.msrb.mxu2 %v4092_v63  ;;  %2627 = vmatpush.bf16.msra.mxu3 %v4184_v34 }
 0x172   :  { %v2113_v4 = vadd.f32 1e-05, %v2109_v28 }
 0x173   :  { %v1964_v47 = vpop.f32.mrf.mxu2 }
 0x174   :  { %v1977_v50 = vpop.f32.mrf.mxu3  ;;  %4621 = vrsqrt.f32 %v2113_v4  ;;  %vm2141_vm9 = vweird.f32 %v2113_v4  ;;  %v4176_v47 = vor.u32 %v4588_v45, %v4175_v44 }
 0x175   :  { %v4586_v50 = vld [vmem:[%s6844_s5 + $0x1a4] sm:$0xf0] }
 0x176   :  { %2628 = vmatpush.bf16.msra.mxu3 %v4176_v47 }
 0x17a   :  { %v4622_v37 = vpop.eup %4621 }
 0x17b   :  { %v2136_v12 = vmul.f32 %v4622_v37, %v2113_v4  ;;  %vm2142_vm8 = vweird.f32 %v4622_v37  ;;  %v4167_v4 = vld [vmem:[%s6844_s5 + $0x1a0] sm:$0xf] }
 0x17c   :  { %vm2143_vm10 = vmor %vm2141_vm9, %vm2142_vm8  ;;  %v4168_v54 = vor.u32 %v4586_v50, %v4167_v4 }
 0x17d   :  { %v2137_v33 = vmul.f32 %v4622_v37, %v2136_v12 }
 0x17e   :  { %2629 = vmatpush.bf16.msra.mxu3 %v4168_v54 }
 0x17f   :  { %v2138_v2 = vmul.f32 0.5, %v2137_v33  ;;  %v4595_v33 = vld [vmem:[%s6844_s5 + $0x1f4] sm:$0xf] }
 0x180   :  { %v4212_v61 = vor.u32 %v4595_v33, %v4209_v38 }
 0x181   :  { %v2139_v8 = vsub.f32 1.5, %v2138_v2  ;;  %v4593_v2 = vld [vmem:[%s6844_s5 + $0x1e4] sm:$0xf] }
 0x182   :  { %2630 = vmatpush.bf16.msra.mxu3 %v4160_v59 }
 0x183   :  { %v1988_v7 = vpop.f32.mrf.mxu0  ;;  %v2140_v14 = vmul.f32 %v4622_v37, %v2139_v8 }
 0x184   :  { %v2001_v10 = vpop.f32.mrf.mxu1  ;;  %v1989_v11 = vadd.f32 %v1988_v7, %v1976_v6  ;;  %v4204_v7 = vor.u32 %v4593_v2, %v4201_v3 }
 0x185   :  { %v2144_v18 = vsel %vm2143_vm10, %v4622_v37, %v2140_v14  ;;  %v4151_v37 = vld [vmem:[%s6844_s5 + $0x180] sm:$0xf]  ;;  %v4589_v14 = vld [vmem:[%s6844_s5 + $0x1c4] sm:$0xf] }
 0x186   :  { %v2157_v25 = vmul.f32 %v2144_v18, %v6596_v17  ;;  %v2002_v26 = vadd.f32 %v2001_v10, %v1989_v11  ;;  %v4152_v62 = vor.u32 %v4582_v60, %v4151_v37  ;;  %v4591_v10 = vld [vmem:[%s6844_s5 + $0x1d4] sm:$0xf]  ;;  %v4193_v11 = vld [vmem:[%s6844_s5 + $0x1d8] sm:$0xf0] }
 0x187   :  { %v4196_v13 = vor.u32 %v4591_v10, %v4193_v11  ;;  %v4603_v10 = vld [vmem:[%s6849_s9 + $0x30] sm:$0xff] }
 0x188   :  { %v2171_v22 = vmul.f32 %v2163_v42, %v2157_v25  ;;  %2631 = vmatpush.bf16.msra.mxu3 %v4152_v62  ;;  %v4188_v25 = vor.u32 %v4589_v14, %v4185_v15  ;;  %v4602_v14 = vld [vmem:[%s6849_s9 + $0x28] sm:$0xff] }
 0x18a   :  { %v2185_v30 = vadd.f32 %v2177_v9, %v2171_v22  ;;  %v4585_v22 = vld [vmem:[%s6844_s5 + $0x1a4] sm:$0xf] }
 0x18b   :  { %v2014_v21 = vpop.f32.mrf.mxu2  ;;  %v1990_v27 = vpop.f32.mrf.mxu0 }
 0x18c   :  { %v2015_v23 = vadd.f32 %v2014_v21, %v2002_v26  ;;  %v2027_v24 = vpop.f32.mrf.mxu3  ;;  %v2003_v29 = vpop.f32.mrf.mxu1  ;;  %v2189_v39 = vmax.f32 %v2185_v30, 0.0  ;;  %2676 = vmatpush.bf16.msrb.mxu3 %v4212_v61 }
 0x18d   :  { %v4583_v29 = vld [vmem:[%s6844_s5 + $0x194] sm:$0xf] }
 0x18e   :  { %v2028_v17 = vadd.f32 %v2027_v24, %v2015_v23  ;;  %v2193_v41 = vpack.c.bf16 %v2189_v39, %v2189_v39  ;;  %v4169_v23 = vld [vmem:[%s6844_s5 + $0x1a8] sm:$0xf0] }
 0x18f   :  { %v4172_v27 = vor.u32 %v4585_v22, %v4169_v23  ;;  %v4612_v22 = vld [vmem:[%s6849_s9 + $0x78] sm:$0xff] }
 0x190   :  { %v2053_v36 = vsel %vm2031_vm0, %v2028_v17, 0.0  ;;  %2619 = vmatmul.bf16.vlgmr.msra.gmra.mxu2 %v2193_v41  ;;  %2677 = vmatpush.bf16.msrb.mxu3 %v4204_v7 }
 0x191   :  { %v2054_v40 = vrot.slane %v2053_v36, 4  ;;  %2914 = vmatpush.bf16.msra.mxu1 %v4612_v22 }
 0x193   :  { %v2055_v28 = vadd.f32 %v2054_v40, %v2053_v36  ;;  %v2016_v46 = vpop.f32.mrf.mxu2  ;;  %v4156_v36 = vor.u32 %v4581_v31, %v4153_v32  ;;  %v4611_v31 = vld [vmem:[%s6849_s9 + $0x70] sm:$0xff] }
 0x194   :  { %v2029_v48 = vpop.f32.mrf.mxu3  ;;  %2678 = vmatpush.bf16.msrb.mxu3 %v4196_v13  ;;  %v2164_v46 = vperm.slane %v6365_v5, 3 }
 0x195   :  { %v2056_v49 = vrot.slane %v2055_v28, 2  ;;  %2915 = vmatpush.bf16.msra.mxu1 %v4611_v31 }
 0x197   :  { %v2057_v51 = vadd.f32 %v2056_v49, %v2055_v28  ;;  %v2178_v49 = vperm.slane %v6384_v16, 3 }
 0x198   :  { %2679 = vmatpush.bf16.msrb.mxu3 %v4188_v25  ;;  %v4601_v25 = vld [vmem:[%s6849_s9 + $0x20] sm:$0xff] }
 0x199   :  { %v2058_v53 = vrot.slane %v2057_v51, 1 }
 0x19b   :  { %v2059_v58 = vadd.f32 %v2058_v53, %v2057_v51  ;;  %v2259_v53 = vld [vmem:[%s6847_s6] sm:$0x3] }
 0x19c   :  { %2680 = vmatpush.bf16.msrb.mxu3 %v4180_v43  ;;  %v2261_v57 = vperm.slane %v2259_v53, 0  ;;  %v2262_v37 = vperm.slane %v2259_v53, 1  ;;  %v4600_v43 = vld [vmem:[%s6849_s9 + $0x18] sm:$0xff] }
 0x19d   :  { %v2070_v56 = vmul.f32 %v6136_v55, %v2059_v58  ;;  %v4608_v53 = vld [vmem:[%s6849_s9 + $0x58] sm:$0xff] }
 0x19f   :  { %v2074_v12 = vsub.f32 %v2028_v17, %v2070_v56  ;;  %v4161_v17 = vld [vmem:[%s6844_s5 + $0x198] sm:$0xf0] }
 0x1a0   :  { %2671 = vmatmul.bf16.vlgmr.msrb.gmra.mxu2 %v2193_v41  ;;  %2681 = vmatpush.bf16.msrb.mxu3 %v4172_v27  ;;  %v4164_v30 = vor.u32 %v4583_v29, %v4161_v17 }
 0x1a1   :  { %v2078_v63 = vmul.f32 %v2074_v12, %v2074_v12 }
 0x1a3   :  { %v6716_v0 = vpop.f32.mrf.mxu0  ;;  %v2100_v1 = vsel %vm2031_vm0, %v2078_v63, 0.0 }
 0x1a4   :  { %v2101_v6 = vrot.slane %v2100_v1, 4  ;;  %2682 = vmatpush.bf16.msrb.mxu3 %v4164_v30  ;;  %v2595_v58 = vadd.f32 %v6716_v0, %v2261_v57  ;;  %v4604_v0 = vld [vmem:[%s6849_s9 + $0x38] sm:$0xff]  ;;  %v4599_v30 = vld [vmem:[%s6849_s9 + $0x10] sm:$0xff] }
 0x1a5   :  { %2901 = vmatpush.bf16.msra.mxu0 %v4604_v0 }
 0x1a6   :  { %v2102_v8 = vadd.f32 %v2101_v6, %v2100_v1 }
 0x1a8   :  { %v2103_v52 = vrot.slane %v2102_v8, 2  ;;  %2683 = vmatpush.bf16.msrb.mxu3 %v4156_v36 }
 0x1a9   :  { %2902 = vmatpush.bf16.msra.mxu0 %v4603_v10 }
 0x1aa   :  { %v2104_v42 = vadd.f32 %v2103_v52, %v2102_v8 }
 0x1ab   :  { %v2596_v18 = vpop.f32.mrf.mxu0 }
 0x1ac   :  { %v2105_v26 = vrot.slane %v2104_v42, 1 }
 0x1ad   :  { %2903 = vmatpush.bf16.msra.mxu0 %v4602_v14 }
 0x1ae   :  { %v2106_v9 = vadd.f32 %v2105_v26, %v2104_v42 }
 0x1b0   :  { %v2110_v21 = vmul.f32 %v2106_v9, %v6136_v55 }
 0x1b1   :  { %2904 = vmatpush.bf16.msra.mxu0 %v4601_v25 }
 0x1b2   :  { %v2114_v24 = vadd.f32 1e-05, %v2110_v21 }
 0x1b4   :  { %4623 = vrsqrt.f32 %v2114_v24  ;;  %vm2151_vm12 = vweird.f32 %v2114_v24 }
 0x1b5   :  { %2905 = vmatpush.bf16.msra.mxu0 %v4600_v43 }
 0x1b9   :  { %2906 = vmatpush.bf16.msra.mxu0 %v4599_v30 }
 0x1ba   :  { %v4624_v34 = vpop.eup %4623 }
 0x1bb   :  { %v2146_v39 = vmul.f32 %v4624_v34, %v2114_v24  ;;  %vm2152_vm11 = vweird.f32 %v4624_v34 }
 0x1bc   :  { %vm2153_vm13 = vmor %vm2151_vm12, %vm2152_vm11 }
 0x1bd   :  { %v2147_v40 = vmul.f32 %v4624_v34, %v2146_v39 }
 0x1bf   :  { %v2148_v41 = vmul.f32 0.5, %v2147_v40 }
 0x1c1   :  { %v2149_v45 = vsub.f32 1.5, %v2148_v41  ;;  %v4598_v41 = vld [vmem:[%s6849_s9 + $0x8] sm:$0xff] }
 0x1c2   :  { %2907 = vmatpush.bf16.msra.mxu0 %v4598_v41 }
 0x1c3   :  { %v2646_v44 = vpop.f32.mrf.mxu0  ;;  %v2150_v28 = vmul.f32 %v4624_v34, %v2149_v45 }
 0x1c4   :  { %v2647_v60 = vadd.f32 %v2646_v44, %v2262_v37  ;;  %v4610_v44 = vld [vmem:[%s6849_s9 + $0x68] sm:$0xff] }
 0x1c5   :  { %v2154_v47 = vsel %vm2153_vm13, %v4624_v34, %v2150_v28  ;;  %2916 = vmatpush.bf16.msra.mxu1 %v4610_v44 }
 0x1c6   :  { %v2158_v48 = vmul.f32 %v2154_v47, %v2074_v12 }
 0x1c8   :  { %v2172_v50 = vmul.f32 %v2164_v46, %v2158_v48  ;;  %v4597_v48 = vld [vmem:[%s6849_s9] sm:$0xff] }
 0x1c9   :  { %2908 = vmatpush.bf16.msra.mxu0 %v4597_v48 }
 0x1ca   :  { %v2186_v51 = vadd.f32 %v2178_v49, %v2172_v50  ;;  %v4609_v49 = vld [vmem:[%s6849_s9 + $0x60] sm:$0xff] }
 0x1cb   :  { %v2648_v4 = vpop.f32.mrf.mxu0  ;;  %2917 = vmatpush.bf16.msra.mxu1 %v4609_v49 }
 0x1cc   :  { %v2190_v54 = vmax.f32 %v2186_v51, 0.0 }
 0x1cd   :  { %v2607_v59 = vpop.f32.mrf.mxu1 }
 0x1ce   :  { %v2194_v35 = vpack.c.bf16 %v2190_v54, %v2190_v54  ;;  %v2608_v56 = vadd.f32 %v2607_v59, %v2595_v58 }
 0x1cf   :  { %2918 = vmatpush.bf16.msra.mxu1 %v4608_v53 }
 0x1d0   :  { %2632 = vmatmul.bf16.vlgmr.msra.gmra.mxu3 %v2194_v35 }
 0x1d5   :  { %v2609_v5 = vpop.f32.mrf.mxu1 }
 0x1dd   :  { %v2659_v16 = vpop.f32.mrf.mxu1 }
 0x1de   :  { %v2660_v12 = vadd.f32 %v2659_v16, %v2647_v60  ;;  %v4606_v60 = vld [vmem:[%s6849_s9 + $0x48] sm:$0xff] }
 0x1e0   :  { %2684 = vmatmul.bf16.vlgmr.msrb.gmra.mxu3 %v2194_v35 }
 0x1e5   :  { %v2661_v62 = vpop.f32.mrf.mxu1 }
 0x1e6   :  { %v4605_v62 = vld [vmem:[%s6849_s9 + $0x40] sm:$0xff] }
 0x213   :  { %v2620_v33 = vpop.f32.mrf.mxu2 }
 0x214   :  { %v2621_v1 = vadd.f32 %v2620_v33, %v2608_v56  ;;  %v4607_v56 = vld [vmem:[%s6849_s9 + $0x50] sm:$0xff] }
 0x215   :  { %2919 = vmatpush.bf16.msra.mxu1 %v4607_v56 }
 0x219   :  { %2920 = vmatpush.bf16.msra.mxu1 %v4606_v60 }
 0x21b   :  { %v2622_v38 = vpop.f32.mrf.mxu2 }
 0x21d   :  { %2921 = vmatpush.bf16.msra.mxu1 %v4605_v62 }
 0x223   :  { %v2672_v61 = vpop.f32.mrf.mxu2 }
 0x224   :  { %v2673_v18 = vadd.f32 %v2672_v61, %v2660_v12 }
 0x22b   :  { %v2674_v63 = vpop.f32.mrf.mxu2 }
 0x253   :  { %v2633_v2 = vpop.f32.mrf.mxu3 }
 0x254   :  { %v2634_v3 = vadd.f32 %v2633_v2, %v2621_v1 }
 0x256   :  { %v2689_v6 = vsel %vm2031_vm0, %v2634_v3, 0.0 }
 0x257   :  { %v2690_v7 = vrot.slane %v2689_v6, 4 }
 0x259   :  { %v2691_v8 = vadd.f32 %v2690_v7, %v2689_v6  ;;  %v2749_v6 = vld [vmem:[%s6850_s7] sm:$0x3] }
 0x25a   :  { %v2751_v10 = vperm.slane %v2749_v6, 0  ;;  %v2752_v43 = vperm.slane %v2749_v6, 1 }
 0x25b   :  { %v2692_v11 = vrot.slane %v2691_v8, 2  ;;  %v2635_v52 = vpop.f32.mrf.mxu3 }
 0x25d   :  { %v2693_v13 = vadd.f32 %v2692_v11, %v2691_v8  ;;  %v2757_v8 = vld [vmem:[%s6851_s8] sm:$0x3] }
 0x25f   :  { %v2694_v15 = vrot.slane %v2693_v13, 1 }
 0x261   :  { %v2695_v42 = vadd.f32 %v2694_v15, %v2693_v13 }
 0x263   :  { %v2703_v26 = vmul.f32 %v2695_v42, %v6136_v55  ;;  %v2685_v9 = vpop.f32.mrf.mxu3 }
 0x264   :  { %v2686_v19 = vadd.f32 %v2685_v9, %v2673_v18 }
 0x265   :  { %v6782_v20 = vsub.f32 %v2634_v3, %v2703_v26 }
 0x266   :  { %v2696_v21 = vsel %vm2031_vm0, %v2686_v19, 0.0 }
 0x267   :  { %v2707_v23 = vmul.f32 %v6782_v20, %v6782_v20  ;;  %v2697_v24 = vrot.slane %v2696_v21, 4 }
 0x269   :  { %v2709_v27 = vsel %vm2031_vm0, %v2707_v23, 0.0  ;;  %v2698_v29 = vadd.f32 %v2697_v24, %v2696_v21  ;;  %v2760_v24 = vperm.slane %v2757_v8, 1 }
 0x26a   :  { %v2710_v17 = vrot.slane %v2709_v27, 4 }
 0x26b   :  { %v2699_v32 = vrot.slane %v2698_v29, 2  ;;  %v2687_v34 = vpop.f32.mrf.mxu3 }
 0x26c   :  { %v2711_v36 = vadd.f32 %v2710_v17, %v2709_v27 }
 0x26d   :  { %v2700_v39 = vadd.f32 %v2699_v32, %v2698_v29  ;;  %v4614_v32 = vld [vmem:[%s6848_s10] ss:$0 sm:$0xff] }
 0x26e   :  { %v2712_v40 = vrot.slane %v2711_v36, 2 }
 0x26f   :  { %v2701_v45 = vrot.slane %v2700_v39, 1 }
 0x270   :  { %v2713_v28 = vadd.f32 %v2712_v40, %v2711_v36 }
 0x271   :  { %v2702_v46 = vadd.f32 %v2701_v45, %v2700_v39 }
 0x272   :  { %v2714_v47 = vrot.slane %v2713_v28, 1 }
 0x273   :  { %v2704_v4 = vmul.f32 %v2702_v46, %v6136_v55 }
 0x274   :  { %v2715_v50 = vadd.f32 %v2714_v47, %v2713_v28 }
 0x275   :  { %v2706_v51 = vsub.f32 %v2686_v19, %v2704_v4 }
 0x276   :  { %v2723_v54 = vmul.f32 %v2715_v50, %v6136_v55 }
 0x277   :  { %v2708_v35 = vmul.f32 %v2706_v51, %v2706_v51 }
 0x278   :  { %v2725_v57 = vadd.f32 1e-05, %v2723_v54 }
 0x279   :  { %v2716_v58 = vsel %vm2031_vm0, %v2708_v35, 0.0 }
 0x27a   :  { %4625 = vrsqrt.f32 %v2725_v57  ;;  %v2717_v59 = vrot.slane %v2716_v58, 4  ;;  %vm2733_vm15 = vweird.f32 %v2725_v57 }
 0x27c   :  { %v2718_v5 = vadd.f32 %v2717_v59, %v2716_v58 }
 0x27e   :  { %v2719_v37 = vrot.slane %v2718_v5, 2 }
 0x280   :  { %v4626_v16 = vpop.eup %4625  ;;  %v2720_v12 = vadd.f32 %v2719_v37, %v2718_v5 }
 0x281   :  { %v2728_v33 = vmul.f32 %v4626_v16, %v2725_v57  ;;  %vm2734_vm14 = vweird.f32 %v4626_v16 }
 0x282   :  { %v2721_v38 = vrot.slane %v2720_v12, 1  ;;  %vm2735_vm0 = vmor %vm2733_vm15, %vm2734_vm14 }
 0x283   :  { %v2729_v61 = vmul.f32 %v4626_v16, %v2728_v33 }
 0x284   :  { %v2722_v63 = vadd.f32 %v2721_v38, %v2720_v12 }
 0x285   :  { %v2730_v1 = vmul.f32 0.5, %v2729_v61 }
 0x286   :  { %v2724_v2 = vmul.f32 %v2722_v63, %v6136_v55  ;;  %v2759_v55 = vperm.slane %v2757_v8, 0 }
 0x287   :  { %v2731_v3 = vsub.f32 1.5, %v2730_v1 }
 0x288   :  { %v2726_v0 = vadd.f32 1e-05, %v2724_v2 }
 0x289   :  { %v2732_v7 = vmul.f32 %v4626_v16, %v2731_v3 }
 0x28a   :  { %4627 = vrsqrt.f32 %v2726_v0  ;;  %vm2743_vm2 = vweird.f32 %v2726_v0 }
 0x28b   :  { %v2736_v11 = vsel %vm2735_vm0, %v4626_v16, %v2732_v7 }
 0x28c   :  { %v2747_v52 = vmul.f32 %v2736_v11, %v6782_v20 }
 0x28e   :  { %v2755_v13 = vmul.f32 %v2751_v10, %v2747_v52 }
 0x290   :  { %v4628_v14 = vpop.eup %4627  ;;  %v2763_v15 = vadd.f32 %v2759_v55, %v2755_v13 }
 0x291   :  { %v2738_v42 = vmul.f32 %v4628_v14, %v2726_v0  ;;  %vm2744_vm1 = vweird.f32 %v4628_v14 }
 0x292   :  { %v2765_v18 = vmax.f32 %v2763_v15, 0.0  ;;  %vm2745_vm3 = vmor %vm2743_vm2, %vm2744_vm1 }
 0x293   :  { %v2739_v25 = vmul.f32 %v4628_v14, %v2738_v42 }
 0x294   :  { %v2767_v26 = vpack.c.bf16 %v2765_v18, %v2765_v18 }
 0x295   :  { %v2740_v9 = vmul.f32 0.5, %v2739_v25 }
 0x296   :  { %2909 = vmatmul.bf16.vlgmr.msra.gmra.mxu0 %v2767_v26 }
 0x297   :  { %v2741_v19 = vsub.f32 1.5, %v2740_v9 }
 0x299   :  { %v2742_v21 = vmul.f32 %v4628_v14, %v2741_v19 }
 0x29b   :  { %v2746_v22 = vsel %vm2745_vm3, %v4628_v14, %v2742_v21 }
 0x29c   :  { %v2748_v23 = vmul.f32 %v2746_v22, %v2706_v51 }
 0x29e   :  { %v2756_v20 = vmul.f32 %v2752_v43, %v2748_v23 }
 0x2a0   :  { %v2764_v27 = vadd.f32 %v2760_v24, %v2756_v20 }
 0x2a2   :  { %v2766_v29 = vmax.f32 %v2764_v27, 0.0 }
 0x2a4   :  { %v2768_v17 = vpack.c.bf16 %v2766_v29, %v2766_v29 }
 0x2a6   :  { %2922 = vmatmul.bf16.vlgmr.msra.gmra.mxu1 %v2768_v17 }
 0x313   :  { %v2910_v30 = vpop.f32.mrf.mxu0 }
 0x314   :  { %v2911_v34 = vadd.f32 %v4614_v32, %v2910_v30 }
 0x31b   :  { %v2912_v31 = vpop.f32.mrf.mxu0 }
 0x323   :  { %v2923_v36 = vpop.f32.mrf.mxu1 }
 0x324   :  { %v2924_v39 = vadd.f32 %v2923_v36, %v2911_v34 }
 0x326   :  { %2928 = vst.msk [vmem:[%s6852_s11] sm:$0x3] %vm2927_vm4, %v2924_v39 }
 0x32b   :  { %v2925_v40 = vpop.f32.mrf.mxu1 }

</bundles_post_ra>
